<compile_context>
chip_gen: v7x
topology: tpu7x:2x2x1
jax: 0.10.0
libtpu: 0.0.40
codegen_flags: <defaults>
</compile_context>

<pallas_src>
import functools

import jax
import jax.numpy as jnp
from jax import lax
from jax.experimental import pallas as pl
from jax.experimental.pallas import tpu as pltpu

IMG = 36                      # frame height/width (hard-coded by the module)
HW = IMG * IMG                # 1296 flattened pixels
HW_PAD = 1408                 # 11 * 128, lane-aligned conv/FC lane width
SHIFT_PAD = IMG + 1           # 37: max |flat shift| of a 3x3 tap
LANE_W = 1536                 # 12 * 128 >= 2*SHIFT_PAD + HW_PAD
# flat lane offset of each 3x3 tap, (kh, kw)-major — matches weight/mask order
OFFSETS = tuple((kh - 1) * IMG + (kw - 1) for kh in range(3) for kw in range(3))


# ----------------------------------------------------------------------------
# Fused encoder kernel: in-kernel 3x3 shift expansion + conv + ReLU + FC + sigmoid
# for a block of F_BLK frames per grid step.
# ----------------------------------------------------------------------------
def _encoder_kernel(x_ref, m_ref, w_ref, cb_ref, fw_ref, fb_ref, o_ref, *,
                    channels, f_blk, hw_pad, shift_pad, offsets):
    # x_ref  : (1, C*F, LANE_W) bf16  raw frames, rows = c*F + f, 37-lane zero pads
    # m_ref  : (9, 1, HW_PAD)   bf16  tap validity masks (0/1)
    # w_ref  : (9, C*F, C*F)    bf16  block-diagonal conv weights kron(W_k, I_F)
    # cb_ref : (C*F, 1)         f32   conv bias (row c*F+f -> b[c])
    # fw_ref : (C, E, HW_PAD)   bf16  transposed FC weight, zero on pad lanes
    # fb_ref : (1, E)           f32   FC bias
    # o_ref  : (F, E)           f32   per-frame encodings for this block
    cf = channels * f_blk
    acc = jnp.zeros((cf, hw_pad), jnp.float32)
    for k, off in enumerate(offsets):
        s = shift_pad + off                                  # static, >= 0
        shifted = x_ref[0, :, pl.ds(s, hw_pad)] * m_ref[k]   # (C*F, HW_PAD) bf16
        acc = acc + jnp.dot(w_ref[k], shifted,
                            preferred_element_type=jnp.float32)
    conv = jnp.maximum(acc + cb_ref[...], 0.0).astype(jnp.bfloat16)  # (C*F, HW_PAD)

    out = fb_ref[...]                                        # (1, E) f32
    for c in range(channels):                                # 3 lane-contracting matmuls
        out = out + lax.dot_general(
            conv[c * f_blk:(c + 1) * f_blk, :], fw_ref[c],
            dimension_numbers=(((1,), (1,)), ((), ())),
            preferred_element_type=jnp.float32)              # (F, E)
    o_ref[...] = jax.nn.sigmoid(out)


def encode_frames(x_cm, params, n_frames, f_blk, channels, enc_dim):
    """x_cm: (G, C*F, LANE_W) bf16 -> (n_frames, enc_dim) f32."""
    g = n_frames // f_blk
    cf = channels * f_blk
    lane_w = x_cm.shape[-1]
    kern = functools.partial(_encoder_kernel, channels=channels, f_blk=f_blk,
                             hw_pad=HW_PAD, shift_pad=SHIFT_PAD, offsets=OFFSETS)
    return pl.pallas_call(
        kern,
        out_shape=jax.ShapeDtypeStruct((n_frames, enc_dim), jnp.float32),
        grid=(g,),
        in_specs=[
            pl.BlockSpec((1, cf, lane_w), lambda i: (i, 0, 0)),
            pl.BlockSpec((9, 1, HW_PAD), lambda i: (0, 0, 0)),
            pl.BlockSpec((9, cf, cf), lambda i: (0, 0, 0)),
            pl.BlockSpec((cf, 1), lambda i: (0, 0)),
            pl.BlockSpec((channels, enc_dim, HW_PAD), lambda i: (0, 0, 0)),
            pl.BlockSpec((1, enc_dim), lambda i: (0, 0)),
        ],
        out_specs=pl.BlockSpec((f_blk, enc_dim), lambda i: (i, 0)),
        compiler_params=pltpu.CompilerParams(dimension_semantics=("parallel",)),
    )(x_cm, params["conv_masks"], params["conv_w_bd"], params["conv_b_col"],
      params["enc_fc_wT"], params["enc_fc_b_row"])


# ----------------------------------------------------------------------------
# Whole LSTM stack in a single pallas_call (time loop inside the kernel)
# ----------------------------------------------------------------------------
def _lstm_stack_kernel(*refs, num_layers, seq_len, batch, hidden):
    # refs: x (T*B, F0) f32; per layer: w_ih (F, 4H) bf16, w_hh (H, 4H) bf16,
    #       bias (1, 4H) f32; out (T, B, H) f32; act scratch (T*B, H) f32.
    x_ref = refs[0]
    w_refs = refs[1:1 + 3 * num_layers]
    out_ref = refs[1 + 3 * num_layers]
    act_ref = refs[2 + 3 * num_layers]
    H = hidden

    for layer in range(num_layers):
        wih = w_refs[3 * layer][...]                         # (F, 4H) bf16
        whh = w_refs[3 * layer + 1][...]                     # (H, 4H) bf16
        b = w_refs[3 * layer + 2][...]                       # (1, 4H) f32
        last = layer == num_layers - 1

        lx = (x_ref[...] if layer == 0 else act_ref[...]).astype(jnp.bfloat16)
        # Hoisted input projection for ALL timesteps, one fused-gate matmul.
        xp = jnp.dot(lx, wih, preferred_element_type=jnp.float32) + b   # (T*B, 4H)

        h = jnp.zeros((batch, H), jnp.float32)
        c = jnp.zeros((batch, H), jnp.float32)
        for t in range(seq_len):                             # serial recurrence only
            gates = xp[t * batch:(t + 1) * batch] + jnp.dot(
                h.astype(jnp.bfloat16), whh,
                preferred_element_type=jnp.float32)          # (B, 4H), one matmul/step
            i_g = jax.nn.sigmoid(gates[:, 0 * H:1 * H])
            f_g = jax.nn.sigmoid(gates[:, 1 * H:2 * H])
            g_g = jnp.tanh(gates[:, 2 * H:3 * H])
            o_g = jax.nn.sigmoid(gates[:, 3 * H:4 * H])
            c = f_g * c + i_g * g_g
            h = o_g * jnp.tanh(c)
            if last:
                out_ref[t] = h
            else:
                act_ref[pl.ds(t * batch, batch), :] = h      # bounds liveness, no concat


def lstm_forward(x_btf, layer_params):
    """Multi-layer LSTM, batch_first (B, T, F) -> (B, T, H), zero init state."""
    B, T, F = x_btf.shape
    H = layer_params[0][1].shape[0]                          # w_hh: (H, 4H)
    x_tb = jnp.transpose(x_btf, (1, 0, 2)).reshape(T * B, F)  # time-major rows
    flat = []
    for (wih, whh, b) in layer_params:
        flat.extend([wih, whh, b])
    # TODO(synk): for large batch on v7x, shard B across the two TensorCores.
    out = pl.pallas_call(
        functools.partial(_lstm_stack_kernel, num_layers=len(layer_params),
                          seq_len=T, batch=B, hidden=H),
        out_shape=jax.ShapeDtypeStruct((T, B, H), jnp.float32),
        scratch_shapes=[pltpu.VMEM((T * B, H), jnp.float32)],
    )(x_tb, *flat)
    return jnp.transpose(out, (1, 0, 2))                     # (B, T, H)


# ----------------------------------------------------------------------------
# Parameters & forward
# ----------------------------------------------------------------------------
def init_params(key, input_channels, hidden_dim, num_layers, n_objs, f_blk):
    C = input_channels
    enc_dim = n_objs * 2
    H = hidden_dim
    keys = jax.random.split(key, 4 + num_layers)

    def u(k, shape, fan_in):
        bound = 1.0 / jnp.sqrt(jnp.float32(fan_in))
        return jax.random.uniform(k, shape, jnp.float32, -bound, bound)

    # synthetic ConvEncoder: 3x3 same conv (C->C) + ReLU, FC -> n_objs*2, sigmoid
    conv_w = u(keys[0], (C, C, 3, 3), C * 9)                 # (Cout, Cin, kh, kw)
    conv_b = u(keys[1], (C,), C * 9)
    enc_fc_w = u(keys[2], (C, HW, enc_dim), C * HW)          # feature order (c, h, w)
    enc_fc_b = u(keys[3], (enc_dim,), C * HW)

    # block-diagonal conv weights: kron(W_k, I_F) so one matmul covers all
    # F_BLK frames of a block (rows/cols are c*F + f).
    eye = jnp.eye(f_blk, dtype=jnp.float32)
    w_bd = jnp.stack([jnp.kron(conv_w[:, :, kh, kw], eye)
                      for kh in range(3) for kw in range(3)], axis=0)  # (9, CF, CF)

    # per-tap validity masks over the padded lane axis
    pos = jnp.arange(HW_PAD)
    row = pos // IMG
    col = pos % IMG
    masks = []
    for kh in range(3):
        for kw in range(3):
            dh, dw = kh - 1, kw - 1
            m = ((pos < HW) & (row + dh >= 0) & (row + dh < IMG)
                 & (col + dw >= 0) & (col + dw < IMG))
            masks.append(m)
    masks = jnp.stack(masks)[:, None, :].astype(jnp.bfloat16)           # (9, 1, HW_PAD)

    # lane-dense transposed FC weight, zero on pad lanes (kills relu(bias) there)
    fc_wT = jnp.transpose(enc_fc_w, (0, 2, 1))                          # (C, E, HW)
    fc_wT = jnp.pad(fc_wT, ((0, 0), (0, 0), (0, HW_PAD - HW)))

    params = {
        "conv_w_bd": w_bd.astype(jnp.bfloat16),
        "conv_b_col": jnp.repeat(conv_b, f_blk).reshape(C * f_blk, 1),
        "conv_masks": masks,
        "enc_fc_wT": fc_wT.astype(jnp.bfloat16),
        "enc_fc_b_row": enc_fc_b.reshape(1, enc_dim),
    }

    # LSTM layers, fused-gate layout (F, 4H)/(H, 4H), gate order (i, f, g, o).
    lstm_layers = []
    feat = enc_dim
    for layer in range(num_layers):
        k0, k1, k2, k3 = jax.random.split(keys[4 + layer], 4)
        wih = u(k0, (feat, 4 * H), H)
        whh = u(k1, (H, 4 * H), H)
        bih = u(k2, (1, 4 * H), H)
        bhh = u(k3, (1, 4 * H), H)
        lstm_layers.append((wih.astype(jnp.bfloat16),
                            whh.astype(jnp.bfloat16),
                            bih + bhh))
        feat = H
    params["lstm"] = lstm_layers
    return params


def physics_predictor_forward(x, params, n_objs, input_steps, f_blk):
    """x: (B, T, C, 36, 36) float32 -> lstm_out: (B, T, hidden_dim)."""
    B, T, C, Hh, Ww = x.shape
    assert (Hh, Ww) == (IMG, IMG)
    enc_dim = n_objs * 2
    n = B * T
    assert n % f_blk == 0, (n, f_blk)
    hw = Hh * Ww

    # Host prep is only the RAW frames (no 9x slab): group channel-major per
    # frame block and add the 37-lane zero pads used by the in-kernel taps.
    frames = x.reshape(n, C, hw)
    g = n // f_blk
    x_cm = frames.reshape(g, f_blk, C, hw).transpose(0, 2, 1, 3).reshape(g, C * f_blk, hw)
    x_cm = jnp.pad(x_cm, ((0, 0), (0, 0), (SHIFT_PAD, LANE_W - SHIFT_PAD - hw)))
    x_cm = x_cm.astype(jnp.bfloat16)

    # --- fused encoder (in-kernel 3x3 shifts + conv + ReLU + FC + sigmoid)
    enc = encode_frames(x_cm, params, n, f_blk, C, enc_dim)   # (B*T, n_objs*2)
    encoded_frames = enc.reshape(B, T, enc_dim)

    # unused in the reference forward as well; DCE'd under jit
    _pos_for_vel_est = encoded_frames[:, :input_steps, :]
    # TODO(synk): ConvSTDecoder output is print-only/discarded in the reference
    #             forward, so it is not computed here.

    # --- LSTM over encoded frames (single kernel, time loop inside)
    lstm_out = lstm_forward(encoded_frames, params["lstm"])
    return lstm_out


# ----------------------------------------------------------------------------
# Main
# ----------------------------------------------------------------------------
if __name__ == "__main__":
    # Small config consistent with the module: frames are 36x36 (hard-coded).
    batch = 2
    input_channels = 3
    hidden_dim = 32
    num_layers = 2
    n_objs = 2
    seq_len = 8
    input_steps = 4

    n_frames = batch * seq_len
    # 8 frames/grid-step: 2 parallel blocks (feeds both v7x TensorCores); on
    # single-TC chips the extra step costs ~0.35 us only.
    f_blk = 8 if n_frames % 8 == 0 else n_frames

    key = jax.random.PRNGKey(0)
    k_x, k_p = jax.random.split(key)
    x = jax.random.normal(k_x, (batch, seq_len, input_channels, 36, 36), jnp.float32)
    params = init_params(k_p, input_channels, hidden_dim, num_layers, n_objs, f_blk)

    fwd = jax.jit(functools.partial(physics_predictor_forward,
                                    n_objs=n_objs, input_steps=input_steps,
                                    f_blk=f_blk))
    out = fwd(x, params)
    out = jax.block_until_ready(out)
    assert out.shape == (batch, seq_len, hidden_dim), out.shape
    print("KERNEL_OK")
</pallas_src>

<mosaic_0001>
module attributes {stable_mosaic.version = 11 : i64} {
  func.func @_encoder_kernel(%arg0: i32, %arg1: memref<1x24x1536xbf16, #tpu.memory_space<vmem>>, %arg2: memref<9x1x1408xbf16, #tpu.memory_space<vmem>>, %arg3: memref<9x24x24xbf16, #tpu.memory_space<vmem>>, %arg4: memref<24x1xf32, #tpu.memory_space<vmem>>, %arg5: memref<3x4x1408xbf16, #tpu.memory_space<vmem>>, %arg6: memref<1x4xf32, #tpu.memory_space<vmem>>, %arg7: memref<8x4xf32, #tpu.memory_space<vmem>>) attributes {dimension_semantics = [#tpu.dimension_semantics<parallel>], iteration_bounds = array<i64: 2>, scalar_prefetch = 0 : i64, scratch_operands = 0 : i64, tpu.core_type = #tpu.core_type<tc>, window_params = [{transform_indices = @transform_0, window_bounds = array<i64: 1, 24, 1536>}, {pipeline_mode = #tpu.pipeline_mode<synchronous>, transform_indices = @transform_1, window_bounds = array<i64: 9, 1, 1408>}, {pipeline_mode = #tpu.pipeline_mode<synchronous>, transform_indices = @transform_2, window_bounds = array<i64: 9, 24, 24>}, {pipeline_mode = #tpu.pipeline_mode<synchronous>, transform_indices = @transform_3, window_bounds = array<i64: 24, 1>}, {pipeline_mode = #tpu.pipeline_mode<synchronous>, transform_indices = @transform_4, window_bounds = array<i64: 3, 4, 1408>}, {pipeline_mode = #tpu.pipeline_mode<synchronous>, transform_indices = @transform_5, window_bounds = array<i64: 1, 4>}, {transform_indices = @transform_6, window_bounds = array<i64: 8, 4>}]} {
    %cst = arith.constant 0.000000e+00 : f32
    %0 = vector.broadcast %cst : f32 to vector<24x1408xf32>
    %c0 = arith.constant 0 : index
    %c0_0 = arith.constant 0 : index
    %c0_1 = arith.constant 0 : index
    %1 = vector.load %arg1[%c0, %c0_0, %c0_1] : memref<1x24x1536xbf16, #tpu.memory_space<vmem>>, vector<1x24x1408xbf16>
    %2 = vector.shape_cast %1 : vector<1x24x1408xbf16> to vector<24x1408xbf16>
    %c0_2 = arith.constant 0 : index
    %c0_3 = arith.constant 0 : index
    %c0_4 = arith.constant 0 : index
    %3 = vector.load %arg2[%c0_2, %c0_3, %c0_4] : memref<9x1x1408xbf16, #tpu.memory_space<vmem>>, vector<1x1x1408xbf16>
    %4 = vector.shape_cast %3 : vector<1x1x1408xbf16> to vector<1x1408xbf16>
    %5 = vector.broadcast %4 : vector<1x1408xbf16> to vector<24x1408xbf16>
    %6 = arith.mulf %2, %5 : vector<24x1408xbf16>
    %c0_5 = arith.constant 0 : index
    %c0_6 = arith.constant 0 : index
    %c0_7 = arith.constant 0 : index
    %7 = vector.load %arg3[%c0_5, %c0_6, %c0_7] : memref<9x24x24xbf16, #tpu.memory_space<vmem>>, vector<1x24x24xbf16>
    %8 = vector.shape_cast %7 : vector<1x24x24xbf16> to vector<24x24xbf16>
    %cst_8 = arith.constant dense<0.000000e+00> : vector<24x1408xf32>
    %9 = tpu.matmul %8, %6, %cst_8 {dimension_numbers = #tpu.dot_dimension_numbers<[1], [0], [0], [1], [0, 0, 1, 1], [], []>} : vector<24x24xbf16>, vector<24x1408xbf16>, vector<24x1408xf32> -> vector<24x1408xf32>
    %10 = arith.addf %0, %9 : vector<24x1408xf32>
    %c0_9 = arith.constant 0 : index
    %c0_10 = arith.constant 0 : index
    %c1 = arith.constant 1 : index
    %11 = vector.load %arg1[%c0_9, %c0_10, %c1] : memref<1x24x1536xbf16, #tpu.memory_space<vmem>>, vector<1x24x1408xbf16>
    %12 = vector.shape_cast %11 : vector<1x24x1408xbf16> to vector<24x1408xbf16>
    %c1_11 = arith.constant 1 : index
    %c0_12 = arith.constant 0 : index
    %c0_13 = arith.constant 0 : index
    %13 = vector.load %arg2[%c1_11, %c0_12, %c0_13] : memref<9x1x1408xbf16, #tpu.memory_space<vmem>>, vector<1x1x1408xbf16>
    %14 = vector.shape_cast %13 : vector<1x1x1408xbf16> to vector<1x1408xbf16>
    %15 = vector.broadcast %14 : vector<1x1408xbf16> to vector<24x1408xbf16>
    %16 = arith.mulf %12, %15 : vector<24x1408xbf16>
    %c1_14 = arith.constant 1 : index
    %c0_15 = arith.constant 0 : index
    %c0_16 = arith.constant 0 : index
    %17 = vector.load %arg3[%c1_14, %c0_15, %c0_16] : memref<9x24x24xbf16, #tpu.memory_space<vmem>>, vector<1x24x24xbf16>
    %18 = vector.shape_cast %17 : vector<1x24x24xbf16> to vector<24x24xbf16>
    %cst_17 = arith.constant dense<0.000000e+00> : vector<24x1408xf32>
    %19 = tpu.matmul %18, %16, %cst_17 {dimension_numbers = #tpu.dot_dimension_numbers<[1], [0], [0], [1], [0, 0, 1, 1], [], []>} : vector<24x24xbf16>, vector<24x1408xbf16>, vector<24x1408xf32> -> vector<24x1408xf32>
    %20 = arith.addf %10, %19 : vector<24x1408xf32>
    %c0_18 = arith.constant 0 : index
    %c0_19 = arith.constant 0 : index
    %c2 = arith.constant 2 : index
    %21 = vector.load %arg1[%c0_18, %c0_19, %c2] : memref<1x24x1536xbf16, #tpu.memory_space<vmem>>, vector<1x24x1408xbf16>
    %22 = vector.shape_cast %21 : vector<1x24x1408xbf16> to vector<24x1408xbf16>
    %c2_20 = arith.constant 2 : index
    %c0_21 = arith.constant 0 : index
    %c0_22 = arith.constant 0 : index
    %23 = vector.load %arg2[%c2_20, %c0_21, %c0_22] : memref<9x1x1408xbf16, #tpu.memory_space<vmem>>, vector<1x1x1408xbf16>
    %24 = vector.shape_cast %23 : vector<1x1x1408xbf16> to vector<1x1408xbf16>
    %25 = vector.broadcast %24 : vector<1x1408xbf16> to vector<24x1408xbf16>
    %26 = arith.mulf %22, %25 : vector<24x1408xbf16>
    %c2_23 = arith.constant 2 : index
    %c0_24 = arith.constant 0 : index
    %c0_25 = arith.constant 0 : index
    %27 = vector.load %arg3[%c2_23, %c0_24, %c0_25] : memref<9x24x24xbf16, #tpu.memory_space<vmem>>, vector<1x24x24xbf16>
    %28 = vector.shape_cast %27 : vector<1x24x24xbf16> to vector<24x24xbf16>
    %cst_26 = arith.constant dense<0.000000e+00> : vector<24x1408xf32>
    %29 = tpu.matmul %28, %26, %cst_26 {dimension_numbers = #tpu.dot_dimension_numbers<[1], [0], [0], [1], [0, 0, 1, 1], [], []>} : vector<24x24xbf16>, vector<24x1408xbf16>, vector<24x1408xf32> -> vector<24x1408xf32>
    %30 = arith.addf %20, %29 : vector<24x1408xf32>
    %c0_27 = arith.constant 0 : index
    %c0_28 = arith.constant 0 : index
    %c36 = arith.constant 36 : index
    %31 = vector.load %arg1[%c0_27, %c0_28, %c36] : memref<1x24x1536xbf16, #tpu.memory_space<vmem>>, vector<1x24x1408xbf16>
    %32 = vector.shape_cast %31 : vector<1x24x1408xbf16> to vector<24x1408xbf16>
    %c3 = arith.constant 3 : index
    %c0_29 = arith.constant 0 : index
    %c0_30 = arith.constant 0 : index
    %33 = vector.load %arg2[%c3, %c0_29, %c0_30] : memref<9x1x1408xbf16, #tpu.memory_space<vmem>>, vector<1x1x1408xbf16>
    %34 = vector.shape_cast %33 : vector<1x1x1408xbf16> to vector<1x1408xbf16>
    %35 = vector.broadcast %34 : vector<1x1408xbf16> to vector<24x1408xbf16>
    %36 = arith.mulf %32, %35 : vector<24x1408xbf16>
    %c3_31 = arith.constant 3 : index
    %c0_32 = arith.constant 0 : index
    %c0_33 = arith.constant 0 : index
    %37 = vector.load %arg3[%c3_31, %c0_32, %c0_33] : memref<9x24x24xbf16, #tpu.memory_space<vmem>>, vector<1x24x24xbf16>
    %38 = vector.shape_cast %37 : vector<1x24x24xbf16> to vector<24x24xbf16>
    %cst_34 = arith.constant dense<0.000000e+00> : vector<24x1408xf32>
    %39 = tpu.matmul %38, %36, %cst_34 {dimension_numbers = #tpu.dot_dimension_numbers<[1], [0], [0], [1], [0, 0, 1, 1], [], []>} : vector<24x24xbf16>, vector<24x1408xbf16>, vector<24x1408xf32> -> vector<24x1408xf32>
    %40 = arith.addf %30, %39 : vector<24x1408xf32>
    %c0_35 = arith.constant 0 : index
    %c0_36 = arith.constant 0 : index
    %c37 = arith.constant 37 : index
    %41 = vector.load %arg1[%c0_35, %c0_36, %c37] : memref<1x24x1536xbf16, #tpu.memory_space<vmem>>, vector<1x24x1408xbf16>
    %42 = vector.shape_cast %41 : vector<1x24x1408xbf16> to vector<24x1408xbf16>
    %c4 = arith.constant 4 : index
    %c0_37 = arith.constant 0 : index
    %c0_38 = arith.constant 0 : index
    %43 = vector.load %arg2[%c4, %c0_37, %c0_38] : memref<9x1x1408xbf16, #tpu.memory_space<vmem>>, vector<1x1x1408xbf16>
    %44 = vector.shape_cast %43 : vector<1x1x1408xbf16> to vector<1x1408xbf16>
    %45 = vector.broadcast %44 : vector<1x1408xbf16> to vector<24x1408xbf16>
    %46 = arith.mulf %42, %45 : vector<24x1408xbf16>
    %c4_39 = arith.constant 4 : index
    %c0_40 = arith.constant 0 : index
    %c0_41 = arith.constant 0 : index
    %47 = vector.load %arg3[%c4_39, %c0_40, %c0_41] : memref<9x24x24xbf16, #tpu.memory_space<vmem>>, vector<1x24x24xbf16>
    %48 = vector.shape_cast %47 : vector<1x24x24xbf16> to vector<24x24xbf16>
    %cst_42 = arith.constant dense<0.000000e+00> : vector<24x1408xf32>
    %49 = tpu.matmul %48, %46, %cst_42 {dimension_numbers = #tpu.dot_dimension_numbers<[1], [0], [0], [1], [0, 0, 1, 1], [], []>} : vector<24x24xbf16>, vector<24x1408xbf16>, vector<24x1408xf32> -> vector<24x1408xf32>
    %50 = arith.addf %40, %49 : vector<24x1408xf32>
    %c0_43 = arith.constant 0 : index
    %c0_44 = arith.constant 0 : index
    %c38 = arith.constant 38 : index
    %51 = vector.load %arg1[%c0_43, %c0_44, %c38] : memref<1x24x1536xbf16, #tpu.memory_space<vmem>>, vector<1x24x1408xbf16>
    %52 = vector.shape_cast %51 : vector<1x24x1408xbf16> to vector<24x1408xbf16>
    %c5 = arith.constant 5 : index
    %c0_45 = arith.constant 0 : index
    %c0_46 = arith.constant 0 : index
    %53 = vector.load %arg2[%c5, %c0_45, %c0_46] : memref<9x1x1408xbf16, #tpu.memory_space<vmem>>, vector<1x1x1408xbf16>
    %54 = vector.shape_cast %53 : vector<1x1x1408xbf16> to vector<1x1408xbf16>
    %55 = vector.broadcast %54 : vector<1x1408xbf16> to vector<24x1408xbf16>
    %56 = arith.mulf %52, %55 : vector<24x1408xbf16>
    %c5_47 = arith.constant 5 : index
    %c0_48 = arith.constant 0 : index
    %c0_49 = arith.constant 0 : index
    %57 = vector.load %arg3[%c5_47, %c0_48, %c0_49] : memref<9x24x24xbf16, #tpu.memory_space<vmem>>, vector<1x24x24xbf16>
    %58 = vector.shape_cast %57 : vector<1x24x24xbf16> to vector<24x24xbf16>
    %cst_50 = arith.constant dense<0.000000e+00> : vector<24x1408xf32>
    %59 = tpu.matmul %58, %56, %cst_50 {dimension_numbers = #tpu.dot_dimension_numbers<[1], [0], [0], [1], [0, 0, 1, 1], [], []>} : vector<24x24xbf16>, vector<24x1408xbf16>, vector<24x1408xf32> -> vector<24x1408xf32>
    %60 = arith.addf %50, %59 : vector<24x1408xf32>
    %c0_51 = arith.constant 0 : index
    %c0_52 = arith.constant 0 : index
    %c72 = arith.constant 72 : index
    %61 = vector.load %arg1[%c0_51, %c0_52, %c72] : memref<1x24x1536xbf16, #tpu.memory_space<vmem>>, vector<1x24x1408xbf16>
    %62 = vector.shape_cast %61 : vector<1x24x1408xbf16> to vector<24x1408xbf16>
    %c6 = arith.constant 6 : index
    %c0_53 = arith.constant 0 : index
    %c0_54 = arith.constant 0 : index
    %63 = vector.load %arg2[%c6, %c0_53, %c0_54] : memref<9x1x1408xbf16, #tpu.memory_space<vmem>>, vector<1x1x1408xbf16>
    %64 = vector.shape_cast %63 : vector<1x1x1408xbf16> to vector<1x1408xbf16>
    %65 = vector.broadcast %64 : vector<1x1408xbf16> to vector<24x1408xbf16>
    %66 = arith.mulf %62, %65 : vector<24x1408xbf16>
    %c6_55 = arith.constant 6 : index
    %c0_56 = arith.constant 0 : index
    %c0_57 = arith.constant 0 : index
    %67 = vector.load %arg3[%c6_55, %c0_56, %c0_57] : memref<9x24x24xbf16, #tpu.memory_space<vmem>>, vector<1x24x24xbf16>
    %68 = vector.shape_cast %67 : vector<1x24x24xbf16> to vector<24x24xbf16>
    %cst_58 = arith.constant dense<0.000000e+00> : vector<24x1408xf32>
    %69 = tpu.matmul %68, %66, %cst_58 {dimension_numbers = #tpu.dot_dimension_numbers<[1], [0], [0], [1], [0, 0, 1, 1], [], []>} : vector<24x24xbf16>, vector<24x1408xbf16>, vector<24x1408xf32> -> vector<24x1408xf32>
    %70 = arith.addf %60, %69 : vector<24x1408xf32>
    %c0_59 = arith.constant 0 : index
    %c0_60 = arith.constant 0 : index
    %c73 = arith.constant 73 : index
    %71 = vector.load %arg1[%c0_59, %c0_60, %c73] : memref<1x24x1536xbf16, #tpu.memory_space<vmem>>, vector<1x24x1408xbf16>
    %72 = vector.shape_cast %71 : vector<1x24x1408xbf16> to vector<24x1408xbf16>
    %c7 = arith.constant 7 : index
    %c0_61 = arith.constant 0 : index
    %c0_62 = arith.constant 0 : index
    %73 = vector.load %arg2[%c7, %c0_61, %c0_62] : memref<9x1x1408xbf16, #tpu.memory_space<vmem>>, vector<1x1x1408xbf16>
    %74 = vector.shape_cast %73 : vector<1x1x1408xbf16> to vector<1x1408xbf16>
    %75 = vector.broadcast %74 : vector<1x1408xbf16> to vector<24x1408xbf16>
    %76 = arith.mulf %72, %75 : vector<24x1408xbf16>
    %c7_63 = arith.constant 7 : index
    %c0_64 = arith.constant 0 : index
    %c0_65 = arith.constant 0 : index
    %77 = vector.load %arg3[%c7_63, %c0_64, %c0_65] : memref<9x24x24xbf16, #tpu.memory_space<vmem>>, vector<1x24x24xbf16>
    %78 = vector.shape_cast %77 : vector<1x24x24xbf16> to vector<24x24xbf16>
    %cst_66 = arith.constant dense<0.000000e+00> : vector<24x1408xf32>
    %79 = tpu.matmul %78, %76, %cst_66 {dimension_numbers = #tpu.dot_dimension_numbers<[1], [0], [0], [1], [0, 0, 1, 1], [], []>} : vector<24x24xbf16>, vector<24x1408xbf16>, vector<24x1408xf32> -> vector<24x1408xf32>
    %80 = arith.addf %70, %79 : vector<24x1408xf32>
    %c0_67 = arith.constant 0 : index
    %c0_68 = arith.constant 0 : index
    %c74 = arith.constant 74 : index
    %81 = vector.load %arg1[%c0_67, %c0_68, %c74] : memref<1x24x1536xbf16, #tpu.memory_space<vmem>>, vector<1x24x1408xbf16>
    %82 = vector.shape_cast %81 : vector<1x24x1408xbf16> to vector<24x1408xbf16>
    %c8 = arith.constant 8 : index
    %c0_69 = arith.constant 0 : index
    %c0_70 = arith.constant 0 : index
    %83 = vector.load %arg2[%c8, %c0_69, %c0_70] : memref<9x1x1408xbf16, #tpu.memory_space<vmem>>, vector<1x1x1408xbf16>
    %84 = vector.shape_cast %83 : vector<1x1x1408xbf16> to vector<1x1408xbf16>
    %85 = vector.broadcast %84 : vector<1x1408xbf16> to vector<24x1408xbf16>
    %86 = arith.mulf %82, %85 : vector<24x1408xbf16>
    %c8_71 = arith.constant 8 : index
    %c0_72 = arith.constant 0 : index
    %c0_73 = arith.constant 0 : index
    %87 = vector.load %arg3[%c8_71, %c0_72, %c0_73] : memref<9x24x24xbf16, #tpu.memory_space<vmem>>, vector<1x24x24xbf16>
    %88 = vector.shape_cast %87 : vector<1x24x24xbf16> to vector<24x24xbf16>
    %cst_74 = arith.constant dense<0.000000e+00> : vector<24x1408xf32>
    %89 = tpu.matmul %88, %86, %cst_74 {dimension_numbers = #tpu.dot_dimension_numbers<[1], [0], [0], [1], [0, 0, 1, 1], [], []>} : vector<24x24xbf16>, vector<24x1408xbf16>, vector<24x1408xf32> -> vector<24x1408xf32>
    %90 = arith.addf %80, %89 : vector<24x1408xf32>
    %c0_75 = arith.constant 0 : index
    %c0_76 = arith.constant 0 : index
    %91 = vector.load %arg4[%c0_75, %c0_76] : memref<24x1xf32, #tpu.memory_space<vmem>>, vector<24x1xf32>
    %92 = vector.broadcast %91 : vector<24x1xf32> to vector<24x1408xf32>
    %93 = arith.addf %90, %92 : vector<24x1408xf32>
    %cst_77 = arith.constant 0.000000e+00 : f32
    %94 = vector.broadcast %cst_77 : f32 to vector<24x1408xf32>
    %95 = arith.maximumf %93, %94 : vector<24x1408xf32>
    %96 = arith.truncf %95 : vector<24x1408xf32> to vector<24x1408xbf16>
    %c0_78 = arith.constant 0 : index
    %c0_79 = arith.constant 0 : index
    %97 = vector.load %arg6[%c0_78, %c0_79] : memref<1x4xf32, #tpu.memory_space<vmem>>, vector<1x4xf32>
    %98 = vector.extract_strided_slice %96 {offsets = [0, 0], sizes = [8, 1408], strides = [1, 1]} : vector<24x1408xbf16> to vector<8x1408xbf16>
    %c0_80 = arith.constant 0 : index
    %c0_81 = arith.constant 0 : index
    %c0_82 = arith.constant 0 : index
    %99 = vector.load %arg5[%c0_80, %c0_81, %c0_82] : memref<3x4x1408xbf16, #tpu.memory_space<vmem>>, vector<1x4x1408xbf16>
    %100 = vector.shape_cast %99 : vector<1x4x1408xbf16> to vector<4x1408xbf16>
    %cst_83 = arith.constant dense<0.000000e+00> : vector<8x4xf32>
    %101 = tpu.matmul %98, %100, %cst_83 {dimension_numbers = #tpu.dot_dimension_numbers<[1], [1], [0], [0], [0, 0, 1, 0], [], []>} : vector<8x1408xbf16>, vector<4x1408xbf16>, vector<8x4xf32> -> vector<8x4xf32>
    %102 = vector.broadcast %97 : vector<1x4xf32> to vector<8x4xf32>
    %103 = arith.addf %102, %101 : vector<8x4xf32>
    %104 = vector.extract_strided_slice %96 {offsets = [8, 0], sizes = [8, 1408], strides = [1, 1]} : vector<24x1408xbf16> to vector<8x1408xbf16>
    %c1_84 = arith.constant 1 : index
    %c0_85 = arith.constant 0 : index
    %c0_86 = arith.constant 0 : index
    %105 = vector.load %arg5[%c1_84, %c0_85, %c0_86] : memref<3x4x1408xbf16, #tpu.memory_space<vmem>>, vector<1x4x1408xbf16>
    %106 = vector.shape_cast %105 : vector<1x4x1408xbf16> to vector<4x1408xbf16>
    %cst_87 = arith.constant dense<0.000000e+00> : vector<8x4xf32>
    %107 = tpu.matmul %104, %106, %cst_87 {dimension_numbers = #tpu.dot_dimension_numbers<[1], [1], [0], [0], [0, 0, 1, 0], [], []>} : vector<8x1408xbf16>, vector<4x1408xbf16>, vector<8x4xf32> -> vector<8x4xf32>
    %108 = arith.addf %103, %107 : vector<8x4xf32>
    %109 = vector.extract_strided_slice %96 {offsets = [16, 0], sizes = [8, 1408], strides = [1, 1]} : vector<24x1408xbf16> to vector<8x1408xbf16>
    %c2_88 = arith.constant 2 : index
    %c0_89 = arith.constant 0 : index
    %c0_90 = arith.constant 0 : index
    %110 = vector.load %arg5[%c2_88, %c0_89, %c0_90] : memref<3x4x1408xbf16, #tpu.memory_space<vmem>>, vector<1x4x1408xbf16>
    %111 = vector.shape_cast %110 : vector<1x4x1408xbf16> to vector<4x1408xbf16>
    %cst_91 = arith.constant dense<0.000000e+00> : vector<8x4xf32>
    %112 = tpu.matmul %109, %111, %cst_91 {dimension_numbers = #tpu.dot_dimension_numbers<[1], [1], [0], [0], [0, 0, 1, 0], [], []>} : vector<8x1408xbf16>, vector<4x1408xbf16>, vector<8x4xf32> -> vector<8x4xf32>
    %113 = arith.addf %108, %112 : vector<8x4xf32>
    %114 = arith.negf %113 : vector<8x4xf32>
    %115 = math.exp %114 : vector<8x4xf32>
    %cst_92 = arith.constant 1.000000e+00 : f32
    %116 = vector.broadcast %cst_92 : f32 to vector<8x4xf32>
    %117 = arith.addf %116, %115 : vector<8x4xf32>
    %118 = arith.divf %116, %117 : vector<8x4xf32>
    %c0_93 = arith.constant 0 : index
    %c0_94 = arith.constant 0 : index
    %119 = vector.load %arg7[%c0_93, %c0_94] : memref<8x4xf32, #tpu.memory_space<vmem>>, vector<8x4xf32>
    tpu.vector_store %arg7[%c0_93, %c0_94], %118 {strides = array<i32>} : memref<8x4xf32, #tpu.memory_space<vmem>>, vector<8x4xf32>,
    return
  }
  func.func @transform_0(%arg0: i32) -> (i32, i32, i32) {
    %c0_i32 = arith.constant 0 : i32
    %c0_i32_0 = arith.constant 0 : i32
    %c0_i32_1 = arith.constant 0 : i32
    return %arg0, %c0_i32, %c0_i32_0 : i32, i32, i32
  }
  func.func @transform_1(%arg0: i32) -> (i32, i32, i32) {
    %c0_i32 = arith.constant 0 : i32
    %c0_i32_0 = arith.constant 0 : i32
    %c0_i32_1 = arith.constant 0 : i32
    %c0_i32_2 = arith.constant 0 : i32
    return %c0_i32, %c0_i32_0, %c0_i32_1 : i32, i32, i32
  }
  func.func @transform_2(%arg0: i32) -> (i32, i32, i32) {
    %c0_i32 = arith.constant 0 : i32
    %c0_i32_0 = arith.constant 0 : i32
    %c0_i32_1 = arith.constant 0 : i32
    %c0_i32_2 = arith.constant 0 : i32
    return %c0_i32, %c0_i32_0, %c0_i32_1 : i32, i32, i32
  }
  func.func @transform_3(%arg0: i32) -> (i32, i32) {
    %c0_i32 = arith.constant 0 : i32
    %c0_i32_0 = arith.constant 0 : i32
    %c0_i32_1 = arith.constant 0 : i32
    return %c0_i32, %c0_i32_0 : i32, i32
  }
  func.func @transform_4(%arg0: i32) -> (i32, i32, i32) {
    %c0_i32 = arith.constant 0 : i32
    %c0_i32_0 = arith.constant 0 : i32
    %c0_i32_1 = arith.constant 0 : i32
    %c0_i32_2 = arith.constant 0 : i32
    return %c0_i32, %c0_i32_0, %c0_i32_1 : i32, i32, i32
  }
  func.func @transform_5(%arg0: i32) -> (i32, i32) {
    %c0_i32 = arith.constant 0 : i32
    %c0_i32_0 = arith.constant 0 : i32
    %c0_i32_1 = arith.constant 0 : i32
    return %c0_i32, %c0_i32_0 : i32, i32
  }
  func.func @transform_6(%arg0: i32) -> (i32, i32) {
    %c0_i32 = arith.constant 0 : i32
    %c0_i32_0 = arith.constant 0 : i32
    return %arg0, %c0_i32 : i32, i32
  }
}

module attributes {stable_mosaic.version = 11 : i64} {
  func.func @_lstm_stack_kernel(%arg0: memref<16x4xf32, #tpu.memory_space<vmem>>, %arg1: memref<4x128xbf16, #tpu.memory_space<vmem>>, %arg2: memref<32x128xbf16, #tpu.memory_space<vmem>>, %arg3: memref<1x128xf32, #tpu.memory_space<vmem>>, %arg4: memref<32x128xbf16, #tpu.memory_space<vmem>>, %arg5: memref<32x128xbf16, #tpu.memory_space<vmem>>, %arg6: memref<1x128xf32, #tpu.memory_space<vmem>>, %arg7: memref<8x2x32xf32, #tpu.memory_space<vmem>>, %arg8: memref<16x32xf32, #tpu.memory_space<vmem>>) attributes {dimension_semantics = [], scalar_prefetch = 0 : i64, scratch_operands = 1 : i64, tpu.core_type = #tpu.core_type<tc>} {
    %c0 = arith.constant 0 : index
    %c0_0 = arith.constant 0 : index
    %0 = vector.load %arg1[%c0, %c0_0] : memref<4x128xbf16, #tpu.memory_space<vmem>>, vector<4x128xbf16>
    %c0_1 = arith.constant 0 : index
    %c0_2 = arith.constant 0 : index
    %1 = vector.load %arg2[%c0_1, %c0_2] : memref<32x128xbf16, #tpu.memory_space<vmem>>, vector<32x128xbf16>
    %c0_3 = arith.constant 0 : index
    %c0_4 = arith.constant 0 : index
    %2 = vector.load %arg3[%c0_3, %c0_4] : memref<1x128xf32, #tpu.memory_space<vmem>>, vector<1x128xf32>
    %c0_5 = arith.constant 0 : index
    %c0_6 = arith.constant 0 : index
    %3 = vector.load %arg0[%c0_5, %c0_6] : memref<16x4xf32, #tpu.memory_space<vmem>>, vector<16x4xf32>
    %4 = arith.truncf %3 : vector<16x4xf32> to vector<16x4xbf16>
    %cst = arith.constant dense<0.000000e+00> : vector<16x128xf32>
    %5 = tpu.matmul %4, %0, %cst {dimension_numbers = #tpu.dot_dimension_numbers<[1], [0], [0], [1], [0, 0, 1, 1], [], []>} : vector<16x4xbf16>, vector<4x128xbf16>, vector<16x128xf32> -> vector<16x128xf32>
    %6 = vector.broadcast %2 : vector<1x128xf32> to vector<16x128xf32>
    %7 = arith.addf %5, %6 : vector<16x128xf32>
    %cst_7 = arith.constant 0.000000e+00 : f32
    %8 = vector.broadcast %cst_7 : f32 to vector<2x32xf32>
    %cst_8 = arith.constant 0.000000e+00 : f32
    %9 = vector.broadcast %cst_8 : f32 to vector<2x32xf32>
    %10 = vector.extract_strided_slice %7 {offsets = [0, 0], sizes = [2, 128], strides = [1, 1]} : vector<16x128xf32> to vector<2x128xf32>
    %11 = arith.truncf %8 : vector<2x32xf32> to vector<2x32xbf16>
    %cst_9 = arith.constant dense<0.000000e+00> : vector<2x128xf32>
    %12 = tpu.matmul %11, %1, %cst_9 {dimension_numbers = #tpu.dot_dimension_numbers<[1], [0], [0], [1], [0, 0, 1, 1], [], []>} : vector<2x32xbf16>, vector<32x128xbf16>, vector<2x128xf32> -> vector<2x128xf32>
    %13 = arith.addf %10, %12 : vector<2x128xf32>
    %14 = vector.extract_strided_slice %13 {offsets = [0, 0], sizes = [2, 32], strides = [1, 1]} : vector<2x128xf32> to vector<2x32xf32>
    %15 = arith.negf %14 : vector<2x32xf32>
    %16 = math.exp %15 : vector<2x32xf32>
    %cst_10 = arith.constant 1.000000e+00 : f32
    %17 = vector.broadcast %cst_10 : f32 to vector<2x32xf32>
    %18 = arith.addf %17, %16 : vector<2x32xf32>
    %19 = arith.divf %17, %18 : vector<2x32xf32>
    %20 = vector.extract_strided_slice %13 {offsets = [0, 32], sizes = [2, 32], strides = [1, 1]} : vector<2x128xf32> to vector<2x32xf32>
    %21 = arith.negf %20 : vector<2x32xf32>
    %22 = math.exp %21 : vector<2x32xf32>
    %cst_11 = arith.constant 1.000000e+00 : f32
    %23 = vector.broadcast %cst_11 : f32 to vector<2x32xf32>
    %24 = arith.addf %23, %22 : vector<2x32xf32>
    %25 = arith.divf %23, %24 : vector<2x32xf32>
    %26 = vector.extract_strided_slice %13 {offsets = [0, 64], sizes = [2, 32], strides = [1, 1]} : vector<2x128xf32> to vector<2x32xf32>
    %27 = math.tanh %26 : vector<2x32xf32>
    %28 = vector.extract_strided_slice %13 {offsets = [0, 96], sizes = [2, 32], strides = [1, 1]} : vector<2x128xf32> to vector<2x32xf32>
    %29 = arith.negf %28 : vector<2x32xf32>
    %30 = math.exp %29 : vector<2x32xf32>
    %cst_12 = arith.constant 1.000000e+00 : f32
    %31 = vector.broadcast %cst_12 : f32 to vector<2x32xf32>
    %32 = arith.addf %31, %30 : vector<2x32xf32>
    %33 = arith.divf %31, %32 : vector<2x32xf32>
    %34 = arith.mulf %25, %9 : vector<2x32xf32>
    %35 = arith.mulf %19, %27 : vector<2x32xf32>
    %36 = arith.addf %34, %35 : vector<2x32xf32>
    %37 = math.tanh %36 : vector<2x32xf32>
    %38 = arith.mulf %33, %37 : vector<2x32xf32>
    %c0_13 = arith.constant 0 : index
    %c0_14 = arith.constant 0 : index
    %39 = vector.load %arg8[%c0_13, %c0_14] : memref<16x32xf32, #tpu.memory_space<vmem>>, vector<2x32xf32>
    tpu.vector_store %arg8[%c0_13, %c0_14], %38 {strides = array<i32>} : memref<16x32xf32, #tpu.memory_space<vmem>>, vector<2x32xf32>,
    %40 = vector.extract_strided_slice %7 {offsets = [2, 0], sizes = [2, 128], strides = [1, 1]} : vector<16x128xf32> to vector<2x128xf32>
    %41 = arith.truncf %38 : vector<2x32xf32> to vector<2x32xbf16>
    %cst_15 = arith.constant dense<0.000000e+00> : vector<2x128xf32>
    %42 = tpu.matmul %41, %1, %cst_15 {dimension_numbers = #tpu.dot_dimension_numbers<[1], [0], [0], [1], [0, 0, 1, 1], [], []>} : vector<2x32xbf16>, vector<32x128xbf16>, vector<2x128xf32> -> vector<2x128xf32>
    %43 = arith.addf %40, %42 : vector<2x128xf32>
    %44 = vector.extract_strided_slice %43 {offsets = [0, 0], sizes = [2, 32], strides = [1, 1]} : vector<2x128xf32> to vector<2x32xf32>
    %45 = arith.negf %44 : vector<2x32xf32>
    %46 = math.exp %45 : vector<2x32xf32>
    %cst_16 = arith.constant 1.000000e+00 : f32
    %47 = vector.broadcast %cst_16 : f32 to vector<2x32xf32>
    %48 = arith.addf %47, %46 : vector<2x32xf32>
    %49 = arith.divf %47, %48 : vector<2x32xf32>
    %50 = vector.extract_strided_slice %43 {offsets = [0, 32], sizes = [2, 32], strides = [1, 1]} : vector<2x128xf32> to vector<2x32xf32>
    %51 = arith.negf %50 : vector<2x32xf32>
    %52 = math.exp %51 : vector<2x32xf32>
    %cst_17 = arith.constant 1.000000e+00 : f32
    %53 = vector.broadcast %cst_17 : f32 to vector<2x32xf32>
    %54 = arith.addf %53, %52 : vector<2x32xf32>
    %55 = arith.divf %53, %54 : vector<2x32xf32>
    %56 = vector.extract_strided_slice %43 {offsets = [0, 64], sizes = [2, 32], strides = [1, 1]} : vector<2x128xf32> to vector<2x32xf32>
    %57 = math.tanh %56 : vector<2x32xf32>
    %58 = vector.extract_strided_slice %43 {offsets = [0, 96], sizes = [2, 32], strides = [1, 1]} : vector<2x128xf32> to vector<2x32xf32>
    %59 = arith.negf %58 : vector<2x32xf32>
    %60 = math.exp %59 : vector<2x32xf32>
    %cst_18 = arith.constant 1.000000e+00 : f32
    %61 = vector.broadcast %cst_18 : f32 to vector<2x32xf32>
    %62 = arith.addf %61, %60 : vector<2x32xf32>
    %63 = arith.divf %61, %62 : vector<2x32xf32>
    %64 = arith.mulf %55, %36 : vector<2x32xf32>
    %65 = arith.mulf %49, %57 : vector<2x32xf32>
    %66 = arith.addf %64, %65 : vector<2x32xf32>
    %67 = math.tanh %66 : vector<2x32xf32>
    %68 = arith.mulf %63, %67 : vector<2x32xf32>
    %c2 = arith.constant 2 : index
    %c0_19 = arith.constant 0 : index
    %69 = vector.load %arg8[%c2, %c0_19] : memref<16x32xf32, #tpu.memory_space<vmem>>, vector<2x32xf32>
    tpu.vector_store %arg8[%c2, %c0_19], %68 {strides = array<i32>} : memref<16x32xf32, #tpu.memory_space<vmem>>, vector<2x32xf32>,
    %70 = vector.extract_strided_slice %7 {offsets = [4, 0], sizes = [2, 128], strides = [1, 1]} : vector<16x128xf32> to vector<2x128xf32>
    %71 = arith.truncf %68 : vector<2x32xf32> to vector<2x32xbf16>
    %cst_20 = arith.constant dense<0.000000e+00> : vector<2x128xf32>
    %72 = tpu.matmul %71, %1, %cst_20 {dimension_numbers = #tpu.dot_dimension_numbers<[1], [0], [0], [1], [0, 0, 1, 1], [], []>} : vector<2x32xbf16>, vector<32x128xbf16>, vector<2x128xf32> -> vector<2x128xf32>
    %73 = arith.addf %70, %72 : vector<2x128xf32>
    %74 = vector.extract_strided_slice %73 {offsets = [0, 0], sizes = [2, 32], strides = [1, 1]} : vector<2x128xf32> to vector<2x32xf32>
    %75 = arith.negf %74 : vector<2x32xf32>
    %76 = math.exp %75 : vector<2x32xf32>
    %cst_21 = arith.constant 1.000000e+00 : f32
    %77 = vector.broadcast %cst_21 : f32 to vector<2x32xf32>
    %78 = arith.addf %77, %76 : vector<2x32xf32>
    %79 = arith.divf %77, %78 : vector<2x32xf32>
    %80 = vector.extract_strided_slice %73 {offsets = [0, 32], sizes = [2, 32], strides = [1, 1]} : vector<2x128xf32> to vector<2x32xf32>
    %81 = arith.negf %80 : vector<2x32xf32>
    %82 = math.exp %81 : vector<2x32xf32>
    %cst_22 = arith.constant 1.000000e+00 : f32
    %83 = vector.broadcast %cst_22 : f32 to vector<2x32xf32>
    %84 = arith.addf %83, %82 : vector<2x32xf32>
    %85 = arith.divf %83, %84 : vector<2x32xf32>
    %86 = vector.extract_strided_slice %73 {offsets = [0, 64], sizes = [2, 32], strides = [1, 1]} : vector<2x128xf32> to vector<2x32xf32>
    %87 = math.tanh %86 : vector<2x32xf32>
    %88 = vector.extract_strided_slice %73 {offsets = [0, 96], sizes = [2, 32], strides = [1, 1]} : vector<2x128xf32> to vector<2x32xf32>
    %89 = arith.negf %88 : vector<2x32xf32>
    %90 = math.exp %89 : vector<2x32xf32>
    %cst_23 = arith.constant 1.000000e+00 : f32
    %91 = vector.broadcast %cst_23 : f32 to vector<2x32xf32>
    %92 = arith.addf %91, %90 : vector<2x32xf32>
    %93 = arith.divf %91, %92 : vector<2x32xf32>
    %94 = arith.mulf %85, %66 : vector<2x32xf32>
    %95 = arith.mulf %79, %87 : vector<2x32xf32>
    %96 = arith.addf %94, %95 : vector<2x32xf32>
    %97 = math.tanh %96 : vector<2x32xf32>
    %98 = arith.mulf %93, %97 : vector<2x32xf32>
    %c4 = arith.constant 4 : index
    %c0_24 = arith.constant 0 : index
    %99 = vector.load %arg8[%c4, %c0_24] : memref<16x32xf32, #tpu.memory_space<vmem>>, vector<2x32xf32>
    tpu.vector_store %arg8[%c4, %c0_24], %98 {strides = array<i32>} : memref<16x32xf32, #tpu.memory_space<vmem>>, vector<2x32xf32>,
    %100 = vector.extract_strided_slice %7 {offsets = [6, 0], sizes = [2, 128], strides = [1, 1]} : vector<16x128xf32> to vector<2x128xf32>
    %101 = arith.truncf %98 : vector<2x32xf32> to vector<2x32xbf16>
    %cst_25 = arith.constant dense<0.000000e+00> : vector<2x128xf32>
    %102 = tpu.matmul %101, %1, %cst_25 {dimension_numbers = #tpu.dot_dimension_numbers<[1], [0], [0], [1], [0, 0, 1, 1], [], []>} : vector<2x32xbf16>, vector<32x128xbf16>, vector<2x128xf32> -> vector<2x128xf32>
    %103 = arith.addf %100, %102 : vector<2x128xf32>
    %104 = vector.extract_strided_slice %103 {offsets = [0, 0], sizes = [2, 32], strides = [1, 1]} : vector<2x128xf32> to vector<2x32xf32>
    %105 = arith.negf %104 : vector<2x32xf32>
    %106 = math.exp %105 : vector<2x32xf32>
    %cst_26 = arith.constant 1.000000e+00 : f32
    %107 = vector.broadcast %cst_26 : f32 to vector<2x32xf32>
    %108 = arith.addf %107, %106 : vector<2x32xf32>
    %109 = arith.divf %107, %108 : vector<2x32xf32>
    %110 = vector.extract_strided_slice %103 {offsets = [0, 32], sizes = [2, 32], strides = [1, 1]} : vector<2x128xf32> to vector<2x32xf32>
    %111 = arith.negf %110 : vector<2x32xf32>
    %112 = math.exp %111 : vector<2x32xf32>
    %cst_27 = arith.constant 1.000000e+00 : f32
    %113 = vector.broadcast %cst_27 : f32 to vector<2x32xf32>
    %114 = arith.addf %113, %112 : vector<2x32xf32>
    %115 = arith.divf %113, %114 : vector<2x32xf32>
    %116 = vector.extract_strided_slice %103 {offsets = [0, 64], sizes = [2, 32], strides = [1, 1]} : vector<2x128xf32> to vector<2x32xf32>
    %117 = math.tanh %116 : vector<2x32xf32>
    %118 = vector.extract_strided_slice %103 {offsets = [0, 96], sizes = [2, 32], strides = [1, 1]} : vector<2x128xf32> to vector<2x32xf32>
    %119 = arith.negf %118 : vector<2x32xf32>
    %120 = math.exp %119 : vector<2x32xf32>
    %cst_28 = arith.constant 1.000000e+00 : f32
    %121 = vector.broadcast %cst_28 : f32 to vector<2x32xf32>
    %122 = arith.addf %121, %120 : vector<2x32xf32>
    %123 = arith.divf %121, %122 : vector<2x32xf32>
    %124 = arith.mulf %115, %96 : vector<2x32xf32>
    %125 = arith.mulf %109, %117 : vector<2x32xf32>
    %126 = arith.addf %124, %125 : vector<2x32xf32>
    %127 = math.tanh %126 : vector<2x32xf32>
    %128 = arith.mulf %123, %127 : vector<2x32xf32>
    %c6 = arith.constant 6 : index
    %c0_29 = arith.constant 0 : index
    %129 = vector.load %arg8[%c6, %c0_29] : memref<16x32xf32, #tpu.memory_space<vmem>>, vector<2x32xf32>
    tpu.vector_store %arg8[%c6, %c0_29], %128 {strides = array<i32>} : memref<16x32xf32, #tpu.memory_space<vmem>>, vector<2x32xf32>,
    %130 = vector.extract_strided_slice %7 {offsets = [8, 0], sizes = [2, 128], strides = [1, 1]} : vector<16x128xf32> to vector<2x128xf32>
    %131 = arith.truncf %128 : vector<2x32xf32> to vector<2x32xbf16>
    %cst_30 = arith.constant dense<0.000000e+00> : vector<2x128xf32>
    %132 = tpu.matmul %131, %1, %cst_30 {dimension_numbers = #tpu.dot_dimension_numbers<[1], [0], [0], [1], [0, 0, 1, 1], [], []>} : vector<2x32xbf16>, vector<32x128xbf16>, vector<2x128xf32> -> vector<2x128xf32>
    %133 = arith.addf %130, %132 : vector<2x128xf32>
    %134 = vector.extract_strided_slice %133 {offsets = [0, 0], sizes = [2, 32], strides = [1, 1]} : vector<2x128xf32> to vector<2x32xf32>
    %135 = arith.negf %134 : vector<2x32xf32>
    %136 = math.exp %135 : vector<2x32xf32>
    %cst_31 = arith.constant 1.000000e+00 : f32
    %137 = vector.broadcast %cst_31 : f32 to vector<2x32xf32>
    %138 = arith.addf %137, %136 : vector<2x32xf32>
    %139 = arith.divf %137, %138 : vector<2x32xf32>
    %140 = vector.extract_strided_slice %133 {offsets = [0, 32], sizes = [2, 32], strides = [1, 1]} : vector<2x128xf32> to vector<2x32xf32>
    %141 = arith.negf %140 : vector<2x32xf32>
    %142 = math.exp %141 : vector<2x32xf32>
    %cst_32 = arith.constant 1.000000e+00 : f32
    %143 = vector.broadcast %cst_32 : f32 to vector<2x32xf32>
    %144 = arith.addf %143, %142 : vector<2x32xf32>
    %145 = arith.divf %143, %144 : vector<2x32xf32>
    %146 = vector.extract_strided_slice %133 {offsets = [0, 64], sizes = [2, 32], strides = [1, 1]} : vector<2x128xf32> to vector<2x32xf32>
    %147 = math.tanh %146 : vector<2x32xf32>
    %148 = vector.extract_strided_slice %133 {offsets = [0, 96], sizes = [2, 32], strides = [1, 1]} : vector<2x128xf32> to vector<2x32xf32>
    %149 = arith.negf %148 : vector<2x32xf32>
    %150 = math.exp %149 : vector<2x32xf32>
    %cst_33 = arith.constant 1.000000e+00 : f32
    %151 = vector.broadcast %cst_33 : f32 to vector<2x32xf32>
    %152 = arith.addf %151, %150 : vector<2x32xf32>
    %153 = arith.divf %151, %152 : vector<2x32xf32>
    %154 = arith.mulf %145, %126 : vector<2x32xf32>
    %155 = arith.mulf %139, %147 : vector<2x32xf32>
    %156 = arith.addf %154, %155 : vector<2x32xf32>
    %157 = math.tanh %156 : vector<2x32xf32>
    %158 = arith.mulf %153, %157 : vector<2x32xf32>
    %c8 = arith.constant 8 : index
    %c0_34 = arith.constant 0 : index
    %159 = vector.load %arg8[%c8, %c0_34] : memref<16x32xf32, #tpu.memory_space<vmem>>, vector<2x32xf32>
    tpu.vector_store %arg8[%c8, %c0_34], %158 {strides = array<i32>} : memref<16x32xf32, #tpu.memory_space<vmem>>, vector<2x32xf32>,
    %160 = vector.extract_strided_slice %7 {offsets = [10, 0], sizes = [2, 128], strides = [1, 1]} : vector<16x128xf32> to vector<2x128xf32>
    %161 = arith.truncf %158 : vector<2x32xf32> to vector<2x32xbf16>
    %cst_35 = arith.constant dense<0.000000e+00> : vector<2x128xf32>
    %162 = tpu.matmul %161, %1, %cst_35 {dimension_numbers = #tpu.dot_dimension_numbers<[1], [0], [0], [1], [0, 0, 1, 1], [], []>} : vector<2x32xbf16>, vector<32x128xbf16>, vector<2x128xf32> -> vector<2x128xf32>
    %163 = arith.addf %160, %162 : vector<2x128xf32>
    %164 = vector.extract_strided_slice %163 {offsets = [0, 0], sizes = [2, 32], strides = [1, 1]} : vector<2x128xf32> to vector<2x32xf32>
    %165 = arith.negf %164 : vector<2x32xf32>
    %166 = math.exp %165 : vector<2x32xf32>
    %cst_36 = arith.constant 1.000000e+00 : f32
    %167 = vector.broadcast %cst_36 : f32 to vector<2x32xf32>
    %168 = arith.addf %167, %166 : vector<2x32xf32>
    %169 = arith.divf %167, %168 : vector<2x32xf32>
    %170 = vector.extract_strided_slice %163 {offsets = [0, 32], sizes = [2, 32], strides = [1, 1]} : vector<2x128xf32> to vector<2x32xf32>
    %171 = arith.negf %170 : vector<2x32xf32>
    %172 = math.exp %171 : vector<2x32xf32>
    %cst_37 = arith.constant 1.000000e+00 : f32
    %173 = vector.broadcast %cst_37 : f32 to vector<2x32xf32>
    %174 = arith.addf %173, %172 : vector<2x32xf32>
    %175 = arith.divf %173, %174 : vector<2x32xf32>
    %176 = vector.extract_strided_slice %163 {offsets = [0, 64], sizes = [2, 32], strides = [1, 1]} : vector<2x128xf32> to vector<2x32xf32>
    %177 = math.tanh %176 : vector<2x32xf32>
    %178 = vector.extract_strided_slice %163 {offsets = [0, 96], sizes = [2, 32], strides = [1, 1]} : vector<2x128xf32> to vector<2x32xf32>
    %179 = arith.negf %178 : vector<2x32xf32>
    %180 = math.exp %179 : vector<2x32xf32>
    %cst_38 = arith.constant 1.000000e+00 : f32
    %181 = vector.broadcast %cst_38 : f32 to vector<2x32xf32>
    %182 = arith.addf %181, %180 : vector<2x32xf32>
    %183 = arith.divf %181, %182 : vector<2x32xf32>
    %184 = arith.mulf %175, %156 : vector<2x32xf32>
    %185 = arith.mulf %169, %177 : vector<2x32xf32>
    %186 = arith.addf %184, %185 : vector<2x32xf32>
    %187 = math.tanh %186 : vector<2x32xf32>
    %188 = arith.mulf %183, %187 : vector<2x32xf32>
    %c10 = arith.constant 10 : index
    %c0_39 = arith.constant 0 : index
    %189 = vector.load %arg8[%c10, %c0_39] : memref<16x32xf32, #tpu.memory_space<vmem>>, vector<2x32xf32>
    tpu.vector_store %arg8[%c10, %c0_39], %188 {strides = array<i32>} : memref<16x32xf32, #tpu.memory_space<vmem>>, vector<2x32xf32>,
    %190 = vector.extract_strided_slice %7 {offsets = [12, 0], sizes = [2, 128], strides = [1, 1]} : vector<16x128xf32> to vector<2x128xf32>
    %191 = arith.truncf %188 : vector<2x32xf32> to vector<2x32xbf16>
    %cst_40 = arith.constant dense<0.000000e+00> : vector<2x128xf32>
    %192 = tpu.matmul %191, %1, %cst_40 {dimension_numbers = #tpu.dot_dimension_numbers<[1], [0], [0], [1], [0, 0, 1, 1], [], []>} : vector<2x32xbf16>, vector<32x128xbf16>, vector<2x128xf32> -> vector<2x128xf32>
    %193 = arith.addf %190, %192 : vector<2x128xf32>
    %194 = vector.extract_strided_slice %193 {offsets = [0, 0], sizes = [2, 32], strides = [1, 1]} : vector<2x128xf32> to vector<2x32xf32>
    %195 = arith.negf %194 : vector<2x32xf32>
    %196 = math.exp %195 : vector<2x32xf32>
    %cst_41 = arith.constant 1.000000e+00 : f32
    %197 = vector.broadcast %cst_41 : f32 to vector<2x32xf32>
    %198 = arith.addf %197, %196 : vector<2x32xf32>
    %199 = arith.divf %197, %198 : vector<2x32xf32>
    %200 = vector.extract_strided_slice %193 {offsets = [0, 32], sizes = [2, 32], strides = [1, 1]} : vector<2x128xf32> to vector<2x32xf32>
    %201 = arith.negf %200 : vector<2x32xf32>
    %202 = math.exp %201 : vector<2x32xf32>
    %cst_42 = arith.constant 1.000000e+00 : f32
    %203 = vector.broadcast %cst_42 : f32 to vector<2x32xf32>
    %204 = arith.addf %203, %202 : vector<2x32xf32>
    %205 = arith.divf %203, %204 : vector<2x32xf32>
    %206 = vector.extract_strided_slice %193 {offsets = [0, 64], sizes = [2, 32], strides = [1, 1]} : vector<2x128xf32> to vector<2x32xf32>
    %207 = math.tanh %206 : vector<2x32xf32>
    %208 = vector.extract_strided_slice %193 {offsets = [0, 96], sizes = [2, 32], strides = [1, 1]} : vector<2x128xf32> to vector<2x32xf32>
    %209 = arith.negf %208 : vector<2x32xf32>
    %210 = math.exp %209 : vector<2x32xf32>
    %cst_43 = arith.constant 1.000000e+00 : f32
    %211 = vector.broadcast %cst_43 : f32 to vector<2x32xf32>
    %212 = arith.addf %211, %210 : vector<2x32xf32>
    %213 = arith.divf %211, %212 : vector<2x32xf32>
    %214 = arith.mulf %205, %186 : vector<2x32xf32>
    %215 = arith.mulf %199, %207 : vector<2x32xf32>
    %216 = arith.addf %214, %215 : vector<2x32xf32>
    %217 = math.tanh %216 : vector<2x32xf32>
    %218 = arith.mulf %213, %217 : vector<2x32xf32>
    %c12 = arith.constant 12 : index
    %c0_44 = arith.constant 0 : index
    %219 = vector.load %arg8[%c12, %c0_44] : memref<16x32xf32, #tpu.memory_space<vmem>>, vector<2x32xf32>
    tpu.vector_store %arg8[%c12, %c0_44], %218 {strides = array<i32>} : memref<16x32xf32, #tpu.memory_space<vmem>>, vector<2x32xf32>,
    %220 = vector.extract_strided_slice %7 {offsets = [14, 0], sizes = [2, 128], strides = [1, 1]} : vector<16x128xf32> to vector<2x128xf32>
    %221 = arith.truncf %218 : vector<2x32xf32> to vector<2x32xbf16>
    %cst_45 = arith.constant dense<0.000000e+00> : vector<2x128xf32>
    %222 = tpu.matmul %221, %1, %cst_45 {dimension_numbers = #tpu.dot_dimension_numbers<[1], [0], [0], [1], [0, 0, 1, 1], [], []>} : vector<2x32xbf16>, vector<32x128xbf16>, vector<2x128xf32> -> vector<2x128xf32>
    %223 = arith.addf %220, %222 : vector<2x128xf32>
    %224 = vector.extract_strided_slice %223 {offsets = [0, 0], sizes = [2, 32], strides = [1, 1]} : vector<2x128xf32> to vector<2x32xf32>
    %225 = arith.negf %224 : vector<2x32xf32>
    %226 = math.exp %225 : vector<2x32xf32>
    %cst_46 = arith.constant 1.000000e+00 : f32
    %227 = vector.broadcast %cst_46 : f32 to vector<2x32xf32>
    %228 = arith.addf %227, %226 : vector<2x32xf32>
    %229 = arith.divf %227, %228 : vector<2x32xf32>
    %230 = vector.extract_strided_slice %223 {offsets = [0, 32], sizes = [2, 32], strides = [1, 1]} : vector<2x128xf32> to vector<2x32xf32>
    %231 = arith.negf %230 : vector<2x32xf32>
    %232 = math.exp %231 : vector<2x32xf32>
    %cst_47 = arith.constant 1.000000e+00 : f32
    %233 = vector.broadcast %cst_47 : f32 to vector<2x32xf32>
    %234 = arith.addf %233, %232 : vector<2x32xf32>
    %235 = arith.divf %233, %234 : vector<2x32xf32>
    %236 = vector.extract_strided_slice %223 {offsets = [0, 64], sizes = [2, 32], strides = [1, 1]} : vector<2x128xf32> to vector<2x32xf32>
    %237 = math.tanh %236 : vector<2x32xf32>
    %238 = vector.extract_strided_slice %223 {offsets = [0, 96], sizes = [2, 32], strides = [1, 1]} : vector<2x128xf32> to vector<2x32xf32>
    %239 = arith.negf %238 : vector<2x32xf32>
    %240 = math.exp %239 : vector<2x32xf32>
    %cst_48 = arith.constant 1.000000e+00 : f32
    %241 = vector.broadcast %cst_48 : f32 to vector<2x32xf32>
    %242 = arith.addf %241, %240 : vector<2x32xf32>
    %243 = arith.divf %241, %242 : vector<2x32xf32>
    %244 = arith.mulf %235, %216 : vector<2x32xf32>
    %245 = arith.mulf %229, %237 : vector<2x32xf32>
    %246 = arith.addf %244, %245 : vector<2x32xf32>
    %247 = math.tanh %246 : vector<2x32xf32>
    %248 = arith.mulf %243, %247 : vector<2x32xf32>
    %c14 = arith.constant 14 : index
    %c0_49 = arith.constant 0 : index
    %249 = vector.load %arg8[%c14, %c0_49] : memref<16x32xf32, #tpu.memory_space<vmem>>, vector<2x32xf32>
    tpu.vector_store %arg8[%c14, %c0_49], %248 {strides = array<i32>} : memref<16x32xf32, #tpu.memory_space<vmem>>, vector<2x32xf32>,
    %c0_50 = arith.constant 0 : index
    %c0_51 = arith.constant 0 : index
    %250 = vector.load %arg4[%c0_50, %c0_51] : memref<32x128xbf16, #tpu.memory_space<vmem>>, vector<32x128xbf16>
    %c0_52 = arith.constant 0 : index
    %c0_53 = arith.constant 0 : index
    %251 = vector.load %arg5[%c0_52, %c0_53] : memref<32x128xbf16, #tpu.memory_space<vmem>>, vector<32x128xbf16>
    %c0_54 = arith.constant 0 : index
    %c0_55 = arith.constant 0 : index
    %252 = vector.load %arg6[%c0_54, %c0_55] : memref<1x128xf32, #tpu.memory_space<vmem>>, vector<1x128xf32>
    %c0_56 = arith.constant 0 : index
    %c0_57 = arith.constant 0 : index
    %253 = vector.load %arg8[%c0_56, %c0_57] : memref<16x32xf32, #tpu.memory_space<vmem>>, vector<16x32xf32>
    %254 = arith.truncf %253 : vector<16x32xf32> to vector<16x32xbf16>
    %cst_58 = arith.constant dense<0.000000e+00> : vector<16x128xf32>
    %255 = tpu.matmul %254, %250, %cst_58 {dimension_numbers = #tpu.dot_dimension_numbers<[1], [0], [0], [1], [0, 0, 1, 1], [], []>} : vector<16x32xbf16>, vector<32x128xbf16>, vector<16x128xf32> -> vector<16x128xf32>
    %256 = vector.broadcast %252 : vector<1x128xf32> to vector<16x128xf32>
    %257 = arith.addf %255, %256 : vector<16x128xf32>
    %cst_59 = arith.constant 0.000000e+00 : f32
    %258 = vector.broadcast %cst_59 : f32 to vector<2x32xf32>
    %cst_60 = arith.constant 0.000000e+00 : f32
    %259 = vector.broadcast %cst_60 : f32 to vector<2x32xf32>
    %260 = vector.extract_strided_slice %257 {offsets = [0, 0], sizes = [2, 128], strides = [1, 1]} : vector<16x128xf32> to vector<2x128xf32>
    %261 = arith.truncf %258 : vector<2x32xf32> to vector<2x32xbf16>
    %cst_61 = arith.constant dense<0.000000e+00> : vector<2x128xf32>
    %262 = tpu.matmul %261, %251, %cst_61 {dimension_numbers = #tpu.dot_dimension_numbers<[1], [0], [0], [1], [0, 0, 1, 1], [], []>} : vector<2x32xbf16>, vector<32x128xbf16>, vector<2x128xf32> -> vector<2x128xf32>
    %263 = arith.addf %260, %262 : vector<2x128xf32>
    %264 = vector.extract_strided_slice %263 {offsets = [0, 0], sizes = [2, 32], strides = [1, 1]} : vector<2x128xf32> to vector<2x32xf32>
    %265 = arith.negf %264 : vector<2x32xf32>
    %266 = math.exp %265 : vector<2x32xf32>
    %cst_62 = arith.constant 1.000000e+00 : f32
    %267 = vector.broadcast %cst_62 : f32 to vector<2x32xf32>
    %268 = arith.addf %267, %266 : vector<2x32xf32>
    %269 = arith.divf %267, %268 : vector<2x32xf32>
    %270 = vector.extract_strided_slice %263 {offsets = [0, 32], sizes = [2, 32], strides = [1, 1]} : vector<2x128xf32> to vector<2x32xf32>
    %271 = arith.negf %270 : vector<2x32xf32>
    %272 = math.exp %271 : vector<2x32xf32>
    %cst_63 = arith.constant 1.000000e+00 : f32
    %273 = vector.broadcast %cst_63 : f32 to vector<2x32xf32>
    %274 = arith.addf %273, %272 : vector<2x32xf32>
    %275 = arith.divf %273, %274 : vector<2x32xf32>
    %276 = vector.extract_strided_slice %263 {offsets = [0, 64], sizes = [2, 32], strides = [1, 1]} : vector<2x128xf32> to vector<2x32xf32>
    %277 = math.tanh %276 : vector<2x32xf32>
    %278 = vector.extract_strided_slice %263 {offsets = [0, 96], sizes = [2, 32], strides = [1, 1]} : vector<2x128xf32> to vector<2x32xf32>
    %279 = arith.negf %278 : vector<2x32xf32>
    %280 = math.exp %279 : vector<2x32xf32>
    %cst_64 = arith.constant 1.000000e+00 : f32
    %281 = vector.broadcast %cst_64 : f32 to vector<2x32xf32>
    %282 = arith.addf %281, %280 : vector<2x32xf32>
    %283 = arith.divf %281, %282 : vector<2x32xf32>
    %284 = arith.mulf %275, %259 : vector<2x32xf32>
    %285 = arith.mulf %269, %277 : vector<2x32xf32>
    %286 = arith.addf %284, %285 : vector<2x32xf32>
    %287 = math.tanh %286 : vector<2x32xf32>
    %288 = arith.mulf %283, %287 : vector<2x32xf32>
    %c0_65 = arith.constant 0 : index
    %c0_66 = arith.constant 0 : index
    %c0_67 = arith.constant 0 : index
    %289 = vector.load %arg7[%c0_65, %c0_66, %c0_67] : memref<8x2x32xf32, #tpu.memory_space<vmem>>, vector<1x2x32xf32>
    %290 = vector.shape_cast %289 : vector<1x2x32xf32> to vector<2x32xf32>
    %291 = vector.shape_cast %288 : vector<2x32xf32> to vector<1x2x32xf32>
    tpu.vector_store %arg7[%c0_65, %c0_66, %c0_67], %291 {strides = array<i32>} : memref<8x2x32xf32, #tpu.memory_space<vmem>>, vector<1x2x32xf32>,
    %292 = vector.extract_strided_slice %257 {offsets = [2, 0], sizes = [2, 128], strides = [1, 1]} : vector<16x128xf32> to vector<2x128xf32>
    %293 = arith.truncf %288 : vector<2x32xf32> to vector<2x32xbf16>
    %cst_68 = arith.constant dense<0.000000e+00> : vector<2x128xf32>
    %294 = tpu.matmul %293, %251, %cst_68 {dimension_numbers = #tpu.dot_dimension_numbers<[1], [0], [0], [1], [0, 0, 1, 1], [], []>} : vector<2x32xbf16>, vector<32x128xbf16>, vector<2x128xf32> -> vector<2x128xf32>
    %295 = arith.addf %292, %294 : vector<2x128xf32>
    %296 = vector.extract_strided_slice %295 {offsets = [0, 0], sizes = [2, 32], strides = [1, 1]} : vector<2x128xf32> to vector<2x32xf32>
    %297 = arith.negf %296 : vector<2x32xf32>
    %298 = math.exp %297 : vector<2x32xf32>
    %cst_69 = arith.constant 1.000000e+00 : f32
    %299 = vector.broadcast %cst_69 : f32 to vector<2x32xf32>
    %300 = arith.addf %299, %298 : vector<2x32xf32>
    %301 = arith.divf %299, %300 : vector<2x32xf32>
    %302 = vector.extract_strided_slice %295 {offsets = [0, 32], sizes = [2, 32], strides = [1, 1]} : vector<2x128xf32> to vector<2x32xf32>
    %303 = arith.negf %302 : vector<2x32xf32>
    %304 = math.exp %303 : vector<2x32xf32>
    %cst_70 = arith.constant 1.000000e+00 : f32
    %305 = vector.broadcast %cst_70 : f32 to vector<2x32xf32>
    %306 = arith.addf %305, %304 : vector<2x32xf32>
    %307 = arith.divf %305, %306 : vector<2x32xf32>
    %308 = vector.extract_strided_slice %295 {offsets = [0, 64], sizes = [2, 32], strides = [1, 1]} : vector<2x128xf32> to vector<2x32xf32>
    %309 = math.tanh %308 : vector<2x32xf32>
    %310 = vector.extract_strided_slice %295 {offsets = [0, 96], sizes = [2, 32], strides = [1, 1]} : vector<2x128xf32> to vector<2x32xf32>
    %311 = arith.negf %310 : vector<2x32xf32>
    %312 = math.exp %311 : vector<2x32xf32>
    %cst_71 = arith.constant 1.000000e+00 : f32
    %313 = vector.broadcast %cst_71 : f32 to vector<2x32xf32>
    %314 = arith.addf %313, %312 : vector<2x32xf32>
    %315 = arith.divf %313, %314 : vector<2x32xf32>
    %316 = arith.mulf %307, %286 : vector<2x32xf32>
    %317 = arith.mulf %301, %309 : vector<2x32xf32>
    %318 = arith.addf %316, %317 : vector<2x32xf32>
    %319 = math.tanh %318 : vector<2x32xf32>
    %320 = arith.mulf %315, %319 : vector<2x32xf32>
    %c1 = arith.constant 1 : index
    %c0_72 = arith.constant 0 : index
    %c0_73 = arith.constant 0 : index
    %321 = vector.load %arg7[%c1, %c0_72, %c0_73] : memref<8x2x32xf32, #tpu.memory_space<vmem>>, vector<1x2x32xf32>
    %322 = vector.shape_cast %321 : vector<1x2x32xf32> to vector<2x32xf32>
    %323 = vector.shape_cast %320 : vector<2x32xf32> to vector<1x2x32xf32>
    tpu.vector_store %arg7[%c1, %c0_72, %c0_73], %323 {strides = array<i32>} : memref<8x2x32xf32, #tpu.memory_space<vmem>>, vector<1x2x32xf32>,
    %324 = vector.extract_strided_slice %257 {offsets = [4, 0], sizes = [2, 128], strides = [1, 1]} : vector<16x128xf32> to vector<2x128xf32>
    %325 = arith.truncf %320 : vector<2x32xf32> to vector<2x32xbf16>
    %cst_74 = arith.constant dense<0.000000e+00> : vector<2x128xf32>
    %326 = tpu.matmul %325, %251, %cst_74 {dimension_numbers = #tpu.dot_dimension_numbers<[1], [0], [0], [1], [0, 0, 1, 1], [], []>} : vector<2x32xbf16>, vector<32x128xbf16>, vector<2x128xf32> -> vector<2x128xf32>
    %327 = arith.addf %324, %326 : vector<2x128xf32>
    %328 = vector.extract_strided_slice %327 {offsets = [0, 0], sizes = [2, 32], strides = [1, 1]} : vector<2x128xf32> to vector<2x32xf32>
    %329 = arith.negf %328 : vector<2x32xf32>
    %330 = math.exp %329 : vector<2x32xf32>
    %cst_75 = arith.constant 1.000000e+00 : f32
    %331 = vector.broadcast %cst_75 : f32 to vector<2x32xf32>
    %332 = arith.addf %331, %330 : vector<2x32xf32>
    %333 = arith.divf %331, %332 : vector<2x32xf32>
    %334 = vector.extract_strided_slice %327 {offsets = [0, 32], sizes = [2, 32], strides = [1, 1]} : vector<2x128xf32> to vector<2x32xf32>
    %335 = arith.negf %334 : vector<2x32xf32>
    %336 = math.exp %335 : vector<2x32xf32>
    %cst_76 = arith.constant 1.000000e+00 : f32
    %337 = vector.broadcast %cst_76 : f32 to vector<2x32xf32>
    %338 = arith.addf %337, %336 : vector<2x32xf32>
    %339 = arith.divf %337, %338 : vector<2x32xf32>
    %340 = vector.extract_strided_slice %327 {offsets = [0, 64], sizes = [2, 32], strides = [1, 1]} : vector<2x128xf32> to vector<2x32xf32>
    %341 = math.tanh %340 : vector<2x32xf32>
    %342 = vector.extract_strided_slice %327 {offsets = [0, 96], sizes = [2, 32], strides = [1, 1]} : vector<2x128xf32> to vector<2x32xf32>
    %343 = arith.negf %342 : vector<2x32xf32>
    %344 = math.exp %343 : vector<2x32xf32>
    %cst_77 = arith.constant 1.000000e+00 : f32
    %345 = vector.broadcast %cst_77 : f32 to vector<2x32xf32>
    %346 = arith.addf %345, %344 : vector<2x32xf32>
    %347 = arith.divf %345, %346 : vector<2x32xf32>
    %348 = arith.mulf %339, %318 : vector<2x32xf32>
    %349 = arith.mulf %333, %341 : vector<2x32xf32>
    %350 = arith.addf %348, %349 : vector<2x32xf32>
    %351 = math.tanh %350 : vector<2x32xf32>
    %352 = arith.mulf %347, %351 : vector<2x32xf32>
    %c2_78 = arith.constant 2 : index
    %c0_79 = arith.constant 0 : index
    %c0_80 = arith.constant 0 : index
    %353 = vector.load %arg7[%c2_78, %c0_79, %c0_80] : memref<8x2x32xf32, #tpu.memory_space<vmem>>, vector<1x2x32xf32>
    %354 = vector.shape_cast %353 : vector<1x2x32xf32> to vector<2x32xf32>
    %355 = vector.shape_cast %352 : vector<2x32xf32> to vector<1x2x32xf32>
    tpu.vector_store %arg7[%c2_78, %c0_79, %c0_80], %355 {strides = array<i32>} : memref<8x2x32xf32, #tpu.memory_space<vmem>>, vector<1x2x32xf32>,
    %356 = vector.extract_strided_slice %257 {offsets = [6, 0], sizes = [2, 128], strides = [1, 1]} : vector<16x128xf32> to vector<2x128xf32>
    %357 = arith.truncf %352 : vector<2x32xf32> to vector<2x32xbf16>
    %cst_81 = arith.constant dense<0.000000e+00> : vector<2x128xf32>
    %358 = tpu.matmul %357, %251, %cst_81 {dimension_numbers = #tpu.dot_dimension_numbers<[1], [0], [0], [1], [0, 0, 1, 1], [], []>} : vector<2x32xbf16>, vector<32x128xbf16>, vector<2x128xf32> -> vector<2x128xf32>
    %359 = arith.addf %356, %358 : vector<2x128xf32>
    %360 = vector.extract_strided_slice %359 {offsets = [0, 0], sizes = [2, 32], strides = [1, 1]} : vector<2x128xf32> to vector<2x32xf32>
    %361 = arith.negf %360 : vector<2x32xf32>
    %362 = math.exp %361 : vector<2x32xf32>
    %cst_82 = arith.constant 1.000000e+00 : f32
    %363 = vector.broadcast %cst_82 : f32 to vector<2x32xf32>
    %364 = arith.addf %363, %362 : vector<2x32xf32>
    %365 = arith.divf %363, %364 : vector<2x32xf32>
    %366 = vector.extract_strided_slice %359 {offsets = [0, 32], sizes = [2, 32], strides = [1, 1]} : vector<2x128xf32> to vector<2x32xf32>
    %367 = arith.negf %366 : vector<2x32xf32>
    %368 = math.exp %367 : vector<2x32xf32>
    %cst_83 = arith.constant 1.000000e+00 : f32
    %369 = vector.broadcast %cst_83 : f32 to vector<2x32xf32>
    %370 = arith.addf %369, %368 : vector<2x32xf32>
    %371 = arith.divf %369, %370 : vector<2x32xf32>
    %372 = vector.extract_strided_slice %359 {offsets = [0, 64], sizes = [2, 32], strides = [1, 1]} : vector<2x128xf32> to vector<2x32xf32>
    %373 = math.tanh %372 : vector<2x32xf32>
    %374 = vector.extract_strided_slice %359 {offsets = [0, 96], sizes = [2, 32], strides = [1, 1]} : vector<2x128xf32> to vector<2x32xf32>
    %375 = arith.negf %374 : vector<2x32xf32>
    %376 = math.exp %375 : vector<2x32xf32>
    %cst_84 = arith.constant 1.000000e+00 : f32
    %377 = vector.broadcast %cst_84 : f32 to vector<2x32xf32>
    %378 = arith.addf %377, %376 : vector<2x32xf32>
    %379 = arith.divf %377, %378 : vector<2x32xf32>
    %380 = arith.mulf %371, %350 : vector<2x32xf32>
    %381 = arith.mulf %365, %373 : vector<2x32xf32>
    %382 = arith.addf %380, %381 : vector<2x32xf32>
    %383 = math.tanh %382 : vector<2x32xf32>
    %384 = arith.mulf %379, %383 : vector<2x32xf32>
    %c3 = arith.constant 3 : index
    %c0_85 = arith.constant 0 : index
    %c0_86 = arith.constant 0 : index
    %385 = vector.load %arg7[%c3, %c0_85, %c0_86] : memref<8x2x32xf32, #tpu.memory_space<vmem>>, vector<1x2x32xf32>
    %386 = vector.shape_cast %385 : vector<1x2x32xf32> to vector<2x32xf32>
    %387 = vector.shape_cast %384 : vector<2x32xf32> to vector<1x2x32xf32>
    tpu.vector_store %arg7[%c3, %c0_85, %c0_86], %387 {strides = array<i32>} : memref<8x2x32xf32, #tpu.memory_space<vmem>>, vector<1x2x32xf32>,
    %388 = vector.extract_strided_slice %257 {offsets = [8, 0], sizes = [2, 128], strides = [1, 1]} : vector<16x128xf32> to vector<2x128xf32>
    %389 = arith.truncf %384 : vector<2x32xf32> to vector<2x32xbf16>
    %cst_87 = arith.constant dense<0.000000e+00> : vector<2x128xf32>
    %390 = tpu.matmul %389, %251, %cst_87 {dimension_numbers = #tpu.dot_dimension_numbers<[1], [0], [0], [1], [0, 0, 1, 1], [], []>} : vector<2x32xbf16>, vector<32x128xbf16>, vector<2x128xf32> -> vector<2x128xf32>
    %391 = arith.addf %388, %390 : vector<2x128xf32>
    %392 = vector.extract_strided_slice %391 {offsets = [0, 0], sizes = [2, 32], strides = [1, 1]} : vector<2x128xf32> to vector<2x32xf32>
    %393 = arith.negf %392 : vector<2x32xf32>
    %394 = math.exp %393 : vector<2x32xf32>
    %cst_88 = arith.constant 1.000000e+00 : f32
    %395 = vector.broadcast %cst_88 : f32 to vector<2x32xf32>
    %396 = arith.addf %395, %394 : vector<2x32xf32>
    %397 = arith.divf %395, %396 : vector<2x32xf32>
    %398 = vector.extract_strided_slice %391 {offsets = [0, 32], sizes = [2, 32], strides = [1, 1]} : vector<2x128xf32> to vector<2x32xf32>
    %399 = arith.negf %398 : vector<2x32xf32>
    %400 = math.exp %399 : vector<2x32xf32>
    %cst_89 = arith.constant 1.000000e+00 : f32
    %401 = vector.broadcast %cst_89 : f32 to vector<2x32xf32>
    %402 = arith.addf %401, %400 : vector<2x32xf32>
    %403 = arith.divf %401, %402 : vector<2x32xf32>
    %404 = vector.extract_strided_slice %391 {offsets = [0, 64], sizes = [2, 32], strides = [1, 1]} : vector<2x128xf32> to vector<2x32xf32>
    %405 = math.tanh %404 : vector<2x32xf32>
    %406 = vector.extract_strided_slice %391 {offsets = [0, 96], sizes = [2, 32], strides = [1, 1]} : vector<2x128xf32> to vector<2x32xf32>
    %407 = arith.negf %406 : vector<2x32xf32>
    %408 = math.exp %407 : vector<2x32xf32>
    %cst_90 = arith.constant 1.000000e+00 : f32
    %409 = vector.broadcast %cst_90 : f32 to vector<2x32xf32>
    %410 = arith.addf %409, %408 : vector<2x32xf32>
    %411 = arith.divf %409, %410 : vector<2x32xf32>
    %412 = arith.mulf %403, %382 : vector<2x32xf32>
    %413 = arith.mulf %397, %405 : vector<2x32xf32>
    %414 = arith.addf %412, %413 : vector<2x32xf32>
    %415 = math.tanh %414 : vector<2x32xf32>
    %416 = arith.mulf %411, %415 : vector<2x32xf32>
    %c4_91 = arith.constant 4 : index
    %c0_92 = arith.constant 0 : index
    %c0_93 = arith.constant 0 : index
    %417 = vector.load %arg7[%c4_91, %c0_92, %c0_93] : memref<8x2x32xf32, #tpu.memory_space<vmem>>, vector<1x2x32xf32>
    %418 = vector.shape_cast %417 : vector<1x2x32xf32> to vector<2x32xf32>
    %419 = vector.shape_cast %416 : vector<2x32xf32> to vector<1x2x32xf32>
    tpu.vector_store %arg7[%c4_91, %c0_92, %c0_93], %419 {strides = array<i32>} : memref<8x2x32xf32, #tpu.memory_space<vmem>>, vector<1x2x32xf32>,
    %420 = vector.extract_strided_slice %257 {offsets = [10, 0], sizes = [2, 128], strides = [1, 1]} : vector<16x128xf32> to vector<2x128xf32>
    %421 = arith.truncf %416 : vector<2x32xf32> to vector<2x32xbf16>
    %cst_94 = arith.constant dense<0.000000e+00> : vector<2x128xf32>
    %422 = tpu.matmul %421, %251, %cst_94 {dimension_numbers = #tpu.dot_dimension_numbers<[1], [0], [0], [1], [0, 0, 1, 1], [], []>} : vector<2x32xbf16>, vector<32x128xbf16>, vector<2x128xf32> -> vector<2x128xf32>
    %423 = arith.addf %420, %422 : vector<2x128xf32>
    %424 = vector.extract_strided_slice %423 {offsets = [0, 0], sizes = [2, 32], strides = [1, 1]} : vector<2x128xf32> to vector<2x32xf32>
    %425 = arith.negf %424 : vector<2x32xf32>
    %426 = math.exp %425 : vector<2x32xf32>
    %cst_95 = arith.constant 1.000000e+00 : f32
    %427 = vector.broadcast %cst_95 : f32 to vector<2x32xf32>
    %428 = arith.addf %427, %426 : vector<2x32xf32>
    %429 = arith.divf %427, %428 : vector<2x32xf32>
    %430 = vector.extract_strided_slice %423 {offsets = [0, 32], sizes = [2, 32], strides = [1, 1]} : vector<2x128xf32> to vector<2x32xf32>
    %431 = arith.negf %430 : vector<2x32xf32>
    %432 = math.exp %431 : vector<2x32xf32>
    %cst_96 = arith.constant 1.000000e+00 : f32
    %433 = vector.broadcast %cst_96 : f32 to vector<2x32xf32>
    %434 = arith.addf %433, %432 : vector<2x32xf32>
    %435 = arith.divf %433, %434 : vector<2x32xf32>
    %436 = vector.extract_strided_slice %423 {offsets = [0, 64], sizes = [2, 32], strides = [1, 1]} : vector<2x128xf32> to vector<2x32xf32>
    %437 = math.tanh %436 : vector<2x32xf32>
    %438 = vector.extract_strided_slice %423 {offsets = [0, 96], sizes = [2, 32], strides = [1, 1]} : vector<2x128xf32> to vector<2x32xf32>
    %439 = arith.negf %438 : vector<2x32xf32>
    %440 = math.exp %439 : vector<2x32xf32>
    %cst_97 = arith.constant 1.000000e+00 : f32
    %441 = vector.broadcast %cst_97 : f32 to vector<2x32xf32>
    %442 = arith.addf %441, %440 : vector<2x32xf32>
    %443 = arith.divf %441, %442 : vector<2x32xf32>
    %444 = arith.mulf %435, %414 : vector<2x32xf32>
    %445 = arith.mulf %429, %437 : vector<2x32xf32>
    %446 = arith.addf %444, %445 : vector<2x32xf32>
    %447 = math.tanh %446 : vector<2x32xf32>
    %448 = arith.mulf %443, %447 : vector<2x32xf32>
    %c5 = arith.constant 5 : index
    %c0_98 = arith.constant 0 : index
    %c0_99 = arith.constant 0 : index
    %449 = vector.load %arg7[%c5, %c0_98, %c0_99] : memref<8x2x32xf32, #tpu.memory_space<vmem>>, vector<1x2x32xf32>
    %450 = vector.shape_cast %449 : vector<1x2x32xf32> to vector<2x32xf32>
    %451 = vector.shape_cast %448 : vector<2x32xf32> to vector<1x2x32xf32>
    tpu.vector_store %arg7[%c5, %c0_98, %c0_99], %451 {strides = array<i32>} : memref<8x2x32xf32, #tpu.memory_space<vmem>>, vector<1x2x32xf32>,
    %452 = vector.extract_strided_slice %257 {offsets = [12, 0], sizes = [2, 128], strides = [1, 1]} : vector<16x128xf32> to vector<2x128xf32>
    %453 = arith.truncf %448 : vector<2x32xf32> to vector<2x32xbf16>
    %cst_100 = arith.constant dense<0.000000e+00> : vector<2x128xf32>
    %454 = tpu.matmul %453, %251, %cst_100 {dimension_numbers = #tpu.dot_dimension_numbers<[1], [0], [0], [1], [0, 0, 1, 1], [], []>} : vector<2x32xbf16>, vector<32x128xbf16>, vector<2x128xf32> -> vector<2x128xf32>
    %455 = arith.addf %452, %454 : vector<2x128xf32>
    %456 = vector.extract_strided_slice %455 {offsets = [0, 0], sizes = [2, 32], strides = [1, 1]} : vector<2x128xf32> to vector<2x32xf32>
    %457 = arith.negf %456 : vector<2x32xf32>
    %458 = math.exp %457 : vector<2x32xf32>
    %cst_101 = arith.constant 1.000000e+00 : f32
    %459 = vector.broadcast %cst_101 : f32 to vector<2x32xf32>
    %460 = arith.addf %459, %458 : vector<2x32xf32>
    %461 = arith.divf %459, %460 : vector<2x32xf32>
    %462 = vector.extract_strided_slice %455 {offsets = [0, 32], sizes = [2, 32], strides = [1, 1]} : vector<2x128xf32> to vector<2x32xf32>
    %463 = arith.negf %462 : vector<2x32xf32>
    %464 = math.exp %463 : vector<2x32xf32>
    %cst_102 = arith.constant 1.000000e+00 : f32
    %465 = vector.broadcast %cst_102 : f32 to vector<2x32xf32>
    %466 = arith.addf %465, %464 : vector<2x32xf32>
    %467 = arith.divf %465, %466 : vector<2x32xf32>
    %468 = vector.extract_strided_slice %455 {offsets = [0, 64], sizes = [2, 32], strides = [1, 1]} : vector<2x128xf32> to vector<2x32xf32>
    %469 = math.tanh %468 : vector<2x32xf32>
    %470 = vector.extract_strided_slice %455 {offsets = [0, 96], sizes = [2, 32], strides = [1, 1]} : vector<2x128xf32> to vector<2x32xf32>
    %471 = arith.negf %470 : vector<2x32xf32>
    %472 = math.exp %471 : vector<2x32xf32>
    %cst_103 = arith.constant 1.000000e+00 : f32
    %473 = vector.broadcast %cst_103 : f32 to vector<2x32xf32>
    %474 = arith.addf %473, %472 : vector<2x32xf32>
    %475 = arith.divf %473, %474 : vector<2x32xf32>
    %476 = arith.mulf %467, %446 : vector<2x32xf32>
    %477 = arith.mulf %461, %469 : vector<2x32xf32>
    %478 = arith.addf %476, %477 : vector<2x32xf32>
    %479 = math.tanh %478 : vector<2x32xf32>
    %480 = arith.mulf %475, %479 : vector<2x32xf32>
    %c6_104 = arith.constant 6 : index
    %c0_105 = arith.constant 0 : index
    %c0_106 = arith.constant 0 : index
    %481 = vector.load %arg7[%c6_104, %c0_105, %c0_106] : memref<8x2x32xf32, #tpu.memory_space<vmem>>, vector<1x2x32xf32>
    %482 = vector.shape_cast %481 : vector<1x2x32xf32> to vector<2x32xf32>
    %483 = vector.shape_cast %480 : vector<2x32xf32> to vector<1x2x32xf32>
    tpu.vector_store %arg7[%c6_104, %c0_105, %c0_106], %483 {strides = array<i32>} : memref<8x2x32xf32, #tpu.memory_space<vmem>>, vector<1x2x32xf32>,
    %484 = vector.extract_strided_slice %257 {offsets = [14, 0], sizes = [2, 128], strides = [1, 1]} : vector<16x128xf32> to vector<2x128xf32>
    %485 = arith.truncf %480 : vector<2x32xf32> to vector<2x32xbf16>
    %cst_107 = arith.constant dense<0.000000e+00> : vector<2x128xf32>
    %486 = tpu.matmul %485, %251, %cst_107 {dimension_numbers = #tpu.dot_dimension_numbers<[1], [0], [0], [1], [0, 0, 1, 1], [], []>} : vector<2x32xbf16>, vector<32x128xbf16>, vector<2x128xf32> -> vector<2x128xf32>
    %487 = arith.addf %484, %486 : vector<2x128xf32>
    %488 = vector.extract_strided_slice %487 {offsets = [0, 0], sizes = [2, 32], strides = [1, 1]} : vector<2x128xf32> to vector<2x32xf32>
    %489 = arith.negf %488 : vector<2x32xf32>
    %490 = math.exp %489 : vector<2x32xf32>
    %cst_108 = arith.constant 1.000000e+00 : f32
    %491 = vector.broadcast %cst_108 : f32 to vector<2x32xf32>
    %492 = arith.addf %491, %490 : vector<2x32xf32>
    %493 = arith.divf %491, %492 : vector<2x32xf32>
    %494 = vector.extract_strided_slice %487 {offsets = [0, 32], sizes = [2, 32], strides = [1, 1]} : vector<2x128xf32> to vector<2x32xf32>
    %495 = arith.negf %494 : vector<2x32xf32>
    %496 = math.exp %495 : vector<2x32xf32>
    %cst_109 = arith.constant 1.000000e+00 : f32
    %497 = vector.broadcast %cst_109 : f32 to vector<2x32xf32>
    %498 = arith.addf %497, %496 : vector<2x32xf32>
    %499 = arith.divf %497, %498 : vector<2x32xf32>
    %500 = vector.extract_strided_slice %487 {offsets = [0, 64], sizes = [2, 32], strides = [1, 1]} : vector<2x128xf32> to vector<2x32xf32>
    %501 = math.tanh %500 : vector<2x32xf32>
    %502 = vector.extract_strided_slice %487 {offsets = [0, 96], sizes = [2, 32], strides = [1, 1]} : vector<2x128xf32> to vector<2x32xf32>
    %503 = arith.negf %502 : vector<2x32xf32>
    %504 = math.exp %503 : vector<2x32xf32>
    %cst_110 = arith.constant 1.000000e+00 : f32
    %505 = vector.broadcast %cst_110 : f32 to vector<2x32xf32>
    %506 = arith.addf %505, %504 : vector<2x32xf32>
    %507 = arith.divf %505, %506 : vector<2x32xf32>
    %508 = arith.mulf %499, %478 : vector<2x32xf32>
    %509 = arith.mulf %493, %501 : vector<2x32xf32>
    %510 = arith.addf %508, %509 : vector<2x32xf32>
    %511 = math.tanh %510 : vector<2x32xf32>
    %512 = arith.mulf %507, %511 : vector<2x32xf32>
    %c7 = arith.constant 7 : index
    %c0_111 = arith.constant 0 : index
    %c0_112 = arith.constant 0 : index
    %513 = vector.load %arg7[%c7, %c0_111, %c0_112] : memref<8x2x32xf32, #tpu.memory_space<vmem>>, vector<1x2x32xf32>
    %514 = vector.shape_cast %513 : vector<1x2x32xf32> to vector<2x32xf32>
    %515 = vector.shape_cast %512 : vector<2x32xf32> to vector<1x2x32xf32>
    tpu.vector_store %arg7[%c7, %c0_111, %c0_112], %515 {strides = array<i32>} : memref<8x2x32xf32, #tpu.memory_space<vmem>>, vector<1x2x32xf32>,
    return
  }
}

</mosaic_0001>

<bundles_post_ra>
// kernel: physics_predictor_forward.3
= control target key start
LH: loop header
LB: loop body
LE: loop exit
PB: predicated region body
PF: predicated region fallthrough
CT: control target
= control target key end

     0   :  { %vm46_vm0 = vcmask 1041408   ;;  %v1895_v0 = vmov 0.0   ;;  %vm1896_vm1 = vmmov 0   ;;  %vm42_vm2 = vcmask 31744   ;;  %s1898_s10 = smov 64   ;;  %s2303_s1 = inlined_call_operand.vmem [shape: bf16[4,128], index: 1, kind: input, shape index: {}]   ;;  %s2304_s2 = inlined_call_operand.vmem [shape: bf16[32,128], index: 2, kind: input, shape index: {}]   ;;  %s2305_s0 = inlined_call_operand.vmem [shape: f32[16,4], index: 0, kind: input, shape index: {}]   ;;  %s2306_s3 = inlined_call_operand.vmem [shape: f32[1,128], index: 3, kind: input, shape index: {}]   ;;  %s2307_s5 = inlined_call_operand.vmem [shape: bf16[32,128], index: 5, kind: input, shape index: {}]   ;;  %s2308_s4 = inlined_call_operand.vmem [shape: bf16[32,128], index: 4, kind: input, shape index: {}]   ;;  %s2309_s6 = inlined_call_operand.vmem [shape: f32[1,128], index: 6, kind: input, shape index: {}]   ;;  %s2310_s7 = inlined_call_operand.vmem [shape: f32[8,2,32], index: 7, kind: output, shape index: {}]  }
   0x1   :  { %1614 = vmatprep.subr.bf16.mxu0 %v1895_v0  ;;  %v27_v1 = vld [vmem:[%s2303_s1] sm:$0x3]  ;;  %1620 = vmatprep.subr.bf16.mxu1 %v1895_v0  ;;  %v34_v5 = vld [vmem:[%s2305_s0 + $0x8] sm:$0xff]  ;;  %v1897_v8 = vmov 0   ;;  %vm103_vm3 = vcmask 261120   ;;  %vm176_vm4 = vcmask 254976  }
   0x2   :  { %v48_v2 = vsel %vm46_vm0, %v27_v1, 0  ;;  %v1948_v3 = vld [vmem:[%s2304_s2] sm:$0xff]   ;;  %1616 = vmatprep.mubr.msk.bf16.mxu0 %vm1896_vm1, %v1895_v0  ;;  %1624 = vmatprep.mubr.msk.bf16.mxu1 %vm1896_vm1, %v1895_v0  ;;  %v1964_v7 = vld [vmem:[%s2304_s2 + $0x8] sm:$0xff]   ;;  %vm345_vm5 = vcmask 259076   ;;  %vm260_vm6 = vcmask 257026   ;;  %vm430_vm7 = vcmask 261126  }
   0x3   :  { %v33_v4 = vld [vmem:[%s2305_s0] sm:$0xff]  ;;  %1615 = vmatpush3.bf16.msra.mxu0 %v48_v2  ;;  %1621 = vmatpush3.bf16.msra.mxu1 %v1948_v3 }
   0x4   :  { %v35_v6 = vpack.c.bf16 %v34_v5, %v33_v4  ;;  %1628 = vmatprep.subr.bf16.mxu0 %v1895_v0  ;;  %1622 = vmatprep.subr.bf16.mxu1 %v1895_v0  ;;  %v1514_v9 = vld [vmem:[%s2306_s3] ss:$0 sm:$0xff]  ;;  %s1899_s3 = smov 32  }
   0x6   :  { %1617 = vmatmul.mubr.msk.bf16.vlgmr.msra.gmra.mrb[0].mxu0 %vm42_vm2, %v35_v6 }
   0x7   :  { %1629 = vmatpush3.bf16.msra.mxu0 %v1948_v3  ;;  %1632 = vmatprep.mubr.msk.bf16.mxu0 %vm1896_vm1, %v1895_v0 }
   0x8   :  { %1623 = vmatpush3.bf16.msra.mxu1 %v1964_v7  ;;  %1630 = vmatprep.subr.bf16.mxu0 %v1895_v0 }
   0x9   :  { %1636 = vmatprep.subr.bf16.mxu1 %v1895_v0 }
   0xb   :  { %1625 = vmatmul.mubr.bf16.vlgmr.msra.gmra.mrb[0].mxu1 %v1897_v8  ;;  %1631 = vmatpush3.bf16.msra.mxu0 %v1964_v7 }
   0xc   :  { %1637 = vmatpush3.bf16.msra.mxu1 %v1948_v3  ;;  %1640 = vmatprep.mubr.msk.bf16.mxu1 %vm1896_vm1, %v1895_v0 }
   0xd   :  { %1638 = vmatprep.subr.bf16.mxu1 %v1895_v0  ;;  %1644 = vmatprep.subr.bf16.mxu0 %v1895_v0 }
  0x10   :  { %1639 = vmatpush3.bf16.msra.mxu1 %v1964_v7 }
  0x11   :  { %1652 = vmatprep.subr.bf16.mxu1 %v1895_v0 }
  0xd9   :  { %v84_v10 = vpop.f32.mrb[0].mxu0 }
  0xda   :  { %v1618_v11 = vpop.f32.mrb[1].mxu0  ;;  %v1986_v12 = vadd.f32 %v1514_v9, %v84_v10 }
  0xdb   :  { %v87_v13 = vpop.f32.mrb[2].mxu0 }
  0xdc   :  { %v1988_v14 = vadd.f32 %v1514_v9, %v87_v13  ;;  %v1619_v15 = vpop.f32.mrb[3].mxu0 }
  0xde   :  { %v141_v16 = vpop.f32.mrb[0].mxu1 }
  0xdf   :  { %v147_v17 = vadd.f32 %v141_v16, %v1986_v12  ;;  %v1626_v18 = vpop.f32.mrb[1].mxu1 }
  0xe0   :  { %v144_v19 = vpop.f32.mrb[2].mxu1 }
  0xe1   :  { %1767 = vtanh.f32 %v147_v17  ;;  %v1627_v20 = vpop.f32.mrb[3].mxu1  ;;  %v1518_v22 = vmul.f32 -1.442695, %v147_v17 }
  0xe3   :  { %1769 = vpow2.f32 %v1518_v22 }
  0xeb   :  { %v1768_v21 = vpop.eup %1767 }
  0xec   :  { %157 = vrot.lane.b32.xlu0 %v1768_v21, %s1898_s10 }
  0xed   :  { %v1770_v23 = vpop.eup %1769 }
  0xee   :  { %v151_v24 = vadd.f32 1.0, %v1770_v23 }
  0xf0   :  { %1771 = vrcp.f32 %v151_v24 }
  0xfa   :  { %v1772_v25 = vpop.eup %1771 }
  0xfb   :  { %v155_v28 = vmul.f32 0.0, %v1772_v25 }
 0x15e   :  { %v158_v26 = vpop.permute.xlu0 %157 }
 0x15f   :  { %v160_v27 = vmul.f32 %v1772_v25, %v158_v26 }
 0x161   :  { %162 = vrot.lane.b32.xlu0 %v160_v27, %s1899_s3 }
 0x1d3   :  { %v163_v29 = vpop.permute.xlu0 %162 }
 0x1d4   :  { %v165_v30 = vadd.f32 %v163_v29, %v155_v28 }
 0x1d6   :  { %1773 = vtanh.f32 %v165_v30  ;;  %v237_v49 = vrot.slane %v165_v30, 6 }
 0x1e0   :  { %v1774_v31 = vpop.eup %1773 }
 0x1e1   :  { %168 = vrot.lane.b32.xlu1 %v1774_v31, %s1898_s10 }
 0x253   :  { %v169_v32 = vpop.permute.xlu1 %168 }
 0x254   :  { %v1994_v33 = vmul.f32 %v1772_v25, %v169_v32 }
 0x256   :  { %v178_v34 = vpack.c.bf16 %v1994_v33, %v1994_v33 }
 0x258   :  { %180 = vrot.lane.b32.xlu1 %v178_v34, %s1899_s3 }
 0x2ca   :  { %v181_v35 = vpop.permute.xlu1 %180 }
 0x2cb   :  { %1633 = vmatmul.mubr.msk.bf16.vlgmr.msra.gmra.mrb[4].mxu0 %vm103_vm3, %v181_v35 }
 0x2cc   :  { %1645 = vmatpush3.bf16.msra.mxu0 %v1948_v3  ;;  %1648 = vmatprep.mubr.msk.bf16.mxu0 %vm1896_vm1, %v1895_v0 }
 0x2cd   :  { %1646 = vmatprep.subr.bf16.mxu0 %v1895_v0 }
 0x2d0   :  { %1647 = vmatpush3.bf16.msra.mxu0 %v1964_v7 }
 0x2d1   :  { %1660 = vmatprep.subr.bf16.mxu0 %v1895_v0 }
 0x39e   :  { %v219_v36 = vpop.f32.mrb[4].mxu0 }
 0x39f   :  { %v226_v37 = vrot.slane %v219_v36, 6  ;;  %v1634_v38 = vpop.f32.mrb[5].mxu0 }
 0x3a0   :  { %v222_v39 = vpop.f32.mrb[6].mxu0 }
 0x3a1   :  { %v228_v40 = vadd.f32 %v226_v37, %v1986_v12  ;;  %v1635_v41 = vpop.f32.mrb[7].mxu0 }
 0x3a3   :  { %1775 = vtanh.f32 %v228_v40  ;;  %v1520_v43 = vmul.f32 -1.442695, %v228_v40 }
 0x3a5   :  { %1777 = vpow2.f32 %v1520_v43 }
 0x3ad   :  { %v1776_v42 = vpop.eup %1775 }
 0x3ae   :  { %241 = vrot.lane.b32.xlu0 %v1776_v42, %s1898_s10 }
 0x3af   :  { %v1778_v44 = vpop.eup %1777 }
 0x3b0   :  { %v232_v45 = vadd.f32 1.0, %v1778_v44 }
 0x3b2   :  { %1779 = vrcp.f32 %v232_v45 }
 0x3bc   :  { %v1780_v46 = vpop.eup %1779 }
 0x3bd   :  { %v239_v50 = vmul.f32 %v1780_v46, %v237_v49 }
 0x420   :  { %v242_v47 = vpop.permute.xlu0 %241 }
 0x421   :  { %v244_v48 = vmul.f32 %v1780_v46, %v242_v47 }
 0x423   :  { %246 = vrot.lane.b32.xlu1 %v244_v48, %s1899_s3 }
 0x495   :  { %v247_v51 = vpop.permute.xlu1 %246 }
 0x496   :  { %v249_v52 = vadd.f32 %v247_v51, %v239_v50 }
 0x498   :  { %1781 = vtanh.f32 %v249_v52  ;;  %v322_v13 = vrot.slane %v249_v52, 6 }
 0x4a2   :  { %v1782_v53 = vpop.eup %1781 }
 0x4a3   :  { %252 = vrot.lane.b32.xlu0 %v1782_v53, %s1898_s10 }
 0x515   :  { %v253_v54 = vpop.permute.xlu0 %252 }
 0x516   :  { %v2010_v55 = vmul.f32 %v1780_v46, %v253_v54 }
 0x518   :  { %v262_v56 = vpack.c.bf16 %v2010_v55, %v2010_v55 }
 0x51a   :  { %v264_v57 = vrot.slane %v262_v56, 1 }
 0x51c   :  { %265 = vrot.lane.b32.xlu1 %v264_v57, %s1899_s3 }
 0x58e   :  { %v266_v58 = vpop.permute.xlu1 %265 }
 0x58f   :  { %1641 = vmatmul.mubr.msk.bf16.vlgmr.msra.gmra.mrb[4].mxu1 %vm103_vm3, %v266_v58 }
 0x590   :  { %1653 = vmatpush3.bf16.msra.mxu1 %v1948_v3  ;;  %1656 = vmatprep.mubr.msk.bf16.mxu1 %vm1896_vm1, %v1895_v0 }
 0x591   :  { %1654 = vmatprep.subr.bf16.mxu1 %v1895_v0 }
 0x594   :  { %1655 = vmatpush3.bf16.msra.mxu1 %v1964_v7 }
 0x595   :  { %1668 = vmatprep.subr.bf16.mxu1 %v1895_v0 }
 0x662   :  { %v304_v59 = vpop.f32.mrb[4].mxu1 }
 0x663   :  { %v311_v60 = vrot.slane %v304_v59, 4  ;;  %v1642_v61 = vpop.f32.mrb[5].mxu1 }
 0x664   :  { %v307_v62 = vpop.f32.mrb[6].mxu1 }
 0x665   :  { %v313_v63 = vadd.f32 %v311_v60, %v1986_v12  ;;  %v1643_v1 = vpop.f32.mrb[7].mxu1 }
 0x667   :  { %1783 = vtanh.f32 %v313_v63  ;;  %v1522_v4 = vmul.f32 -1.442695, %v313_v63 }
 0x669   :  { %1785 = vpow2.f32 %v1522_v4 }
 0x671   :  { %v1784_v2 = vpop.eup %1783 }
 0x672   :  { %326 = vrot.lane.b32.xlu0 %v1784_v2, %s1898_s10 }
 0x673   :  { %v1786_v5 = vpop.eup %1785 }
 0x674   :  { %v317_v6 = vadd.f32 1.0, %v1786_v5 }
 0x676   :  { %1787 = vrcp.f32 %v317_v6 }
 0x680   :  { %v1788_v9 = vpop.eup %1787 }
 0x681   :  { %v324_v15 = vmul.f32 %v1788_v9, %v322_v13 }
 0x6e4   :  { %v327_v10 = vpop.permute.xlu0 %326 }
 0x6e5   :  { %v329_v11 = vmul.f32 %v1788_v9, %v327_v10 }
 0x6e7   :  { %331 = vrot.lane.b32.xlu1 %v329_v11, %s1899_s3 }
 0x759   :  { %v332_v16 = vpop.permute.xlu1 %331 }
 0x75a   :  { %v334_v17 = vadd.f32 %v332_v16, %v324_v15 }
 0x75c   :  { %1789 = vtanh.f32 %v334_v17  ;;  %v407_v38 = vrot.slane %v334_v17, 6 }
 0x766   :  { %v1790_v18 = vpop.eup %1789 }
 0x767   :  { %337 = vrot.lane.b32.xlu0 %v1790_v18, %s1898_s10 }
 0x7d9   :  { %v338_v19 = vpop.permute.xlu0 %337 }
 0x7da   :  { %v2026_v20 = vmul.f32 %v1788_v9, %v338_v19 }
 0x7dc   :  { %v347_v21 = vpack.c.bf16 %v2026_v20, %v2026_v20 }
 0x7de   :  { %v349_v22 = vrot.slane %v347_v21, 2 }
 0x7e0   :  { %350 = vrot.lane.b32.xlu1 %v349_v22, %s1899_s3 }
 0x852   :  { %v351_v23 = vpop.permute.xlu1 %350 }
 0x853   :  { %1649 = vmatmul.mubr.msk.bf16.vlgmr.msra.gmra.mrb[8].mxu0 %vm103_vm3, %v351_v23 }
 0x854   :  { %1661 = vmatpush3.bf16.msra.mxu0 %v1948_v3  ;;  %1664 = vmatprep.mubr.msk.bf16.mxu0 %vm1896_vm1, %v1895_v0 }
 0x855   :  { %1662 = vmatprep.subr.bf16.mxu0 %v1895_v0 }
 0x858   :  { %1663 = vmatpush3.bf16.msra.mxu0 %v1964_v7 }
 0x859   :  { %1676 = vmatprep.subr.bf16.mxu0 %v1895_v0 }
 0x926   :  { %v389_v24 = vpop.f32.mrb[8].mxu0 }
 0x927   :  { %v396_v25 = vrot.slane %v389_v24, 2  ;;  %v1650_v26 = vpop.f32.mrb[9].mxu0 }
 0x928   :  { %v392_v27 = vpop.f32.mrb[10].mxu0 }
 0x929   :  { %v398_v28 = vadd.f32 %v396_v25, %v1986_v12  ;;  %v1651_v29 = vpop.f32.mrb[11].mxu0 }
 0x92b   :  { %1791 = vtanh.f32 %v398_v28  ;;  %v1524_v31 = vmul.f32 -1.442695, %v398_v28 }
 0x92d   :  { %1793 = vpow2.f32 %v1524_v31 }
 0x935   :  { %v1792_v30 = vpop.eup %1791 }
 0x936   :  { %411 = vrot.lane.b32.xlu0 %v1792_v30, %s1898_s10 }
 0x937   :  { %v1794_v32 = vpop.eup %1793 }
 0x938   :  { %v402_v34 = vadd.f32 1.0, %v1794_v32 }
 0x93a   :  { %1795 = vrcp.f32 %v402_v34 }
 0x944   :  { %v1796_v35 = vpop.eup %1795 }
 0x945   :  { %v409_v39 = vmul.f32 %v1796_v35, %v407_v38 }
 0x9a8   :  { %v412_v36 = vpop.permute.xlu0 %411 }
 0x9a9   :  { %v414_v37 = vmul.f32 %v1796_v35, %v412_v36 }
 0x9ab   :  { %416 = vrot.lane.b32.xlu1 %v414_v37, %s1899_s3 }
 0xa1d   :  { %v417_v40 = vpop.permute.xlu1 %416 }
 0xa1e   :  { %v419_v41 = vadd.f32 %v417_v40, %v409_v39 }
 0xa20   :  { %1797 = vtanh.f32 %v419_v41  ;;  %v489_v60 = vrot.slane %v419_v41, 6 }
 0xa2a   :  { %v1798_v12 = vpop.eup %1797 }
 0xa2b   :  { %422 = vrot.lane.b32.xlu0 %v1798_v12, %s1898_s10 }
 0xa9d   :  { %v423_v42 = vpop.permute.xlu0 %422 }
 0xa9e   :  { %v2042_v43 = vmul.f32 %v1796_v35, %v423_v42 }
 0xaa0   :  { %v432_v44 = vpack.c.bf16 %v2042_v43, %v2042_v43 }
 0xaa2   :  { %v434_v45 = vrot.slane %v432_v44, 3 }
 0xaa4   :  { %435 = vrot.lane.b32.xlu1 %v434_v45, %s1899_s3 }
 0xb16   :  { %v436_v46 = vpop.permute.xlu1 %435 }
 0xb17   :  { %1657 = vmatmul.mubr.msk.bf16.vlgmr.msra.gmra.mrb[8].mxu1 %vm103_vm3, %v436_v46 }
 0xb18   :  { %1669 = vmatpush3.bf16.msra.mxu1 %v1948_v3  ;;  %1672 = vmatprep.mubr.msk.bf16.mxu1 %vm1896_vm1, %v1895_v0 }
 0xb19   :  { %1670 = vmatprep.subr.bf16.mxu1 %v1895_v0 }
 0xb1c   :  { %1671 = vmatpush3.bf16.msra.mxu1 %v1964_v7 }
 0xb1d   :  { %1684 = vmatprep.subr.bf16.mxu1 %v1895_v0 }
 0xbea   :  { %v474_v47 = vpop.f32.mrb[8].mxu1 }
 0xbeb   :  { %v480_v48 = vadd.f32 %v474_v47, %v1988_v14  ;;  %v1658_v49 = vpop.f32.mrb[9].mxu1 }
 0xbec   :  { %v477_v50 = vpop.f32.mrb[10].mxu1 }
 0xbed   :  { %1799 = vtanh.f32 %v480_v48  ;;  %v1659_v51 = vpop.f32.mrb[11].mxu1  ;;  %v1526_v53 = vmul.f32 -1.442695, %v480_v48 }
 0xbef   :  { %1801 = vpow2.f32 %v1526_v53 }
 0xbf7   :  { %v1800_v52 = vpop.eup %1799 }
 0xbf8   :  { %493 = vrot.lane.b32.xlu0 %v1800_v52, %s1898_s10 }
 0xbf9   :  { %v1802_v54 = vpop.eup %1801 }
 0xbfa   :  { %v484_v56 = vadd.f32 1.0, %v1802_v54 }
 0xbfc   :  { %1803 = vrcp.f32 %v484_v56 }
 0xc06   :  { %v1804_v57 = vpop.eup %1803 }
 0xc07   :  { %v491_v61 = vmul.f32 %v1804_v57, %v489_v60 }
 0xc6a   :  { %v494_v58 = vpop.permute.xlu0 %493 }
 0xc6b   :  { %v496_v59 = vmul.f32 %v1804_v57, %v494_v58 }
 0xc6d   :  { %498 = vrot.lane.b32.xlu1 %v496_v59, %s1899_s3 }
 0xcdf   :  { %v499_v62 = vpop.permute.xlu1 %498 }
 0xce0   :  { %v501_v63 = vadd.f32 %v499_v62, %v491_v61 }
 0xce2   :  { %1805 = vtanh.f32 %v501_v63  ;;  %v572_v23 = vrot.slane %v501_v63, 6 }
 0xcec   :  { %v1806_v1 = vpop.eup %1805 }
 0xced   :  { %504 = vrot.lane.b32.xlu0 %v1806_v1, %s1898_s10 }
 0xd5f   :  { %v505_v2 = vpop.permute.xlu0 %504 }
 0xd60   :  { %v2058_v4 = vmul.f32 %v1804_v57, %v505_v2 }
 0xd62   :  { %v513_v5 = vpack.c.bf16 %v2058_v4, %v2058_v4 }
 0xd64   :  { %515 = vrot.lane.b32.xlu1 %v513_v5, %s1899_s3 }
 0xdd6   :  { %v516_v6 = vpop.permute.xlu1 %515 }
 0xdd7   :  { %1665 = vmatmul.mubr.msk.bf16.vlgmr.msra.gmra.mrb[12].mxu0 %vm103_vm3, %v516_v6 }
 0xdd8   :  { %1677 = vmatpush3.bf16.msra.mxu0 %v1948_v3  ;;  %1680 = vmatprep.mubr.msk.bf16.mxu0 %vm1896_vm1, %v1895_v0 }
 0xdd9   :  { %1678 = vmatprep.subr.bf16.mxu0 %v1895_v0 }
 0xddc   :  { %1679 = vmatpush3.bf16.msra.mxu0 %v1964_v7 }
 0xddd   :  { %1692 = vmatprep.subr.bf16.mxu0 %v1895_v0 }
 0xeaa   :  { %v554_v9 = vpop.f32.mrb[12].mxu0 }
 0xeab   :  { %v561_v10 = vrot.slane %v554_v9, 6  ;;  %v1666_v11 = vpop.f32.mrb[13].mxu0 }
 0xeac   :  { %v557_v13 = vpop.f32.mrb[14].mxu0 }
 0xead   :  { %v563_v15 = vadd.f32 %v561_v10, %v1988_v14  ;;  %v1667_v16 = vpop.f32.mrb[15].mxu0 }
 0xeaf   :  { %1807 = vtanh.f32 %v563_v15  ;;  %v1528_v3 = vmul.f32 -1.442695, %v563_v15 }
 0xeb1   :  { %1809 = vpow2.f32 %v1528_v3 }
 0xeb9   :  { %v1808_v17 = vpop.eup %1807 }
 0xeba   :  { %576 = vrot.lane.b32.xlu0 %v1808_v17, %s1898_s10 }
 0xebb   :  { %v1810_v18 = vpop.eup %1809 }
 0xebc   :  { %v567_v19 = vadd.f32 1.0, %v1810_v18  ;;  %v2114_v18 = vld [vmem:[%s2307_s5] sm:$0xff]  }
 0xebe   :  { %1811 = vrcp.f32 %v567_v19  ;;  %v1763_v19 = vld [vmem:[%s2308_s4] sm:$0xff]  }
 0xec8   :  { %v1812_v21 = vpop.eup %1811 }
 0xec9   :  { %v574_v24 = vmul.f32 %v1812_v21, %v572_v23 }
 0xf2c   :  { %v577_v7 = vpop.permute.xlu0 %576 }
 0xf2d   :  { %v579_v22 = vmul.f32 %v1812_v21, %v577_v7 }
 0xf2f   :  { %581 = vrot.lane.b32.xlu1 %v579_v22, %s1899_s3 }
 0xfa1   :  { %v582_v25 = vpop.permute.xlu1 %581 }
 0xfa2   :  { %v584_v26 = vadd.f32 %v582_v25, %v574_v24 }
 0xfa4   :  { %1813 = vtanh.f32 %v584_v26  ;;  %v656_v47 = vrot.slane %v584_v26, 6 }
 0xfae   :  { %v1814_v27 = vpop.eup %1813 }
 0xfaf   :  { %587 = vrot.lane.b32.xlu0 %v1814_v27, %s1898_s10 }
0x1021   :  { %v588_v28 = vpop.permute.xlu0 %587 }
0x1022   :  { %v2074_v29 = vmul.f32 %v1812_v21, %v588_v28 }
0x1024   :  { %v596_v30 = vpack.c.bf16 %v2074_v29, %v2074_v29 }
0x1026   :  { %v598_v31 = vrot.slane %v596_v30, 1 }
0x1028   :  { %599 = vrot.lane.b32.xlu1 %v598_v31, %s1899_s3 }
0x109a   :  { %v600_v32 = vpop.permute.xlu1 %599 }
0x109b   :  { %1673 = vmatmul.mubr.msk.bf16.vlgmr.msra.gmra.mrb[12].mxu1 %vm103_vm3, %v600_v32  ;;  %v1533_v32 = vld [vmem:[%s2309_s6] ss:$0 sm:$0xff] }
0x109c   :  { %1688 = vmatprep.mubr.msk.bf16.mxu1 %vm1896_vm1, %v1895_v0  ;;  %1685 = vmatpush3.bf16.msra.mxu1 %v1763_v19 }
0x109d   :  { %1686 = vmatprep.subr.bf16.mxu1 %v1895_v0 }
0x116e   :  { %v638_v34 = vpop.f32.mrb[12].mxu1 }
0x116f   :  { %v645_v35 = vrot.slane %v638_v34, 4  ;;  %v1674_v36 = vpop.f32.mrb[13].mxu1 }
0x1170   :  { %v641_v37 = vpop.f32.mrb[14].mxu1 }
0x1171   :  { %v647_v38 = vadd.f32 %v645_v35, %v1988_v14  ;;  %v1675_v39 = vpop.f32.mrb[15].mxu1 }
0x1173   :  { %1815 = vtanh.f32 %v647_v38  ;;  %v1530_v41 = vmul.f32 -1.442695, %v647_v38 }
0x1175   :  { %1817 = vpow2.f32 %v1530_v41 }
0x117d   :  { %v1816_v40 = vpop.eup %1815 }
0x117e   :  { %660 = vrot.lane.b32.xlu0 %v1816_v40, %s1898_s10 }
0x117f   :  { %v1818_v12 = vpop.eup %1817 }
0x1180   :  { %v651_v42 = vadd.f32 1.0, %v1818_v12 }
0x1182   :  { %1819 = vrcp.f32 %v651_v42 }
0x118c   :  { %v1820_v44 = vpop.eup %1819 }
0x118d   :  { %v658_v48 = vmul.f32 %v1820_v44, %v656_v47 }
0x11f0   :  { %v661_v45 = vpop.permute.xlu0 %660 }
0x11f1   :  { %v663_v46 = vmul.f32 %v1820_v44, %v661_v45 }
0x11f3   :  { %665 = vrot.lane.b32.xlu1 %v663_v46, %s1899_s3 }
0x1265   :  { %v666_v49 = vpop.permute.xlu1 %665 }
0x1266   :  { %v668_v50 = vadd.f32 %v666_v49, %v658_v48 }
0x1268   :  { %1821 = vtanh.f32 %v668_v50 }
0x1272   :  { %v1822_v51 = vpop.eup %1821 }
0x1273   :  { %671 = vrot.lane.b32.xlu0 %v1822_v51, %s1898_s10 }
0x12e5   :  { %v672_v52 = vpop.permute.xlu0 %671 }
0x12e6   :  { %v674_v53 = vmul.f32 %v1820_v44, %v672_v52 }
0x12e8   :  { %v680_v54 = vpack.c.bf16 %v674_v53, %v674_v53 }
0x12ea   :  { %v682_v56 = vrot.slane %v680_v54, 2 }
0x12ec   :  { %683 = vrot.lane.b32.xlu1 %v682_v56, %s1899_s3 }
0x135e   :  { %v684_v57 = vpop.permute.xlu1 %683 }
0x135f   :  { %1681 = vmatmul.mubr.msk.bf16.vlgmr.msra.gmra.mrb[16].mxu0 %vm103_vm3, %v684_v57 }
0x1360   :  { %1696 = vmatprep.mubr.msk.bf16.mxu0 %vm1896_vm1, %v1895_v0  ;;  %1693 = vmatpush3.bf16.msra.mxu0 %v2114_v18 }
0x1361   :  { %1694 = vmatprep.subr.bf16.mxu0 %v1895_v0 }
0x1432   :  { %v722_v58 = vpop.f32.mrb[16].mxu0 }
0x1433   :  { %v729_v59 = vrot.slane %v722_v58, 2  ;;  %v1682_v60 = vpop.f32.mrb[17].mxu0 }
0x1434   :  { %v725_v61 = vpop.f32.mrb[18].mxu0 }
0x1435   :  { %v731_v62 = vadd.f32 %v729_v59, %v1988_v14  ;;  %v1683_v63 = vpop.f32.mrb[19].mxu0  ;;  %v740_v14 = vrot.slane %v668_v50, 6 }
0x1437   :  { %1823 = vtanh.f32 %v731_v62  ;;  %v1532_v2 = vmul.f32 -1.442695, %v731_v62 }
0x1439   :  { %1825 = vpow2.f32 %v1532_v2 }
0x1441   :  { %v1824_v1 = vpop.eup %1823 }
0x1442   :  { %744 = vrot.lane.b32.xlu0 %v1824_v1, %s1898_s10 }
0x1443   :  { %v1826_v5 = vpop.eup %1825 }
0x1444   :  { %v735_v6 = vadd.f32 1.0, %v1826_v5 }
0x1446   :  { %1827 = vrcp.f32 %v735_v6 }
0x1450   :  { %v1828_v9 = vpop.eup %1827 }
0x1451   :  { %v742_v13 = vmul.f32 %v1828_v9, %v740_v14 }
0x14b4   :  { %v745_v10 = vpop.permute.xlu0 %744 }
0x14b5   :  { %v747_v11 = vmul.f32 %v1828_v9, %v745_v10 }
0x14b7   :  { %749 = vrot.lane.b32.xlu1 %v747_v11, %s1899_s3 }
0x14bb   :  { %173 = vrot.lane.b32.xlu1 %v1994_v33, %s1899_s3 }
0x14bf   :  { %342 = vrot.lane.b32.xlu1 %v2026_v20, %s1899_s3 }
0x14c3   :  { %509 = vrot.lane.b32.xlu1 %v2058_v4, %s1899_s3 }
0x14c7   :  { %676 = vrot.lane.b32.xlu1 %v674_v53, %s1899_s3 }
0x1529   :  { %v750_v15 = vpop.permute.xlu1 %749 }
0x152a   :  { %v752_v16 = vadd.f32 %v750_v15, %v742_v13 }
0x152c   :  { %1829 = vtanh.f32 %v752_v16 }
0x152d   :  { %v174_v17 = vpop.permute.xlu1 %173 }
0x152e   :  { %177 = vst.msk [vmem:[#allocation2] sm:$0x3] %vm176_vm4, %v174_v17 }
0x1531   :  { %v343_v3 = vpop.permute.xlu1 %342 }
0x1532   :  { %346 = vst.msk [vmem:[#allocation2] sm:$0x30] %vm345_vm5, %v343_v3 }
0x1535   :  { %v510_v33 = vpop.permute.xlu1 %509 }
0x1536   :  { %v1830_v20 = vpop.eup %1829  ;;  %512 = vst.msk [vmem:[#allocation2 + $0x8] sm:$0x3] %vm176_vm4, %v510_v33 }
0x1537   :  { %755 = vrot.lane.b32.xlu0 %v1830_v20, %s1898_s10 }
0x1539   :  { %v677_v4 = vpop.permute.xlu1 %676 }
0x153a   :  { %679 = vst.msk [vmem:[#allocation2 + $0x8] sm:$0x30] %vm345_vm5, %v677_v4 }
0x153b   :  { %257 = vrot.lane.b32.xlu0 %v2010_v55, %s1899_s3  ;;  %v1765_v55 = vld [vmem:[%s2308_s4 + $0x8] sm:$0xff]  }
0x153c   :  { %1687 = vmatpush3.bf16.msra.mxu1 %v1765_v55 }
0x153d   :  { %1700 = vmatprep.subr.bf16.mxu1 %v1895_v0 }
0x153f   :  { %427 = vrot.lane.b32.xlu0 %v2042_v43, %s1899_s3  ;;  %v2127_v43 = vld [vmem:[%s2307_s5 + $0x8] sm:$0xff]  }
0x1540   :  { %1695 = vmatpush3.bf16.msra.mxu0 %v2127_v43 }
0x1541   :  { %1708 = vmatprep.subr.bf16.mxu0 %v1895_v0 }
0x1543   :  { %592 = vrot.lane.b32.xlu0 %v2074_v29, %s1899_s3  ;;  %1697 = vmatmul.mubr.bf16.vlgmr.msra.gmra.mrb[20].mxu0 %v1897_v8 }
0x1544   :  { %1709 = vmatpush3.bf16.msra.mxu0 %v2114_v18  ;;  %1712 = vmatprep.mubr.msk.bf16.mxu0 %vm1896_vm1, %v1895_v0 }
0x1545   :  { %1710 = vmatprep.subr.bf16.mxu0 %v1895_v0 }
0x1548   :  { %1711 = vmatpush3.bf16.msra.mxu0 %v2127_v43 }
0x1549   :  { %1724 = vmatprep.subr.bf16.mxu0 %v1895_v0 }
0x15a9   :  { %v756_v21 = vpop.permute.xlu0 %755 }
0x15aa   :  { %v758_v7 = vmul.f32 %v1828_v9, %v756_v21 }
0x15ac   :  { %760 = vrot.lane.b32.xlu0 %v758_v7, %s1899_s3 }
0x15ad   :  { %v258_v22 = vpop.permute.xlu0 %257 }
0x15ae   :  { %261 = vst.msk [vmem:[#allocation2] sm:$0xc] %vm260_vm6, %v258_v22 }
0x15b1   :  { %v428_v8 = vpop.permute.xlu0 %427 }
0x15b2   :  { %431 = vst.msk [vmem:[#allocation2] sm:$0xc0] %vm430_vm7, %v428_v8 }
0x15b5   :  { %v593_v23 = vpop.permute.xlu0 %592 }
0x15b6   :  { %595 = vst.msk [vmem:[#allocation2 + $0x8] sm:$0xc] %vm260_vm6, %v593_v23 }
0x15b9   :  { %v773_v25 = vld [vmem:[#allocation2] sm:$0xff] }
0x1616   :  { %v884_v28 = vpop.f32.mrb[20].mxu0 }
0x1617   :  { %v1698_v29 = vpop.f32.mrb[21].mxu0 }
0x1618   :  { %v887_v30 = vpop.f32.mrb[22].mxu0 }
0x1619   :  { %v1699_v31 = vpop.f32.mrb[23].mxu0 }
0x161e   :  { %v761_v24 = vpop.permute.xlu0 %760 }
0x161f   :  { %763 = vst.msk [vmem:[#allocation2 + $0x8] sm:$0xc0] %vm430_vm7, %v761_v24 }
0x1626   :  { %v774_v26 = vld [vmem:[#allocation2 + $0x8] sm:$0xff] }
0x1627   :  { %v775_v27 = vpack.c.bf16 %v774_v26, %v773_v25 }
0x1629   :  { %1689 = vmatmul.mubr.msk.bf16.vlgmr.msra.gmra.mrb[16].mxu1 %vm103_vm3, %v775_v27 }
0x162a   :  { %1701 = vmatpush3.bf16.msra.mxu1 %v2114_v18  ;;  %1704 = vmatprep.mubr.msk.bf16.mxu1 %vm1896_vm1, %v1895_v0 }
0x162b   :  { %1702 = vmatprep.subr.bf16.mxu1 %v1895_v0 }
0x162e   :  { %1703 = vmatpush3.bf16.msra.mxu1 %v2127_v43 }
0x162f   :  { %1716 = vmatprep.subr.bf16.mxu1 %v1895_v0 }
0x16fc   :  { %v831_v34 = vpop.f32.mrb[16].mxu1 }
0x16fd   :  { %v2155_v35 = vadd.f32 %v1533_v32, %v831_v34  ;;  %v1690_v36 = vpop.f32.mrb[17].mxu1 }
0x16fe   :  { %v834_v37 = vpop.f32.mrb[18].mxu1 }
0x16ff   :  { %v890_v38 = vadd.f32 %v884_v28, %v2155_v35  ;;  %v2158_v39 = vadd.f32 %v1533_v32, %v834_v37  ;;  %v1691_v40 = vpop.f32.mrb[19].mxu1 }
0x1701   :  { %1831 = vtanh.f32 %v890_v38  ;;  %v1539_v12 = vmul.f32 -1.442695, %v890_v38 }
0x1703   :  { %1833 = vpow2.f32 %v1539_v12 }
0x170b   :  { %v1832_v41 = vpop.eup %1831 }
0x170c   :  { %900 = vrot.lane.b32.xlu1 %v1832_v41, %s1898_s10 }
0x170d   :  { %v1834_v42 = vpop.eup %1833 }
0x170e   :  { %v894_v44 = vadd.f32 1.0, %v1834_v42 }
0x1710   :  { %1835 = vrcp.f32 %v894_v44 }
0x171a   :  { %v1836_v45 = vpop.eup %1835 }
0x171b   :  { %v898_v48 = vmul.f32 0.0, %v1836_v45 }
0x177e   :  { %v901_v46 = vpop.permute.xlu1 %900 }
0x177f   :  { %v903_v47 = vmul.f32 %v1836_v45, %v901_v46 }
0x1781   :  { %905 = vrot.lane.b32.xlu0 %v903_v47, %s1899_s3 }
0x17f3   :  { %v906_v49 = vpop.permute.xlu0 %905 }
0x17f4   :  { %v908_v50 = vadd.f32 %v906_v49, %v898_v48 }
0x17f6   :  { %1837 = vtanh.f32 %v908_v50  ;;  %v979_v11 = vrot.slane %v908_v50, 6 }
0x1800   :  { %v1838_v51 = vpop.eup %1837 }
0x1801   :  { %911 = vrot.lane.b32.xlu1 %v1838_v51, %s1898_s10 }
0x1873   :  { %v912_v52 = vpop.permute.xlu1 %911 }
0x1874   :  { %v2163_v53 = vmul.f32 %v1836_v45, %v912_v52 }
0x1876   :  { %v920_v54 = vpack.c.bf16 %v2163_v53, %v2163_v53 }
0x1878   :  { %922 = vrot.lane.b32.xlu0 %v920_v54, %s1899_s3 }
0x18ea   :  { %v923_v56 = vpop.permute.xlu0 %922 }
0x18eb   :  { %1705 = vmatmul.mubr.msk.bf16.vlgmr.msra.gmra.mrb[20].mxu1 %vm103_vm3, %v923_v56 }
0x18ec   :  { %1717 = vmatpush3.bf16.msra.mxu1 %v2114_v18  ;;  %1720 = vmatprep.mubr.msk.bf16.mxu1 %vm1896_vm1, %v1895_v0 }
0x18ed   :  { %1718 = vmatprep.subr.bf16.mxu1 %v1895_v0 }
0x18f0   :  { %1719 = vmatpush3.bf16.msra.mxu1 %v2127_v43 }
0x18f1   :  { %1732 = vmatprep.subr.bf16.mxu1 %v1895_v0 }
0x19be   :  { %v961_v57 = vpop.f32.mrb[20].mxu1 }
0x19bf   :  { %v968_v58 = vrot.slane %v961_v57, 6  ;;  %v1706_v59 = vpop.f32.mrb[21].mxu1 }
0x19c0   :  { %v964_v60 = vpop.f32.mrb[22].mxu1 }
0x19c1   :  { %v970_v61 = vadd.f32 %v968_v58, %v2155_v35  ;;  %v1707_v62 = vpop.f32.mrb[23].mxu1 }
0x19c3   :  { %1839 = vtanh.f32 %v970_v61  ;;  %v1541_v1 = vmul.f32 -1.442695, %v970_v61 }
0x19c5   :  { %1841 = vpow2.f32 %v1541_v1 }
0x19cd   :  { %v1840_v63 = vpop.eup %1839 }
0x19ce   :  { %983 = vrot.lane.b32.xlu1 %v1840_v63, %s1898_s10 }
0x19cf   :  { %v1842_v2 = vpop.eup %1841 }
0x19d0   :  { %v974_v5 = vadd.f32 1.0, %v1842_v2 }
0x19d2   :  { %1843 = vrcp.f32 %v974_v5 }
0x19dc   :  { %v1844_v6 = vpop.eup %1843 }
0x19dd   :  { %v981_v14 = vmul.f32 %v1844_v6, %v979_v11 }
0x1a40   :  { %v984_v9 = vpop.permute.xlu1 %983 }
0x1a41   :  { %v986_v10 = vmul.f32 %v1844_v6, %v984_v9 }
0x1a43   :  { %988 = vrot.lane.b32.xlu0 %v986_v10, %s1899_s3 }
0x1ab5   :  { %v989_v13 = vpop.permute.xlu0 %988 }
0x1ab6   :  { %v991_v15 = vadd.f32 %v989_v13, %v981_v14 }
0x1ab8   :  { %1845 = vtanh.f32 %v991_v15  ;;  %v1064_v30 = vrot.slane %v991_v15, 6 }
0x1ac2   :  { %v1846_v16 = vpop.eup %1845 }
0x1ac3   :  { %994 = vrot.lane.b32.xlu1 %v1846_v16, %s1898_s10 }
0x1b35   :  { %v995_v17 = vpop.permute.xlu1 %994 }
0x1b36   :  { %v2179_v3 = vmul.f32 %v1844_v6, %v995_v17 }
0x1b38   :  { %v1004_v33 = vpack.c.bf16 %v2179_v3, %v2179_v3 }
0x1b3a   :  { %v1006_v20 = vrot.slane %v1004_v33, 1 }
0x1b3c   :  { %1007 = vrot.lane.b32.xlu0 %v1006_v20, %s1899_s3 }
0x1bae   :  { %v1008_v4 = vpop.permute.xlu0 %1007 }
0x1baf   :  { %1713 = vmatmul.mubr.msk.bf16.vlgmr.msra.gmra.mrb[24].mxu0 %vm103_vm3, %v1008_v4 }
0x1bb0   :  { %1725 = vmatpush3.bf16.msra.mxu0 %v2114_v18  ;;  %1728 = vmatprep.mubr.msk.bf16.mxu0 %vm1896_vm1, %v1895_v0 }
0x1bb1   :  { %1726 = vmatprep.subr.bf16.mxu0 %v1895_v0 }
0x1bb4   :  { %1727 = vmatpush3.bf16.msra.mxu0 %v2127_v43 }
0x1bb5   :  { %1740 = vmatprep.subr.bf16.mxu0 %v1895_v0 }
0x1c82   :  { %v1046_v19 = vpop.f32.mrb[24].mxu0 }
0x1c83   :  { %v1053_v55 = vrot.slane %v1046_v19, 4  ;;  %v1714_v21 = vpop.f32.mrb[25].mxu0 }
0x1c84   :  { %v1049_v7 = vpop.f32.mrb[26].mxu0 }
0x1c85   :  { %v1055_v22 = vadd.f32 %v1053_v55, %v2155_v35  ;;  %v1715_v8 = vpop.f32.mrb[27].mxu0 }
0x1c87   :  { %1847 = vtanh.f32 %v1055_v22  ;;  %v1544_v24 = vmul.f32 -1.442695, %v1055_v22 }
0x1c89   :  { %1849 = vpow2.f32 %v1544_v24 }
0x1c91   :  { %v1848_v23 = vpop.eup %1847 }
0x1c92   :  { %1068 = vrot.lane.b32.xlu1 %v1848_v23, %s1898_s10 }
0x1c93   :  { %v1850_v25 = vpop.eup %1849 }
0x1c94   :  { %v1059_v26 = vadd.f32 1.0, %v1850_v25 }
0x1c96   :  { %1851 = vrcp.f32 %v1059_v26 }
0x1ca0   :  { %v1852_v27 = vpop.eup %1851 }
0x1ca1   :  { %v1066_v31 = vmul.f32 %v1852_v27, %v1064_v30 }
0x1d04   :  { %v1069_v28 = vpop.permute.xlu1 %1068 }
0x1d05   :  { %v1071_v29 = vmul.f32 %v1852_v27, %v1069_v28 }
0x1d07   :  { %1073 = vrot.lane.b32.xlu0 %v1071_v29, %s1899_s3 }
0x1d79   :  { %v1074_v32 = vpop.permute.xlu0 %1073 }
0x1d7a   :  { %v1076_v34 = vadd.f32 %v1074_v32, %v1066_v31 }
0x1d7c   :  { %1853 = vtanh.f32 %v1076_v34  ;;  %v1149_v58 = vrot.slane %v1076_v34, 6 }
0x1d86   :  { %v1854_v36 = vpop.eup %1853 }
0x1d87   :  { %1079 = vrot.lane.b32.xlu1 %v1854_v36, %s1898_s10 }
0x1df9   :  { %v1080_v37 = vpop.permute.xlu1 %1079 }
0x1dfa   :  { %v2195_v38 = vmul.f32 %v1852_v27, %v1080_v37 }
0x1dfc   :  { %v1089_v40 = vpack.c.bf16 %v2195_v38, %v2195_v38 }
0x1dfe   :  { %v1091_v41 = vrot.slane %v1089_v40, 2 }
0x1e00   :  { %1092 = vrot.lane.b32.xlu0 %v1091_v41, %s1899_s3 }
0x1e72   :  { %v1093_v12 = vpop.permute.xlu0 %1092 }
0x1e73   :  { %1721 = vmatmul.mubr.msk.bf16.vlgmr.msra.gmra.mrb[24].mxu1 %vm103_vm3, %v1093_v12 }
0x1e74   :  { %1733 = vmatpush3.bf16.msra.mxu1 %v2114_v18  ;;  %1736 = vmatprep.mubr.msk.bf16.mxu1 %vm1896_vm1, %v1895_v0 }
0x1e75   :  { %1734 = vmatprep.subr.bf16.mxu1 %v1895_v0 }
0x1e78   :  { %1735 = vmatpush3.bf16.msra.mxu1 %v2127_v43 }
0x1e79   :  { %1748 = vmatprep.subr.bf16.mxu1 %v1895_v0 }
0x1f46   :  { %v1131_v42 = vpop.f32.mrb[24].mxu1 }
0x1f47   :  { %v1138_v44 = vrot.slane %v1131_v42, 2  ;;  %v1722_v45 = vpop.f32.mrb[25].mxu1 }
0x1f48   :  { %v1134_v46 = vpop.f32.mrb[26].mxu1 }
0x1f49   :  { %v1140_v47 = vadd.f32 %v1138_v44, %v2155_v35  ;;  %v1723_v48 = vpop.f32.mrb[27].mxu1 }
0x1f4b   :  { %1855 = vtanh.f32 %v1140_v47  ;;  %v1547_v50 = vmul.f32 -1.442695, %v1140_v47 }
0x1f4d   :  { %1857 = vpow2.f32 %v1547_v50 }
0x1f55   :  { %v1856_v49 = vpop.eup %1855 }
0x1f56   :  { %1153 = vrot.lane.b32.xlu1 %v1856_v49, %s1898_s10 }
0x1f57   :  { %v1858_v51 = vpop.eup %1857 }
0x1f58   :  { %v1144_v52 = vadd.f32 1.0, %v1858_v51 }
0x1f5a   :  { %1859 = vrcp.f32 %v1144_v52 }
0x1f64   :  { %v1860_v54 = vpop.eup %1859 }
0x1f65   :  { %v1151_v59 = vmul.f32 %v1860_v54, %v1149_v58 }
0x1fc8   :  { %v1154_v56 = vpop.permute.xlu1 %1153 }
0x1fc9   :  { %v1156_v57 = vmul.f32 %v1860_v54, %v1154_v56 }
0x1fcb   :  { %1158 = vrot.lane.b32.xlu0 %v1156_v57, %s1899_s3 }
0x203d   :  { %v1159_v60 = vpop.permute.xlu0 %1158 }
0x203e   :  { %v1161_v61 = vadd.f32 %v1159_v60, %v1151_v59 }
0x2040   :  { %1861 = vtanh.f32 %v1161_v61  ;;  %v1231_v19 = vrot.slane %v1161_v61, 6 }
0x204a   :  { %v1862_v35 = vpop.eup %1861 }
0x204b   :  { %1164 = vrot.lane.b32.xlu1 %v1862_v35, %s1898_s10 }
0x20bd   :  { %v1165_v62 = vpop.permute.xlu1 %1164 }
0x20be   :  { %v2211_v63 = vmul.f32 %v1860_v54, %v1165_v62 }
0x20c0   :  { %v1174_v1 = vpack.c.bf16 %v2211_v63, %v2211_v63 }
0x20c2   :  { %v1176_v2 = vrot.slane %v1174_v1, 3 }
0x20c4   :  { %1177 = vrot.lane.b32.xlu0 %v1176_v2, %s1899_s3 }
0x2136   :  { %v1178_v5 = vpop.permute.xlu0 %1177 }
0x2137   :  { %1729 = vmatmul.mubr.msk.bf16.vlgmr.msra.gmra.mrb[28].mxu0 %vm103_vm3, %v1178_v5 }
0x2138   :  { %1741 = vmatpush3.bf16.msra.mxu0 %v2114_v18  ;;  %1744 = vmatprep.mubr.msk.bf16.mxu0 %vm1896_vm1, %v1895_v0 }
0x2139   :  { %1742 = vmatprep.subr.bf16.mxu0 %v1895_v0 }
0x213c   :  { %1743 = vmatpush3.bf16.msra.mxu0 %v2127_v43 }
0x220a   :  { %v1216_v6 = vpop.f32.mrb[28].mxu0 }
0x220b   :  { %v1222_v9 = vadd.f32 %v1216_v6, %v2158_v39  ;;  %v1730_v10 = vpop.f32.mrb[29].mxu0 }
0x220c   :  { %v1219_v11 = vpop.f32.mrb[30].mxu0 }
0x220d   :  { %1863 = vtanh.f32 %v1222_v9  ;;  %v1731_v14 = vpop.f32.mrb[31].mxu0  ;;  %v1550_v15 = vmul.f32 -1.442695, %v1222_v9 }
0x220f   :  { %1865 = vpow2.f32 %v1550_v15 }
0x2217   :  { %v1864_v13 = vpop.eup %1863 }
0x2218   :  { %1235 = vrot.lane.b32.xlu1 %v1864_v13, %s1898_s10 }
0x2219   :  { %v1866_v16 = vpop.eup %1865 }
0x221a   :  { %v1226_v17 = vadd.f32 1.0, %v1866_v16 }
0x221c   :  { %1867 = vrcp.f32 %v1226_v17 }
0x2226   :  { %v1868_v33 = vpop.eup %1867 }
0x2227   :  { %v1233_v55 = vmul.f32 %v1868_v33, %v1231_v19 }
0x228a   :  { %v1236_v20 = vpop.permute.xlu1 %1235 }
0x228b   :  { %v1238_v4 = vmul.f32 %v1868_v33, %v1236_v20 }
0x228d   :  { %1240 = vrot.lane.b32.xlu0 %v1238_v4, %s1899_s3 }
0x22ff   :  { %v1241_v21 = vpop.permute.xlu0 %1240 }
0x2300   :  { %v1243_v7 = vadd.f32 %v1241_v21, %v1233_v55 }
0x2302   :  { %1869 = vtanh.f32 %v1243_v7 }
0x230c   :  { %v1870_v22 = vpop.eup %1869 }
0x230d   :  { %1246 = vrot.lane.b32.xlu1 %v1870_v22, %s1898_s10 }
0x237f   :  { %v1247_v8 = vpop.permute.xlu1 %1246 }
0x2380   :  { %v2226_v23 = vmul.f32 %v1868_v33, %v1247_v8 }
0x2382   :  { %v1256_v24 = vpack.c.bf16 %v2226_v23, %v2226_v23 }
0x2384   :  { %1258 = vrot.lane.b32.xlu0 %v1256_v24, %s1899_s3 }
0x23f6   :  { %v1259_v25 = vpop.permute.xlu0 %1258 }
0x23f7   :  { %1737 = vmatmul.mubr.msk.bf16.vlgmr.msra.gmra.mrb[28].mxu1 %vm103_vm3, %v1259_v25 }
0x23f8   :  { %1749 = vmatpush3.bf16.msra.mxu1 %v2114_v18  ;;  %1752 = vmatprep.mubr.msk.bf16.mxu1 %vm1896_vm1, %v1895_v0 }
0x23f9   :  { %1750 = vmatprep.subr.bf16.mxu1 %v1895_v0 }
0x23fc   :  { %1751 = vmatpush3.bf16.msra.mxu1 %v2127_v43  ;;  %v1315_v43 = vrot.slane %v1243_v7, 6 }
0x24ca   :  { %v1297_v26 = vpop.f32.mrb[28].mxu1 }
0x24cb   :  { %v1304_v27 = vrot.slane %v1297_v26, 6  ;;  %v1738_v28 = vpop.f32.mrb[29].mxu1 }
0x24cc   :  { %v1300_v29 = vpop.f32.mrb[30].mxu1 }
0x24cd   :  { %v1306_v30 = vadd.f32 %v1304_v27, %v2158_v39  ;;  %v1739_v31 = vpop.f32.mrb[31].mxu1 }
0x24cf   :  { %1871 = vtanh.f32 %v1306_v30  ;;  %v1553_v34 = vmul.f32 -1.442695, %v1306_v30 }
0x24d1   :  { %1873 = vpow2.f32 %v1553_v34 }
0x24d9   :  { %v1872_v32 = vpop.eup %1871 }
0x24da   :  { %1319 = vrot.lane.b32.xlu1 %v1872_v32, %s1898_s10 }
0x24db   :  { %v1874_v18 = vpop.eup %1873 }
0x24dc   :  { %v1310_v36 = vadd.f32 1.0, %v1874_v18 }
0x24de   :  { %1875 = vrcp.f32 %v1310_v36 }
0x24e8   :  { %v1876_v37 = vpop.eup %1875 }
0x24e9   :  { %v1317_v41 = vmul.f32 %v1876_v37, %v1315_v43 }
0x254c   :  { %v1320_v0 = vpop.permute.xlu1 %1319 }
0x254d   :  { %v1322_v40 = vmul.f32 %v1876_v37, %v1320_v0 }
0x254f   :  { %1324 = vrot.lane.b32.xlu0 %v1322_v40, %s1899_s3 }
0x25c1   :  { %v1325_v12 = vpop.permute.xlu0 %1324 }
0x25c2   :  { %v1327_v42 = vadd.f32 %v1325_v12, %v1317_v41 }
0x25c4   :  { %1877 = vtanh.f32 %v1327_v42  ;;  %v1400_v2 = vrot.slane %v1327_v42, 6 }
0x25ce   :  { %v1878_v44 = vpop.eup %1877 }
0x25cf   :  { %1330 = vrot.lane.b32.xlu1 %v1878_v44, %s1898_s10 }
0x2641   :  { %v1331_v45 = vpop.permute.xlu1 %1330 }
0x2642   :  { %v2241_v46 = vmul.f32 %v1876_v37, %v1331_v45 }
0x2644   :  { %v1340_v47 = vpack.c.bf16 %v2241_v46, %v2241_v46 }
0x2646   :  { %v1342_v48 = vrot.slane %v1340_v47, 1 }
0x2648   :  { %1343 = vrot.lane.b32.xlu0 %v1342_v48, %s1899_s3 }
0x26ba   :  { %v1344_v49 = vpop.permute.xlu0 %1343 }
0x26bb   :  { %1745 = vmatmul.mubr.msk.bf16.vlgmr.msra.gmra.mrb[32].mxu0 %vm103_vm3, %v1344_v49 }
0x278e   :  { %v1382_v50 = vpop.f32.mrb[32].mxu0 }
0x278f   :  { %v1389_v51 = vrot.slane %v1382_v50, 4  ;;  %v1746_v52 = vpop.f32.mrb[33].mxu0 }
0x2790   :  { %v1385_v54 = vpop.f32.mrb[34].mxu0 }
0x2791   :  { %v1391_v56 = vadd.f32 %v1389_v51, %v2158_v39  ;;  %v1747_v57 = vpop.f32.mrb[35].mxu0 }
0x2793   :  { %1879 = vtanh.f32 %v1391_v56  ;;  %v1556_v59 = vmul.f32 -1.442695, %v1391_v56 }
0x2795   :  { %1881 = vpow2.f32 %v1556_v59 }
0x279d   :  { %v1880_v58 = vpop.eup %1879 }
0x279e   :  { %1404 = vrot.lane.b32.xlu1 %v1880_v58, %s1898_s10 }
0x279f   :  { %v1882_v60 = vpop.eup %1881 }
0x27a0   :  { %v1395_v61 = vadd.f32 1.0, %v1882_v60 }
0x27a2   :  { %1883 = vrcp.f32 %v1395_v61 }
0x27ac   :  { %v1884_v35 = vpop.eup %1883 }
0x27ad   :  { %v1402_v5 = vmul.f32 %v1884_v35, %v1400_v2 }
0x2810   :  { %v1405_v62 = vpop.permute.xlu1 %1404 }
0x2811   :  { %v1407_v1 = vmul.f32 %v1884_v35, %v1405_v62 }
0x2813   :  { %1409 = vrot.lane.b32.xlu0 %v1407_v1, %s1899_s3 }
0x2885   :  { %v1410_v6 = vpop.permute.xlu0 %1409 }
0x2886   :  { %v1412_v9 = vadd.f32 %v1410_v6, %v1402_v5 }
0x2888   :  { %1885 = vtanh.f32 %v1412_v9 }
0x2892   :  { %v1886_v10 = vpop.eup %1885 }
0x2893   :  { %1415 = vrot.lane.b32.xlu1 %v1886_v10, %s1898_s10 }
0x2905   :  { %v1416_v11 = vpop.permute.xlu1 %1415 }
0x2906   :  { %v1418_v14 = vmul.f32 %v1884_v35, %v1416_v11 }
0x2908   :  { %v1425_v13 = vpack.c.bf16 %v1418_v14, %v1418_v14 }
0x290a   :  { %v1427_v15 = vrot.slane %v1425_v13, 2 }
0x290c   :  { %1428 = vrot.lane.b32.xlu0 %v1427_v15, %s1899_s3 }
0x297e   :  { %v1429_v16 = vpop.permute.xlu0 %1428 }
0x297f   :  { %1753 = vmatmul.mubr.msk.bf16.vlgmr.msra.gmra.mrb[32].mxu1 %vm103_vm3, %v1429_v16 }
0x2a52   :  { %v1467_v17 = vpop.f32.mrb[32].mxu1 }
0x2a53   :  { %v1474_v33 = vrot.slane %v1467_v17, 2  ;;  %v1754_v20 = vpop.f32.mrb[33].mxu1 }
0x2a54   :  { %v1470_v4 = vpop.f32.mrb[34].mxu1 }
0x2a55   :  { %v1476_v19 = vadd.f32 %v1474_v33, %v2158_v39  ;;  %v1755_v55 = vpop.f32.mrb[35].mxu1  ;;  %v1485_v39 = vrot.slane %v1412_v9, 6 }
0x2a57   :  { %1887 = vtanh.f32 %v1476_v19  ;;  %v1559_v7 = vmul.f32 -1.442695, %v1476_v19 }
0x2a59   :  { %1889 = vpow2.f32 %v1559_v7 }
0x2a61   :  { %v1888_v21 = vpop.eup %1887 }
0x2a62   :  { %1489 = vrot.lane.b32.xlu1 %v1888_v21, %s1898_s10 }
0x2a63   :  { %v1890_v22 = vpop.eup %1889 }
0x2a64   :  { %v1480_v8 = vadd.f32 1.0, %v1890_v22 }
0x2a66   :  { %1891 = vrcp.f32 %v1480_v8 }
0x2a70   :  { %v1892_v24 = vpop.eup %1891 }
0x2a71   :  { %v1487_v27 = vmul.f32 %v1892_v24, %v1485_v39 }
0x2ad4   :  { %v1490_v25 = vpop.permute.xlu1 %1489 }
0x2ad5   :  { %v1492_v26 = vmul.f32 %v1892_v24, %v1490_v25 }
0x2ad7   :  { %1494 = vrot.lane.b32.xlu0 %v1492_v26, %s1899_s3 }
0x2adb   :  { %916 = vrot.lane.b32.xlu0 %v2163_v53, %s1899_s3 }
0x2adf   :  { %1084 = vrot.lane.b32.xlu0 %v2195_v38, %s1899_s3 }
0x2ae3   :  { %1251 = vrot.lane.b32.xlu0 %v2226_v23, %s1899_s3 }
0x2ae7   :  { %1420 = vrot.lane.b32.xlu0 %v1418_v14, %s1899_s3 }
0x2b49   :  { %v1495_v28 = vpop.permute.xlu0 %1494 }
0x2b4a   :  { %v1497_v29 = vadd.f32 %v1495_v28, %v1487_v27 }
0x2b4c   :  { %1893 = vtanh.f32 %v1497_v29 }
0x2b4d   :  { %v917_v30 = vpop.permute.xlu0 %916 }
0x2b4e   :  { %919 = vst.msk [vmem:[%s2310_s7] sm:$0x3] %vm176_vm4, %v917_v30 }
0x2b51   :  { %v1085_v53 = vpop.permute.xlu0 %1084 }
0x2b52   :  { %1545 = vst.msk [vmem:[%s2310_s7] sm:$0x30] %vm345_vm5, %v1085_v53 }
0x2b55   :  { %v1252_v38 = vpop.permute.xlu0 %1251 }
0x2b56   :  { %v1894_v23 = vpop.eup %1893  ;;  %1551 = vst.msk [vmem:[%s2310_s7 + $0x8] sm:$0x3] %vm176_vm4, %v1252_v38 }
0x2b57   :  { %1500 = vrot.lane.b32.xlu1 %v1894_v23, %s1898_s10 }
0x2b59   :  { %v1421_v31 = vpop.permute.xlu0 %1420 }
0x2b5a   :  { %1557 = vst.msk [vmem:[%s2310_s7 + $0x8] sm:$0x30] %vm345_vm5, %v1421_v31 }
0x2b5b   :  { %999 = vrot.lane.b32.xlu1 %v2179_v3, %s1899_s3 }
0x2b5f   :  { %1169 = vrot.lane.b32.xlu1 %v2211_v63, %s1899_s3 }
0x2b63   :  { %1335 = vrot.lane.b32.xlu1 %v2241_v46, %s1899_s3 }
0x2bc9   :  { %v1501_v32 = vpop.permute.xlu1 %1500 }
0x2bca   :  { %v1503_v34 = vmul.f32 %v1892_v24, %v1501_v32 }
0x2bcc   :  { %1505 = vrot.lane.b32.xlu1 %v1503_v34, %s1899_s3 }
0x2bcd   :  { %v1000_v18 = vpop.permute.xlu1 %999 }
0x2bce   :  { %1542 = vst.msk [vmem:[%s2310_s7] sm:$0xc] %vm260_vm6, %v1000_v18 }
0x2bd1   :  { %v1170_v36 = vpop.permute.xlu1 %1169 }
0x2bd2   :  { %1548 = vst.msk [vmem:[%s2310_s7] sm:$0xc0] %vm430_vm7, %v1170_v36 }
0x2bd5   :  { %v1336_v3 = vpop.permute.xlu1 %1335 }
0x2bd6   :  { %1554 = vst.msk [vmem:[%s2310_s7 + $0x8] sm:$0xc] %vm260_vm6, %v1336_v3 }
0x2c3e   :  { %v1506_v63 = vpop.permute.xlu1 %1505 }
0x2c3f   :  { %1560 = vst.msk [vmem:[%s2310_s7 + $0x8] sm:$0xc0] %vm430_vm7, %v1506_v63 }

// kernel: physics_predictor_forward.2
= control target key start
LH: loop header
LB: loop body
LE: loop exit
PB: predicated region body
PF: predicated region fallthrough
CT: control target
= control target key end

     0   :  { %s9454_s21 = smov 0   ;;  %s12632_s0 = inlined_call_operand.vmem [shape: bf16[2,24,1536], index: 0, kind: input, shape index: {}]   ;;  %s12633_s1 = inlined_call_operand.vmem [shape: bf16[9,1,1408], index: 1, kind: input, shape index: {}]   ;;  %s12634_s2 = inlined_call_operand.vmem [shape: bf16[9,24,24], index: 2, kind: input, shape index: {}]   ;;  %s12635_s3 = inlined_call_operand.vmem [shape: f32[24,1], index: 3, kind: input, shape index: {}]   ;;  %s12636_s4 = inlined_call_operand.vmem [shape: bf16[3,4,1408], index: 4, kind: input, shape index: {}]   ;;  %s12637_s5 = inlined_call_operand.vmem [shape: f32[1,4], index: 5, kind: input, shape index: {}]   ;;  %s12638_s6 = inlined_call_operand.vmem [shape: f32[16,4], index: 6, kind: output, shape index: {}]  }
   0x1 LB: > { %s8422_s22 = sadd.s32 4294967295, %s9396_s21   ;;  %p8426_p0 = scmp.ge.s32.totalorder %s9396_s21, 1  ;;  %s9396_s21 = sphi %s9454_s21, %s16_s21  }
   0x2   : > { %p212_p1 = scmp.lt.s32.totalorder %s9396_s21, 3 }
   0x4   : > { %p213_p2 = pnand %p8426_p0, %p212_p1 }
   0x6   : > { %216 = sbr.rel (%p213_p2) target bundleno = 1578 (0x62a), region = 44 }
   0xd   : > { %v277_v0 = vlaneseq  ;;  %v9398_v1 = vmov 1966171168   ;;  %v8438_v3 = vld.sshfl [vmem:[%s12633_s1 + $0x13] sm:$0x13 pattern:$0x75316420] }
   0xe   : > { %v275_v2 = vunpack.c.l.s4 %v9398_v1  ;;  %v8436_v5 = vld [vmem:[%s12633_s1 + $0xb] sm:$0xff]  ;;  %v556_v8 = vcombine.high %v8438_v3, %v8438_v3  ;;  %v9476_v10 = vld [vmem:[%s12633_s1 + $0x16] sm:$0xff]  ;;  %s9399_s29 = smov 1   ;;  %s9400_s30 = smov 2   ;;  %vm695_vm0 = vcmask 7168   ;;  %vm697_vm1 = vcmask 1043456  }
   0xf   : > { %v9465_v4 = vshrl.u32 %v277_v0, 7  ;;  %v500_v7 = vcombine.high %v8436_v5, %v8436_v5  ;;  %p241_p3 = scmp.lt.s32.totalorder %s8422_s22, 1  ;;  %s9401_s11 = smov 127   ;;  %vm904_vm2 = vcmask 195584   ;;  %vm1900_vm3 = vcmask 15360  }
  0x10   : > { %v276_v6 = vunpack.c.0.s8 %v275_v2  ;;  %s9403_s20 = smov 36   ;;  %s9404_s23 = smov 126   ;;  %vm870_vm4 = vcmask 1039360   ;;  %vm2701_vm5 = vcmask 293888   ;;  %vm3502_vm6 = vcmask 302080  }
  0x11   : > { %12656 = vst [vmem:[#allocation2_spill] sm:$0xff] %v9465_v4  ;;  %v9482_v14 = vsub.s32 0, %v9465_v4  ;;  %s12711_s22 = smov (!%p241_p3, %s8422_s22), 1  ;;  %s9405_s26 = smov 37   ;;  %vm2074_vm7 = vcmask 1031168   ;;  %vm4303_vm8 = vcmask 310272  }
  0x12   : > { %v9471_v9 = vsub.s32 %v276_v6, %v9465_v4  ;;  %s9297_s7 = smul.u32 144, %s12711_s22  ;;  %s9406_s9 = smov 92   ;;  %vm2875_vm9 = vcmask 752640   ;;  %vm3676_vm10 = vcmask 744448   ;;  %vm5104_vm11 = vcmask 588800  }
  0x13   : > { %s9407_s19 = smov 38   ;;  %s9408_s25 = smov 91   ;;  %vm4477_vm12 = vcmask 736256   ;;  %vm5905_vm13 = vcmask 596992   ;;  %vm5278_vm14 = vcmask 457728   ;;  %vm6706_vm15 = vcmask 605184  }
  0x14   : > { %v507_v11 = vrot.slane %v8436_v5, %v9471_v9  ;;  %v514_v12 = vrot.slane %v500_v7, %v9471_v9  ;;  %v563_v13 = vrot.slane %v8438_v3, %v9471_v9  ;;  %v570_v15 = vrot.slane %v556_v8, %v9471_v9  ;;  %s9527_s10 = scalar_lea.vmem %s12632_s0, %s9297_s7  ;;  %s9409_s27 = smov 72  }
  0x15   : > { %v1712_v16 = vrot.slane %v9476_v10, %v9471_v9  ;;  %v1705_v8 = vcombine.high %v9476_v10, %v9476_v10  ;;  %s9411_s18 = smov 73   ;;  %s9414_s12 = smov 55  }
  0x16   : > { %v515_v17 = vcombine.high %v507_v11, %v507_v11  ;;  %v523_v18 = vrot.slane %v507_v11, %v9471_v9  ;;  %v516_v19 = vcombine.high %v514_v12, %v514_v12  ;;  %v530_v20 = vrot.slane %v514_v12, %v9471_v9 }
  0x17   : > { %v629_v21 = vpack.i.b16 %v563_v13, %v563_v13  ;;  %v571_v22 = vcombine.high %v563_v13, %v563_v13  ;;  %v636_v29 = vpack.i.b16 %v570_v15, %v570_v15  ;;  %v1720_v30 = vcombine.high %v1712_v16, %v1712_v16  ;;  %v9532_v13 = vld [vmem:[%s9527_s10] sm:$0xff]  ;;  %v9535_v15 = vld [vmem:[%s9527_s10 + $0x30] sm:$0xff] }
  0x18   : > { %v537_v23 = vrot.slane %v515_v17, %v9471_v9  ;;  %v573_v24 = vpack.i.b16 %v523_v18, %v523_v18  ;;  %v544_v25 = vrot.slane %v516_v19, %v9471_v9  ;;  %v601_v26 = vpack.i.b16 %v530_v20, %v530_v20 }
  0x19   : > { %v545_v27 = vcombine.high %v523_v18, %v523_v18  ;;  %v546_v28 = vcombine.high %v530_v20, %v530_v20  ;;  %v634_v41 = vrot.slane %v629_v21, %v9482_v14  ;;  %v643_v42 = vpack.i.b16 %v571_v22, %v571_v22 }
  0x1a   : > { %v578_v31 = vrot.slane %v573_v24, %v9482_v14  ;;  %v580_v32 = vpack.i.b16 %v537_v23, %v537_v23  ;;  %v606_v33 = vrot.slane %v601_v26, %v9482_v14  ;;  %v608_v34 = vpack.i.b16 %v544_v25, %v544_v25  ;;  %v9548_v26 = vld [vmem:[%s9527_s10 + $0x8] sm:$0xff] }
  0x1b   : > { %v547_v35 = vcombine.high %v537_v23, %v537_v23  ;;  %v587_v36 = vpack.i.b16 %v545_v27, %v545_v27  ;;  %v548_v37 = vcombine.high %v544_v25, %v544_v25  ;;  %v615_v38 = vpack.i.b16 %v546_v28, %v546_v28  ;;  %v9551_v27 = vld [vmem:[%s9527_s10 + $0x38] sm:$0xff] }
  0x1c   : > { %v585_v39 = vrot.slane %v580_v32, %v9482_v14  ;;  %v613_v40 = vrot.slane %v608_v34, %v9482_v14  ;;  %v641_v49 = vrot.slane %v636_v29, %v9482_v14  ;;  %v1728_v50 = vrot.slane %v1712_v16, %v9471_v9  ;;  %v9538_v16 = vld [vmem:[%s9527_s10 + $0x60] sm:$0xff] }
  0x1d   : > { %v592_v43 = vrot.slane %v587_v36, %v9482_v14  ;;  %v594_v44 = vpack.i.b16 %v547_v35, %v547_v35  ;;  %v620_v45 = vrot.slane %v615_v38, %v9482_v14  ;;  %v622_v46 = vpack.i.b16 %v548_v37, %v548_v37 }
  0x1e   : > { %v8439_v47 = vcombine.low %v578_v31, %v585_v39  ;;  %v8441_v48 = vcombine.low %v606_v33, %v613_v40  ;;  %v648_v53 = vrot.slane %v643_v42, %v9482_v14  ;;  %v1742_v54 = vrot.slane %v1720_v30, %v9471_v9  ;;  %v9555_v31 = vld [vmem:[%s9527_s10 + $0x68] sm:$0xff]  ;;  %v8534_v39 = vld.sshfl [vmem:[%s12633_s1 + $0x1e] sm:$0x13 pattern:$0x75316420] }
  0x1f   : > { %v599_v51 = vrot.slane %v594_v44, %v9482_v14  ;;  %v627_v52 = vrot.slane %v622_v46, %v9482_v14  ;;  %v1778_v55 = vpack.i.b16 %v1728_v50, %v1728_v50  ;;  %v1750_v56 = vcombine.high %v1728_v50, %v1728_v50 }
  0x20   : > { %677 = vrot.lane.b32.xlu0 %v8439_v47, %s9399_s29  ;;  %681 = vrot.lane.b32.xlu1 %v8441_v48, %s9399_s29  ;;  %v1785_v59 = vpack.i.b16 %v1742_v54, %v1742_v54  ;;  %v1752_v60 = vcombine.high %v1742_v54, %v1742_v54  ;;  %v8443_v62 = vcombine.low %v634_v41, %v641_v49  ;;  %v9584_v54 = vld [vmem:[%s9527_s10 + $0x58] sm:$0xff] }
  0x21   : > { %v8440_v57 = vcombine.low %v592_v43, %v599_v51  ;;  %v8442_v58 = vcombine.low %v620_v45, %v627_v52  ;;  %v1792_v61 = vpack.i.b16 %v1750_v56, %v1750_v56  ;;  %v8444_v63 = vcombine.low %v648_v53, %v648_v53  ;;  %v8587_v52 = vld [vmem:[%s12633_s1 + $0x21] sm:$0xff] }
  0x22   : > { %v1799_v0 = vpack.i.b16 %v1752_v60, %v1752_v60  ;;  %v1783_v1 = vrot.slane %v1778_v55, %v9482_v14  ;;  %v1790_v2 = vrot.slane %v1785_v59, %v9482_v14  ;;  %v1719_v17 = vrot.slane %v1705_v8, %v9471_v9  ;;  %v9581_v53 = vld [vmem:[%s9527_s10 + $0x28] sm:$0xff] }
  0x23   : > { %v9507_v3 = vrot.slane %v1792_v61, %v9482_v14  ;;  %v1761_v45 = vcombine.high %v8534_v39, %v8534_v39  ;;  %v9589_v56 = vrot.slane %v8534_v39, %v9471_v9  ;;  %v9646_v39 = vld [vmem:[%s9527_s10 + $0x88] sm:$0xff] }
  0x24   : > { %679 = vrot.lane.b32.xlu0 %v8440_v57, %s9399_s29  ;;  %683 = vrot.lane.b32.xlu1 %v8442_v58, %s9399_s29  ;;  %v9510_v5 = vrot.slane %v1799_v0, %v9482_v14  ;;  %v8535_v7 = vcombine.low %v1783_v1, %v1790_v2  ;;  %v1721_v25 = vcombine.high %v1719_v17, %v1719_v17  ;;  %v9607_v1 = vld [vmem:[%s9527_s10 + $0x10] sm:$0xff]  ;;  %v9610_v2 = vld [vmem:[%s9527_s10 + $0x40] sm:$0xff] }
  0x25   : > { %v1735_v37 = vrot.slane %v1719_v17, %v9471_v9  ;;  %v1775_v57 = vrot.slane %v1761_v45, %v9471_v9  ;;  %v1834_v8 = vpack.i.b16 %v9589_v56, %v9589_v56 }
  0x26   : > { %v8536_v6 = vcombine.low %v9507_v3, %v9510_v5  ;;  %v1749_v38 = vrot.slane %v1721_v25, %v9471_v9  ;;  %v12641_v25 = vmov 0  }
  0x27   : > { %v1806_v48 = vpack.i.b16 %v1735_v37, %v1735_v37  ;;  %977 = vmatprep.mubr.bf16.mxu0 %v12641_v25  ;;  %v1839_v3 = vrot.slane %v1834_v8, %v9482_v14  ;;  %9328 = vset.pattern.permute.xlu1 %v12641_v25 }
  0x28   : > { %685 = vrot.lane.b32.xlu0 %v8443_v62, %s9399_s29  ;;  %687 = vrot.lane.b32.xlu1 %v8444_v63, %s9399_s29  ;;  %v1813_v49 = vpack.i.b16 %v1749_v38, %v1749_v38  ;;  %v2513_v62 = vrot.slane %v8587_v52, %v9471_v9 }
  0x29   : > { %v1811_v59 = vrot.slane %v1806_v48, %v9482_v14  ;;  %9327 = vset.pattern.permute.xlu0 %v12641_v25 }
  0x2a   : > { %v1818_v60 = vrot.slane %v1813_v49, %v9482_v14 }
  0x2c   : > { %1882 = vrot.lane.b32.xlu0 %v8535_v7, %s9400_s30  ;;  %v8537_v17 = vcombine.low %v1811_v59, %v1818_v60 }
  0x92   : > { %v678_v11 = vpop.permute.xlu0 %677  ;;  %v9529_v12 = vpop.permute.xlu1 %681 }
  0x93   : > { %v689_v10 = vrot.slane %v678_v11, 4  ;;  %v691_v46 = vrot.slane %v9529_v12, 4 }
  0x95   : > { %v696_v18 = vsel %vm695_vm0, %v689_v10, %v678_v11  ;;  %v1841_v11 = vpack.i.b16 %v1775_v57, %v1775_v57 }
  0x96   : > { %v714_v19 = vmul.bf16 %v696_v18, %v9532_v13  ;;  %v720_v20 = vmul.bf16 %v696_v18, %v9535_v15  ;;  %v726_v21 = vmul.bf16 %v696_v18, %v9538_v16  ;;  %v680_v22 = vpop.permute.xlu0 %679  ;;  %v9545_v23 = vpop.permute.xlu1 %683  ;;  %v9623_v18 = vld [vmem:[%s12634_s2 + $0xc] sm:$0xff]  }
  0x97   : > { %v690_v24 = vrot.slane %v680_v22, 4  ;;  %8973 = vmatprep.mubr.msk.bf16.mxu1 %vm904_vm2, %v9623_v18  ;;  %v1846_v5 = vrot.slane %v1841_v11, %v9482_v14  ;;  %v1776_v11 = vcombine.high %v9589_v56, %v9589_v56 }
  0x98   : > { %v8462_v28 = vcombine.low %v726_v21, %v726_v21  ;;  %v8451_v29 = vcombine.high %v714_v19, %v720_v20  ;;  %v8450_v41 = vcombine.low %v714_v19, %v720_v20  ;;  %v8463_v50 = vcombine.high %v726_v21, %v726_v21 }
  0x99   : > { %v698_v30 = vsel %vm697_vm1, %v689_v10, %v690_v24  ;;  %v700_v58 = vsel %vm697_vm1, %v690_v24, %v691_v46  ;;  %v2506_v10 = vcombine.high %v8587_v52, %v8587_v52  ;;  %v2521_v20 = vcombine.high %v2513_v62, %v2513_v62 }
  0x9a   : > { %v699_v32 = vsel %vm695_vm0, %v698_v30, %v680_v22  ;;  %846 = vrot.lane.b32.xlu1 %v8462_v28, %s9401_s11  ;;  %824 = vrot.lane.b32.xlu0 %v8451_v29, %s9401_s11  ;;  %v9560_v33 = vpop.permute.xlu0 %685  ;;  %v688_v34 = vpop.permute.xlu1 %687  ;;  %v701_v7 = vsel %vm695_vm0, %v700_v58, %v9529_v12  ;;  %v1751_v29 = vcombine.high %v1735_v37, %v1735_v37  ;;  %v9675_v12 = vld [vmem:[%s9527_s10 + $0x48] sm:$0xff] }
  0x9b   : > { %v715_v35 = vmul.bf16 %v699_v32, %v9548_v26  ;;  %v721_v36 = vmul.bf16 %v699_v32, %v9551_v27  ;;  %v693_v40 = vrot.slane %v9560_v33, 4  ;;  %v694_v42 = vrot.slane %v688_v34, 4 }
  0x9c   : > { %v727_v43 = vmul.bf16 %v699_v32, %v9555_v31  ;;  %v716_v22 = vmul.bf16 %v701_v7, %v9607_v1  ;;  %v722_v24 = vmul.bf16 %v701_v7, %v9610_v2  ;;  %v2520_v28 = vrot.slane %v2506_v10, %v9471_v9 }
  0x9d   : > { %v8452_v44 = vcombine.low %v715_v35, %v721_v36  ;;  %v706_v47 = vsel %vm697_vm1, %v693_v40, %v694_v42  ;;  %v8453_v61 = vcombine.high %v715_v35, %v721_v36  ;;  %v1753_v30 = vcombine.high %v1749_v38, %v1749_v38 }
  0x9e   : > { %822 = vrot.lane.b32.xlu0 %v8450_v41, %s9401_s11  ;;  %v8464_v51 = vcombine.low %v727_v43, %v727_v43  ;;  %v707_v55 = vsel %vm695_vm0, %v706_v47, %v688_v34  ;;  %v8465_v19 = vcombine.high %v727_v43, %v727_v43  ;;  %v8454_v32 = vcombine.low %v716_v22, %v722_v24 }
  0x9f   : > { %826 = vrot.lane.b32.xlu1 %v8452_v44, %s9401_s11  ;;  %v9600_v63 = vmul.bf16 %v707_v55, %v9581_v53  ;;  %v9603_v0 = vmul.bf16 %v707_v55, %v9584_v54  ;;  %v2529_v35 = vrot.slane %v2513_v62, %v9471_v9  ;;  %v2543_v36 = vrot.slane %v2521_v20, %v9471_v9 }
  0xa0   : > { %v8539_v41 = vcombine.low %v1839_v3, %v1846_v5  ;;  %v2522_v42 = vcombine.high %v2520_v28, %v2520_v28  ;;  %v692_v43 = vrot.slane %v9545_v23, 4  ;;  %v1820_v37 = vpack.i.b16 %v1751_v29, %v1751_v29  ;;  %v9703_v29 = vpop.permute.xlu0 %1882 }
  0xa1   : > { %v8460_v21 = vcombine.low %v9600_v63, %v9603_v0  ;;  %v1827_v38 = vpack.i.b16 %v1753_v30, %v1753_v30  ;;  %v9652_v44 = vmul.bf16 %v707_v55, %v9646_v39  ;;  %v2579_v47 = vpack.i.b16 %v2529_v35, %v2529_v35 }
  0xa2   : > { %848 = vrot.lane.b32.xlu0 %v8463_v50, %s9401_s11  ;;  %v2586_v48 = vpack.i.b16 %v2543_v36, %v2543_v36  ;;  %v9656_v49 = vrot.slane %v2520_v28, %v9471_v9  ;;  %v9659_v50 = vrot.slane %v2522_v42, %v9471_v9  ;;  %v1825_v52 = vrot.slane %v1820_v37, %v9482_v14 }
  0xa3   : > { %850 = vrot.lane.b32.xlu1 %v8464_v51, %s9401_s11  ;;  %v702_v51 = vsel %vm697_vm1, %v691_v46, %v692_v43  ;;  %v1832_v55 = vrot.slane %v1827_v38, %v9482_v14  ;;  %v8455_v57 = vcombine.high %v716_v22, %v722_v24  ;;  %v8472_v58 = vcombine.low %v9652_v44, %v9652_v44  ;;  %v9697_v22 = vld [vmem:[%s9527_s10 + $0x78] sm:$0xff] }
  0xa4   : > { %v2584_v59 = vrot.slane %v2579_v47, %v9482_v14  ;;  %v2591_v60 = vrot.slane %v2586_v48, %v9482_v14  ;;  %v703_v46 = vsel %vm695_vm0, %v702_v51, %v9545_v23  ;;  %v2607_v62 = vpack.i.b16 %v9656_v49, %v9656_v49 }
  0xa5   : > { %v8538_v8 = vcombine.low %v1825_v52, %v1832_v55  ;;  %v2551_v3 = vcombine.high %v2529_v35, %v2529_v35  ;;  %v2553_v5 = vcombine.high %v2543_v36, %v2543_v36  ;;  %v1848_v28 = vpack.i.b16 %v1776_v11, %v1776_v11 }
  0xa6   : > { %828 = vrot.lane.b32.xlu0 %v8453_v61, %s9401_s11  ;;  %v9672_v61 = vld [vmem:[%s9527_s10 + $0x18] sm:$0xff]  ;;  %v8590_v20 = vcombine.low %v2584_v59, %v2591_v60  ;;  %v2612_v56 = vrot.slane %v2607_v62, %v9482_v14  ;;  %v729_v30 = vmul.bf16 %v703_v46, %v9697_v22  ;;  %v1894_v35 = vrot.slane %v9703_v29, 4  ;;  %v9729_v60 = vld [vmem:[%s9527_s10 + $0x20] sm:$0xff] }
  0xa7   : > { %1884 = vrot.lane.b32.xlu1 %v8536_v6, %s9400_s30  ;;  %v9636_v6 = vld [vmem:[%s9527_s10 + $0x70] sm:$0xff]  ;;  %v717_v23 = vmul.bf16 %v703_v46, %v9672_v61  ;;  %v2593_v42 = vpack.i.b16 %v2551_v3, %v2551_v3  ;;  %v2600_v37 = vpack.i.b16 %v2553_v5, %v2553_v5  ;;  %v1853_v36 = vrot.slane %v1848_v28, %v9482_v14 }
  0xa8   : > { %v728_v34 = vmul.bf16 %v701_v7, %v9636_v6  ;;  %v2614_v7 = vpack.i.b16 %v9659_v50, %v9659_v50  ;;  %v8468_v38 = vcombine.low %v729_v30, %v729_v30  ;;  %v704_v51 = vsel %vm697_vm1, %v692_v43, %v693_v40 }
  0xa9   : > { %v2598_v47 = vrot.slane %v2593_v42, %v9482_v14  ;;  %v2605_v48 = vrot.slane %v2600_v37, %v9482_v14  ;;  %v1901_v52 = vsel %vm1900_vm3, %v1894_v35, %v9703_v29  ;;  %v8540_v55 = vcombine.low %v1853_v36, %v1853_v36  ;;  %v8589_v36 = vld.sshfl [vmem:[%s12633_s1 + $0x29] sm:$0x13 pattern:$0x75316420] }
  0xaa   : > { %852 = vrot.lane.b32.xlu0 %v8465_v19, %s9401_s11  ;;  %v8466_v45 = vcombine.low %v728_v34, %v728_v34  ;;  %v8467_v10 = vcombine.high %v728_v34, %v728_v34  ;;  %v723_v19 = vmul.bf16 %v703_v46, %v9675_v12  ;;  %v2619_v24 = vrot.slane %v2614_v7, %v9482_v14  ;;  %v9732_v46 = vld [vmem:[%s9527_s10 + $0x50] sm:$0xff] }
  0xab   : > { %842 = vrot.lane.b32.xlu1 %v8460_v21, %s9401_s11  ;;  %v705_v40 = vsel %vm695_vm0, %v704_v51, %v9560_v33  ;;  %v1918_v43 = vmul.bf16 %v1901_v52, %v9532_v13  ;;  %v1924_v62 = vmul.bf16 %v1901_v52, %v9535_v15  ;;  %v8591_v7 = vcombine.low %v2598_v47, %v2605_v48 }
  0xac   : > { %v2554_v11 = vcombine.high %v9659_v50, %v9659_v50  ;;  %v1930_v42 = vmul.bf16 %v1901_v52, %v9538_v16  ;;  %v2562_v47 = vcombine.high %v8589_v36, %v8589_v36  ;;  %v2569_v48 = vrot.slane %v8589_v36, %v9471_v9 }
  0xad   : > { %v8546_v37 = vcombine.low %v1918_v43, %v1924_v62  ;;  %vm6079_vm0 = vcmask 449536  }
  0xae   : > { %1886 = vrot.lane.b32.xlu0 %v8537_v17, %s9400_s30  ;;  %v9690_v17 = vld [vmem:[%s12633_s1 + $0x2c] sm:$0xff]  ;;  %v2628_v3 = vpack.i.b16 %v2554_v11, %v2554_v11  ;;  %v8559_v52 = vcombine.high %v1930_v42, %v1930_v42 }
  0xaf   : > { %830 = vrot.lane.b32.xlu1 %v8454_v32, %s9401_s11  ;;  %v3307_v21 = vcombine.high %v9690_v17, %v9690_v17  ;;  %v8456_v32 = vcombine.low %v717_v23, %v723_v19 }
  0xb1   : > { %v3321_v34 = vrot.slane %v3307_v21, %v9471_v9 }
  0xb2   : > { %1890 = vrot.lane.b32.xlu0 %v8539_v41, %s9400_s30  ;;  %v8592_v41 = vcombine.low %v2612_v56, %v2619_v24  ;;  %v9751_v24 = vld [vmem:[%s9527_s10 + $0x80] sm:$0xff] }
  0xb3   : > { %854 = vrot.lane.b32.xlu1 %v8466_v45, %s9401_s11  ;;  %v3323_v45 = vcombine.high %v3321_v34, %v3321_v34 }
  0xb5   : > { %v9726_v59 = vrot.slane %v3323_v45, %v9471_v9  ;;  %v2633_v45 = vrot.slane %v2628_v3, %v9482_v14 }
  0xb6   : > { %832 = vrot.lane.b32.xlu0 %v8455_v57, %s9401_s11  ;;  %v8457_v57 = vcombine.high %v717_v23, %v723_v19  ;;  %v8469_v23 = vcombine.high %v729_v30, %v729_v30  ;;  %v718_v19 = vmul.bf16 %v705_v40, %v9729_v60  ;;  %v730_v30 = vmul.bf16 %v705_v40, %v9751_v24 }
  0xb7   : > { %866 = vrot.lane.b32.xlu1 %v8472_v58, %s9401_s11  ;;  %v9723_v58 = vrot.slane %v3321_v34, %v9471_v9  ;;  %v3355_v33 = vcombine.high %v9726_v59, %v9726_v59  ;;  %v3314_v34 = vrot.slane %v9690_v17, %v9471_v9 }
  0xb8   : > { %v8470_v17 = vcombine.low %v730_v30, %v730_v30 }
  0xb9   : > { %v3429_v56 = vpack.i.b16 %v3355_v33, %v3355_v33  ;;  %v3322_v51 = vcombine.high %v3314_v34, %v3314_v34  ;;  %v8461_v33 = vcombine.high %v9600_v63, %v9603_v0 }
  0xba   : > { %856 = vrot.lane.b32.xlu0 %v8467_v10, %s9401_s11  ;;  %v3353_v10 = vcombine.high %v9723_v58, %v9723_v58 }
  0xbb   : > { %1888 = vrot.lane.b32.xlu1 %v8538_v8, %s9400_s30  ;;  %v2552_v8 = vcombine.high %v9656_v49, %v9656_v49  ;;  %v8547_v49 = vcombine.high %v1918_v43, %v1924_v62  ;;  %v9759_v28 = vrot.slane %v3429_v56, %v9482_v14  ;;  %v3330_v43 = vrot.slane %v3314_v34, %v9471_v9 }
  0xbc   : > { %v3422_v21 = vpack.i.b16 %v3353_v10, %v3353_v10  ;;  %v3344_v62 = vrot.slane %v3322_v51, %v9471_v9 }
  0xbd   : > { %v2621_v50 = vpack.i.b16 %v2552_v8, %v2552_v8  ;;  %v3352_v11 = vcombine.high %v3330_v43, %v3330_v43  ;;  %v3380_v63 = vpack.i.b16 %v3330_v43, %v3330_v43 }
  0xbe   : > { %2683 = vrot.lane.b32.xlu0 %v8590_v20, %s9403_s20  ;;  %v724_v20 = vmul.bf16 %v705_v40, %v9732_v46  ;;  %v9756_v5 = vrot.slane %v3422_v21, %v9482_v14  ;;  %v2576_v40 = vrot.slane %v2562_v47, %v9471_v9  ;;  %v3354_v10 = vcombine.high %v3344_v62, %v3344_v62 }
  0xbf   : > { %834 = vrot.lane.b32.xlu1 %v8456_v32, %s9401_s11  ;;  %v3387_v0 = vpack.i.b16 %v3344_v62, %v3344_v62  ;;  %v3415_v47 = vpack.i.b16 %v9726_v59, %v9726_v59 }
  0xc0   : > { %v8458_v32 = vcombine.low %v718_v19, %v724_v20  ;;  %v2642_v21 = vpack.i.b16 %v2576_v40, %v2576_v40  ;;  %v8459_v3 = vcombine.high %v718_v19, %v724_v20 }
  0xc1   : > { %v3392_v20 = vrot.slane %v3387_v0, %v9482_v14 }
  0xc2   : > { %2687 = vrot.lane.b32.xlu0 %v8592_v41, %s9403_s20  ;;  %v8648_v41 = vcombine.low %v9756_v5, %v9759_v28 }
  0xc3   : > { %858 = vrot.lane.b32.xlu1 %v8468_v38, %s9401_s11  ;;  %v2626_v38 = vrot.slane %v2621_v50, %v9482_v14  ;;  %v3401_v50 = vpack.i.b16 %v3354_v10, %v3354_v10 }
  0xc6   : > { %836 = vrot.lane.b32.xlu0 %v8457_v57, %s9401_s11  ;;  %v2577_v57 = vcombine.high %v2569_v48, %v2569_v48 }
  0xc7   : > { %1892 = vrot.lane.b32.xlu1 %v8540_v55, %s9400_s30  ;;  %v8593_v55 = vcombine.low %v2626_v38, %v2633_v45  ;;  %v3406_v38 = vrot.slane %v3401_v50, %v9482_v14  ;;  %v8471_v45 = vcombine.high %v730_v30, %v730_v30  ;;  %v9825_v50 = vld [vmem:[%s12634_s2 + $0x14] ss:$0 sps:$4 sm:$0xff]   ;;  %s9413_s30 = smov 74  }
  0xc8   : > { %v2649_v8 = vpack.i.b16 %v2577_v57, %v2577_v57 }
  0xca   : > { %860 = vrot.lane.b32.xlu0 %v8469_v23, %s9401_s11  ;;  %v2635_v23 = vpack.i.b16 %v2569_v48, %v2569_v48  ;;  %v2654_v56 = vrot.slane %v2649_v8, %v9482_v14 }
  0xcb   : > { %2685 = vrot.lane.b32.xlu1 %v8591_v7, %s9403_s20  ;;  %v8558_v7 = vcombine.low %v1930_v42, %v1930_v42  ;;  %v2647_v42 = vrot.slane %v2642_v21, %v9482_v14 }
  0xcc   : > { %v2640_v34 = vrot.slane %v2635_v23, %v9482_v14 }
  0xce   : > { %2028 = vrot.lane.b32.xlu0 %v8547_v49, %s9404_s23  ;;  %v3394_v49 = vpack.i.b16 %v3352_v11, %v3352_v11  ;;  %v8594_v19 = vcombine.low %v2640_v34, %v2647_v42 }
  0xcf   : > { %838 = vrot.lane.b32.xlu1 %v8458_v32, %s9401_s11  ;;  %v8473_v32 = vcombine.high %v9652_v44, %v9652_v44  ;;  %v3385_v44 = vrot.slane %v3380_v63, %v9482_v14 }
  0xd0   : > { %v3399_v36 = vrot.slane %v3394_v49, %v9482_v14 }
  0xd1   : > { %v8645_v51 = vcombine.low %v3385_v44, %v3392_v20  ;;  %v269_v44 = vld [vmem:[%s12633_s1] sm:$0xff] }
  0xd2   : > { %2026 = vrot.lane.b32.xlu0 %v8546_v37, %s9404_s23  ;;  %v8595_v37 = vcombine.low %v2654_v56, %v2654_v56  ;;  %v8646_v48 = vcombine.low %v3399_v36, %v3406_v38 }
  0xd3   : > { %862 = vrot.lane.b32.xlu1 %v8470_v17, %s9401_s11  ;;  %v3408_v17 = vpack.i.b16 %v9723_v58, %v9723_v58 }
  0xd5   : > { %v3413_v30 = vrot.slane %v3408_v17, %v9482_v14  ;;  %v8644_v17 = vld.sshfl [vmem:[%s12633_s1 + $0x34] sm:$0x13 pattern:$0x75316420] }
  0xd6   : > { %2052 = vrot.lane.b32.xlu0 %v8559_v52, %s9404_s23  ;;  %v3420_v52 = vrot.slane %v3415_v47, %v9482_v14 }
  0xd7   : > { %2689 = vrot.lane.b32.xlu1 %v8593_v55, %s9403_s20 }
  0xd8   : > { %v8647_v55 = vcombine.low %v3413_v30, %v3420_v52 }
  0xda   : > { %844 = vrot.lane.b32.xlu0 %v8461_v33, %s9401_s11 }
  0xdb   : > { %2050 = vrot.lane.b32.xlu1 %v8558_v7, %s9404_s23 }
  0xde   : > { %840 = vrot.lane.b32.xlu0 %v8459_v3, %s9401_s11 }
  0xdf   : > { %868 = vrot.lane.b32.xlu1 %v8473_v32, %s9401_s11 }
  0xe2   : > { %864 = vrot.lane.b32.xlu0 %v8471_v45, %s9401_s11  ;;  %s8428_s11 = sshll.u32 %s12711_s22, 3 }
  0xe3   : > { %2693 = vrot.lane.b32.xlu1 %v8595_v37, %s9403_s20  ;;  %s249_s13 = scalar_lea.vmem %s12638_s6, %s8428_s11 }
  0xe6   : > { %2691 = vrot.lane.b32.xlu0 %v8594_v19, %s9403_s20 }
  0xe7   : > { %3486 = vrot.lane.b32.xlu1 %v8646_v48, %s9405_s26  ;;  %v280_v48 = vrot.slane %v269_v44, %v9471_v9 }
  0xea   : > { %3484 = vrot.lane.b32.xlu0 %v8645_v51, %s9405_s26  ;;  %v3363_v51 = vcombine.high %v8644_v17, %v8644_v17 }
  0xee   : > { %3488 = vrot.lane.b32.xlu0 %v8647_v55, %s9405_s26 }
 0x10c   : > { %v847_v58 = vpop.permute.xlu1 %846  ;;  %v825_v59 = vpop.permute.xlu0 %824 }
 0x110   : > { %v823_v57 = vpop.permute.xlu0 %822 }
 0x111   : > { %v827_v40 = vpop.permute.xlu1 %826  ;;  %v871_v62 = vsel %vm870_vm4, %v823_v57, %v825_v59  ;;  %v288_v57 = vcombine.high %v280_v48, %v280_v48 }
 0x112   : > { %v872_v43 = vsel %vm870_vm4, %v825_v59, %v827_v40  ;;  %v3370_v59 = vrot.slane %v8644_v17, %v9471_v9 }
 0x113   : > { %945 = vmatprep.subr.bf16.mxu0 %v872_v43 }
 0x114   : > { %946 = vmatpush1.bf16.msra.mxu0 %v871_v62  ;;  %v849_v7 = vpop.permute.xlu0 %848  ;;  %v3377_v62 = vrot.slane %v3363_v51, %v9471_v9 }
 0x115   : > { %v851_v8 = vpop.permute.xlu1 %850  ;;  %v882_v11 = vsel %vm870_vm4, %v847_v58, %v849_v7 }
 0x116   : > { %v883_v10 = vsel %vm870_vm4, %v849_v7, %v851_v8  ;;  %v913_v33 = vsel %vm697_vm1, %v882_v11, 0 }
 0x117   : > { %8474 = vmatprep.subr.msk.bf16.mxu0 %vm697_vm1, %v883_v10 }
 0x118   : > { %948 = vmatpush1.bf16.msra.mxu0 %v913_v33  ;;  %v829_v23 = vpop.permute.xlu0 %828 }
 0x119   : > { %v9815_v21 = vpop.permute.xlu1 %1884  ;;  %v873_v42 = vsel %vm870_vm4, %v827_v40, %v829_v23 }
 0x11b   : > { %8475 = vmatmul.mubr.msk.bf16.vlgmr.msra.gmra.mrb[0].mxu0 %vm904_vm2, %v9623_v18 }
 0x11c   : > { %v853_v56 = vpop.permute.xlu0 %852  ;;  %987 = vmatprep.mubr.bf16.mxu0 %v12641_v25 }
 0x11d   : > { %v9820_v49 = vpop.permute.xlu1 %842  ;;  %v884_v63 = vsel %vm870_vm4, %v851_v8, %v853_v56 }
 0x11e   : > { %v919_v38 = vsel %vm697_vm1, %v884_v63, 0  ;;  %v3443_v63 = vpack.i.b16 %v3377_v62, %v3377_v62 }
 0x120   : > { %v9827_v3 = vpop.permute.xlu0 %1886 }
 0x121   : > { %v831_v32 = vpop.permute.xlu1 %830 }
 0x122   : > { %v874_v34 = vsel %vm870_vm4, %v829_v23, %v831_v32 }
 0x123   : > { %996 = vmatprep.subr.bf16.mxu0 %v874_v34  ;;  %8476 = vmatmul.mubr.msk.bf16.gmra.mrb[4].mxu0 %vm904_vm2, %v9825_v50  ;;  %v310_v34 = vrot.slane %v288_v57, %v9471_v9 }
 0x124   : > { %997 = vmatpush1.bf16.msra.mxu0 %v873_v42  ;;  %v9834_v0 = vpop.permute.xlu0 %1890  ;;  %1028 = vmatprep.mubr.bf16.mxu0 %v12641_v25  ;;  %v12640_v42 = vrot.slane %v9827_v3, 4 }
 0x125   : > { %v855_v37 = vpop.permute.xlu1 %854  ;;  %v1898_v51 = vrot.slane %v9834_v0, 4 }
 0x126   : > { %v885_v36 = vsel %vm870_vm4, %v853_v56, %v855_v37 }
 0x127   : > { %8477 = vmatprep.subr.msk.bf16.mxu0 %vm697_vm1, %v885_v36 }
 0x128   : > { %999 = vmatpush1.bf16.msra.mxu0 %v919_v38  ;;  %v833_v45 = vpop.permute.xlu0 %832 }
 0x129   : > { %v9840_v19 = vpop.permute.xlu1 %866  ;;  %v875_v43 = vsel %vm870_vm4, %v831_v32, %v833_v45  ;;  %v296_v32 = vrot.slane %v280_v48, %v9471_v9  ;;  %v3378_v48 = vcombine.high %v3370_v59, %v3370_v59 }
 0x12b   : > { %8478 = vmatmul.mubr.msk.bf16.vlgmr.msra.gmra.mrb[8].mxu0 %vm904_vm2, %v9623_v18  ;;  %v346_v57 = vpack.i.b16 %v296_v32, %v296_v32 }
 0x12c   : > { %v857_v20 = vpop.permute.xlu0 %856  ;;  %1038 = vmatprep.mubr.bf16.mxu0 %v12641_v25 }
 0x12d   : > { %v9851_v47 = vpop.permute.xlu1 %1888  ;;  %v886_v7 = vsel %vm870_vm4, %v855_v37, %v857_v20 }
 0x130   : > { %v9854_v30 = vpop.permute.xlu0 %2683 }
 0x131   : > { %v12639_v52 = vrot.slane %v9854_v30, 4  ;;  %v9857_v55 = vpop.permute.xlu1 %834 }
 0x132   : > { %v876_v58 = vsel %vm870_vm4, %v833_v45, %v9857_v55  ;;  %v273_v45 = vcombine.high %v269_v44, %v269_v44  ;;  %v3448_v44 = vrot.slane %v3443_v63, %v9482_v14 }
 0x133   : > { %v2702_v40 = vsel %vm2701_vm5, %v12639_v52, %v9854_v30  ;;  %1047 = vmatprep.subr.bf16.mxu0 %v876_v58  ;;  %8479 = vmatmul.mubr.msk.bf16.gmra.mrb[12].mxu0 %vm904_vm2, %v9825_v50 }
 0x134   : > { %v2719_v8 = vmul.bf16 %v2702_v40, %v9532_v13  ;;  %v2725_v11 = vmul.bf16 %v2702_v40, %v9535_v15  ;;  %1048 = vmatpush1.bf16.msra.mxu0 %v875_v43  ;;  %v9873_v10 = vpop.permute.xlu0 %2687  ;;  %1079 = vmatprep.mubr.bf16.mxu0 %v12641_v25  ;;  %v925_v13 = vsel %vm697_vm1, %v886_v7, 0  ;;  %v3436_v15 = vpack.i.b16 %v3370_v59, %v3370_v59 }
 0x135   : > { %v9876_v33 = vpop.permute.xlu1 %858  ;;  %v9886_v37 = vmul.bf16 %v2702_v40, %v9538_v16  ;;  %v353_v43 = vpack.i.b16 %v310_v34, %v310_v34 }
 0x136   : > { %v887_v23 = vsel %vm870_vm4, %v857_v20, %v9876_v33  ;;  %v8602_v56 = vcombine.high %v2719_v8, %v2725_v11  ;;  %v8601_v38 = vcombine.low %v2719_v8, %v2725_v11  ;;  %v1895_v20 = vrot.slane %v9815_v21, 4 }
 0x137   : > { %8480 = vmatprep.subr.msk.bf16.mxu0 %vm697_vm1, %v887_v23  ;;  %v3441_v40 = vrot.slane %v3436_v15, %v9482_v14  ;;  %v8614_v7 = vcombine.high %v9886_v37, %v9886_v37  ;;  %v287_v8 = vrot.slane %v273_v45, %v9471_v9  ;;  %v320_v15 = vcombine.high %v310_v34, %v310_v34 }
 0x138   : > { %1050 = vmatpush1.bf16.msra.mxu0 %v925_v13  ;;  %2829 = vrot.lane.b32.xlu0 %v8602_v56, %s9406_s9  ;;  %v837_v36 = vpop.permute.xlu0 %836  ;;  %v1904_v16 = vsel %vm697_vm1, %v1895_v20, %v12640_v42  ;;  %v3450_v56 = vpack.i.b16 %v3378_v48, %v3378_v48  ;;  %v318_v13 = vcombine.high %v296_v32, %v296_v32 }
 0x139   : > { %v1893_v17 = vpop.permute.xlu1 %1892  ;;  %v358_v52 = vrot.slane %v353_v43, %v9482_v14  ;;  %v1905_v45 = vsel %vm1900_vm3, %v1904_v16, %v9827_v3  ;;  %v8649_v34 = vcombine.low %v3441_v40, %v3448_v44  ;;  %v9942_v44 = vld [vmem:[%s12633_s1 + $0x37] sm:$0xff]  ;;  %v8613_v28 = vcombine.low %v9886_v37, %v9886_v37 }
 0x13a   : > { %v1899_v58 = vrot.slane %v1893_v17, 4  ;;  %v360_v16 = vpack.i.b16 %v318_v13, %v318_v13  ;;  %v877_v13 = vsel %vm870_vm4, %v9857_v55, %v837_v36 }
 0x13b   : > { %8481 = vmatmul.mubr.msk.bf16.vlgmr.msra.gmra.mrb[16].mxu0 %vm904_vm2, %v9623_v18 }
 0x13c   : > { %v1910_v59 = vsel %vm697_vm1, %v1898_v51, %v1899_v58  ;;  %2827 = vrot.lane.b32.xlu0 %v8601_v38, %s9406_s9  ;;  %v861_v62 = vpop.permute.xlu0 %860  ;;  %1089 = vmatprep.mubr.bf16.mxu0 %v12641_v25  ;;  %v351_v58 = vrot.slane %v346_v57, %v9482_v14  ;;  %v9930_v57 = vrot.slane %v3450_v56, %v9482_v14 }
 0x13d   : > { %v1911_v11 = vsel %vm1900_vm3, %v1910_v59, %v1893_v17  ;;  %v9907_v23 = vpop.permute.xlu1 %2685  ;;  %v1920_v59 = vmul.bf16 %v1905_v45, %v9607_v1  ;;  %v1902_v56 = vsel %vm697_vm1, %v1894_v35, %v1895_v20  ;;  %v9970_v20 = vrot.slane %v9942_v44, %v9471_v9 }
 0x13e   : > { %v9910_v63 = vmul.bf16 %v1911_v11, %v9581_v53  ;;  %v9913_v38 = vmul.bf16 %v1911_v11, %v9584_v54  ;;  %v9920_v17 = vmul.bf16 %v1911_v11, %v9646_v39  ;;  %v289_v54 = vcombine.high %v287_v8, %v287_v8 }
 0x13f   : > { %v367_v39 = vpack.i.b16 %v320_v15, %v320_v15  ;;  %v9944_v11 = vcombine.low %v351_v58, %v358_v52  ;;  %v9954_v15 = vrot.slane %v287_v8, %v9471_v9  ;;  %v888_v52 = vsel %vm870_vm4, %v9876_v33, %v861_v62 }
 0x140   : > { %2853 = vrot.lane.b32.xlu0 %v8614_v7, %s9406_s9  ;;  %v9923_v32 = vpop.permute.xlu0 %2028  ;;  %v8556_v53 = vcombine.low %v9910_v63, %v9913_v38  ;;  %v1926_v7 = vmul.bf16 %v1905_v45, %v9610_v2  ;;  %v8568_v35 = vcombine.low %v9920_v17, %v9920_v17  ;;  %v317_v55 = vrot.slane %v289_v54, %v9471_v9 }
 0x141   : > { %12657 = vst [vmem:[#allocation3_spill] sm:$0xff] %v9923_v32  ;;  %v9927_v48 = vpop.permute.xlu1 %838  ;;  %v365_v33 = vrot.slane %v360_v16, %v9482_v14  ;;  %v372_v8 = vrot.slane %v367_v39, %v9482_v14  ;;  %v1903_v58 = vsel %vm1900_vm3, %v1902_v56, %v9815_v21  ;;  %v931_v43 = vsel %vm697_vm1, %v888_v52, 0 }
 0x142   : > { %2046 = vrot.lane.b32.xlu1 %v8556_v53, %s9404_s23  ;;  %v878_v40 = vsel %vm870_vm4, %v837_v36, %v9927_v48  ;;  %v12643_v53 = vrot.slane %v9851_v47, 4  ;;  %v8551_v54 = vcombine.high %v1920_v59, %v1926_v7  ;;  %v8650_v52 = vcombine.low %v9930_v57, %v9930_v57 }
 0x143   : > { %1098 = vmatprep.subr.bf16.mxu0 %v878_v40  ;;  %8482 = vmatmul.mubr.msk.bf16.gmra.mrb[20].mxu0 %vm904_vm2, %v9825_v50  ;;  %v9980_v40 = vld [vmem:[%s9527_s10] sm:$0xff]  ;;  %v10011_v42 = vmul.bf16 %v1903_v58, %v9551_v27  ;;  %v12645_v57 = vrot.slane %v9873_v10, 4  ;;  %v10027_v27 = vmul.bf16 %v1903_v58, %v9555_v31  ;;  %v321_v4 = vcombine.high %v317_v55, %v317_v55 }
 0x144   : > { %3492 = vrot.lane.b32.xlu0 %v8649_v34, %s9405_s26  ;;  %1099 = vmatpush1.bf16.msra.mxu0 %v877_v13  ;;  %v9960_v29 = vpop.permute.xlu0 %2026  ;;  %v9983_v13 = vld [vmem:[%s9527_s10 + $0x30] sm:$0xff]  ;;  %v9989_v16 = vmul.bf16 %v9944_v11, %v9980_v40  ;;  %v1908_v39 = vsel %vm697_vm1, %v12643_v53, %v1898_v51  ;;  %v8431_v53 = vcombine.low %v365_v33, %v372_v8  ;;  %v12664_v32 = vrot.slane %v9851_v47, 4 }
 0x145   : > { %12658 = vst [vmem:[#allocation4_spill] sm:$0xff] %v9960_v29  ;;  %v9965_v36 = vpop.permute.xlu1 %862  ;;  %1130 = vmatprep.mubr.bf16.mxu0 %v12641_v25  ;;  %v9993_v21 = vmul.bf16 %v9944_v11, %v9983_v13 }
 0x146   : > { %2070 = vrot.lane.b32.xlu1 %v8568_v35, %s9404_s23  ;;  %v889_v34 = vsel %vm870_vm4, %v861_v62, %v9965_v36  ;;  %v374_v62 = vpack.i.b16 %v9954_v15, %v9954_v15  ;;  %v381_v35 = vpack.i.b16 %v317_v55, %v317_v55 }
 0x147   : > { %8483 = vmatprep.subr.msk.bf16.mxu0 %vm697_vm1, %v889_v34  ;;  %v10008_v34 = vmul.bf16 %v1903_v58, %v9548_v26  ;;  %v8550_v26 = vcombine.low %v1920_v59, %v1926_v7  ;;  %v10049_v59 = vld [vmem:[%s9527_s10 + $0x38] sm:$0xff] }
 0x148   : > { %2036 = vrot.lane.b32.xlu0 %v8551_v54, %s9404_s23  ;;  %1101 = vmatpush1.bf16.msra.mxu0 %v931_v43  ;;  %v10003_v56 = vpop.permute.xlu0 %2052  ;;  %v10018_v43 = vmul.bf16 %v1905_v45, %v9636_v6  ;;  %v1909_v45 = vsel %vm1900_vm3, %v1908_v39, %v9834_v0  ;;  %v379_v8 = vrot.slane %v374_v62, %v9482_v14  ;;  %v10046_v0 = vld [vmem:[%s9527_s10 + $0x8] sm:$0xff] }
 0x149   : > { %12659 = vst [vmem:[#allocation5_spill] sm:$0xff] %v10003_v56  ;;  %v10013_v25 = vpop.permute.xlu1 %2689  ;;  %12661 = vst [vmem:[#allocation6_spill] sm:$0xff] %v10046_v0  ;;  %v386_v7 = vrot.slane %v381_v35, %v9482_v14  ;;  %v10061_v37 = vmul.bf16 %v8431_v53, %v10046_v0  ;;  %v10105_v0 = vld [vmem:[%s9527_s10 + $0x68] sm:$0xff] }
 0x14a   : > { %v12644_v54 = vrot.slane %v10013_v25, 4  ;;  %3490 = vrot.lane.b32.xlu1 %v8648_v41, %s9405_s26  ;;  %v12660_v41 = vmov 0   ;;  %12662 = vst [vmem:[#allocation7_spill] sm:$0xff] %v10049_v59  ;;  %v8563_v35 = vcombine.high %v10018_v43, %v10018_v43 }
 0x14b   : > { %8484 = vmatmul.mubr.msk.bf16.vlgmr.msra.gmra.mrb[24].mxu0 %vm904_vm2, %v9623_v18  ;;  %v10093_v29 = vcombine.low %v379_v8, %v386_v7 }
 0x14c   : > { %v2707_v5 = vsel %vm697_vm1, %v12645_v57, %v12644_v54  ;;  %2034 = vrot.lane.b32.xlu0 %v8550_v26, %s9404_s23  ;;  %v845_v31 = vpop.permute.xlu0 %844  ;;  %1140 = vmatprep.mubr.bf16.mxu0 %v12660_v41  ;;  %v10064_v26 = vmul.bf16 %v8431_v53, %v10049_v59  ;;  %v1922_v54 = vmul.bf16 %v1909_v45, %v9729_v60  ;;  %v12665_v59 = vrot.slane %v9827_v3, 4 }
 0x14d   : > { %v10054_v58 = vsel %vm2701_vm5, %v2707_v5, %v10013_v25  ;;  %v10056_v62 = vpop.permute.xlu1 %2050  ;;  %v881_v39 = vsel %vm870_vm4, %v9820_v49, %v845_v31  ;;  %v1928_v5 = vmul.bf16 %v1909_v45, %v9732_v46  ;;  %v319_v57 = vcombine.high %v9954_v15, %v9954_v15 }
 0x14e   : > { %12663 = vst [vmem:[#allocation8_spill] sm:$0xff] %v10056_v62  ;;  %2851 = vrot.lane.b32.xlu1 %v8613_v28, %s9406_s9  ;;  %v10075_v31 = vmul.bf16 %v10054_v58, %v9672_v61  ;;  %v10079_v33 = vmul.bf16 %v10054_v58, %v9675_v12  ;;  %8969 = vmatprep.subr.bf16.mxu1 %v881_v39  ;;  %v10082_v28 = vld [vmem:[%s9527_s10 + $0x60] sm:$0xff] }
 0x14f   : > { %8970 = vmatpush3.bf16.msra.mxu1 %v881_v39  ;;  %v8548_v62 = vcombine.low %v10008_v34, %v10011_v42  ;;  %v10091_v56 = vmul.bf16 %v9944_v11, %v10082_v28  ;;  %v1906_v15 = vsel %vm697_vm1, %v12665_v59, %v12664_v32  ;;  %v8496_v11 = vcombine.high %v10061_v37, %v10064_v26 }
 0x150   : > { %2060 = vrot.lane.b32.xlu0 %v8563_v35, %s9404_s23  ;;  %v841_v51 = vpop.permute.xlu0 %840  ;;  %v8555_v3 = vcombine.high %v1922_v54, %v1928_v5  ;;  %v10113_v32 = vmul.bf16 %v8431_v53, %v10105_v0  ;;  %v395_v59 = vpack.i.b16 %v321_v4, %v321_v4  ;;  %v2696_v53 = vrot.slane %v9907_v23, 4 }
 0x151   : > { %v869_v55 = vpop.permute.xlu1 %868  ;;  %v880_v39 = vsel %vm870_vm4, %v841_v51, %v9820_v49  ;;  %v879_v35 = vsel %vm870_vm4, %v9927_v48, %v841_v51  ;;  %v8429_v48 = vld.sshfl [vmem:[%s12633_s1 + $0x8] sm:$0x13 pattern:$0x75316420]  ;;  %v388_v51 = vpack.i.b16 %v319_v57, %v319_v57 }
 0x152   : > { %v892_v8 = vsel %vm870_vm4, %v9840_v19, %v869_v55  ;;  %3494 = vrot.lane.b32.xlu1 %v8650_v52, %s9405_s26  ;;  %1149 = vmatprep.subr.bf16.mxu0 %v880_v39  ;;  %v1907_v52 = vsel %vm1900_vm3, %v1906_v15, %v9851_v47  ;;  %v8554_v39 = vcombine.low %v1922_v54, %v1928_v5  ;;  %v12666_v15 = vrot.slane %v9873_v10, 4 }
 0x153   : > { %1150 = vmatpush1.bf16.msra.mxu0 %v879_v35  ;;  %9288 = vmatprep.subr.msk.bf16.mxu1 %vm697_vm1, %v892_v8  ;;  %v943_v49 = vsel %vm697_vm1, %v892_v8, 0  ;;  %v10127_v35 = vmul.bf16 %v1909_v45, %v9751_v24  ;;  %v8495_v47 = vcombine.low %v10061_v37, %v10064_v26  ;;  %v10146_v45 = vrot.slane %v8429_v48, %v9471_v9 }
 0x154   : > { %2044 = vrot.lane.b32.xlu0 %v8555_v3, %s9404_s23  ;;  %8972 = vmatpush3.bf16.msra.mxu1 %v943_v49  ;;  %v865_v55 = vpop.permute.xlu0 %864  ;;  %v2705_v54 = vsel %vm697_vm1, %v2696_v53, %v12666_v15  ;;  %v8507_v37 = vcombine.high %v10113_v32, %v10113_v32  ;;  %v393_v26 = vrot.slane %v388_v51, %v9482_v14  ;;  %vm6880_vm3 = vcmask 441344  }
 0x155   : > { %v890_v57 = vsel %vm870_vm4, %v9965_v36, %v865_v55  ;;  %v891_v4 = vsel %vm870_vm4, %v865_v55, %v9840_v19  ;;  %v2694_v8 = vpop.permute.xlu1 %2693  ;;  %8485 = vmatmul.mubr.msk.bf16.gmra.mrb[28].mxu0 %vm904_vm2, %v9825_v50  ;;  %1430 = vmatprep.subr.bf16.mxu1 %v8496_v11  ;;  %v329_v36 = vcombine.high %v8429_v48, %v8429_v48 }
 0x156   : > { %2030 = vrot.lane.b32.xlu1 %v8548_v62, %s9404_s23  ;;  %8486 = vmatprep.subr.msk.bf16.mxu0 %vm697_vm1, %v891_v4  ;;  %v937_v19 = vsel %vm697_vm1, %v890_v57, 0  ;;  %v2700_v5 = vrot.slane %v2694_v8, 4  ;;  %v400_v62 = vrot.slane %v395_v59, %v9482_v14  ;;  %v10154_v11 = vmul.bf16 %v1907_v52, %v9672_v61 }
 0x157   : > { %1152 = vmatpush1.bf16.msra.mxu0 %v937_v19  ;;  %1181 = vmatprep.mubr.bf16.mxu0 %v12660_v41  ;;  %v10157_v3 = vmul.bf16 %v1907_v52, %v9675_v12  ;;  %v8560_v49 = vcombine.low %v10027_v27, %v10027_v27  ;;  %v12667_v55 = vcombine.high %v9989_v16, %v9993_v21  ;;  %v10173_v12 = vld [vmem:[%s9527_s10 + $0x10] sm:$0xff] }
 0x158   : > { %2042 = vrot.lane.b32.xlu0 %v8554_v39, %s9404_s23  ;;  %v10162_v48 = vpop.permute.xlu0 %2691  ;;  %v10169_v51 = vsel %vm2701_vm5, %v2705_v54, %v9873_v10  ;;  %v8504_v59 = vcombine.low %v10091_v56, %v10091_v56  ;;  %8974 = vmatmul.mubr.msk.bf16.vlgmr.msra.gmra.mrb[0].mxu1 %vm904_vm2, %v9825_v50  ;;  %v344_v39 = vcombine.high %v10146_v45, %v10146_v45  ;;  %v10194_v54 = vld [vmem:[%s9527_s10 + $0x40] sm:$0xff] }
 0x159   : > { %1379 = vmatprep.subr.bf16.mxu0 %v12667_v55  ;;  %v2699_v61 = vrot.slane %v10162_v48, 4  ;;  %v8567_v10 = vcombine.high %v10127_v35, %v10127_v35  ;;  %v10186_v57 = vmul.bf16 %v10093_v29, %v10173_v12  ;;  %1431 = vmatpush1.bf16.msra.mxu1 %v8495_v47  ;;  %v8506_v4 = vcombine.low %v10113_v32, %v10113_v32  ;;  %v10215_v55 = vld [vmem:[%s9527_s10 + $0x18] sm:$0xff] }
 0x15a   : > { %2054 = vrot.lane.b32.xlu1 %v8560_v49, %s9404_s23  ;;  %8518 = vmatprep.subr.msk.bf16.mxu1 %vm697_vm1, %v8507_v37  ;;  %v343_v19 = vrot.slane %v329_v36, %v9471_v9  ;;  %v8433_v49 = vcombine.low %v393_v26, %v400_v62  ;;  %v8552_v47 = vcombine.low %v10154_v11, %v10157_v3  ;;  %v10218_v36 = vld [vmem:[%s9527_s10 + $0x48] sm:$0xff] }
 0x15b   : > { %v2711_v15 = vsel %vm697_vm1, %v2699_v61, %v2700_v5  ;;  %1462 = vmatprep.mubr.bf16.mxu1 %v12660_v41  ;;  %v10204_v32 = vmul.bf16 %v10169_v51, %v9607_v1  ;;  %v10208_v5 = vmul.bf16 %v10169_v51, %v9610_v2  ;;  %v10212_v37 = vmul.bf16 %v10093_v29, %v10194_v54  ;;  %v10231_v2 = vld [vmem:[%s9527_s10 + $0x78] sm:$0xff] }
 0x15c   : > { %2068 = vrot.lane.b32.xlu0 %v8567_v10, %s9404_s23  ;;  %v8549_v26 = vcombine.high %v10008_v34, %v10011_v42  ;;  %v10224_v62 = vrot.slane %v9970_v20, %v9471_v9  ;;  %v8505_v1 = vcombine.high %v10091_v56, %v10091_v56  ;;  %v416_v10 = vpack.i.b16 %v344_v39, %v344_v39 }
 0x15d   : > { %8487 = vmatmul.mubr.msk.bf16.vlgmr.msra.gmra.mrb[32].mxu0 %vm904_vm2, %v9623_v18  ;;  %v10234_v7 = vmul.bf16 %v1907_v52, %v9697_v22  ;;  %v10238_v42 = vsel %vm2701_vm5, %v2711_v15, %v2694_v8  ;;  %v1347_v18 = vsel %vm697_vm1, %v8504_v59, 0  ;;  %v1353_v34 = vsel %vm697_vm1, %v8506_v4, 0 }
 0x15e   : > { %2038 = vrot.lane.b32.xlu1 %v8552_v47, %s9404_s23  ;;  %1191 = vmatprep.mubr.bf16.mxu0 %v12660_v41  ;;  %v12668_v56 = vcombine.low %v9989_v16, %v9993_v21  ;;  %v402_v22 = vpack.i.b16 %v10146_v45, %v10146_v45  ;;  %v409_v52 = vpack.i.b16 %v343_v19, %v343_v19  ;;  %v12669_v45 = vrot.slane %v9854_v30, 4  ;;  %v9369_v19 = vld [vmem:[%s9527_s10 + $0x28] sm:$0xff] }
 0x15f   : > { %v459_v39 = vmul.bf16 %v8433_v49, %v10215_v55  ;;  %v465_v8 = vmul.bf16 %v8433_v49, %v10218_v36  ;;  %v8562_v15 = vcombine.low %v10018_v43, %v10018_v43  ;;  %v8606_v59 = vcombine.high %v10204_v32, %v10208_v5  ;;  %1433 = vmatpush1.bf16.msra.mxu1 %v1353_v34 }
 0x160   : > { %1380 = vmatpush1.bf16.msra.mxu0 %v12668_v56  ;;  %2032 = vrot.lane.b32.xlu0 %v8549_v26, %s9404_s23  ;;  %v8498_v16 = vcombine.high %v10186_v57, %v10212_v37  ;;  %v471_v21 = vmul.bf16 %v8433_v49, %v10231_v2  ;;  %v2703_v4 = vsel %vm697_vm1, %v12669_v45, %v2696_v53  ;;  %v9370_v26 = vld [vmem:[%s9527_s10 + $0x58] sm:$0xff] }
 0x161   : > { %v10265_v47 = vmul.bf16 %v9369_v19, %v10238_v42  ;;  %v10269_v43 = vmul.bf16 %v9370_v26, %v10238_v42  ;;  %8515 = vmatprep.subr.msk.bf16.mxu0 %vm697_vm1, %v8505_v1  ;;  %v421_v56 = vrot.slane %v416_v10, %v9482_v14  ;;  %v12670_v30 = vcombine.high %v9970_v20, %v9970_v20  ;;  %v10287_v1 = vld [vmem:[%s12634_s2] sm:$0xff]  }
 0x162   : > { %2058 = vrot.lane.b32.xlu1 %v8562_v15, %s9404_s23  ;;  %v4181_v53 = vpack.i.b16 %v10224_v62, %v10224_v62  ;;  %v8564_v45 = vcombine.low %v10234_v7, %v10234_v7  ;;  %v407_v10 = vrot.slane %v402_v22, %v9482_v14  ;;  %v414_v15 = vrot.slane %v409_v52, %v9482_v14 }
 0x163   : > { %v10278_v49 = vrot.slane %v12670_v30, %v9471_v9  ;;  %v8500_v20 = vcombine.high %v459_v39, %v465_v8  ;;  %v2704_v19 = vsel %vm2701_vm5, %v2703_v4, %v9907_v23  ;;  %v8511_v34 = vcombine.high %v471_v21, %v471_v21  ;;  %8519 = vmatmul.mubr.msk.bf16.vlgmr.msra.gmra.mrb[4].mxu1 %vm904_vm2, %v10287_v1  ;;  %v10317_v4 = vld [vmem:[%s9527_s10 + $0x70] sm:$0xff] }
 0x164   : > { %1382 = vmatpush1.bf16.msra.mxu0 %v1347_v18  ;;  %2837 = vrot.lane.b32.xlu0 %v8606_v59, %s9406_s9  ;;  %v8499_v18 = vcombine.low %v459_v39, %v465_v8  ;;  %v8510_v22 = vcombine.low %v471_v21, %v471_v21  ;;  %v10298_v52 = vcombine.low %v421_v56, %v421_v56  ;;  %v256_v59 = vld [vmem:[%s9527_s10 + $0x28] sm:$0xf]  ;;  %v10335_v30 = vld [vmem:[%s9527_s10 + $0x50] sm:$0xff] }
 0x165   : > { %1481 = vmatprep.subr.bf16.mxu0 %v8498_v16  ;;  %8488 = vmatmul.mubr.msk.bf16.gmra.mrb[36].mxu0 %vm904_vm2, %v9825_v50  ;;  %v8612_v23 = vcombine.high %v10265_v47, %v10269_v43  ;;  %v8605_v39 = vcombine.low %v10204_v32, %v10208_v5  ;;  %v10307_v8 = vmul.bf16 %v10169_v51, %v9636_v6  ;;  %v262_v16 = vld [vmem:[%s9527_s10 + $0x58] sm:$0xf]  ;;  %v9371_v6 = vld [vmem:[%s9527_s10 + $0x8] sm:$0xff] }
 0x166   : > { %2062 = vrot.lane.b32.xlu1 %v8564_v45, %s9404_s23  ;;  %v4188_v50 = vpack.i.b16 %v10278_v49, %v10278_v49  ;;  %1411 = vmatprep.mubr.bf16.mxu0 %v12660_v41  ;;  %v8566_v21 = vcombine.low %v10127_v35, %v10127_v35  ;;  %v10319_v26 = vcombine.low %v407_v10, %v414_v15  ;;  %v9372_v32 = vld [vmem:[%s9527_s10 + $0x38] sm:$0xff]  ;;  %v10332_v35 = vld [vmem:[%s9527_s10 + $0x20] sm:$0xff]  ;;  %v1365_v10 = vsel %vm697_vm1, %v8510_v22, 0  ;;  %v9373_v22 = vld [vmem:[%s9527_s10 + $0x68] sm:$0xff] }
 0x167   : > { %1472 = vmatprep.mubr.bf16.mxu1 %v12660_v41  ;;  %1532 = vmatprep.subr.bf16.mxu1 %v8500_v20  ;;  %v10323_v51 = vmul.bf16 %v9371_v6, %v2704_v19  ;;  %v10326_v5 = vmul.bf16 %v9372_v32, %v2704_v19  ;;  %v470_v56 = vmul.bf16 %v10093_v29, %v10317_v4 }
 0x168   : > { %2835 = vrot.lane.b32.xlu0 %v8605_v39, %s9406_s9  ;;  %1533 = vmatpush1.bf16.msra.mxu1 %v8499_v18  ;;  %v4186_v45 = vrot.slane %v4181_v53, %v9482_v14  ;;  %v461_v15 = vmul.bf16 %v10298_v52, %v256_v59  ;;  %v467_v20 = vmul.bf16 %v10298_v52, %v262_v16  ;;  %v12671_v39 = vrot.slane %v10013_v25, 4  ;;  %v10359_v16 = vld [vmem:[%s12634_s2 + $0x8] ss:$0 sps:$4 sm:$0xff]  }
 0x169   : > { %8524 = vmatprep.subr.msk.bf16.mxu1 %vm697_vm1, %v8511_v34  ;;  %v8618_v29 = vcombine.high %v10307_v8, %v10307_v8  ;;  %v4193_v53 = vrot.slane %v4188_v50, %v9482_v14  ;;  %v4108_v34 = vcombine.high %v9942_v44, %v9942_v44  ;;  %v10354_v59 = vmul.bf16 %v9373_v22, %v2704_v19 }
 0x16a   : > { %2066 = vrot.lane.b32.xlu1 %v8566_v21, %s9404_s23  ;;  %v2709_v18 = vsel %vm697_vm1, %v12671_v39, %v2699_v61  ;;  %v8497_v21 = vcombine.low %v10186_v57, %v10212_v37  ;;  %v10365_v25 = vmul.bf16 %v10319_v26, %v10332_v35  ;;  %v10369_v61 = vmul.bf16 %v10319_v26, %v10335_v30  ;;  %v268_v37 = vld [vmem:[%s9527_s10 + $0x88] sm:$0xf] }
 0x16b   : > { %v8603_v44 = vcombine.low %v10323_v51, %v10326_v5  ;;  %v8509_v19 = vcombine.high %v470_v56, %v470_v56  ;;  %v8508_v50 = vcombine.low %v470_v56, %v470_v56  ;;  %v2710_v6 = vsel %vm2701_vm5, %v2709_v18, %v10162_v48  ;;  %8520 = vmatmul.mubr.msk.bf16.gmra.mrb[8].mxu1 %vm904_vm2, %v10359_v16  ;;  %v10404_v18 = vld [vmem:[%s9527_s10 + $0x80] sm:$0xff] }
 0x16c   : > { %2861 = vrot.lane.b32.xlu0 %v8618_v29, %s9406_s9  ;;  %1535 = vmatpush1.bf16.msra.mxu1 %v1365_v10  ;;  %v8503_v57 = vcombine.low %v461_v15, %v467_v20  ;;  %v8553_v32 = vcombine.high %v10154_v11, %v10157_v3  ;;  %v8700_v29 = vcombine.low %v4186_v45, %v4193_v53 }
 0x16d   : > { %8516 = vmatmul.mubr.msk.bf16.vlgmr.msra.gmra.mrb[0].mxu0 %vm904_vm2, %v10287_v1  ;;  %v8615_v56 = vcombine.low %v10354_v59, %v10354_v59  ;;  %v4122_v48 = vrot.slane %v4108_v34, %v9471_v9  ;;  %v8502_v10 = vcombine.high %v10365_v25, %v10369_v61  ;;  %1564 = vmatprep.mubr.bf16.mxu1 %v12660_v41  ;;  %v1359_v11 = vsel %vm697_vm1, %v8508_v50, 0 }
 0x16e   : > { %2831 = vrot.lane.b32.xlu1 %v8603_v44, %s9406_s9  ;;  %1421 = vmatprep.mubr.bf16.mxu0 %v12660_v41  ;;  %v2723_v15 = vmul.bf16 %v2710_v6, %v9729_v60  ;;  %v2729_v20 = vmul.bf16 %v2710_v6, %v9732_v46  ;;  %v473_v3 = vmul.bf16 %v10298_v52, %v268_v37 }
 0x16f   : > { %1482 = vmatpush1.bf16.msra.mxu0 %v8497_v21  ;;  %8977 = vmatprep.subr.bf16.mxu1 %v8503_v57  ;;  %v4124_v45 = vcombine.high %v4122_v48, %v4122_v48  ;;  %v8561_v60 = vcombine.high %v10027_v27, %v10027_v27  ;;  %v10411_v52 = vrot.slane %v4122_v48, %v9471_v9 }
 0x170   : > { %2040 = vrot.lane.b32.xlu0 %v8553_v32, %s9404_s23  ;;  %8521 = vmatprep.subr.msk.bf16.mxu0 %vm697_vm1, %v8509_v19  ;;  %v8610_v46 = vcombine.high %v2723_v15, %v2729_v20  ;;  %v8514_v39 = vcombine.low %v473_v3, %v473_v3  ;;  %v8607_v53 = vcombine.low %v10075_v31, %v10079_v33  ;;  %v3485_v19 = vpop.permute.xlu0 %3484 }
 0x171   : > { %v10414_v27 = vrot.slane %v4124_v45, %v9471_v9  ;;  %v472_v34 = vmul.bf16 %v10319_v26, %v10404_v18  ;;  %v10425_v21 = vmul.bf16 %v2710_v6, %v9751_v24  ;;  %v8609_v44 = vcombine.low %v2723_v15, %v2729_v20  ;;  %v9374_v6 = vld [vmem:[%s9527_s10 + $0x78] sm:$0xff]  ;;  %v3487_v45 = vpop.permute.xlu1 %3486 }
 0x172   : > { %2855 = vrot.lane.b32.xlu1 %v8615_v56, %s9406_s9  ;;  %v1377_v22 = vsel %vm697_vm1, %v8514_v39, 0  ;;  %v4153_v50 = vcombine.high %v10224_v62, %v10224_v62  ;;  %v4209_v26 = vpack.i.b16 %v10411_v52, %v10411_v52  ;;  %v8501_v24 = vcombine.low %v10365_v25, %v10369_v61 }
 0x173   : > { %1484 = vmatpush1.bf16.msra.mxu0 %v1359_v11  ;;  %8525 = vmatmul.mubr.msk.bf16.vlgmr.msra.gmra.mrb[12].mxu1 %vm904_vm2, %v10287_v1  ;;  %v4216_v37 = vpack.i.b16 %v10414_v27, %v10414_v27  ;;  %v10440_v32 = vmul.bf16 %v9374_v6, %v10054_v58  ;;  %v8617_v62 = vcombine.low %v10307_v8, %v10307_v8  ;;  %v3496_v56 = vrot.slane %v3485_v19, 4 }
 0x174   : > { %4285 = vrot.lane.b32.xlu0 %v8700_v29, %s9407_s19  ;;  %1583 = vmatprep.subr.bf16.mxu0 %v8502_v10  ;;  %v8512_v29 = vcombine.low %v472_v34, %v472_v34  ;;  %v8622_v58 = vcombine.high %v10425_v21, %v10425_v21  ;;  %v4195_v25 = vpack.i.b16 %v4153_v50, %v4153_v50 }
 0x175   : > { %8517 = vmatmul.mubr.msk.bf16.gmra.mrb[40].mxu0 %vm904_vm2, %v10359_v16  ;;  %1574 = vmatprep.mubr.bf16.mxu1 %v12660_v41  ;;  %v8619_v8 = vcombine.low %v10440_v32, %v10440_v32  ;;  %v4214_v48 = vrot.slane %v4209_v26, %v9482_v14  ;;  %v4221_v10 = vrot.slane %v4216_v37, %v9482_v14 }
 0x176   : > { %2056 = vrot.lane.b32.xlu1 %v8561_v60, %s9404_s23  ;;  %1513 = vmatprep.mubr.bf16.mxu0 %v12660_v41  ;;  %v1371_v15 = vsel %vm697_vm1, %v8512_v29, 0  ;;  %v3503_v20 = vsel %vm3502_vm6, %v3496_v56, %v3485_v19  ;;  %v4200_v11 = vrot.slane %v4195_v25, %v9482_v14  ;;  %v12672_v60 = vcombine.high %v9910_v63, %v9913_v38 }
 0x177   : > { %8978 = vmatpush3.bf16.msra.mxu1 %v8503_v57  ;;  %v4155_v57 = vcombine.high %v10278_v49, %v10278_v49  ;;  %v8513_v49 = vcombine.high %v472_v34, %v472_v34  ;;  %v8702_v34 = vcombine.low %v4214_v48, %v4221_v10  ;;  %v3497_v38 = vrot.slane %v3487_v45, 4 }
 0x178   : > { %2845 = vrot.lane.b32.xlu0 %v8610_v46, %s9406_s9  ;;  %9289 = vmatprep.subr.msk.bf16.mxu1 %vm697_vm1, %v8514_v39  ;;  %v3520_v46 = vmul.bf16 %v3503_v20, %v9980_v40  ;;  %v3526_v39 = vmul.bf16 %v3503_v20, %v9983_v13  ;;  %v8611_v26 = vcombine.low %v10265_v47, %v10269_v43 }
 0x179   : > { %v4202_v61 = vpack.i.b16 %v4155_v57, %v4155_v57  ;;  %v3532_v57 = vmul.bf16 %v3503_v20, %v10082_v28  ;;  %v4156_v28 = vcombine.high %v10414_v27, %v10414_v27  ;;  %v8621_v25 = vcombine.low %v10425_v21, %v10425_v21 }
 0x17a   : > { %2839 = vrot.lane.b32.xlu1 %v8607_v53, %s9406_s9  ;;  %v8565_v53 = vcombine.high %v10234_v7, %v10234_v7  ;;  %v8657_v13 = vcombine.high %v3520_v46, %v3526_v39  ;;  %v3504_v7 = vsel %vm697_vm1, %v3496_v56, %v3497_v38  ;;  %v8656_v37 = vcombine.low %v3520_v46, %v3526_v39  ;;  %v9375_v56 = vld [vmem:[%s9527_s10 + $0x88] sm:$0xff]  ;;  %v12673_v46 = vld [vmem:[#allocation6_spill] sm:$0xff] }
 0x17b   : > { %8980 = vmatpush3.bf16.msra.mxu1 %v1377_v22  ;;  %v4207_v3 = vrot.slane %v4202_v61, %v9482_v14  ;;  %v8699_v22 = vld.sshfl [vmem:[%s12633_s1 + $0x3f] sm:$0x13 pattern:$0x75316420] }
 0x17c   : > { %2843 = vrot.lane.b32.xlu0 %v8609_v44, %s9406_s9  ;;  %8526 = vmatmul.mubr.msk.bf16.gmra.mrb[16].mxu1 %vm904_vm2, %v10359_v16  ;;  %v4164_v40 = vcombine.high %v8699_v22, %v8699_v22  ;;  %v10487_v44 = vpop.permute.xlu0 %3488  ;;  %v4171_v19 = vrot.slane %v8699_v22, %v9471_v9 }
 0x17d   : > { %8522 = vmatmul.mubr.msk.bf16.vlgmr.msra.gmra.mrb[16].mxu0 %vm904_vm2, %v10287_v1  ;;  %8981 = vmatprep.mubr.msk.bf16.mxu1 %vm904_vm2, %v10287_v1  ;;  %v8701_v63 = vcombine.low %v4200_v11, %v4207_v3  ;;  %v3498_v6 = vrot.slane %v10487_v44, 4 }
 0x17e   : > { %2859 = vrot.lane.b32.xlu1 %v8617_v62, %s9406_s9  ;;  %1523 = vmatprep.mubr.bf16.mxu0 %v12660_v41  ;;  %v4178_v50 = vrot.slane %v4164_v40, %v9471_v9  ;;  %v4154_v62 = vcombine.high %v10411_v52, %v10411_v52  ;;  %v8668_v52 = vcombine.low %v3532_v57, %v3532_v57 }
 0x17f   : > { %1584 = vmatpush1.bf16.msra.mxu0 %v8501_v24  ;;  %v3505_v24 = vsel %vm3502_vm6, %v3504_v7, %v3487_v45  ;;  %v3506_v27 = vsel %vm697_vm1, %v3497_v38, %v3498_v6  ;;  %v8569_v45 = vcombine.high %v9920_v17, %v9920_v17  ;;  %v8604_v38 = vcombine.high %v10323_v51, %v10326_v5  ;;  %v8752_v51 = vld [vmem:[%s12633_s1 + $0x42] sm:$0xff] }
 0x180   : > { %2869 = vrot.lane.b32.xlu0 %v8622_v58, %s9406_s9  ;;  %8527 = vmatprep.subr.msk.bf16.mxu0 %vm697_vm1, %v8513_v49  ;;  %v4237_v49 = vpack.i.b16 %v4171_v19, %v4171_v19  ;;  %v4244_v29 = vpack.i.b16 %v4178_v50, %v4178_v50  ;;  %v10507_v58 = vmul.bf16 %v9375_v56, %v10238_v42 }
 0x181   : > { %v4223_v61 = vpack.i.b16 %v4154_v62, %v4154_v62  ;;  %v3507_v10 = vsel %vm3502_vm6, %v3506_v27, %v10487_v44  ;;  %v10541_v39 = vmul.bf16 %v3505_v24, %v12673_v46  ;;  %v8669_v7 = vcombine.high %v3532_v57, %v3532_v57 }
 0x182   : > { %2863 = vrot.lane.b32.xlu1 %v8619_v8, %s9406_s9  ;;  %v4230_v8 = vpack.i.b16 %v4156_v28, %v4156_v28  ;;  %v4242_v48 = vrot.slane %v4237_v49, %v9482_v14  ;;  %v4249_v21 = vrot.slane %v4244_v29, %v9482_v14  ;;  %v3522_v11 = vmul.bf16 %v3507_v10, %v10173_v12 }
 0x183   : > { %1586 = vmatpush1.bf16.msra.mxu0 %v1371_v15  ;;  %v4228_v15 = vrot.slane %v4223_v61, %v9482_v14  ;;  %v3528_v3 = vmul.bf16 %v3507_v10, %v10194_v54  ;;  %v10552_v54 = vmul.bf16 %v3507_v10, %v10317_v4  ;;  %v8616_v50 = vcombine.high %v10354_v59, %v10354_v59 }
 0x184   : > { %2048 = vrot.lane.b32.xlu0 %v12672_v60, %s9404_s23  ;;  %8982 = vmatmul.mubr.msk.bf16.vlgmr.msra.gmra.mrb[20].mxu1 %vm904_vm2, %v10359_v16  ;;  %v4235_v20 = vrot.slane %v4230_v8, %v9482_v14  ;;  %v8704_v60 = vcombine.low %v4242_v48, %v4249_v21  ;;  %v4916_v57 = vrot.slane %v8752_v51, %v9471_v9 }
 0x185   : > { %8523 = vmatmul.mubr.msk.bf16.gmra.mrb[44].mxu0 %vm904_vm2, %v10359_v16  ;;  %2230 = vmatprep.mubr.bf16.mxu1 %v12660_v41  ;;  %v8661_v12 = vcombine.high %v3522_v11, %v3528_v3  ;;  %v8660_v22 = vcombine.low %v3522_v11, %v3528_v3  ;;  %v8672_v40 = vcombine.low %v10552_v54, %v10552_v54 }
 0x186   : > { %2064 = vrot.lane.b32.xlu1 %v8565_v53, %s9404_s23  ;;  %1615 = vmatprep.mubr.bf16.mxu0 %v12660_v41  ;;  %v12674_v53 = vld [vmem:[#allocation7_spill] sm:$0xff]  ;;  %v4924_v62 = vcombine.high %v4916_v57, %v4916_v57  ;;  %v4932_v49 = vrot.slane %v4916_v57, %v9471_v9  ;;  %v12678_v57 = vld [vmem:[#allocation5_spill] sm:$0xff]  ;;  %v8624_v43 = vcombine.high %v10507_v58, %v10507_v58 }
 0x188   : > { %4289 = vrot.lane.b32.xlu0 %v8702_v34, %s9407_s19  ;;  %v10544_v34 = vmul.bf16 %v3505_v24, %v12674_v53  ;;  %v4946_v29 = vrot.slane %v4924_v62, %v9471_v9  ;;  %v12679_v62 = vld [vmem:[#allocation8_spill] sm:$0xff] }
 0x18a   : > { %4287 = vrot.lane.b32.xlu1 %v8701_v63, %s9407_s19  ;;  %v8658_v17 = vcombine.low %v10541_v39, %v10544_v34  ;;  %v4179_v63 = vcombine.high %v4171_v19, %v4171_v19  ;;  %v4989_v27 = vpack.i.b16 %v4946_v29, %v4946_v29  ;;  %v4956_v53 = vcombine.high %v4946_v29, %v4946_v29 }
 0x18c   : > { %3630 = vrot.lane.b32.xlu0 %v8657_v13, %s9408_s25  ;;  %v4251_v13 = vpack.i.b16 %v4179_v63, %v4179_v63 }
 0x18d   : > { %8528 = vmatmul.mubr.msk.bf16.vlgmr.msra.gmra.mrb[32].mxu0 %vm904_vm2, %v10287_v1  ;;  %v10510_v1 = vmul.bf16 %v3505_v24, %v10105_v0  ;;  %v8623_v0 = vcombine.low %v10507_v58, %v10507_v58  ;;  %v8754_v58 = vld.sshfl [vmem:[%s12633_s1 + $0x4a] sm:$0x13 pattern:$0x75316420] }
 0x18e   : > { %2847 = vrot.lane.b32.xlu1 %v8611_v26, %s9406_s9  ;;  %1625 = vmatprep.mubr.bf16.mxu0 %v12660_v41  ;;  %v4256_v19 = vrot.slane %v4251_v13, %v9482_v14 }
 0x18f   : > { %v8670_v42 = vcombine.low %v10510_v1, %v10510_v1 }
 0x190   : > { %3628 = vrot.lane.b32.xlu0 %v8656_v37, %s9408_s25  ;;  %v8705_v26 = vcombine.low %v4256_v19, %v4256_v19 }
 0x192   : > { %2867 = vrot.lane.b32.xlu1 %v8621_v25, %s9406_s9 }
 0x194   : > { %3652 = vrot.lane.b32.xlu0 %v8668_v52, %s9408_s25  ;;  %v4982_v52 = vpack.i.b16 %v4932_v49, %v4932_v49 }
 0x195   : > { %8529 = vmatmul.mubr.msk.bf16.gmra.mrb[48].mxu0 %vm904_vm2, %v10359_v16  ;;  %v8703_v16 = vcombine.low %v4228_v15, %v4235_v20  ;;  %v4994_v15 = vrot.slane %v4989_v27, %v9482_v14 }
 0x196   : > { %2871 = vrot.lane.b32.xlu1 %v8623_v0, %s9406_s9  ;;  %2179 = vmatprep.mubr.bf16.mxu0 %v12660_v41  ;;  %v4987_v10 = vrot.slane %v4982_v52, %v9482_v14 }
 0x198   : > { %3656 = vrot.lane.b32.xlu0 %v8670_v42, %s9408_s25 }
 0x19a   : > { %2072 = vrot.lane.b32.xlu1 %v8569_v45, %s9404_s23 }
 0x19c   : > { %4293 = vrot.lane.b32.xlu0 %v8704_v60, %s9407_s19 }
 0x19e   : > { %4291 = vrot.lane.b32.xlu1 %v8703_v16, %s9407_s19 }
 0x1a0   : > { %3638 = vrot.lane.b32.xlu0 %v8661_v12, %s9408_s25  ;;  %v4909_v12 = vcombine.high %v8752_v51, %v8752_v51  ;;  %v12677_v51 = vld [vmem:[#allocation4_spill] sm:$0xff] }
 0x1a2   : > { %3632 = vrot.lane.b32.xlu1 %v8658_v17, %s9408_s25 }
 0x1a4   : > { %3636 = vrot.lane.b32.xlu0 %v8660_v22, %s9408_s25 }
 0x1a6   : > { %2833 = vrot.lane.b32.xlu1 %v8604_v38, %s9406_s9 }
 0x1a8   : > { %3660 = vrot.lane.b32.xlu0 %v8672_v40, %s9408_s25  ;;  %v12675_v40 = vcombine.high %v10075_v31, %v10079_v33  ;;  %v8673_v33 = vcombine.high %v10552_v54, %v10552_v54 }
 0x1aa   : > { %3654 = vrot.lane.b32.xlu1 %v8669_v7, %s9408_s25  ;;  %v10563_v4 = vpop.permute.xlu0 %2829  ;;  %v5003_v7 = vpack.i.b16 %v4956_v53, %v4956_v53 }
 0x1ac   : > { %v5008_v52 = vrot.slane %v5003_v7, %v9482_v14 }
 0x1ae   : > { %2857 = vrot.lane.b32.xlu1 %v8616_v50, %s9406_s9  ;;  %v10572_v5 = vpop.permute.xlu0 %2827  ;;  %v12676_v50 = vld [vmem:[#allocation3_spill] sm:$0xff] }
 0x1b2   : > { %4295 = vrot.lane.b32.xlu1 %v8705_v26, %s9407_s19  ;;  %v10576_v37 = vpop.permute.xlu0 %2853  ;;  %v2075_v26 = vsel %vm2074_vm7, %v12677_v51, %v12676_v50  ;;  %s9415_s19 = smov 54  }
 0x1b4   : > { %v10578_v24 = vpop.permute.xlu1 %2046 }
 0x1b6   : > { %v3493_v28 = vpop.permute.xlu0 %3492 }
 0x1b7   : > { %v3500_v61 = vrot.slane %v3493_v28, 4 }
 0x1b8   : > { %v10580_v59 = vpop.permute.xlu1 %2070 }
 0x1ba   : > { %v10584_v56 = vpop.permute.xlu0 %2036 }
 0x1bc   : > { %v3491_v25 = vpop.permute.xlu1 %3490 }
 0x1bd   : > { %v3499_v8 = vrot.slane %v3491_v25, 4 }
 0x1be   : > { %v10586_v0 = vpop.permute.xlu0 %2034 }
 0x1bf   : > { %v3508_v42 = vsel %vm697_vm1, %v3498_v6, %v3499_v8  ;;  %v3510_v20 = vsel %vm697_vm1, %v3499_v8, %v3500_v61 }
 0x1c0   : > { %v3509_v48 = vsel %vm3502_vm6, %v3508_v42, %v3491_v25  ;;  %v10592_v21 = vpop.permute.xlu1 %2851  ;;  %v3511_v16 = vsel %vm3502_vm6, %v3510_v20, %v3493_v28  ;;  %v2086_v28 = vsel %vm2074_vm7, %v12679_v62, %v12678_v57 }
 0x1c1   : > { %v10598_v11 = vmul.bf16 %v3509_v48, %v10215_v55  ;;  %v10601_v3 = vmul.bf16 %v3509_v48, %v10218_v36  ;;  %v10604_v44 = vmul.bf16 %v3509_v48, %v10231_v2  ;;  %v8755_v55 = vcombine.low %v4987_v10, %v4994_v15  ;;  %v10655_v48 = vld [vmem:[%s9527_s10 + $0x28] sm:$0xff] }
 0x1c2   : > { %v10606_v6 = vpop.permute.xlu0 %2060  ;;  %v4954_v36 = vcombine.high %v4932_v49, %v4932_v49  ;;  %v3524_v17 = vmul.bf16 %v3511_v16, %v10332_v35  ;;  %v3530_v22 = vmul.bf16 %v3511_v16, %v10335_v30  ;;  %v4923_v30 = vrot.slane %v4909_v12, %v9471_v9 }
 0x1c3   : > { %v8662_v45 = vcombine.low %v10598_v11, %v10601_v3  ;;  %v8674_v60 = vcombine.low %v10604_v44, %v10604_v44  ;;  %v2115_v42 = vsel %vm697_vm1, %v2086_v28, 0  ;;  %v8620_v15 = vcombine.high %v10440_v32, %v10440_v32 }
 0x1c4   : > { %v3495_v46 = vpop.permute.xlu1 %3494  ;;  %v4996_v13 = vpack.i.b16 %v4954_v36, %v4954_v36  ;;  %v8665_v31 = vcombine.high %v3524_v17, %v3530_v22  ;;  %v4925_v8 = vcombine.high %v4923_v30, %v4923_v30  ;;  %v8664_v20 = vcombine.low %v3524_v17, %v3530_v22 }
 0x1c5   : > { %3640 = vrot.lane.b32.xlu1 %v8662_v45, %s9408_s25  ;;  %3664 = vrot.lane.b32.xlu0 %v8674_v60, %s9408_s25  ;;  %v3501_v63 = vrot.slane %v3495_v46, 4  ;;  %v10663_v45 = vld [vmem:[%s12634_s2 + $0x18] sm:$0xff]   ;;  %v4939_v36 = vrot.slane %v4923_v30, %v9471_v9  ;;  %v2079_v17 = vsel %vm2074_vm7, %v10586_v0, %v10584_v56 }
 0x1c6   : > { %v10615_v2 = vpop.permute.xlu0 %2044  ;;  %v5001_v25 = vrot.slane %v4996_v13, %v9482_v14  ;;  %v10666_v60 = vld [vmem:[%s9527_s10 + $0x58] sm:$0xff] }
 0x1c7   : > { %v3512_v49 = vsel %vm697_vm1, %v3500_v61, %v3501_v63  ;;  %v10651_v61 = vmul.bf16 %v3511_v16, %v10404_v18  ;;  %v10669_v16 = vld [vmem:[%s9527_s10 + $0x88] sm:$0xff]  ;;  %v4953_v63 = vrot.slane %v4925_v8, %v9471_v9  ;;  %v5010_v30 = vpack.i.b16 %v4939_v36, %v4939_v36 }
 0x1c8   : > { %v2031_v38 = vpop.permute.xlu1 %2030  ;;  %v3513_v10 = vsel %vm3502_vm6, %v3512_v49, %v3495_v46  ;;  %v8756_v46 = vcombine.low %v5001_v25, %v5008_v52  ;;  %v4955_v25 = vcombine.high %v4939_v36, %v4939_v36  ;;  %v8659_v8 = vcombine.high %v10541_v39, %v10544_v34 }
 0x1c9   : > { %2841 = vrot.lane.b32.xlu1 %v12675_v40, %s9406_s9  ;;  %5086 = vrot.lane.b32.xlu0 %v8755_v55, %s9409_s27  ;;  %v2076_v35 = vsel %vm2074_vm7, %v12676_v50, %v2031_v38  ;;  %v10680_v53 = vmul.bf16 %v3513_v10, %v10655_v48  ;;  %v8676_v22 = vcombine.low %v10651_v61, %v10651_v61 }
 0x1ca   : > { %v10624_v19 = vpop.permute.xlu0 %2042  ;;  %2147 = vmatprep.subr.bf16.mxu0 %v2076_v35  ;;  %v10689_v40 = vmul.bf16 %v3513_v10, %v10666_v60  ;;  %v10692_v13 = vmul.bf16 %v3513_v10, %v10669_v16  ;;  %v5017_v51 = vpack.i.b16 %v4953_v63, %v4953_v63  ;;  %v5015_v28 = vrot.slane %v5010_v30, %v9482_v14 }
 0x1cb   : > { %2148 = vmatpush1.bf16.msra.mxu0 %v2075_v26  ;;  %v10713_v26 = vld [vmem:[%s12634_s2 + $0x20] ss:$0 sps:$4 sm:$0xff]   ;;  %v2083_v47 = vsel %vm2074_vm7, %v10624_v19, %v10615_v2 }
 0x1cc   : > { %v10638_v29 = vpop.permute.xlu1 %2054  ;;  %v5022_v49 = vrot.slane %v5017_v51, %v9482_v14  ;;  %v4965_v51 = vcombine.high %v8754_v58, %v8754_v58 }
 0x1cd   : > { %3662 = vrot.lane.b32.xlu1 %v8673_v33, %s9408_s25  ;;  %3646 = vrot.lane.b32.xlu0 %v8665_v31, %s9408_s25  ;;  %v2087_v54 = vsel %vm2074_vm7, %v12678_v57, %v10638_v29 }
 0x1ce   : > { %v10647_v27 = vpop.permute.xlu0 %2068  ;;  %8570 = vmatprep.subr.msk.bf16.mxu0 %vm697_vm1, %v2087_v54 }
 0x1cf   : > { %2150 = vmatpush1.bf16.msra.mxu0 %v2115_v42  ;;  %v4957_v42 = vcombine.high %v4953_v63, %v4953_v63  ;;  %v2095_v36 = vsel %vm2074_vm7, %v10647_v27, %v10580_v59  ;;  %v8671_v63 = vcombine.high %v10510_v1, %v10510_v1 }
 0x1d0   : > { %v10671_v55 = vpop.permute.xlu1 %2038 }
 0x1d1   : > { %2865 = vrot.lane.b32.xlu1 %v8620_v15, %s9406_s9  ;;  %3644 = vrot.lane.b32.xlu0 %v8664_v20, %s9408_s25  ;;  %v2080_v32 = vsel %vm2074_vm7, %v10584_v56, %v10671_v55  ;;  %v8757_v15 = vcombine.low %v5015_v28, %v5022_v49  ;;  %v8677_v20 = vcombine.high %v10651_v61, %v10651_v61  ;;  %v9377_v28 = vld [vmem:[%s9527_s10 + $0x30] sm:$0xff] }
 0x1d2   : > { %v2033_v12 = vpop.permute.xlu0 %2032  ;;  %2249 = vmatprep.subr.bf16.mxu0 %v2080_v32  ;;  %8571 = vmatmul.mubr.msk.bf16.vlgmr.msra.gmra.mrb[0].mxu0 %vm904_vm2, %v10663_v45  ;;  %v5024_v32 = vpack.i.b16 %v4955_v25, %v4955_v25  ;;  %v5031_v39 = vpack.i.b16 %v4957_v42, %v4957_v42  ;;  %v4979_v42 = vrot.slane %v4965_v51, %v9471_v9 }
 0x1d3   : > { %v2078_v7 = vsel %vm2074_vm7, %v2033_v12, %v10586_v0  ;;  %v2077_v50 = vsel %vm2074_vm7, %v2031_v38, %v2033_v12  ;;  %2250 = vmatpush1.bf16.msra.mxu0 %v2079_v17  ;;  %2189 = vmatprep.mubr.bf16.mxu0 %v12660_v41  ;;  %v8666_v0 = vcombine.low %v10680_v53, %v10689_v40 }
 0x1d4   : > { %v10699_v56 = vpop.permute.xlu1 %2058  ;;  %2198 = vmatprep.subr.bf16.mxu1 %v2078_v7  ;;  %v8678_v38 = vcombine.low %v10692_v13, %v10692_v13 }
 0x1d5   : > { %5088 = vrot.lane.b32.xlu1 %v8756_v46, %s9409_s27  ;;  %3668 = vrot.lane.b32.xlu0 %v8676_v22, %s9408_s25  ;;  %v2090_v33 = vsel %vm2074_vm7, %v10699_v56, %v10606_v6 }
 0x1d6   : > { %2199 = vmatpush1.bf16.msra.mxu1 %v2077_v50  ;;  %v10703_v35 = vpop.permute.xlu0 %2837  ;;  %v2127_v54 = vsel %vm697_vm1, %v2090_v33, 0  ;;  %v9376_v33 = vld [vmem:[%s9527_s10] sm:$0xff] }
 0x1d8   : > { %v10718_v31 = vpop.permute.xlu1 %2062 }
 0x1d9   : > { %3648 = vrot.lane.b32.xlu1 %v8666_v0, %s9408_s25  ;;  %3672 = vrot.lane.b32.xlu0 %v8678_v38, %s9408_s25  ;;  %v2091_v57 = vsel %vm2074_vm7, %v10606_v6, %v10718_v31  ;;  %v2084_v6 = vsel %vm2074_vm7, %v10615_v2, %v10578_v24  ;;  %v5036_v2 = vrot.slane %v5031_v39, %v9482_v14 }
 0x1da   : > { %v10725_v62 = vpop.permute.xlu0 %2835  ;;  %8576 = vmatprep.subr.msk.bf16.mxu0 %vm697_vm1, %v2091_v57  ;;  %8572 = vmatmul.mubr.msk.bf16.gmra.mrb[52].mxu0 %vm904_vm2, %v10713_v26 }
 0x1db   : > { %2252 = vmatpush1.bf16.msra.mxu0 %v2127_v54  ;;  %2281 = vmatprep.mubr.bf16.mxu0 %v12660_v41 }
 0x1dc   : > { %v10733_v52 = vpop.permute.xlu1 %2066  ;;  %2351 = vmatprep.subr.bf16.mxu0 %v2084_v6 }
 0x1dd   : > { %2849 = vrot.lane.b32.xlu1 %v8612_v23, %s9406_s9  ;;  %3634 = vrot.lane.b32.xlu0 %v8659_v8, %s9408_s25  ;;  %v5029_v23 = vrot.slane %v5024_v32, %v9482_v14  ;;  %v2094_v61 = vsel %vm2074_vm7, %v10733_v52, %v10647_v27  ;;  %v10810_v8 = vrot.slane %v8754_v58, %v9471_v9 }
 0x1de   : > { %v10746_v10 = vpop.permute.xlu0 %2861  ;;  %v2139_v22 = vsel %vm697_vm1, %v2094_v61, 0 }
 0x1df   : > { %v8758_v30 = vcombine.low %v5029_v23, %v5036_v2  ;;  %v5038_v61 = vpack.i.b16 %v10810_v8, %v10810_v8 }
 0x1e0   : > { %v10750_v46 = vpop.permute.xlu1 %2831 }
 0x1e1   : > { %3670 = vrot.lane.b32.xlu1 %v8677_v20, %s9408_s25  ;;  %5090 = vrot.lane.b32.xlu0 %v8757_v15, %s9409_s27  ;;  %v2877_v7 = vsel %vm2875_vm9, %v10563_v4, %v10750_v46  ;;  %v9378_v15 = vld [vmem:[%s9527_s10 + $0x60] sm:$0xff] }
 0x1e2   : > { %v2041_v34 = vpop.permute.xlu0 %2040  ;;  %8577 = vmatmul.mubr.msk.bf16.vlgmr.msra.gmra.mrb[16].mxu0 %vm904_vm2, %v10663_v45 }
 0x1e3   : > { %2352 = vmatpush1.bf16.msra.mxu0 %v2083_v47  ;;  %2291 = vmatprep.mubr.bf16.mxu0 %v12660_v41  ;;  %v2081_v32 = vsel %vm2074_vm7, %v10671_v55, %v2041_v34  ;;  %v2876_v55 = vsel %vm2875_vm9, %v10572_v5, %v10563_v4  ;;  %v5043_v5 = vrot.slane %v5038_v61, %v9482_v14  ;;  %v9382_v61 = vld [vmem:[%s9527_s10 + $0x40] sm:$0xff] }
 0x1e4   : > { %v10768_v12 = vpop.permute.xlu1 %2855  ;;  %8582 = vmatprep.subr.msk.bf16.mxu0 %vm697_vm1, %v2095_v36  ;;  %v5045_v36 = vpack.i.b16 %v4979_v42, %v4979_v42  ;;  %v9380_v42 = vld [vmem:[%s9527_s10 + $0x38] sm:$0xff] }
 0x1e5   : > { %2873 = vrot.lane.b32.xlu1 %v8624_v43, %s9406_s9  ;;  %s9410_s9 = smov 90   ;;  %v2888_v2 = vsel %vm2875_vm9, %v10576_v37, %v10768_v12 }
 0x1e6   : > { %v10777_v17 = vpop.permute.xlu0 %4285 }
 0x1e7   : > { %v4297_v27 = vrot.slane %v10777_v17, 4  ;;  %2354 = vmatpush1.bf16.msra.mxu0 %v2139_v22 }
 0x1e8   : > { %v2057_v50 = vpop.permute.xlu1 %2056  ;;  %2948 = vmatprep.subr.bf16.mxu0 %v2877_v7  ;;  %v8663_v7 = vcombine.high %v10598_v11, %v10601_v3  ;;  %v10877_v3 = vld [vmem:[%s12633_s1 + $0x4d] sm:$0xff] }
 0x1e9   : > { %v4304_v0 = vsel %vm4303_vm8, %v4297_v27, %v10777_v17  ;;  %v2088_v38 = vsel %vm2074_vm7, %v10638_v29, %v2057_v50  ;;  %3658 = vrot.lane.b32.xlu1 %v8671_v63, %s9408_s25  ;;  %v2089_v1 = vsel %vm2074_vm7, %v2057_v50, %v10699_v56  ;;  %v2082_v29 = vsel %vm2074_vm7, %v2041_v34, %v10624_v19 }
 0x1ea   : > { %v4321_v57 = vmul.bf16 %v9376_v33, %v4304_v0  ;;  %v4327_v49 = vmul.bf16 %v9377_v28, %v4304_v0  ;;  %v10797_v54 = vpop.permute.xlu0 %2845  ;;  %8573 = vmatprep.subr.msk.bf16.mxu1 %vm697_vm1, %v2089_v1  ;;  %v2121_v25 = vsel %vm697_vm1, %v2088_v38, 0  ;;  %8578 = vmatmul.mubr.msk.bf16.gmra.mrb[56].mxu0 %vm904_vm2, %v10713_v26  ;;  %v10814_v20 = vmul.bf16 %v9378_v15, %v4304_v0 }
 0x1eb   : > { %2201 = vmatpush1.bf16.msra.mxu1 %v2121_v25  ;;  %2383 = vmatprep.mubr.bf16.mxu0 %v12660_v41  ;;  %v2887_v34 = vsel %vm2875_vm9, %v10592_v21, %v10576_v37  ;;  %v5050_v21 = vrot.slane %v5045_v36, %v9482_v14 }
 0x1ec   : > { %v10805_v6 = vpop.permute.xlu1 %2839  ;;  %2300 = vmatprep.subr.bf16.mxu1 %v2082_v29  ;;  %v8712_v56 = vcombine.high %v4321_v57, %v4327_v49  ;;  %v8711_v39 = vcombine.low %v4321_v57, %v4327_v49  ;;  %v8724_v23 = vcombine.high %v10814_v20, %v10814_v20  ;;  %v2916_v22 = vsel %vm697_vm1, %v2887_v34, 0  ;;  %v10896_v49 = vld [vmem:[%s12634_s2 + $0x24] sm:$0xff]  }
 0x1ed   : > { %5092 = vrot.lane.b32.xlu1 %v8758_v30, %s9409_s27  ;;  %v2881_v37 = vsel %vm2875_vm9, %v10703_v35, %v10805_v6  ;;  %v8759_v38 = vcombine.low %v5043_v5, %v5050_v21  ;;  %v2880_v34 = vsel %vm2875_vm9, %v10725_v62, %v10703_v35  ;;  %v10933_v35 = vld [vmem:[%s9527_s10 + $0x70] sm:$0xff] }
 0x1ee   : > { %4431 = vrot.lane.b32.xlu0 %v8712_v56, %s9410_s9  ;;  %v10817_v19 = vpop.permute.xlu0 %2843  ;;  %8574 = vmatmul.mubr.msk.bf16.vlgmr.msra.gmra.mrb[4].mxu1 %vm904_vm2, %v10663_v45 }
 0x1ef   : > { %2301 = vmatpush1.bf16.msra.mxu1 %v2081_v32  ;;  %2240 = vmatprep.mubr.bf16.mxu1 %v12660_v41  ;;  %v9381_v32 = vld [vmem:[%s9527_s10 + $0x10] sm:$0xff] }
 0x1f0   : > { %v10824_v47 = vpop.permute.xlu1 %2859 }
 0x1f2   : > { %4429 = vrot.lane.b32.xlu0 %v8711_v39, %s9410_s9  ;;  %v10827_v43 = vpop.permute.xlu0 %2869  ;;  %8583 = vmatmul.mubr.msk.bf16.vlgmr.msra.gmra.mrb[32].mxu0 %vm904_vm2, %v10663_v45 }
 0x1f3   : > { %2949 = vmatpush1.bf16.msra.mxu0 %v2876_v55  ;;  %2393 = vmatprep.mubr.bf16.mxu0 %v12660_v41 }
 0x1f4   : > { %v10844_v58 = vpop.permute.xlu1 %2863  ;;  %8625 = vmatprep.subr.msk.bf16.mxu0 %vm697_vm1, %v2888_v2 }
 0x1f5   : > { %v2892_v5 = vsel %vm2875_vm9, %v10746_v10, %v10844_v58 }
 0x1f6   : > { %4455 = vrot.lane.b32.xlu0 %v8724_v23, %s9410_s9  ;;  %v2049_v4 = vpop.permute.xlu0 %2048  ;;  %8575 = vmatmul.mubr.msk.bf16.gmra.mrb[24].mxu1 %vm904_vm2, %v10713_v26 }
 0x1f7   : > { %2332 = vmatprep.mubr.bf16.mxu1 %v12660_v41  ;;  %2951 = vmatpush1.bf16.msra.mxu0 %v2916_v22  ;;  %v2085_v11 = vsel %vm2074_vm7, %v10578_v24, %v2049_v4  ;;  %v5717_v24 = vrot.slane %v10877_v3, %v9471_v9  ;;  %v2891_v4 = vsel %vm2875_vm9, %v10824_v47, %v10746_v10 }
 0x1f8   : > { %v2065_v63 = vpop.permute.xlu1 %2064  ;;  %3050 = vmatprep.subr.bf16.mxu0 %v2881_v37  ;;  %v4980_v37 = vcombine.high %v10810_v8, %v10810_v8  ;;  %v8723_v8 = vcombine.low %v10814_v20, %v10814_v20 }
 0x1f9   : > { %v2092_v50 = vsel %vm2074_vm7, %v10718_v31, %v2065_v63  ;;  %v2093_v30 = vsel %vm2074_vm7, %v2065_v63, %v10733_v52  ;;  %v5725_v55 = vcombine.high %v5717_v24, %v5717_v24  ;;  %v10943_v10 = vrot.slane %v5717_v24, %v9471_v9 }
 0x1fa   : > { %3642 = vrot.lane.b32.xlu0 %v8663_v7, %s9408_s25  ;;  %v10865_v51 = vpop.permute.xlu0 %4289  ;;  %8579 = vmatprep.subr.msk.bf16.mxu1 %vm697_vm1, %v2093_v30  ;;  %v2133_v0 = vsel %vm697_vm1, %v2092_v50, 0  ;;  %v9383_v50 = vld [vmem:[%s9527_s10 + $0x68] sm:$0xff]  ;;  %v5052_v20 = vpack.i.b16 %v4980_v37, %v4980_v37  ;;  %v2884_v37 = vsel %vm2875_vm9, %v10817_v19, %v10797_v54 }
 0x1fb   : > { %v4299_v1 = vrot.slane %v10865_v51, 4  ;;  %8584 = vmatmul.mubr.msk.bf16.gmra.mrb[60].mxu0 %vm904_vm2, %v10713_v26  ;;  %2303 = vmatpush1.bf16.msra.mxu1 %v2133_v0  ;;  %v10946_v7 = vrot.slane %v5725_v55, %v9471_v9  ;;  %v2928_v0 = vsel %vm697_vm1, %v2891_v4, 0  ;;  %v8667_v4 = vcombine.high %v10680_v53, %v10689_v40 }
 0x1fc   : > { %v4288_v31 = vpop.permute.xlu1 %4287  ;;  %8985 = vmatprep.subr.bf16.mxu1 %v2085_v11  ;;  %2980 = vmatprep.mubr.bf16.mxu0 %v12660_v41 }
 0x1fd   : > { %v4298_v52 = vrot.slane %v4288_v31, 4 }
 0x1fe   : > { %5094 = vrot.lane.b32.xlu0 %v8759_v38, %s9409_s27  ;;  %v10881_v33 = vpop.permute.xlu0 %3630  ;;  %8580 = vmatmul.mubr.msk.bf16.vlgmr.msra.gmra.mrb[12].mxu1 %vm904_vm2, %v10663_v45  ;;  %v10957_v38 = vld [vmem:[%s12634_s2 + $0x2c] ss:$0 sps:$4 sm:$0xff]  }
 0x1ff   : > { %v4305_v57 = vsel %vm697_vm1, %v4297_v27, %v4298_v52  ;;  %v4307_v28 = vsel %vm697_vm1, %v4298_v52, %v4299_v1  ;;  %8986 = vmatpush3.bf16.msra.mxu1 %v2085_v11  ;;  %2342 = vmatprep.mubr.bf16.mxu1 %v12660_v41  ;;  %v9379_v27 = vld [vmem:[%s9527_s10 + $0x8] sm:$0xff] }
 0x200   : > { %v4306_v25 = vsel %vm4303_vm8, %v4305_v57, %v4288_v31  ;;  %v4308_v17 = vsel %vm4303_vm8, %v4307_v28, %v10865_v51  ;;  %v10902_v29 = vpop.permute.xlu1 %2847  ;;  %v5790_v28 = vpack.i.b16 %v10946_v7, %v10946_v7 }
 0x201   : > { %v10905_v56 = vmul.bf16 %v9379_v27, %v4306_v25  ;;  %v10908_v15 = vmul.bf16 %v9380_v42, %v4306_v25  ;;  %v4323_v39 = vmul.bf16 %v9381_v32, %v4308_v17  ;;  %v4329_v36 = vmul.bf16 %v9382_v61, %v4308_v17 }
 0x202   : > { %v10911_v23 = vpop.permute.xlu0 %3628  ;;  %v10949_v30 = vmul.bf16 %v9383_v50, %v4306_v25  ;;  %v2885_v11 = vsel %vm2875_vm9, %v10797_v54, %v10902_v29  ;;  %v10967_v24 = vmul.bf16 %v4308_v17, %v10933_v35  ;;  %v5057_v32 = vrot.slane %v5052_v20, %v9482_v14 }
 0x203   : > { %8626 = vmatmul.mubr.msk.bf16.vlgmr.msra.gmra.mrb[0].mxu0 %vm904_vm2, %v10896_v49  ;;  %v8713_v2 = vcombine.low %v10905_v56, %v10908_v15  ;;  %v8716_v22 = vcombine.high %v4323_v39, %v4329_v36  ;;  %v8715_v52 = vcombine.low %v4323_v39, %v4329_v36  ;;  %v5795_v55 = vrot.slane %v5790_v28, %v9482_v14 }
 0x204   : > { %3051 = vmatpush1.bf16.msra.mxu0 %v2880_v34  ;;  %v10927_v21 = vpop.permute.xlu1 %2867  ;;  %2990 = vmatprep.mubr.bf16.mxu0 %v12660_v41  ;;  %v8725_v25 = vcombine.low %v10949_v30, %v10949_v30  ;;  %v8728_v27 = vcombine.high %v10967_v24, %v10967_v24  ;;  %v5710_v20 = vcombine.high %v10877_v3, %v10877_v3 }
 0x205   : > { %8631 = vmatprep.subr.msk.bf16.mxu0 %vm697_vm1, %v2892_v5  ;;  %4433 = vrot.lane.b32.xlu1 %v8713_v2, %s9410_s9 }
 0x206   : > { %4439 = vrot.lane.b32.xlu0 %v8716_v22, %s9410_s9  ;;  %v10938_v63 = vpop.permute.xlu0 %3652  ;;  %8581 = vmatmul.mubr.msk.bf16.gmra.mrb[28].mxu1 %vm904_vm2, %v10713_v26  ;;  %v8760_v22 = vcombine.low %v5057_v32, %v5057_v32 }
 0x207   : > { %8989 = vmatprep.mubr.msk.bf16.mxu1 %vm904_vm2, %v10663_v45  ;;  %v5783_v45 = vpack.i.b16 %v10943_v10, %v10943_v10 }
 0x208   : > { %3053 = vmatpush1.bf16.msra.mxu0 %v2928_v0  ;;  %v10964_v31 = vpop.permute.xlu1 %2871  ;;  %v9384_v0 = vld [vmem:[%s9527_s10 + $0x18] sm:$0xff] }
 0x209   : > { %3152 = vmatprep.subr.bf16.mxu0 %v2885_v11  ;;  %4453 = vrot.lane.b32.xlu1 %v8723_v8, %s9410_s9  ;;  %v5788_v36 = vrot.slane %v5783_v45, %v9482_v14  ;;  %v2896_v51 = vsel %vm2875_vm9, %v10827_v43, %v10964_v31  ;;  %v9385_v11 = vld [vmem:[%s9527_s10 + $0x48] sm:$0xff]  ;;  %v9386_v45 = vld [vmem:[%s9527_s10 + $0x20] sm:$0xff] }
 0x20a   : > { %4437 = vrot.lane.b32.xlu0 %v8715_v52, %s9410_s9  ;;  %v10971_v57 = vpop.permute.xlu0 %3656 }
 0x20b   : > { %8627 = vmatmul.mubr.msk.bf16.gmra.mrb[64].mxu0 %vm904_vm2, %v10957_v38  ;;  %v8810_v50 = vcombine.low %v5788_v36, %v5795_v55  ;;  %v5757_v36 = vcombine.high %v10946_v7, %v10946_v7 }
 0x20c   : > { %v2073_v17 = vpop.permute.xlu1 %2072  ;;  %3082 = vmatprep.mubr.bf16.mxu0 %v12660_v41 }
 0x20d   : > { %v2096_v42 = vsel %vm2074_vm7, %v10580_v59, %v2073_v17  ;;  %4457 = vrot.lane.b32.xlu1 %v8725_v25, %s9410_s9  ;;  %v8675_v59 = vcombine.high %v10604_v44, %v10604_v44  ;;  %v2895_v44 = vsel %vm2875_vm9, %v10927_v21, %v10827_v43  ;;  %v9387_v25 = vld [vmem:[%s9527_s10 + $0x50] sm:$0xff] }
 0x20e   : > { %v2145_v39 = vsel %vm697_vm1, %v2096_v42, 0  ;;  %4463 = vrot.lane.b32.xlu0 %v8728_v27, %s9410_s9  ;;  %v10990_v61 = vpop.permute.xlu0 %4293  ;;  %9290 = vmatprep.subr.msk.bf16.mxu1 %vm697_vm1, %v2096_v42  ;;  %v2940_v27 = vsel %vm697_vm1, %v2895_v44, 0 }
 0x20f   : > { %v4301_v34 = vrot.slane %v10990_v61, 4  ;;  %8988 = vmatpush3.bf16.msra.mxu1 %v2145_v39  ;;  %v5755_v39 = vcombine.high %v10943_v10, %v10943_v10  ;;  %v8727_v10 = vcombine.low %v10967_v24, %v10967_v24 }
 0x210   : > { %v4292_v2 = vpop.permute.xlu1 %4291 }
 0x211   : > { %v4300_v5 = vrot.slane %v4292_v2, 4  ;;  %3666 = vrot.lane.b32.xlu1 %v8675_v59, %s9408_s25 }
 0x212   : > { %3650 = vrot.lane.b32.xlu0 %v8667_v4, %s9408_s25  ;;  %8990 = vmatmul.mubr.msk.bf16.vlgmr.msra.gmra.mrb[32].mxu1 %vm904_vm2, %v10713_v26  ;;  %v9388_v4 = vld [vmem:[%s9527_s10 + $0x78] sm:$0xff] }
 0x213   : > { %v4309_v53 = vsel %vm697_vm1, %v4299_v1, %v4300_v5  ;;  %v4311_v40 = vsel %vm697_vm1, %v4300_v5, %v4301_v34  ;;  %8632 = vmatmul.mubr.msk.bf16.vlgmr.msra.gmra.mrb[16].mxu0 %vm904_vm2, %v10896_v49  ;;  %3031 = vmatprep.mubr.bf16.mxu1 %v12660_v41 }
 0x214   : > { %v4310_v54 = vsel %vm4303_vm8, %v4309_v53, %v4292_v2  ;;  %v4312_v26 = vsel %vm4303_vm8, %v4311_v40, %v10990_v61  ;;  %3153 = vmatpush1.bf16.msra.mxu0 %v2884_v37  ;;  %v11025_v1 = vpop.permute.xlu1 %3632  ;;  %3092 = vmatprep.mubr.bf16.mxu0 %v12660_v41  ;;  %v5724_v2 = vrot.slane %v5710_v20, %v9471_v9 }
 0x215   : > { %v11029_v8 = vmul.bf16 %v9384_v0, %v4310_v54  ;;  %v11032_v52 = vmul.bf16 %v9385_v11, %v4310_v54  ;;  %8637 = vmatprep.subr.msk.bf16.mxu0 %vm697_vm1, %v2896_v51  ;;  %5096 = vrot.lane.b32.xlu1 %v8760_v22, %s9409_s27  ;;  %v3678_v43 = vsel %vm3676_vm10, %v10881_v33, %v11025_v1  ;;  %s9412_s27 = smov 56  }
 0x216   : > { %5887 = vrot.lane.b32.xlu0 %v8810_v50, %s9411_s18  ;;  %v4325_v28 = vmul.bf16 %v9386_v45, %v4312_v26  ;;  %v4331_v17 = vmul.bf16 %v9387_v25, %v4312_v26  ;;  %v11059_v5 = vmul.bf16 %v9388_v4, %v4310_v54  ;;  %v11066_v22 = vmul.bf16 %v4312_v26, %v10404_v18 }
 0x217   : > { %v8717_v42 = vcombine.low %v11029_v8, %v11032_v52  ;;  %v5804_v37 = vpack.i.b16 %v5757_v36, %v5757_v36  ;;  %v5726_v50 = vcombine.high %v5724_v2, %v5724_v2  ;;  %v5740_v18 = vrot.slane %v5724_v2, %v9471_v9 }
 0x218   : > { %3155 = vmatpush1.bf16.msra.mxu0 %v2940_v27  ;;  %v2834_v32 = vpop.permute.xlu1 %2833  ;;  %v8720_v3 = vcombine.high %v4325_v28, %v4331_v17  ;;  %v8729_v44 = vcombine.low %v11059_v5, %v11059_v5  ;;  %v8731_v24 = vcombine.low %v11066_v22, %v11066_v22  ;;  %v3677_v20 = vsel %vm3676_vm10, %v10911_v23, %v10881_v33 }
 0x219   : > { %3749 = vmatprep.subr.bf16.mxu0 %v3678_v43  ;;  %4441 = vrot.lane.b32.xlu1 %v8717_v42, %s9410_s9  ;;  %v2879_v55 = vsel %vm2875_vm9, %v2834_v32, %v10725_v62  ;;  %v2878_v59 = vsel %vm2875_vm9, %v10750_v46, %v2834_v32  ;;  %v8719_v62 = vcombine.low %v4325_v28, %v4331_v17  ;;  %v11110_v32 = vpop.f32.mrb[4].mxu0 }
 0x21a   : > { %4447 = vrot.lane.b32.xlu0 %v8720_v3, %s9410_s9  ;;  %2999 = vmatprep.subr.bf16.mxu1 %v2879_v55  ;;  %v5797_v46 = vpack.i.b16 %v5755_v39, %v5755_v39  ;;  %v5809_v51 = vrot.slane %v5804_v37, %v9482_v14  ;;  %v5754_v0 = vrot.slane %v5726_v50, %v9471_v9  ;;  %v11123_v36 = vpop.f32.mrb[5].mxu0 }
 0x21b   : > { %8633 = vmatmul.mubr.msk.bf16.gmra.mrb[68].mxu0 %vm904_vm2, %v10957_v38  ;;  %3000 = vmatpush1.bf16.msra.mxu1 %v2878_v59  ;;  %v5811_v28 = vpack.i.b16 %v5740_v18, %v5740_v18  ;;  %v993_v55 = vpop.f32.mrb[6].mxu0  ;;  %v8714_v50 = vcombine.high %v10905_v56, %v10908_v15 }
 0x21c   : > { %v3655_v7 = vpop.permute.xlu1 %3654  ;;  %3184 = vmatprep.mubr.bf16.mxu0 %v12660_v41  ;;  %v5802_v40 = vrot.slane %v5797_v46, %v9482_v14  ;;  %v5818_v25 = vpack.i.b16 %v5754_v0, %v5754_v0  ;;  %v994_v59 = vpop.f32.mrb[7].mxu0 }
 0x21d   : > { %4461 = vrot.lane.b32.xlu1 %v8727_v10, %s9410_s9  ;;  %v3689_v43 = vsel %vm3676_vm10, %v3655_v7, %v10971_v57  ;;  %v5816_v42 = vrot.slane %v5811_v28, %v9482_v14  ;;  %v11134_v2 = vpop.f32.mrb[8].mxu0  ;;  %v11185_v28 = vld [vmem:[%s12634_s2 + $0x38] ss:$0 sps:$4 sm:$0xff]  }
 0x21e   : > { %4445 = vrot.lane.b32.xlu0 %v8719_v62, %s9410_s9  ;;  %v8811_v23 = vcombine.low %v5802_v40, %v5809_v51  ;;  %12680 = vst [vmem:[#allocation6_spill] sm:$0xff] %v11134_v2  ;;  %v5758_v62 = vcombine.high %v5754_v0, %v5754_v0  ;;  %v11140_v46 = vpop.f32.mrb[9].mxu0  ;;  %v8809_v59 = vld.sshfl [vmem:[%s12633_s1 + $0x55] sm:$0x13 pattern:$0x75316420] }
 0x21f   : > { %12681 = vst [vmem:[#allocation7_spill] sm:$0xff] %v11140_v46  ;;  %v11144_v37 = vpop.f32.mrb[10].mxu0 }
 0x220   : > { %v2858_v53 = vpop.permute.xlu1 %2857  ;;  %12682 = vst [vmem:[#allocation3_spill] sm:$0xff] %v11144_v37 }
 0x221   : > { %v2889_v54 = vsel %vm2875_vm9, %v10768_v12, %v2858_v53  ;;  %4465 = vrot.lane.b32.xlu1 %v8729_v44, %s9410_s9  ;;  %v2890_v26 = vsel %vm2875_vm9, %v2858_v53, %v10824_v47  ;;  %v8679_v12 = vcombine.high %v10692_v13, %v10692_v13  ;;  %v3688_v47 = vsel %vm3676_vm10, %v10938_v63, %v3655_v7  ;;  %v3639_v13 = vpop.permute.xlu0 %3638  ;;  %v11151_v44 = vld [vmem:[%s12634_s2 + $0x30] sm:$0xff]   ;;  %v11154_v53 = vpop.f32.mrb[11].mxu0 }
 0x222   : > { %4469 = vrot.lane.b32.xlu0 %v8731_v24, %s9410_s9  ;;  %8628 = vmatprep.subr.msk.bf16.mxu1 %vm697_vm1, %v2890_v26  ;;  %v2922_v11 = vsel %vm697_vm1, %v2889_v54, 0  ;;  %v3717_v17 = vsel %vm697_vm1, %v3688_v47, 0  ;;  %v5756_v7 = vcombine.high %v5740_v18, %v5740_v18  ;;  %12683 = vst [vmem:[#allocation4_spill] sm:$0xff] %v11154_v53  ;;  %v11156_v24 = vpop.f32.mrb[12].mxu0  ;;  %v5832_v18 = vpack.i.b16 %v5758_v62, %v5758_v62 }
 0x223   : > { %8638 = vmatmul.mubr.msk.bf16.vlgmr.msra.gmra.mrb[32].mxu0 %vm904_vm2, %v10896_v49  ;;  %3002 = vmatpush1.bf16.msra.mxu1 %v2922_v11  ;;  %v11160_v54 = vpop.f32.mrb[13].mxu0  ;;  %v8732_v26 = vcombine.high %v11066_v22, %v11066_v22  ;;  %v8726_v22 = vcombine.high %v10949_v30, %v10949_v30 }
 0x224   : > { %3750 = vmatpush1.bf16.msra.mxu0 %v3677_v20  ;;  %v4296_v45 = vpop.permute.xlu1 %4295  ;;  %3194 = vmatprep.mubr.bf16.mxu0 %v12660_v41  ;;  %v5825_v40 = vpack.i.b16 %v5756_v7, %v5756_v7  ;;  %v1044_v56 = vpop.f32.mrb[14].mxu0  ;;  %v5837_v20 = vrot.slane %v5832_v18, %v9482_v14 }
 0x225   : > { %8680 = vmatprep.subr.msk.bf16.mxu0 %vm697_vm1, %v3689_v43  ;;  %v4302_v33 = vrot.slane %v4296_v45, 4  ;;  %3674 = vrot.lane.b32.xlu1 %v8679_v12, %s9408_s25  ;;  %v11136_v4 = vpop.permute.xlu0 %3636  ;;  %v1045_v51 = vpop.f32.mrb[15].mxu0  ;;  %v5766_v56 = vcombine.high %v8809_v59, %v8809_v59 }
 0x226   : > { %8629 = vmatmul.mubr.msk.bf16.vlgmr.msra.gmra.mrb[4].mxu1 %vm904_vm2, %v10896_v49  ;;  %v11169_v0 = vpop.f32.mrb[20].mxu0  ;;  %v5830_v11 = vrot.slane %v5825_v40, %v9482_v14 }
 0x227   : > { %v4313_v63 = vsel %vm697_vm1, %v4301_v34, %v4302_v33  ;;  %3041 = vmatprep.mubr.bf16.mxu1 %v12660_v41  ;;  %v5823_v34 = vrot.slane %v5818_v25, %v9482_v14  ;;  %v11174_v12 = vpop.f32.mrb[21].mxu0  ;;  %v3681_v25 = vsel %vm3676_vm10, %v11136_v4, %v3639_v13 }
 0x228   : > { %v4314_v27 = vsel %vm4303_vm8, %v4313_v63, %v4296_v45  ;;  %3752 = vmatpush1.bf16.msra.mxu0 %v3717_v17  ;;  %v1095_v47 = vpop.f32.mrb[22].mxu0  ;;  %v8813_v63 = vcombine.low %v5830_v11, %v5837_v20 }
 0x229   : > { %v11113_v3 = vmul.bf16 %v4314_v27, %v10655_v48  ;;  %v11116_v39 = vmul.bf16 %v4314_v27, %v10666_v60  ;;  %v11119_v61 = vmul.bf16 %v4314_v27, %v10669_v16  ;;  %5889 = vrot.lane.b32.xlu1 %v8811_v23, %s9411_s18  ;;  %v8812_v10 = vcombine.low %v5816_v42, %v5823_v34  ;;  %v11162_v15 = vpop.permute.xlu0 %3660  ;;  %v1096_v23 = vpop.f32.mrb[23].mxu0  ;;  %v11199_v42 = vld [vmem:[%s9527_s10] sm:$0xff]  ;;  %v11202_v34 = vld [vmem:[%s9527_s10 + $0x30] sm:$0xff] }
 0x22a   : > { %v11192_v17 = vpop.f32.mrb[24].mxu0 }
 0x22b   : > { %8639 = vmatmul.mubr.msk.bf16.gmra.mrb[72].mxu0 %vm904_vm2, %v10957_v38  ;;  %v8721_v48 = vcombine.low %v11113_v3, %v11116_v39  ;;  %v8733_v60 = vcombine.low %v11119_v61, %v11119_v61  ;;  %12684 = vst [vmem:[#allocation5_spill] sm:$0xff] %v11192_v17  ;;  %v11194_v30 = vpop.f32.mrb[25].mxu0 }
 0x22c   : > { %3781 = vmatprep.mubr.bf16.mxu0 %v12660_v41  ;;  %12685 = vst [vmem:[#allocation8_spill] sm:$0xff] %v11194_v30 }
 0x22d   : > { %4449 = vrot.lane.b32.xlu1 %v8721_v48, %s9410_s9  ;;  %4473 = vrot.lane.b32.xlu0 %v8733_v60, %s9410_s9 }
 0x22e   : > { %8630 = vmatmul.mubr.msk.bf16.gmra.mrb[36].mxu1 %vm904_vm2, %v10957_v38 }
 0x22f   : > { %3133 = vmatprep.mubr.bf16.mxu1 %v12660_v41 }
 0x231   : > { %4435 = vrot.lane.b32.xlu1 %v8714_v50, %s9410_s9  ;;  %5891 = vrot.lane.b32.xlu0 %v8812_v10, %s9411_s18  ;;  %v11212_v10 = vpop.f32.mrb[26].mxu0 }
 0x232   : > { %12686 = vst [vmem:[#allocation9_spill] sm:$0xff] %v11212_v10  ;;  %v11215_v7 = vpop.f32.mrb[27].mxu0 }
 0x233   : > { %8681 = vmatmul.mubr.msk.bf16.vlgmr.msra.gmra.mrb[0].mxu0 %vm904_vm2, %v11151_v44  ;;  %12687 = vst [vmem:[#allocation10_spill] sm:$0xff] %v11215_v7 }
 0x234   : > { %3791 = vmatprep.mubr.bf16.mxu0 %v12660_v41 }
 0x235   : > { %4471 = vrot.lane.b32.xlu1 %v8732_v26, %s9410_s9  ;;  %v11223_v26 = vld [vmem:[%s9527_s10 + $0x60] sm:$0xff] }
 0x237   : > { %v11176_v43 = vpop.permute.xlu1 %3640  ;;  %v11178_v45 = vpop.permute.xlu0 %3664 }
 0x238   : > { %v3682_v33 = vsel %vm3676_vm10, %v3639_v13, %v11176_v43 }
 0x239   : > { %4459 = vrot.lane.b32.xlu1 %v8726_v22, %s9410_s9  ;;  %3851 = vmatprep.subr.bf16.mxu0 %v3682_v33 }
 0x23a   : > { %3852 = vmatpush1.bf16.msra.mxu0 %v3681_v25 }
 0x23b   : > { %8682 = vmatmul.mubr.msk.bf16.gmra.mrb[76].mxu0 %vm904_vm2, %v11185_v28  ;;  %v2842_v27 = vpop.permute.xlu1 %2841  ;;  %v5087_v55 = vpop.permute.xlu0 %5086 }
 0x23c   : > { %v5098_v48 = vrot.slane %v5087_v55, 4  ;;  %v2883_v13 = vsel %vm2875_vm9, %v2842_v27, %v10817_v19  ;;  %v2882_v60 = vsel %vm2875_vm9, %v10805_v6, %v2842_v27  ;;  %3883 = vmatprep.mubr.bf16.mxu0 %v12660_v41  ;;  %v11218_v19 = vpop.f32.mrb[28].mxu0 }
 0x23d   : > { %5893 = vrot.lane.b32.xlu1 %v8813_v63, %s9411_s18  ;;  %3101 = vmatprep.subr.bf16.mxu1 %v2883_v13  ;;  %v11229_v20 = vpop.f32.mrb[29].mxu0  ;;  %v5773_v13 = vrot.slane %v8809_v59, %v9471_v9 }
 0x23e   : > { %v5105_v62 = vsel %vm5104_vm11, %v5098_v48, %v5087_v55  ;;  %3102 = vmatpush1.bf16.msra.mxu1 %v2882_v60  ;;  %v1146_v33 = vpop.f32.mrb[30].mxu0  ;;  %v5780_v60 = vrot.slane %v5766_v56, %v9471_v9 }
 0x23f   : > { %v5122_v6 = vmul.bf16 %v5105_v62, %v11199_v42  ;;  %v5128_v50 = vmul.bf16 %v5105_v62, %v11202_v34  ;;  %v3663_v40 = vpop.permute.xlu1 %3662  ;;  %v3647_v18 = vpop.permute.xlu0 %3646  ;;  %v11234_v25 = vmul.bf16 %v5105_v62, %v11223_v26  ;;  %v5839_v56 = vpack.i.b16 %v5773_v13, %v5773_v13 }
 0x240   : > { %v3692_v51 = vsel %vm3676_vm10, %v11162_v15, %v3663_v40  ;;  %v3693_v11 = vsel %vm3676_vm10, %v3663_v40, %v11178_v45  ;;  %v1147_v23 = vpop.f32.mrb[31].mxu0  ;;  %v5781_v17 = vcombine.high %v5773_v13, %v5773_v13  ;;  %v8718_v13 = vcombine.high %v11029_v8, %v11032_v52  ;;  %v11343_v52 = vld [vmem:[%s12633_s1 + $0x58] sm:$0xff] }
 0x241   : > { %8686 = vmatprep.subr.msk.bf16.mxu0 %vm697_vm1, %v3693_v11  ;;  %v3729_v47 = vsel %vm697_vm1, %v3692_v51, 0  ;;  %v8767_v22 = vcombine.high %v5122_v6, %v5128_v50  ;;  %v8766_v55 = vcombine.low %v5122_v6, %v5128_v50  ;;  %v11245_v11 = vpop.f32.mrb[36].mxu0  ;;  %v8778_v50 = vcombine.low %v11234_v25, %v11234_v25  ;;  %v11263_v23 = vld [vmem:[%s9527_s10 + $0x8] sm:$0xff] }
 0x242   : > { %3854 = vmatpush1.bf16.msra.mxu0 %v3729_v47  ;;  %v11251_v62 = vpop.f32.mrb[37].mxu0  ;;  %v5846_v47 = vpack.i.b16 %v5780_v60, %v5780_v60  ;;  %v5844_v7 = vrot.slane %v5839_v56, %v9482_v14  ;;  %v6518_v46 = vrot.slane %v11343_v52, %v9471_v9 }
 0x243   : > { %v2866_v63 = vpop.permute.xlu1 %2865  ;;  %v11236_v27 = vpop.permute.xlu0 %3644  ;;  %5232 = vrot.lane.b32.xlu0 %v8767_v22, %s9412_s27 }
 0x244   : > { %v2893_v40 = vsel %vm2875_vm9, %v10844_v58, %v2866_v63  ;;  %v2894_v51 = vsel %vm2875_vm9, %v2866_v63, %v10927_v21  ;;  %v1197_v58 = vpop.f32.mrb[38].mxu0  ;;  %v11266_v63 = vld [vmem:[%s9527_s10 + $0x38] sm:$0xff]  ;;  %v5851_v10 = vrot.slane %v5846_v47, %v9482_v14 }
 0x245   : > { %8634 = vmatprep.subr.msk.bf16.mxu1 %vm697_vm1, %v2894_v51  ;;  %8687 = vmatmul.mubr.msk.bf16.vlgmr.msra.gmra.mrb[16].mxu0 %vm904_vm2, %v11151_v44  ;;  %v2934_v59 = vsel %vm697_vm1, %v2893_v40, 0  ;;  %v1198_v33 = vpop.f32.mrb[39].mxu0  ;;  %v11269_v40 = vld [vmem:[%s9527_s10 + $0x68] sm:$0xff] }
 0x246   : > { %3104 = vmatpush1.bf16.msra.mxu1 %v2934_v59  ;;  %3893 = vmatprep.mubr.bf16.mxu0 %v12660_v41  ;;  %12688 = vst [vmem:[#allocation11_spill] sm:$0xff] %v11269_v40 }
 0x247   : > { %v11254_v6 = vpop.permute.xlu1 %5088  ;;  %v11256_v21 = vpop.permute.xlu0 %3668  ;;  %5230 = vrot.lane.b32.xlu0 %v8766_v55, %s9412_s27 }
 0x248   : > { %v12651_v22 = vrot.slane %v11254_v6, 4  ;;  %v1423_v51 = vpop.f32.mrb[40].mxu0 }
 0x249   : > { %8635 = vmatmul.mubr.msk.bf16.vlgmr.msra.gmra.mrb[12].mxu1 %vm904_vm2, %v10896_v49  ;;  %v11278_v60 = vadd.f32 %v1423_v51, %v11110_v32  ;;  %v1425_v59 = vpop.f32.mrb[41].mxu0 }
 0x24a   : > { %v5106_v55 = vsel %vm697_vm1, %v5098_v48, %v12651_v22  ;;  %3143 = vmatprep.mubr.bf16.mxu1 %v12660_v41  ;;  %v1427_v22 = vpop.f32.mrb[42].mxu0  ;;  %v11305_v56 = vadd.f32 %v1425_v59, %v11123_v36  ;;  %v11318_v59 = vpop.f32.mrb[0].mxu1 }
 0x24b   : > { %12689 = vst [vmem:[#allocation12_spill] sm:$0xff] %v11278_v60  ;;  %v5107_v58 = vsel %vm5104_vm11, %v5106_v55, %v11254_v6  ;;  %v11282_v33 = vpop.permute.xlu1 %3648  ;;  %v11284_v16 = vpop.permute.xlu0 %3672  ;;  %5254 = vrot.lane.b32.xlu0 %v8778_v50, %s9412_s27  ;;  %v3685_v50 = vsel %vm3676_vm10, %v11236_v27, %v3647_v18 }
 0x24c   : > { %v11290_v48 = vmul.bf16 %v5107_v58, %v11263_v23  ;;  %v11293_v32 = vmul.bf16 %v5107_v58, %v11266_v63  ;;  %v11296_v51 = vmul.bf16 %v5107_v58, %v11269_v40  ;;  %v3686_v55 = vsel %vm3676_vm10, %v3647_v18, %v11282_v33  ;;  %12690 = vst [vmem:[#allocation13_spill] sm:$0xff] %v11305_v56  ;;  %v1428_v47 = vpop.f32.mrb[43].mxu0 }
 0x24d   : > { %8688 = vmatmul.mubr.msk.bf16.gmra.mrb[80].mxu0 %vm904_vm2, %v11185_v28  ;;  %3953 = vmatprep.subr.bf16.mxu0 %v3686_v55  ;;  %v8814_v18 = vcombine.low %v5844_v7, %v5851_v10  ;;  %v11322_v55 = vpop.f32.mrb[1].mxu1 }
 0x24e   : > { %3954 = vmatpush1.bf16.msra.mxu0 %v3685_v50  ;;  %v8768_v58 = vcombine.low %v11290_v48, %v11293_v32  ;;  %v8780_v30 = vcombine.low %v11296_v51, %v11296_v51  ;;  %3985 = vmatprep.mubr.bf16.mxu0 %v12660_v41 }
 0x24f   : > { %v2850_v22 = vpop.permute.xlu1 %2849  ;;  %v11312_v53 = vpop.permute.xlu0 %3634 }
 0x250   : > { %5234 = vrot.lane.b32.xlu1 %v8768_v58, %s9412_s27  ;;  %5258 = vrot.lane.b32.xlu0 %v8780_v30, %s9412_s27  ;;  %v2886_v36 = vsel %vm2875_vm9, %v10902_v29, %v2850_v22  ;;  %v8976_v30 = vpop.f32.mrb[2].mxu1  ;;  %v5853_v29 = vpack.i.b16 %v5781_v17, %v5781_v17 }
 0x251   : > { %8636 = vmatmul.mubr.msk.bf16.gmra.mrb[40].mxu1 %vm904_vm2, %v10957_v38  ;;  %8993 = vmatprep.subr.bf16.mxu1 %v2886_v36  ;;  %v11328_v10 = vpop.f32.mrb[3].mxu1 }
 0x252   : > { %8994 = vmatpush3.bf16.msra.mxu1 %v2886_v36  ;;  %8997 = vmatprep.mubr.msk.bf16.mxu1 %vm904_vm2, %v10896_v49  ;;  %v8779_v49 = vcombine.high %v11234_v25, %v11234_v25  ;;  %v1474_v17 = vpop.f32.mrb[8].mxu1  ;;  %v12693_v25 = vrot.slane %v11254_v6, 4  ;;  %v5858_v6 = vrot.slane %v5853_v29, %v9482_v14 }
 0x253   : > { %v3671_v50 = vpop.permute.xlu1 %3670  ;;  %v11332_v47 = vpop.permute.xlu0 %5090 }
 0x254   : > { %v3696_v7 = vsel %vm3676_vm10, %v11256_v21, %v3671_v50  ;;  %4443 = vrot.lane.b32.xlu1 %v8718_v13, %s9410_s9  ;;  %5895 = vrot.lane.b32.xlu0 %v8814_v18, %s9411_s18  ;;  %v3697_v8 = vsel %vm3676_vm10, %v3671_v50, %v11284_v16  ;;  %v12652_v58 = vrot.slane %v11332_v47, 4  ;;  %v1476_v36 = vpop.f32.mrb[9].mxu1  ;;  %v11349_v18 = vld [vmem:[%s9527_s10 + $0x10] sm:$0xff]  ;;  %v11352_v13 = vld [vmem:[%s9527_s10 + $0x40] sm:$0xff] }
 0x255   : > { %8692 = vmatprep.subr.msk.bf16.mxu0 %vm697_vm1, %v3697_v8  ;;  %v3741_v22 = vsel %vm697_vm1, %v3696_v7, 0  ;;  %12691 = vst [vmem:[#allocation14_spill] sm:$0xff] %v11349_v18  ;;  %12692 = vst [vmem:[#allocation15_spill] sm:$0xff] %v11352_v13  ;;  %v1478_v30 = vpop.f32.mrb[10].mxu1 }
 0x256   : > { %3956 = vmatpush1.bf16.msra.mxu0 %v3741_v22  ;;  %v5108_v50 = vsel %vm697_vm1, %v12693_v25, %v12652_v58  ;;  %v1479_v8 = vpop.f32.mrb[11].mxu1  ;;  %v8730_v22 = vcombine.high %v11059_v5, %v11059_v5 }
 0x257   : > { %v2874_v37 = vpop.permute.xlu1 %2873  ;;  %v5109_v7 = vsel %vm5104_vm11, %v5108_v50, %v11332_v47  ;;  %v1576_v25 = vpop.f32.mrb[16].mxu1 }
 0x258   : > { %v2897_v2 = vsel %vm2875_vm9, %v10964_v31, %v2874_v37  ;;  %5256 = vrot.lane.b32.xlu1 %v8779_v49, %s9412_s27  ;;  %v1525_v30 = vpop.f32.mrb[44].mxu0  ;;  %v5124_v58 = vmul.bf16 %v5109_v7, %v11349_v18  ;;  %v5130_v56 = vmul.bf16 %v5109_v7, %v11352_v13  ;;  %v3680_v31 = vsel %vm3676_vm10, %v11312_v53, %v11136_v4  ;;  %v1578_v37 = vpop.f32.mrb[17].mxu1 }
 0x259   : > { %v2946_v8 = vsel %vm697_vm1, %v2897_v2, 0  ;;  %9291 = vmatprep.subr.msk.bf16.mxu1 %vm697_vm1, %v2897_v2  ;;  %8693 = vmatmul.mubr.msk.bf16.vlgmr.msra.gmra.mrb[32].mxu0 %vm904_vm2, %v11151_v44  ;;  %v1527_v5 = vpop.f32.mrb[45].mxu0  ;;  %v11380_v29 = vadd.f32 %v1525_v30, %v11169_v0  ;;  %v11386_v2 = vadd.f32 %v1474_v17, %v11156_v24  ;;  %v1580_v60 = vpop.f32.mrb[18].mxu1  ;;  %v6526_v4 = vcombine.high %v6518_v46, %v6518_v46 }
 0x25a   : > { %8996 = vmatpush3.bf16.msra.mxu1 %v2946_v8  ;;  %3995 = vmatprep.mubr.bf16.mxu0 %v12660_v41  ;;  %v11383_v49 = vadd.f32 %v1527_v5, %v11174_v12  ;;  %v1529_v50 = vpop.f32.mrb[46].mxu0  ;;  %v8771_v18 = vcombine.high %v5124_v58, %v5130_v56  ;;  %v3679_v0 = vsel %vm3676_vm10, %v11025_v1, %v11312_v53  ;;  %v1581_v24 = vpop.f32.mrb[19].mxu1 }
 0x25b   : > { %v3659_v13 = vpop.permute.xlu1 %3658  ;;  %3800 = vmatprep.subr.bf16.mxu1 %v3680_v31  ;;  %v1530_v40 = vpop.f32.mrb[47].mxu0  ;;  %v8815_v30 = vcombine.low %v5858_v6, %v5858_v6  ;;  %v11393_v12 = vadd.f32 %v1476_v36, %v11160_v54  ;;  %v11396_v8 = vadd.f32 %v1576_v25, %v11218_v19  ;;  %v11399_v60 = vmul.bf16 %v5109_v7, %v10933_v35  ;;  %v11431_v7 = vld [vmem:[%s9527_s10 + $0x48] sm:$0xff] }
 0x25c   : > { %4467 = vrot.lane.b32.xlu1 %v8730_v22, %s9410_s9  ;;  %5240 = vrot.lane.b32.xlu0 %v8771_v18, %s9412_s27  ;;  %v8770_v40 = vcombine.low %v5124_v58, %v5130_v56  ;;  %v11405_v17 = vadd.f32 %v1578_v37, %v11229_v20  ;;  %v8983_v1 = vpop.f32.mrb[20].mxu1  ;;  %v3690_v53 = vsel %vm3676_vm10, %v10971_v57, %v3659_v13 }
 0x25d   : > { %8998 = vmatmul.mubr.msk.bf16.vlgmr.msra.gmra.mrb[44].mxu1 %vm904_vm2, %v10957_v38  ;;  %v3691_v35 = vsel %vm3676_vm10, %v3659_v13, %v11162_v15  ;;  %v1668_v54 = vpop.f32.mrb[21].mxu1  ;;  %v6534_v38 = vrot.slane %v6518_v46, %v9471_v9  ;;  %v6548_v20 = vrot.slane %v6526_v4, %v9471_v9  ;;  %v11422_v15 = vadd.f32 %v8983_v1, %v11318_v59  ;;  %v11428_v13 = vld [vmem:[%s9527_s10 + $0x18] sm:$0xff] }
 0x25e   : > { %3801 = vmatpush1.bf16.msra.mxu1 %v3679_v0  ;;  %3832 = vmatprep.mubr.bf16.mxu1 %v12660_v41  ;;  %v8984_v56 = vpop.f32.mrb[22].mxu1  ;;  %v11425_v36 = vadd.f32 %v1668_v54, %v11322_v55  ;;  %v11434_v46 = vld [vmem:[%s9527_s10 + $0x78] sm:$0xff]  ;;  %v3723_v22 = vsel %vm697_vm1, %v3690_v53, 0  ;;  %v8782_v59 = vcombine.low %v11399_v60, %v11399_v60  ;;  %v12694_v55 = vrot.slane %v11332_v47, 4 }
 0x25f   : > { %v11412_v19 = vpop.permute.xlu1 %5092  ;;  %8683 = vmatprep.subr.msk.bf16.mxu1 %vm697_vm1, %v3691_v35  ;;  %v1671_v18 = vpop.f32.mrb[23].mxu1  ;;  %v6584_v31 = vpack.i.b16 %v6534_v38, %v6534_v38  ;;  %v6591_v5 = vpack.i.b16 %v6548_v20, %v6548_v20  ;;  %v6511_v35 = vcombine.high %v11343_v52, %v11343_v52  ;;  %v6556_v52 = vcombine.high %v6534_v38, %v6534_v38 }
 0x260   : > { %v5101_v57 = vrot.slane %v11412_v19, 4  ;;  %5897 = vrot.lane.b32.xlu1 %v8815_v30, %s9411_s18  ;;  %v11419_v58 = vpop.permute.xlu0 %4431  ;;  %5238 = vrot.lane.b32.xlu0 %v8770_v40, %s9412_s27  ;;  %v11462_v0 = vadd.f32 %v1671_v18, %v11328_v10 }
 0x261   : > { %8694 = vmatmul.mubr.msk.bf16.gmra.mrb[84].mxu0 %vm904_vm2, %v11185_v28  ;;  %v6589_v10 = vrot.slane %v6584_v31, %v9482_v14  ;;  %v6596_v1 = vrot.slane %v6591_v5, %v9482_v14  ;;  %v6558_v5 = vcombine.high %v6548_v20, %v6548_v20  ;;  %v11509_v20 = vld [vmem:[%s9527_s10 + $0x20] sm:$0xff] }
 0x262   : > { %v5110_v6 = vsel %vm697_vm1, %v12694_v55, %v5101_v57  ;;  %3803 = vmatpush1.bf16.msra.mxu1 %v3723_v22  ;;  %4582 = vmatprep.mubr.bf16.mxu0 %v12660_v41 }
 0x263   : > { %v5111_v25 = vsel %vm5104_vm11, %v5110_v6, %v11412_v19  ;;  %v12695_v6 = vcombine.high %v11113_v3, %v11116_v39  ;;  %v8865_v31 = vcombine.low %v6589_v10, %v6596_v1  ;;  %v6525_v3 = vrot.slane %v6511_v35, %v9471_v9 }
 0x264   : > { %v11451_v37 = vmul.bf16 %v5111_v25, %v11428_v13  ;;  %v11454_v50 = vmul.bf16 %v5111_v25, %v11431_v7  ;;  %v11457_v4 = vmul.bf16 %v5111_v25, %v11434_v46  ;;  %v11459_v47 = vpop.permute.xlu0 %4429  ;;  %5262 = vrot.lane.b32.xlu0 %v8782_v59, %s9412_s27  ;;  %v8769_v59 = vcombine.high %v11290_v48, %v11293_v32 }
 0x265   : > { %8684 = vmatmul.mubr.msk.bf16.vlgmr.msra.gmra.mrb[4].mxu1 %vm904_vm2, %v11151_v44  ;;  %v8783_v39 = vcombine.high %v11399_v60, %v11399_v60  ;;  %v6598_v32 = vpack.i.b16 %v6556_v52, %v6556_v52  ;;  %v6605_v38 = vpack.i.b16 %v6558_v5, %v6558_v5  ;;  %v8734_v60 = vcombine.high %v11119_v61, %v11119_v61 }
 0x266   : > { %v8772_v30 = vcombine.low %v11451_v37, %v11454_v50  ;;  %v8784_v24 = vcombine.low %v11457_v4, %v11457_v4  ;;  %3842 = vmatprep.mubr.bf16.mxu1 %v12660_v41  ;;  %v11527_v35 = vrot.slane %v6525_v3, %v9471_v9 }
 0x267   : > { %v6603_v1 = vrot.slane %v6598_v32, %v9482_v14 }
 0x268   : > { %5242 = vrot.lane.b32.xlu1 %v8772_v30, %s9412_s27  ;;  %v11473_v40 = vpop.permute.xlu0 %4455  ;;  %v1627_v53 = vpop.f32.mrb[48].mxu0  ;;  %5266 = vrot.lane.b32.xlu0 %v8784_v24, %s9412_s27  ;;  %v11512_v30 = vld [vmem:[%s9527_s10 + $0x50] sm:$0xff]  ;;  %v6612_v52 = vpack.i.b16 %v11527_v35, %v11527_v35 }
 0x269   : > { %v11481_v54 = vadd.f32 %v1627_v53, %v11245_v11  ;;  %v1629_v56 = vpop.f32.mrb[49].mxu0  ;;  %v6610_v53 = vrot.slane %v6605_v38, %v9482_v14 }
 0x26a   : > { %v11484_v18 = vadd.f32 %v1629_v56, %v11251_v62  ;;  %v1631_v22 = vpop.f32.mrb[50].mxu0 }
 0x26b   : > { %v1632_v55 = vpop.f32.mrb[51].mxu0 }
 0x26c   : > { %4451 = vrot.lane.b32.xlu1 %v12695_v6, %s9410_s9  ;;  %v3643_v25 = vpop.permute.xlu0 %3642  ;;  %5236 = vrot.lane.b32.xlu0 %v8769_v59, %s9412_s27  ;;  %v11539_v55 = vld [vmem:[%s9527_s10 + $0x80] sm:$0xff] }
 0x26d   : > { %8685 = vmatmul.mubr.msk.bf16.gmra.mrb[48].mxu1 %vm904_vm2, %v11185_v28  ;;  %v3684_v11 = vsel %vm3676_vm10, %v3643_v25, %v11236_v27  ;;  %v3683_v62 = vsel %vm3676_vm10, %v11176_v43, %v3643_v25  ;;  %v6527_v43 = vcombine.high %v6525_v3, %v6525_v3 }
 0x26e   : > { %3902 = vmatprep.subr.bf16.mxu1 %v3684_v11  ;;  %3934 = vmatprep.mubr.bf16.mxu1 %v12660_v41 }
 0x26f   : > { %3903 = vmatpush1.bf16.msra.mxu1 %v3683_v62  ;;  %v11532_v19 = vrot.slane %v6527_v43, %v9471_v9 }
 0x270   : > { %5264 = vrot.lane.b32.xlu1 %v8783_v39, %s9412_s27  ;;  %v11504_v48 = vpop.permute.xlu0 %5094  ;;  %6688 = vrot.lane.b32.xlu0 %v8865_v31, %s9413_s30  ;;  %v8866_v31 = vcombine.low %v6603_v1, %v6610_v53  ;;  %v11577_v53 = vld [vmem:[%s12634_s2 + $0x3c] sm:$0xff]  }
 0x271   : > { %v5102_v27 = vrot.slane %v11504_v48, 4  ;;  %v6619_v11 = vpack.i.b16 %v11532_v19, %v11532_v19 }
 0x273   : > { %v5112_v24 = vsel %vm697_vm1, %v5101_v57, %v5102_v27  ;;  %v8781_v57 = vcombine.high %v11296_v51, %v11296_v51  ;;  %v4478_v51 = vsel %vm4477_vm12, %v11459_v47, %v11419_v58  ;;  %v6624_v47 = vrot.slane %v6619_v11, %v9482_v14 }
 0x274   : > { %v5113_v10 = vsel %vm5104_vm11, %v5112_v24, %v11504_v48  ;;  %4475 = vrot.lane.b32.xlu1 %v8734_v60, %s9410_s9 }
 0x275   : > { %v5126_v61 = vmul.bf16 %v5113_v10, %v11509_v20  ;;  %v5132_v56 = vmul.bf16 %v5113_v10, %v11512_v30  ;;  %v11554_v62 = vmul.bf16 %v5113_v10, %v11539_v55 }
 0x277   : > { %v11536_v22 = vpop.permute.xlu1 %4433  ;;  %v8775_v59 = vcombine.high %v5126_v61, %v5132_v56  ;;  %v8774_v5 = vcombine.low %v5126_v61, %v5132_v56  ;;  %v8787_v43 = vcombine.high %v11554_v62, %v11554_v62 }
 0x278   : > { %v4440_v6 = vpop.permute.xlu0 %4439  ;;  %5260 = vrot.lane.b32.xlu1 %v8781_v57, %s9412_s27  ;;  %v4479_v25 = vsel %vm4477_vm12, %v11419_v58, %v11536_v22  ;;  %v6617_v58 = vrot.slane %v6612_v52, %v9482_v14  ;;  %v11594_v52 = vld [vmem:[%s9527_s10 + $0x28] sm:$0xff] }
 0x279   : > { %5248 = vrot.lane.b32.xlu0 %v8775_v59, %s9412_s27  ;;  %4550 = vmatprep.subr.bf16.mxu0 %v4479_v25 }
 0x27a   : > { %4551 = vmatpush1.bf16.msra.mxu0 %v4478_v51  ;;  %v8867_v1 = vcombine.low %v6617_v58, %v6624_v47  ;;  %v11597_v51 = vld [vmem:[%s9527_s10 + $0x58] sm:$0xff] }
 0x27b   : > { %v4454_v3 = vpop.permute.xlu1 %4453 }
 0x27c   : > { %v11556_v39 = vpop.permute.xlu0 %4437  ;;  %6690 = vrot.lane.b32.xlu1 %v8866_v31, %s9413_s30  ;;  %v4489_v32 = vsel %vm4477_vm12, %v4454_v3, %v11473_v40 }
 0x27d   : > { %5246 = vrot.lane.b32.xlu0 %v8774_v5, %s9412_s27  ;;  %v4518_v10 = vsel %vm697_vm1, %v4489_v32, 0 }
 0x27f   : > { %v11564_v38 = vpop.permute.xlu1 %4457 }
 0x280   : > { %v4464_v60 = vpop.permute.xlu0 %4463  ;;  %v4490_v24 = vsel %vm4477_vm12, %v11473_v40, %v11564_v38 }
 0x281   : > { %5272 = vrot.lane.b32.xlu0 %v8787_v43, %s9412_s27  ;;  %8735 = vmatprep.subr.msk.bf16.mxu0 %vm697_vm1, %v4490_v24  ;;  %v11629_v43 = vld [vmem:[%s9527_s10 + $0x88] sm:$0xff] }
 0x282   : > { %4553 = vmatpush1.bf16.msra.mxu0 %v4518_v10 }
 0x283   : > { %v3667_v61 = vpop.permute.xlu1 %3666 }
 0x284   : > { %v3694_v56 = vsel %vm3676_vm10, %v11178_v45, %v3667_v61  ;;  %v3651_v40 = vpop.permute.xlu0 %3650  ;;  %v3695_v57 = vsel %vm3676_vm10, %v3667_v61, %v11256_v21  ;;  %v8785_v45 = vcombine.high %v11457_v4, %v11457_v4  ;;  %v11608_v4 = vld [vmem:[%s12634_s2 + $0x44] ss:$0 sps:$4 sm:$0xff]  }
 0x285   : > { %6692 = vrot.lane.b32.xlu0 %v8867_v1, %s9413_s30  ;;  %8689 = vmatprep.subr.msk.bf16.mxu1 %vm697_vm1, %v3695_v57  ;;  %v3735_v59 = vsel %vm697_vm1, %v3694_v56, 0  ;;  %v3687_v25 = vsel %vm3676_vm10, %v11282_v33, %v3651_v40  ;;  %v8786_v56 = vcombine.low %v11554_v62, %v11554_v62 }
 0x286   : > { %8736 = vmatmul.mubr.msk.bf16.vlgmr.msra.gmra.mrb[0].mxu0 %vm904_vm2, %v11577_v53  ;;  %3905 = vmatpush1.bf16.msra.mxu1 %v3735_v59 }
 0x287   : > { %v5097_v31 = vpop.permute.xlu1 %5096  ;;  %9001 = vmatprep.subr.bf16.mxu1 %v3687_v25  ;;  %4592 = vmatprep.mubr.bf16.mxu0 %v12660_v41 }
 0x288   : > { %v5103_v21 = vrot.slane %v5097_v31, 4  ;;  %v5888_v5 = vpop.permute.xlu0 %5887 }
 0x289   : > { %5268 = vrot.lane.b32.xlu0 %v8785_v45, %s9412_s27  ;;  %8690 = vmatmul.mubr.msk.bf16.vlgmr.msra.gmra.mrb[12].mxu1 %vm904_vm2, %v11151_v44  ;;  %v5899_v1 = vrot.slane %v5888_v5, 4 }
 0x28a   : > { %v5114_v33 = vsel %vm697_vm1, %v5102_v27, %v5103_v21  ;;  %9002 = vmatpush3.bf16.msra.mxu1 %v3687_v25  ;;  %3944 = vmatprep.mubr.bf16.mxu1 %v12660_v41  ;;  %v4482_v27 = vsel %vm4477_vm12, %v11556_v39, %v4440_v6 }
 0x28b   : > { %v5115_v11 = vsel %vm5104_vm11, %v5114_v33, %v5097_v31  ;;  %v11612_v3 = vpop.permute.xlu1 %4441  ;;  %v5906_v59 = vsel %vm5905_vm13, %v5899_v1, %v5888_v5  ;;  %v8773_v33 = vcombine.high %v11451_v37, %v11454_v50 }
 0x28c   : > { %v11615_v58 = vmul.bf16 %v5115_v11, %v11594_v52  ;;  %v11618_v47 = vmul.bf16 %v5115_v11, %v11597_v51  ;;  %v4483_v48 = vsel %vm4477_vm12, %v4440_v6, %v11612_v3  ;;  %v4448_v24 = vpop.permute.xlu0 %4447  ;;  %v11638_v61 = vmul.bf16 %v5115_v11, %v11629_v43 }
 0x28d   : > { %4652 = vmatprep.subr.bf16.mxu0 %v4483_v48  ;;  %v5923_v45 = vmul.bf16 %v5906_v59, %v11199_v42  ;;  %v5929_v21 = vmul.bf16 %v5906_v59, %v11202_v34  ;;  %v6557_v48 = vcombine.high %v11527_v35, %v11527_v35 }
 0x28e   : > { %8737 = vmatmul.mubr.msk.bf16.gmra.mrb[88].mxu0 %vm904_vm2, %v11608_v4  ;;  %v8776_v32 = vcombine.low %v11615_v58, %v11618_v47  ;;  %v8788_v62 = vcombine.low %v11638_v61, %v11638_v61 }
 0x28f   : > { %4653 = vmatpush1.bf16.msra.mxu0 %v4482_v27  ;;  %v11631_v10 = vpop.permute.xlu1 %4461  ;;  %4684 = vmatprep.mubr.bf16.mxu0 %v12660_v41  ;;  %v8822_v11 = vcombine.high %v5923_v45, %v5929_v21  ;;  %v6559_v27 = vcombine.high %v11532_v19, %v11532_v19 }
 0x290   : > { %5250 = vrot.lane.b32.xlu1 %v8776_v32, %s9412_s27  ;;  %v4493_v6 = vsel %vm4477_vm12, %v11631_v10, %v4464_v60  ;;  %v11652_v25 = vpop.permute.xlu0 %4445 }
 0x291   : > { %8691 = vmatmul.mubr.msk.bf16.gmra.mrb[52].mxu1 %vm904_vm2, %v11185_v28  ;;  %v4530_v31 = vsel %vm697_vm1, %v4493_v6, 0  ;;  %v4486_v19 = vsel %vm4477_vm12, %v11652_v25, %v4448_v24 }
 0x292   : > { %9005 = vmatprep.mubr.msk.bf16.mxu1 %vm904_vm2, %v11151_v44 }
 0x293   : > { %v11646_v40 = vpop.permute.xlu1 %4465 }
 0x294   : > { %5270 = vrot.lane.b32.xlu1 %v8786_v56, %s9412_s27  ;;  %v4494_v57 = vsel %vm4477_vm12, %v4464_v60, %v11646_v40  ;;  %v11670_v42 = vpop.permute.xlu0 %4469 }
 0x295   : > { %8741 = vmatprep.subr.msk.bf16.mxu0 %vm697_vm1, %v4494_v57  ;;  %v6633_v57 = vpack.i.b16 %v6559_v27, %v6559_v27 }
 0x296   : > { %4655 = vmatpush1.bf16.msra.mxu0 %v4530_v31  ;;  %v8821_v31 = vcombine.low %v5923_v45, %v5929_v21 }
 0x297   : > { %v3675_v44 = vpop.permute.xlu1 %3674  ;;  %v6638_v21 = vrot.slane %v6633_v57, %v9482_v14 }
 0x298   : > { %v3698_v60 = vsel %vm3676_vm10, %v11284_v16, %v3675_v44  ;;  %5274 = vrot.lane.b32.xlu1 %v8788_v62, %s9412_s27 }
 0x299   : > { %v3747_v5 = vsel %vm697_vm1, %v3698_v60, 0  ;;  %9292 = vmatprep.subr.msk.bf16.mxu1 %vm697_vm1, %v3698_v60  ;;  %8742 = vmatmul.mubr.msk.bf16.vlgmr.msra.gmra.mrb[16].mxu0 %vm904_vm2, %v11577_v53 }
 0x29a   : > { %9004 = vmatpush3.bf16.msra.mxu1 %v3747_v5  ;;  %4694 = vmatprep.mubr.bf16.mxu0 %v12660_v41 }
 0x29b   : > { %v5890_v34 = vpop.permute.xlu1 %5889 }
 0x29c   : > { %v5900_v16 = vrot.slane %v5890_v34, 4  ;;  %5244 = vrot.lane.b32.xlu1 %v8773_v33, %s9412_s27 }
 0x29d   : > { %9006 = vmatmul.mubr.msk.bf16.vlgmr.msra.gmra.mrb[56].mxu1 %vm904_vm2, %v11185_v28 }
 0x29e   : > { %v5907_v37 = vsel %vm697_vm1, %v5899_v1, %v5900_v16  ;;  %4633 = vmatprep.mubr.bf16.mxu1 %v12660_v41  ;;  %v6626_v1 = vpack.i.b16 %v6557_v48, %v6557_v48 }
 0x29f   : > { %v5908_v50 = vsel %vm5905_vm13, %v5907_v37, %v5890_v34  ;;  %v11682_v32 = vpop.permute.xlu1 %4449  ;;  %v11684_v6 = vpop.permute.xlu0 %4473  ;;  %v12696_v34 = vld [vmem:[#allocation11_spill] sm:$0xff] }
 0x2a0   : > { %v11687_v56 = vmul.bf16 %v5908_v50, %v11263_v23  ;;  %v11690_v28 = vmul.bf16 %v5908_v50, %v11266_v63  ;;  %6033 = vrot.lane.b32.xlu1 %v8822_v11, %s9414_s12  ;;  %v4487_v35 = vsel %vm4477_vm12, %v4448_v24, %v11682_v32  ;;  %v8864_v23 = vld.sshfl [vmem:[%s12633_s1 + $0x60] sm:$0x13 pattern:$0x75316420]  ;;  %v5935_v63 = vmul.bf16 %v5906_v59, %v11223_v26 }
 0x2a1   : > { %8743 = vmatmul.mubr.msk.bf16.gmra.mrb[92].mxu0 %vm904_vm2, %v11608_v4  ;;  %4754 = vmatprep.subr.bf16.mxu0 %v4487_v35  ;;  %v6567_v59 = vcombine.high %v8864_v23, %v8864_v23  ;;  %v6631_v45 = vrot.slane %v6626_v1, %v9482_v14  ;;  %v11715_v11 = vmul.bf16 %v5908_v50, %v12696_v34 }
 0x2a2   : > { %4755 = vmatpush1.bf16.msra.mxu0 %v4486_v19  ;;  %v8823_v62 = vcombine.low %v11687_v56, %v11690_v28  ;;  %4786 = vmatprep.mubr.bf16.mxu0 %v12660_v41  ;;  %v8833_v33 = vcombine.low %v5935_v63, %v5935_v63 }
 0x2a3   : > { %v4436_v24 = vpop.permute.xlu1 %4435  ;;  %v5892_v44 = vpop.permute.xlu0 %5891  ;;  %v6581_v35 = vrot.slane %v6567_v59, %v9471_v9  ;;  %v8868_v1 = vcombine.low %v6631_v45, %v6638_v21  ;;  %v8789_v21 = vcombine.high %v11638_v61, %v11638_v61 }
 0x2a4   : > { %v4480_v60 = vsel %vm4477_vm12, %v11536_v22, %v4436_v24  ;;  %v5901_v5 = vrot.slane %v5892_v44, 4  ;;  %6035 = vrot.lane.b32.xlu0 %v8823_v62, %s9414_s12  ;;  %6031 = vrot.lane.b32.xlu1 %v8821_v31, %s9414_s12  ;;  %v4481_v26 = vsel %vm4477_vm12, %v4436_v24, %v11556_v39  ;;  %v8834_v22 = vcombine.high %v5935_v63, %v5935_v63 }
 0x2a5   : > { %4601 = vmatprep.subr.bf16.mxu1 %v4481_v26  ;;  %v6574_v39 = vrot.slane %v8864_v23, %v9471_v9  ;;  %v6647_v62 = vpack.i.b16 %v6581_v35, %v6581_v35  ;;  %v12698_v26 = vld [vmem:[#allocation15_spill] sm:$0xff] }
 0x2a6   : > { %4602 = vmatpush1.bf16.msra.mxu1 %v4480_v60  ;;  %v5909_v27 = vsel %vm697_vm1, %v5900_v16, %v5901_v5  ;;  %v8835_v16 = vcombine.low %v11715_v11, %v11715_v11  ;;  %v12697_v60 = vld [vmem:[#allocation14_spill] sm:$0xff] }
 0x2a7   : > { %v4472_v48 = vpop.permute.xlu1 %4471  ;;  %v5910_v57 = vsel %vm5905_vm13, %v5909_v27, %v5892_v44  ;;  %v6640_v31 = vpack.i.b16 %v6574_v39, %v6574_v39 }
 0x2a8   : > { %v4497_v37 = vsel %vm4477_vm12, %v11670_v42, %v4472_v48  ;;  %6055 = vrot.lane.b32.xlu0 %v8833_v33, %s9414_s12  ;;  %v4498_v19 = vsel %vm4477_vm12, %v4472_v48, %v11684_v6  ;;  %6057 = vrot.lane.b32.xlu1 %v8834_v22, %s9414_s12  ;;  %v5925_v44 = vmul.bf16 %v5910_v57, %v12697_v60  ;;  %v12699_v33 = vld [vmem:[#allocation12_spill] sm:$0xff] }
 0x2a9   : > { %v4542_v50 = vsel %vm697_vm1, %v4497_v37, 0  ;;  %8747 = vmatprep.subr.msk.bf16.mxu0 %vm697_vm1, %v4498_v19  ;;  %v5931_v59 = vmul.bf16 %v5910_v57, %v12698_v26  ;;  %v6645_v27 = vrot.slane %v6640_v31, %v9482_v14  ;;  %v8824_v60 = vcombine.high %v11687_v56, %v11690_v28 }
 0x2aa   : > { %4757 = vmatpush1.bf16.msra.mxu0 %v4542_v50 }
 0x2ab   : > { %v4460_v63 = vpop.permute.xlu1 %4459  ;;  %v8826_v19 = vcombine.high %v5925_v44, %v5931_v59 }
 0x2ac   : > { %v4491_v9 = vsel %vm4477_vm12, %v11564_v38, %v4460_v63  ;;  %v4492_v23 = vsel %vm4477_vm12, %v4460_v63, %v11631_v10  ;;  %6059 = vrot.lane.b32.xlu0 %v8835_v16, %s9414_s12  ;;  %6694 = vrot.lane.b32.xlu1 %v8868_v1, %s9413_s30  ;;  %v8777_v38 = vcombine.high %v11615_v58, %v11618_v47  ;;  %v12700_v47 = vld [vmem:[#allocation13_spill] sm:$0xff] }
 0x2ad   : > { %v4524_v24 = vsel %vm697_vm1, %v4491_v9, 0  ;;  %8738 = vmatprep.subr.msk.bf16.mxu1 %vm697_vm1, %v4492_v23  ;;  %8748 = vmatmul.mubr.msk.bf16.vlgmr.msra.gmra.mrb[32].mxu0 %vm904_vm2, %v11577_v53  ;;  %v2191_v10 = vpop.f32.mrb[52].mxu0  ;;  %v6652_v58 = vrot.slane %v6647_v62, %v9482_v14 }
 0x2ae   : > { %4604 = vmatpush1.bf16.msra.mxu1 %v4524_v24  ;;  %4796 = vmatprep.mubr.bf16.mxu0 %v12660_v41  ;;  %v11751_v34 = vadd.f32 %v2191_v10, %v12699_v33  ;;  %v2193_v22 = vpop.f32.mrb[53].mxu0  ;;  %v8825_v24 = vcombine.low %v5925_v44, %v5931_v59 }
 0x2af   : > { %v11745_v45 = vpop.permute.xlu1 %5893  ;;  %v11758_v37 = vadd.f32 %v2193_v22, %v12700_v47  ;;  %v2195_v35 = vpop.f32.mrb[54].mxu0  ;;  %v8869_v9 = vcombine.low %v6645_v27, %v6652_v58  ;;  %v8836_v58 = vcombine.high %v11715_v11, %v11715_v11 }
 0x2b0   : > { %v5902_v48 = vrot.slane %v11745_v45, 4  ;;  %5252 = vrot.lane.b32.xlu0 %v8777_v38, %s9412_s27  ;;  %5276 = vrot.lane.b32.xlu1 %v8789_v21, %s9412_s27  ;;  %v2196_v61 = vpop.f32.mrb[55].mxu0 }
 0x2b1   : > { %8739 = vmatmul.mubr.msk.bf16.vlgmr.msra.gmra.mrb[4].mxu1 %vm904_vm2, %v11577_v53 }
 0x2b2   : > { %v5911_v50 = vsel %vm697_vm1, %v5901_v5, %v5902_v48  ;;  %4643 = vmatprep.mubr.bf16.mxu1 %v12660_v41  ;;  %v9389_v5 = vld [vmem:[%s9527_s10 + $0x70] sm:$0xff] }
 0x2b3   : > { %v5912_v1 = vsel %vm5905_vm13, %v5911_v50, %v11745_v45  ;;  %v5937_v62 = vmul.bf16 %v9389_v5, %v5910_v57 }
 0x2b4   : > { %v11770_v16 = vmul.bf16 %v5912_v1, %v11428_v13  ;;  %v11773_v63 = vmul.bf16 %v5912_v1, %v11431_v7  ;;  %6041 = vrot.lane.b32.xlu0 %v8826_v19, %s9414_s12  ;;  %v6582_v13 = vcombine.high %v6574_v39, %v6574_v39  ;;  %v11792_v21 = vmul.bf16 %v5912_v1, %v11434_v46 }
 0x2b5   : > { %v5233_v23 = vpop.permute.xlu0 %5232  ;;  %8749 = vmatmul.mubr.msk.bf16.gmra.mrb[96].mxu0 %vm904_vm2, %v11608_v4  ;;  %v8837_v10 = vcombine.low %v5937_v62, %v5937_v62  ;;  %v8838_v39 = vcombine.high %v5937_v62, %v5937_v62 }
 0x2b6   : > { %v8827_v31 = vcombine.low %v11770_v16, %v11773_v63  ;;  %5383 = vmatprep.mubr.bf16.mxu0 %v12660_v41  ;;  %v6654_v26 = vpack.i.b16 %v6582_v13, %v6582_v13  ;;  %v8839_v46 = vcombine.low %v11792_v21, %v11792_v21 }
 0x2b8   : > { %6043 = vrot.lane.b32.xlu1 %v8827_v31, %s9414_s12  ;;  %6696 = vrot.lane.b32.xlu0 %v8869_v9, %s9413_s30  ;;  %v6659_v56 = vrot.slane %v6654_v26, %v9482_v14 }
 0x2b9   : > { %8740 = vmatmul.mubr.msk.bf16.gmra.mrb[60].mxu1 %vm904_vm2, %v11608_v4  ;;  %v5231_v7 = vpop.permute.xlu0 %5230 }
 0x2ba   : > { %4735 = vmatprep.mubr.bf16.mxu1 %v12660_v41  ;;  %v5279_v47 = vsel %vm5278_vm14, %v5231_v7, %v5233_v23 }
 0x2bc   : > { %6037 = vrot.lane.b32.xlu0 %v8824_v60, %s9414_s12  ;;  %6039 = vrot.lane.b32.xlu1 %v8825_v24, %s9414_s12 }
 0x2bd   : > { %v5255_v38 = vpop.permute.xlu0 %5254  ;;  %v2293_v33 = vpop.f32.mrb[56].mxu0 }
 0x2be   : > { %v11795_v57 = vadd.f32 %v2293_v33, %v11380_v29  ;;  %v2295_v44 = vpop.f32.mrb[57].mxu0 }
 0x2bf   : > { %v11801_v28 = vadd.f32 %v2295_v44, %v11383_v49  ;;  %v2297_v59 = vpop.f32.mrb[58].mxu0  ;;  %v8870_v49 = vcombine.low %v6659_v56, %v6659_v56 }
 0x2c0   : > { %6065 = vrot.lane.b32.xlu0 %v8838_v39, %s9414_s12  ;;  %6063 = vrot.lane.b32.xlu1 %v8837_v10, %s9414_s12  ;;  %v2298_v22 = vpop.f32.mrb[59].mxu0 }
 0x2c2   : > { %v11805_v27 = vpop.permute.xlu1 %5234  ;;  %v11807_v29 = vpop.permute.xlu0 %5258 }
 0x2c3   : > { %v5280_v14 = vsel %vm5278_vm14, %v5233_v23, %v11805_v27 }
 0x2c4   : > { %6061 = vrot.lane.b32.xlu0 %v8836_v58, %s9414_s12  ;;  %6067 = vrot.lane.b32.xlu1 %v8839_v46, %s9414_s12 }
 0x2c5   : > { %5351 = vmatprep.subr.bf16.mxu0 %v5280_v14 }
 0x2c6   : > { %v4444_v35 = vpop.permute.xlu1 %4443  ;;  %v5896_v61 = vpop.permute.xlu0 %5895  ;;  %5352 = vmatpush1.bf16.msra.mxu0 %v5279_v47  ;;  %v11869_v47 = vld [vmem:[%s12634_s2 + $0x50] ss:$0 sps:$4 sm:$0xff]  }
 0x2c7   : > { %v4484_v19 = vsel %vm4477_vm12, %v11612_v3, %v4444_v35  ;;  %v5903_v50 = vrot.slane %v5896_v61, 4  ;;  %v4485_v11 = vsel %vm4477_vm12, %v4444_v35, %v11652_v25 }
 0x2c8   : > { %6698 = vrot.lane.b32.xlu1 %v8870_v49, %s9413_s30  ;;  %4703 = vmatprep.subr.bf16.mxu1 %v4485_v11 }
 0x2c9   : > { %v5913_v1 = vsel %vm697_vm1, %v5902_v48, %v5903_v50  ;;  %4704 = vmatpush1.bf16.msra.mxu1 %v4484_v19  ;;  %v2242_v9 = vpop.f32.mrb[24].mxu1 }
 0x2ca   : > { %v5914_v23 = vsel %vm5905_vm13, %v5913_v1, %v5896_v61  ;;  %v5257_v31 = vpop.permute.xlu1 %5256  ;;  %v11826_v13 = vadd.f32 %v2242_v9, %v11386_v2  ;;  %v2244_v3 = vpop.f32.mrb[25].mxu1  ;;  %v11841_v2 = vld [vmem:[%s12634_s2 + $0x48] sm:$0xff]  }
 0x2cb   : > { %v5927_v7 = vmul.bf16 %v5914_v23, %v11509_v20  ;;  %v5933_v25 = vmul.bf16 %v5914_v23, %v11512_v30  ;;  %v5290_v5 = vsel %vm5278_vm14, %v5255_v38, %v5257_v31  ;;  %v2246_v62 = vpop.f32.mrb[26].mxu1  ;;  %v5291_v45 = vsel %vm5278_vm14, %v5257_v31, %v11807_v29 }
 0x2cc   : > { %v5319_v48 = vsel %vm697_vm1, %v5290_v5, 0  ;;  %v11835_v24 = vadd.f32 %v2244_v3, %v11393_v12  ;;  %v2247_v60 = vpop.f32.mrb[27].mxu1  ;;  %8790 = vmatprep.subr.msk.bf16.mxu0 %vm697_vm1, %v5291_v45 }
 0x2cd   : > { %v8830_v26 = vcombine.high %v5927_v7, %v5933_v25  ;;  %5354 = vmatpush1.bf16.msra.mxu0 %v5319_v48  ;;  %v8829_v22 = vcombine.low %v5927_v7, %v5933_v25  ;;  %v8828_v25 = vcombine.high %v11770_v16, %v11773_v63 }
 0x2ce   : > { %v4468_v20 = vpop.permute.xlu1 %4467  ;;  %v2395_v30 = vpop.f32.mrb[60].mxu0 }
 0x2cf   : > { %v4495_v38 = vsel %vm4477_vm12, %v11646_v40, %v4468_v20  ;;  %v4496_v10 = vsel %vm4477_vm12, %v4468_v20, %v11670_v42  ;;  %v5241_v12 = vpop.permute.xlu0 %5240  ;;  %6049 = vrot.lane.b32.xlu0 %v8830_v26, %s9414_s12  ;;  %v11849_v39 = vadd.f32 %v2395_v30, %v11481_v54  ;;  %v2397_v33 = vpop.f32.mrb[61].mxu0  ;;  %v5939_v40 = vmul.bf16 %v5914_v23, %v11539_v55 }
 0x2d0   : > { %v4536_v44 = vsel %vm697_vm1, %v4495_v38, 0  ;;  %8744 = vmatprep.subr.msk.bf16.mxu1 %vm697_vm1, %v4496_v10  ;;  %v11854_v56 = vadd.f32 %v2397_v33, %v11484_v18  ;;  %v2399_v59 = vpop.f32.mrb[62].mxu0  ;;  %8791 = vmatmul.mubr.msk.bf16.vlgmr.msra.gmra.mrb[0].mxu0 %vm904_vm2, %v11841_v2  ;;  %v6494_v10 = vld [vmem:[%s9527_s10 + $0x30] sm:$0xff]  ;;  %v8840_v33 = vcombine.high %v11792_v21, %v11792_v21  ;;  %v6500_v21 = vld [vmem:[%s9527_s10 + $0x60] sm:$0xff] }
 0x2d1   : > { %4706 = vmatpush1.bf16.msra.mxu1 %v4536_v44  ;;  %v2400_v42 = vpop.f32.mrb[63].mxu0  ;;  %5393 = vmatprep.mubr.bf16.mxu0 %v12660_v41  ;;  %v8841_v18 = vcombine.low %v5939_v40, %v5939_v40 }
 0x2d2   : > { %v5898_v46 = vpop.permute.xlu1 %5897 }
 0x2d3   : > { %v5904_v54 = vrot.slane %v5898_v46, 4  ;;  %v11860_v58 = vpop.permute.xlu0 %5238  ;;  %6047 = vrot.lane.b32.xlu0 %v8829_v22, %s9414_s12 }
 0x2d4   : > { %8745 = vmatmul.mubr.msk.bf16.vlgmr.msra.gmra.mrb[12].mxu1 %vm904_vm2, %v11577_v53  ;;  %v5283_v7 = vsel %vm5278_vm14, %v11860_v58, %v5241_v12 }
 0x2d5   : > { %v5915_v55 = vsel %vm697_vm1, %v5903_v50, %v5904_v54  ;;  %4745 = vmatprep.mubr.bf16.mxu1 %v12660_v41 }
 0x2d6   : > { %v5916_v14 = vsel %vm5905_vm13, %v5915_v55, %v5898_v46 }
 0x2d7   : > { %v11874_v49 = vmul.bf16 %v5916_v14, %v11594_v52  ;;  %v11877_v35 = vmul.bf16 %v5916_v14, %v11597_v51  ;;  %v11880_v61 = vmul.bf16 %v5916_v14, %v11629_v43  ;;  %v11882_v19 = vpop.permute.xlu0 %5262  ;;  %6071 = vrot.lane.b32.xlu0 %v8841_v18, %s9414_s12 }
 0x2d8   : > { %8792 = vmatmul.mubr.msk.bf16.gmra.mrb[100].mxu0 %vm904_vm2, %v11869_v47 }
 0x2d9   : > { %v8831_v50 = vcombine.low %v11874_v49, %v11877_v35  ;;  %v8843_v11 = vcombine.low %v11880_v61, %v11880_v61  ;;  %v2344_v52 = vpop.f32.mrb[28].mxu1  ;;  %5485 = vmatprep.mubr.bf16.mxu0 %v12660_v41 }
 0x2da   : > { %v11891_v1 = vpop.permute.xlu1 %5242  ;;  %v11895_v51 = vadd.f32 %v2344_v52, %v11396_v8  ;;  %v2346_v43 = vpop.f32.mrb[29].mxu1 }
 0x2db   : > { %v11897_v9 = vpop.permute.xlu0 %5266  ;;  %6051 = vrot.lane.b32.xlu1 %v8831_v50, %s9414_s12  ;;  %v5284_v23 = vsel %vm5278_vm14, %v5241_v12, %v11891_v1  ;;  %6075 = vrot.lane.b32.xlu0 %v8843_v11, %s9414_s12  ;;  %v11904_v31 = vadd.f32 %v2346_v43, %v11405_v17  ;;  %v2348_v3 = vpop.f32.mrb[30].mxu1 }
 0x2dc   : > { %8746 = vmatmul.mubr.msk.bf16.gmra.mrb[64].mxu1 %vm904_vm2, %v11608_v4  ;;  %5453 = vmatprep.subr.bf16.mxu0 %v5284_v23  ;;  %v2349_v8 = vpop.f32.mrb[31].mxu1 }
 0x2dd   : > { %5454 = vmatpush1.bf16.msra.mxu0 %v5283_v7  ;;  %9013 = vmatprep.mubr.msk.bf16.mxu1 %vm904_vm2, %v11577_v53  ;;  %v8842_v53 = vcombine.high %v5939_v40, %v5939_v40 }
 0x2de   : > { %v2992_v5 = vpop.f32.mrb[64].mxu0  ;;  %v4452_v62 = vpop.permute.xlu1 %4451 }
 0x2df   : > { %v11915_v17 = vadd.f32 %v2992_v5, %v11751_v34  ;;  %v5237_v45 = vpop.permute.xlu0 %5236  ;;  %v2994_v48 = vpop.f32.mrb[65].mxu0  ;;  %6045 = vrot.lane.b32.xlu1 %v8828_v25, %s9414_s12  ;;  %v4488_v60 = vsel %vm4477_vm12, %v11682_v32, %v4452_v62 }
 0x2e0   : > { %v11921_v16 = vadd.f32 %v2994_v48, %v11758_v37  ;;  %9009 = vmatprep.subr.bf16.mxu1 %v4488_v60  ;;  %v2996_v63 = vpop.f32.mrb[66].mxu0  ;;  %v6488_v37 = vld [vmem:[%s9527_s10] sm:$0xff]  ;;  %v6495_v48 = vld [vmem:[%s9527_s10 + $0x38] sm:$0xff] }
 0x2e1   : > { %9010 = vmatpush3.bf16.msra.mxu1 %v4488_v60  ;;  %v2997_v26 = vpop.f32.mrb[67].mxu0  ;;  %v6501_v60 = vld [vmem:[%s9527_s10 + $0x68] sm:$0xff] }
 0x2e2   : > { %v5265_v20 = vpop.permute.xlu1 %5264 }
 0x2e3   : > { %v5294_v34 = vsel %vm5278_vm14, %v11882_v19, %v5265_v20  ;;  %v5295_v30 = vsel %vm5278_vm14, %v5265_v20, %v11897_v9  ;;  %6073 = vrot.lane.b32.xlu1 %v8842_v53, %s9414_s12  ;;  %v6689_v32 = vpop.permute.xlu0 %6688 }
 0x2e4   : > { %v5331_v38 = vsel %vm697_vm1, %v5294_v34, 0  ;;  %8796 = vmatprep.subr.msk.bf16.mxu0 %vm697_vm1, %v5295_v30  ;;  %v6700_v12 = vrot.slane %v6689_v32, 4 }
 0x2e5   : > { %5456 = vmatpush1.bf16.msra.mxu0 %v5331_v38  ;;  %v8991_v44 = vpop.f32.mrb[32].mxu1 }
 0x2e6   : > { %v4476_v59 = vpop.permute.xlu1 %4475  ;;  %v6707_v40 = vsel %vm6706_vm15, %v6700_v12, %v6689_v32  ;;  %v11936_v22 = vadd.f32 %v8991_v44, %v11422_v15  ;;  %v2436_v42 = vpop.f32.mrb[33].mxu1  ;;  %v8832_v44 = vcombine.high %v11874_v49, %v11877_v35 }
 0x2e7   : > { %v4499_v46 = vsel %vm4477_vm12, %v11684_v6, %v4476_v59  ;;  %6069 = vrot.lane.b32.xlu1 %v8840_v33, %s9414_s12  ;;  %v6724_v54 = vmul.bf16 %v6707_v40, %v6488_v37  ;;  %v6730_v18 = vmul.bf16 %v6707_v40, %v6494_v10  ;;  %v8992_v55 = vpop.f32.mrb[34].mxu1  ;;  %v11947_v15 = vadd.f32 %v2436_v42, %v11425_v36  ;;  %v6490_v59 = vld [vmem:[%s9527_s10 + $0x10] sm:$0xff] }
 0x2e8   : > { %v4548_v14 = vsel %vm697_vm1, %v4499_v46, 0  ;;  %9293 = vmatprep.subr.msk.bf16.mxu1 %vm697_vm1, %v4499_v46  ;;  %8797 = vmatmul.mubr.msk.bf16.vlgmr.msra.gmra.mrb[16].mxu0 %vm904_vm2, %v11841_v2  ;;  %v2439_v50 = vpop.f32.mrb[35].mxu1  ;;  %v5282_v6 = vsel %vm5278_vm14, %v5237_v45, %v11860_v58  ;;  %v11955_v23 = vmul.bf16 %v6707_v40, %v6500_v21  ;;  %v5281_v36 = vsel %vm5278_vm14, %v11805_v27, %v5237_v45  ;;  %v6489_v45 = vld [vmem:[%s9527_s10 + $0x8] sm:$0xff]  ;;  %v6496_v40 = vld [vmem:[%s9527_s10 + $0x40] sm:$0xff]  ;;  %v6502_v55 = vld [vmem:[%s9527_s10 + $0x70] sm:$0xff] }
 0x2e9   : > { %v8877_v11 = vcombine.high %v6724_v54, %v6730_v18  ;;  %9012 = vmatpush3.bf16.msra.mxu1 %v4548_v14  ;;  %5495 = vmatprep.mubr.bf16.mxu0 %v12660_v41  ;;  %v11953_v43 = vadd.f32 %v2439_v50, %v11462_v0  ;;  %v8876_v3 = vcombine.low %v6724_v54, %v6730_v18 }
 0x2ea   : > { %v5261_v52 = vpop.permute.xlu1 %5260  ;;  %5402 = vmatprep.subr.bf16.mxu1 %v5282_v6  ;;  %v8888_v27 = vcombine.low %v11955_v23, %v11955_v23  ;;  %v8889_v46 = vcombine.high %v11955_v23, %v11955_v23 }
 0x2eb   : > { %v11957_v7 = vpop.permute.xlu0 %5248  ;;  %6834 = vrot.lane.b32.xlu0 %v8877_v11, %s9415_s19  ;;  %v5292_v0 = vsel %vm5278_vm14, %v11807_v29, %v5261_v52  ;;  %v5293_v58 = vsel %vm5278_vm14, %v5261_v52, %v11882_v19 }
 0x2ec   : > { %9014 = vmatmul.mubr.msk.bf16.vlgmr.msra.gmra.mrb[68].mxu1 %vm904_vm2, %v11608_v4  ;;  %v5325_v19 = vsel %vm697_vm1, %v5292_v0, 0 }
 0x2ed   : > { %5403 = vmatpush1.bf16.msra.mxu1 %v5281_v36  ;;  %5434 = vmatprep.mubr.bf16.mxu1 %v12660_v41 }
 0x2ee   : > { %v6691_v8 = vpop.permute.xlu1 %6690  ;;  %8793 = vmatprep.subr.msk.bf16.mxu1 %vm697_vm1, %v5293_v58  ;;  %v3094_v25 = vpop.f32.mrb[68].mxu0 }
 0x2ef   : > { %v6701_v5 = vrot.slane %v6691_v8, 4  ;;  %v11972_v4 = vpop.permute.xlu0 %5246  ;;  %6832 = vrot.lane.b32.xlu0 %v8876_v3, %s9415_s19  ;;  %v11976_v29 = vadd.f32 %v3094_v25, %v11795_v57  ;;  %v3096_v62 = vpop.f32.mrb[69].mxu0  ;;  %v8844_v3 = vcombine.high %v11880_v61, %v11880_v61 }
 0x2f0   : > { %8798 = vmatmul.mubr.msk.bf16.gmra.mrb[104].mxu0 %vm904_vm2, %v11869_v47  ;;  %v11985_v63 = vadd.f32 %v3096_v62, %v11801_v28  ;;  %v3098_v53 = vpop.f32.mrb[70].mxu0 }
 0x2f1   : > { %v6708_v26 = vsel %vm697_vm1, %v6700_v12, %v6701_v5  ;;  %5405 = vmatpush1.bf16.msra.mxu1 %v5325_v19  ;;  %v3099_v20 = vpop.f32.mrb[71].mxu0  ;;  %5587 = vmatprep.mubr.bf16.mxu0 %v12660_v41 }
 0x2f2   : > { %v6709_v57 = vsel %vm6706_vm15, %v6708_v26, %v6691_v8 }
 0x2f3   : > { %v6725_v34 = vmul.bf16 %v6709_v57, %v6489_v45  ;;  %v6731_v30 = vmul.bf16 %v6709_v57, %v6495_v48  ;;  %v6737_v32 = vmul.bf16 %v6709_v57, %v6501_v60  ;;  %v5273_v38 = vpop.permute.xlu0 %5272  ;;  %6856 = vrot.lane.b32.xlu0 %v8888_v27, %s9415_s19 }
 0x2f4   : > { %8794 = vmatmul.mubr.msk.bf16.vlgmr.msra.gmra.mrb[4].mxu1 %vm904_vm2, %v11841_v2 }
 0x2f5   : > { %v8878_v28 = vcombine.low %v6725_v34, %v6731_v30  ;;  %v8890_v37 = vcombine.low %v6737_v32, %v6737_v32  ;;  %5444 = vmatprep.mubr.bf16.mxu1 %v12660_v41  ;;  %v8879_v10 = vcombine.high %v6725_v34, %v6731_v30  ;;  %v8891_v54 = vcombine.high %v6737_v32, %v6737_v32 }
 0x2f7   : > { %6836 = vrot.lane.b32.xlu1 %v8878_v28, %s9415_s19  ;;  %v11995_v12 = vpop.permute.xlu0 %6692  ;;  %6860 = vrot.lane.b32.xlu0 %v8890_v37, %s9415_s19 }
 0x2f8   : > { %v6702_v33 = vrot.slane %v11995_v12, 4 }
 0x2fa   : > { %v6710_v42 = vsel %vm697_vm1, %v6701_v5, %v6702_v33 }
 0x2fb   : > { %v6711_v18 = vsel %vm6706_vm15, %v6710_v42, %v11995_v12  ;;  %6053 = vrot.lane.b32.xlu1 %v8832_v44, %s9414_s12  ;;  %6838 = vrot.lane.b32.xlu0 %v8879_v10, %s9415_s19  ;;  %v5269_v53 = vpop.permute.xlu0 %5268 }
 0x2fc   : > { %v6726_v14 = vmul.bf16 %v6711_v18, %v6490_v59  ;;  %v6732_v49 = vmul.bf16 %v6711_v18, %v6496_v40  ;;  %8795 = vmatmul.mubr.msk.bf16.gmra.mrb[72].mxu1 %vm904_vm2, %v11869_v47  ;;  %v6738_v21 = vmul.bf16 %v6711_v18, %v6502_v55  ;;  %v5296_v37 = vsel %vm5278_vm14, %v11897_v9, %v5269_v53 }
 0x2fd   : > { %5536 = vmatprep.mubr.bf16.mxu1 %v12660_v41 }
 0x2fe   : > { %v3196_v35 = vpop.f32.mrb[72].mxu0  ;;  %v8881_v50 = vcombine.high %v6726_v14, %v6732_v49  ;;  %v8880_v58 = vcombine.low %v6726_v14, %v6732_v49  ;;  %v8893_v5 = vcombine.high %v6738_v21, %v6738_v21  ;;  %v8892_v45 = vcombine.low %v6738_v21, %v6738_v21  ;;  %v6491_v21 = vld [vmem:[%s9527_s10 + $0x18] sm:$0xff] }
 0x2ff   : > { %6858 = vrot.lane.b32.xlu1 %v8889_v46, %s9415_s19  ;;  %6862 = vrot.lane.b32.xlu0 %v8891_v54, %s9415_s19  ;;  %v12019_v11 = vadd.f32 %v3196_v35, %v11849_v39  ;;  %v3198_v6 = vpop.f32.mrb[73].mxu0 }
 0x300   : > { %v12022_v52 = vadd.f32 %v3198_v6, %v11854_v56  ;;  %v3200_v23 = vpop.f32.mrb[74].mxu0 }
 0x301   : > { %v3043_v36 = vpop.f32.mrb[36].mxu1  ;;  %v3201_v0 = vpop.f32.mrb[75].mxu0 }
 0x302   : > { %v12027_v8 = vadd.f32 %v3043_v36, %v11826_v13  ;;  %v12029_v25 = vpop.permute.xlu1 %5250  ;;  %v3045_v27 = vpop.f32.mrb[37].mxu1  ;;  %v5287_v13 = vsel %vm5278_vm14, %v11972_v4, %v11957_v7 }
 0x303   : > { %v12032_v39 = vadd.f32 %v3045_v27, %v11835_v24  ;;  %6077 = vrot.lane.b32.xlu1 %v8844_v3, %s9414_s12  ;;  %v5288_v56 = vsel %vm5278_vm14, %v11957_v7, %v12029_v25  ;;  %6842 = vrot.lane.b32.xlu0 %v8881_v50, %s9415_s19  ;;  %v3047_v61 = vpop.f32.mrb[38].mxu1  ;;  %v6497_v50 = vld [vmem:[%s9527_s10 + $0x48] sm:$0xff]  ;;  %v12098_v3 = vld [vmem:[%s12634_s2 + $0x54] sm:$0xff]  }
 0x304   : > { %5555 = vmatprep.subr.bf16.mxu0 %v5288_v56  ;;  %v3048_v62 = vpop.f32.mrb[39].mxu1  ;;  %v6503_v27 = vld [vmem:[%s9527_s10 + $0x78] sm:$0xff] }
 0x305   : > { %5556 = vmatpush1.bf16.msra.mxu0 %v5287_v13 }
 0x306   : > { %v5271_v19 = vpop.permute.xlu1 %5270 }
 0x307   : > { %6840 = vrot.lane.b32.xlu1 %v8880_v58, %s9415_s19  ;;  %6866 = vrot.lane.b32.xlu0 %v8893_v5, %s9415_s19  ;;  %v5298_v24 = vsel %vm5278_vm14, %v5271_v19, %v5273_v38 }
 0x308   : > { %v5343_v7 = vsel %vm697_vm1, %v5298_v24, 0 }
 0x30a   : > { %v12045_v48 = vpop.permute.xlu1 %5274 }
 0x30b   : > { %v5299_v60 = vsel %vm5278_vm14, %v5273_v38, %v12045_v48  ;;  %6864 = vrot.lane.b32.xlu1 %v8892_v45, %s9415_s19 }
 0x30c   : > { %8802 = vmatprep.subr.msk.bf16.mxu0 %vm697_vm1, %v5299_v60 }
 0x30d   : > { %5558 = vmatpush1.bf16.msra.mxu0 %v5343_v7 }
 0x30e   : > { %v3793_v26 = vpop.f32.mrb[76].mxu0  ;;  %v5245_v20 = vpop.permute.xlu1 %5244 }
 0x30f   : > { %v12053_v57 = vadd.f32 %v3793_v26, %v11915_v17  ;;  %v5285_v34 = vsel %vm5278_vm14, %v11891_v1, %v5245_v20  ;;  %v3795_v30 = vpop.f32.mrb[77].mxu0  ;;  %v5286_v32 = vsel %vm5278_vm14, %v5245_v20, %v11972_v4  ;;  %v5297_v17 = vsel %vm5278_vm14, %v5269_v53, %v5271_v19  ;;  %v12130_v26 = vld [vmem:[%s12634_s2 + $0x5c] ss:$0 sps:$4 sm:$0xff]  }
 0x310   : > { %v12060_v38 = vadd.f32 %v3795_v30, %v11921_v16  ;;  %5504 = vmatprep.subr.bf16.mxu1 %v5286_v32  ;;  %8803 = vmatmul.mubr.msk.bf16.vlgmr.msra.gmra.mrb[32].mxu0 %vm904_vm2, %v11841_v2  ;;  %v3797_v28 = vpop.f32.mrb[78].mxu0  ;;  %v5337_v16 = vsel %vm697_vm1, %v5296_v37, 0  ;;  %v6492_v37 = vld [vmem:[%s9527_s10 + $0x20] sm:$0xff] }
 0x311   : > { %5505 = vmatpush1.bf16.msra.mxu1 %v5285_v34  ;;  %5597 = vmatprep.mubr.bf16.mxu0 %v12660_v41  ;;  %v3798_v1 = vpop.f32.mrb[79].mxu0 }
 0x312   : > { %v6034_v10 = vpop.permute.xlu1 %6033  ;;  %8799 = vmatprep.subr.msk.bf16.mxu1 %vm697_vm1, %v5297_v17  ;;  %v6498_v17 = vld [vmem:[%s9527_s10 + $0x50] sm:$0xff]  ;;  %v6504_v1 = vld [vmem:[%s9527_s10 + $0x80] sm:$0xff] }
 0x315   : > { %5507 = vmatpush1.bf16.msra.mxu1 %v5337_v16 }
 0x316   : > { %v6032_v4 = vpop.permute.xlu1 %6031  ;;  %v12070_v44 = vpop.permute.xlu0 %6035 }
 0x317   : > { %v6080_v59 = vsel %vm6079_vm0, %v6032_v4, %v6034_v10  ;;  %v6081_v9 = vsel %vm6079_vm0, %v6034_v10, %v12070_v44 }
 0x318   : > { %8800 = vmatmul.mubr.msk.bf16.vlgmr.msra.gmra.mrb[12].mxu1 %vm904_vm2, %v11841_v2  ;;  %8804 = vmatmul.mubr.msk.bf16.gmra.mrb[108].mxu0 %vm904_vm2, %v11869_v47 }
 0x319   : > { %6152 = vmatprep.subr.bf16.mxu0 %v6081_v9  ;;  %5546 = vmatprep.mubr.bf16.mxu1 %v12660_v41 }
 0x31a   : > { %6153 = vmatpush1.bf16.msra.mxu0 %v6080_v59  ;;  %v6056_v40 = vpop.permute.xlu0 %6055  ;;  %6184 = vmatprep.mubr.bf16.mxu0 %v12660_v41  ;;  %v6058_v42 = vpop.permute.xlu1 %6057 }
 0x31b   : > { %v6091_v46 = vsel %vm6079_vm0, %v6056_v40, %v6058_v42 }
 0x31c   : > { %v6120_v14 = vsel %vm697_vm1, %v6091_v46, 0 }
 0x31e   : > { %v12082_v54 = vpop.permute.xlu0 %6059  ;;  %v6695_v18 = vpop.permute.xlu1 %6694 }
 0x31f   : > { %v6092_v55 = vsel %vm6079_vm0, %v6058_v42, %v12082_v54  ;;  %v6703_v49 = vrot.slane %v6695_v18, 4 }
 0x320   : > { %v3895_v35 = vpop.f32.mrb[80].mxu0  ;;  %8801 = vmatmul.mubr.msk.bf16.gmra.mrb[76].mxu1 %vm904_vm2, %v11869_v47  ;;  %8845 = vmatprep.subr.msk.bf16.mxu0 %vm697_vm1, %v6092_v55 }
 0x321   : > { %v12093_v6 = vadd.f32 %v3895_v35, %v11976_v29  ;;  %v3897_v23 = vpop.f32.mrb[81].mxu0  ;;  %6155 = vmatpush1.bf16.msra.mxu0 %v6120_v14  ;;  %9021 = vmatprep.mubr.msk.bf16.mxu1 %vm904_vm2, %v11841_v2  ;;  %v6712_v36 = vsel %vm697_vm1, %v6702_v33, %v6703_v49 }
 0x322   : > { %v12106_v0 = vadd.f32 %v3897_v23, %v11985_v63  ;;  %v5253_v58 = vpop.permute.xlu0 %5252  ;;  %v3899_v29 = vpop.f32.mrb[82].mxu0  ;;  %v6713_v5 = vsel %vm6706_vm15, %v6712_v36, %v6695_v18 }
 0x323   : > { %v5277_v56 = vpop.permute.xlu1 %5276  ;;  %v5289_v61 = vsel %vm5278_vm14, %v12029_v25, %v5253_v58  ;;  %v3900_v13 = vpop.f32.mrb[83].mxu0  ;;  %v6727_v62 = vmul.bf16 %v6713_v5, %v6491_v21  ;;  %v6733_v19 = vmul.bf16 %v6713_v5, %v6497_v50  ;;  %v6739_v45 = vmul.bf16 %v6713_v5, %v6503_v27 }
 0x324   : > { %v3145_v2 = vpop.f32.mrb[40].mxu1  ;;  %9017 = vmatprep.subr.bf16.mxu1 %v5289_v61  ;;  %v5300_v12 = vsel %vm5278_vm14, %v12045_v48, %v5277_v56  ;;  %8846 = vmatmul.mubr.msk.bf16.vlgmr.msra.gmra.mrb[0].mxu0 %vm904_vm2, %v12098_v3 }
 0x325   : > { %v12115_v63 = vadd.f32 %v3145_v2, %v11895_v51  ;;  %v3147_v33 = vpop.f32.mrb[41].mxu1  ;;  %9018 = vmatpush3.bf16.msra.mxu1 %v5289_v61  ;;  %v8882_v24 = vcombine.low %v6727_v62, %v6733_v19  ;;  %v8883_v60 = vcombine.high %v6727_v62, %v6733_v19  ;;  %6194 = vmatprep.mubr.bf16.mxu0 %v12660_v41  ;;  %v5349_v48 = vsel %vm697_vm1, %v5300_v12, 0 }
 0x326   : > { %v6042_v25 = vpop.permute.xlu0 %6041  ;;  %9294 = vmatprep.subr.msk.bf16.mxu1 %vm697_vm1, %v5300_v12  ;;  %v3149_v7 = vpop.f32.mrb[42].mxu1  ;;  %v12121_v53 = vadd.f32 %v3147_v33, %v11904_v31  ;;  %v8894_v20 = vcombine.low %v6739_v45, %v6739_v45  ;;  %v8895_v34 = vcombine.high %v6739_v45, %v6739_v45 }
 0x327   : > { %v3150_v51 = vpop.f32.mrb[43].mxu1  ;;  %6846 = vrot.lane.b32.xlu0 %v8883_v60, %s9415_s19  ;;  %6844 = vrot.lane.b32.xlu1 %v8882_v24, %s9415_s19  ;;  %v6493_v60 = vld [vmem:[%s9527_s10 + $0x28] sm:$0xff] }
 0x328   : > { %v6505_v51 = vld [vmem:[%s9527_s10 + $0x88] sm:$0xff] }
 0x329   : > { %9020 = vmatpush3.bf16.msra.mxu1 %v5349_v48 }
 0x32a   : > { %v12132_v31 = vpop.permute.xlu1 %6043  ;;  %v12134_v30 = vpop.permute.xlu0 %6696 }
 0x32b   : > { %v6704_v32 = vrot.slane %v12134_v30, 4  ;;  %v6085_v28 = vsel %vm6079_vm0, %v6042_v25, %v12132_v31  ;;  %6870 = vrot.lane.b32.xlu0 %v8895_v34, %s9415_s19  ;;  %6868 = vrot.lane.b32.xlu1 %v8894_v20, %s9415_s19 }
 0x32c   : > { %9022 = vmatmul.mubr.msk.bf16.vlgmr.msra.gmra.mrb[80].mxu1 %vm904_vm2, %v11869_v47  ;;  %8847 = vmatmul.mubr.msk.bf16.gmra.mrb[112].mxu0 %vm904_vm2, %v12130_v26 }
 0x32d   : > { %v6714_v10 = vsel %vm697_vm1, %v6703_v49, %v6704_v32  ;;  %6254 = vmatprep.subr.bf16.mxu0 %v6085_v28  ;;  %6235 = vmatprep.mubr.bf16.mxu1 %v12660_v41 }
 0x32e   : > { %v6715_v16 = vsel %vm6706_vm15, %v6714_v10, %v12134_v30  ;;  %v6040_v4 = vpop.permute.xlu1 %6039  ;;  %v6038_v59 = vpop.permute.xlu0 %6037  ;;  %6286 = vmatprep.mubr.bf16.mxu0 %v12660_v41 }
 0x32f   : > { %v6728_v9 = vmul.bf16 %v6715_v16, %v6492_v37  ;;  %v6734_v40 = vmul.bf16 %v6715_v16, %v6498_v17  ;;  %v6084_v42 = vsel %vm6079_vm0, %v6040_v4, %v6042_v25  ;;  %v6740_v46 = vmul.bf16 %v6715_v16, %v6504_v1  ;;  %v6499_v25 = vld [vmem:[%s9527_s10 + $0x58] sm:$0xff] }
 0x330   : > { %v6082_v47 = vsel %vm6079_vm0, %v12070_v44, %v6038_v59  ;;  %v6083_v18 = vsel %vm6079_vm0, %v6038_v59, %v6040_v4  ;;  %6255 = vmatpush1.bf16.msra.mxu0 %v6084_v42  ;;  %v8999_v55 = vpop.f32.mrb[44].mxu1  ;;  %v7290_v42 = vld [vmem:[%s12635_s3 + $0x8] sm:$0xff] }
 0x331   : > { %v8884_v14 = vcombine.low %v6728_v9, %v6734_v40  ;;  %v8885_v49 = vcombine.high %v6728_v9, %v6734_v40  ;;  %6203 = vmatprep.subr.bf16.mxu1 %v6083_v18  ;;  %v3237_v35 = vpop.f32.mrb[45].mxu1  ;;  %v12160_v23 = vadd.f32 %v8999_v55, %v11936_v22  ;;  %v8896_v58 = vcombine.low %v6740_v46, %v6740_v46 }
 0x332   : > { %6204 = vmatpush1.bf16.msra.mxu1 %v6082_v47  ;;  %v6064_v21 = vpop.permute.xlu1 %6063  ;;  %v6066_v50 = vpop.permute.xlu0 %6065  ;;  %v12163_v36 = vadd.f32 %v3237_v35, %v11947_v15  ;;  %v8897_v5 = vcombine.high %v6740_v46, %v6740_v46 }
 0x333   : > { %6850 = vrot.lane.b32.xlu0 %v8885_v49, %s9415_s19  ;;  %6848 = vrot.lane.b32.xlu1 %v8884_v14, %s9415_s19  ;;  %v9000_v44 = vpop.f32.mrb[46].mxu1  ;;  %v6095_v56 = vsel %vm6079_vm0, %v6064_v21, %v6066_v50  ;;  %v7291_v49 = vld [vmem:[%s12635_s3 + $0x10] sm:$0xff] }
 0x334   : > { %v3997_v29 = vpop.f32.mrb[84].mxu0  ;;  %v3240_v27 = vpop.f32.mrb[47].mxu1 }
 0x335   : > { %v12169_v61 = vadd.f32 %v3997_v29, %v12019_v11  ;;  %v3999_v13 = vpop.f32.mrb[85].mxu0  ;;  %v12172_v22 = vadd.f32 %v3240_v27, %v11953_v43 }
 0x336   : > { %v12175_v15 = vadd.f32 %v3999_v13, %v12022_v52  ;;  %v12177_v62 = vpop.permute.xlu1 %6067  ;;  %v6062_v19 = vpop.permute.xlu0 %6061  ;;  %v6132_v52 = vsel %vm697_vm1, %v6095_v56, 0 }
 0x337   : > { %v6096_v2 = vsel %vm6079_vm0, %v6066_v50, %v12177_v62  ;;  %v6093_v12 = vsel %vm6079_vm0, %v12082_v54, %v6062_v19  ;;  %v6094_v11 = vsel %vm6079_vm0, %v6062_v19, %v6064_v21  ;;  %6874 = vrot.lane.b32.xlu0 %v8897_v5, %s9415_s19  ;;  %6872 = vrot.lane.b32.xlu1 %v8896_v58, %s9415_s19  ;;  %v4001_v43 = vpop.f32.mrb[86].mxu0 }
 0x338   : > { %v6126_v33 = vsel %vm697_vm1, %v6093_v12, 0  ;;  %8848 = vmatprep.subr.msk.bf16.mxu1 %vm697_vm1, %v6094_v11  ;;  %8851 = vmatprep.subr.msk.bf16.mxu0 %vm697_vm1, %v6096_v2  ;;  %v4002_v45 = vpop.f32.mrb[87].mxu0 }
 0x339   : > { %6206 = vmatpush1.bf16.msra.mxu1 %v6126_v33  ;;  %6257 = vmatpush1.bf16.msra.mxu0 %v6132_v52 }
 0x33a   : > { %v6699_v54 = vpop.permute.xlu1 %6698 }
 0x33b   : > { %v6705_v24 = vrot.slane %v6699_v54, 4 }
 0x33c   : > { %8849 = vmatmul.mubr.msk.bf16.vlgmr.msra.gmra.mrb[4].mxu1 %vm904_vm2, %v12098_v3  ;;  %8852 = vmatmul.mubr.msk.bf16.vlgmr.msra.gmra.mrb[16].mxu0 %vm904_vm2, %v12098_v3 }
 0x33d   : > { %v6716_v7 = vsel %vm697_vm1, %v6704_v32, %v6705_v24  ;;  %6245 = vmatprep.mubr.bf16.mxu1 %v12660_v41  ;;  %6296 = vmatprep.mubr.bf16.mxu0 %v12660_v41 }
 0x33e   : > { %v6717_v48 = vsel %vm6706_vm15, %v6716_v7, %v6699_v54 }
 0x33f   : > { %v6729_v20 = vmul.bf16 %v6717_v48, %v6493_v60  ;;  %v6735_v34 = vmul.bf16 %v6717_v48, %v6499_v25  ;;  %v6741_v37 = vmul.bf16 %v6717_v48, %v6505_v51 }
 0x340   : > { %v3844_v28 = vpop.f32.mrb[48].mxu1 }
 0x341   : > { %v8886_v17 = vcombine.low %v6729_v20, %v6735_v34  ;;  %v8887_v1 = vcombine.high %v6729_v20, %v6735_v34  ;;  %v3846_v10 = vpop.f32.mrb[49].mxu1  ;;  %v12204_v16 = vadd.f32 %v3844_v28, %v12027_v8  ;;  %v6050_v4 = vpop.permute.xlu0 %6049  ;;  %v8898_v9 = vcombine.low %v6741_v37, %v6741_v37  ;;  %v7289_v8 = vld [vmem:[%s12635_s3] sm:$0xff] }
 0x342   : > { %v12207_v30 = vadd.f32 %v3846_v10, %v12032_v39  ;;  %v3848_v32 = vpop.f32.mrb[50].mxu1  ;;  %v8899_v39 = vcombine.high %v6741_v37, %v6741_v37 }
 0x343   : > { %6854 = vrot.lane.b32.xlu0 %v8887_v1, %s9415_s19  ;;  %6852 = vrot.lane.b32.xlu1 %v8886_v17, %s9415_s19  ;;  %v3849_v59 = vpop.f32.mrb[51].mxu1 }
 0x344   : > { %8850 = vmatmul.mubr.msk.bf16.gmra.mrb[84].mxu1 %vm904_vm2, %v12130_v26  ;;  %8853 = vmatmul.mubr.msk.bf16.gmra.mrb[116].mxu0 %vm904_vm2, %v12130_v26 }
 0x345   : > { %6388 = vmatprep.mubr.bf16.mxu0 %v12660_v41  ;;  %6337 = vmatprep.mubr.bf16.mxu1 %v12660_v41  ;;  %v6048_v40 = vpop.permute.xlu0 %6047 }
 0x346   : > { %v6088_v18 = vsel %vm6079_vm0, %v6048_v40, %v6050_v4 }
 0x347   : > { %6876 = vrot.lane.b32.xlu1 %v8898_v9, %s9415_s19  ;;  %7294 = vperm.xlu0 %9327, %v7289_v8  }
 0x349   : > { %v6072_v55 = vpop.permute.xlu0 %6071 }
 0x34b   : > { %6878 = vrot.lane.b32.xlu1 %v8899_v39, %s9415_s19 }
 0x34d   : > { %v6052_v46 = vpop.permute.xlu1 %6051  ;;  %v12233_v50 = vpop.permute.xlu0 %6075 }
 0x34e   : > { %v6089_v47 = vsel %vm6079_vm0, %v6050_v4, %v6052_v46 }
 0x34f   : > { %6356 = vmatprep.subr.bf16.mxu0 %v6089_v47  ;;  %7299 = vperm.xlu1 %9328, %v7290_v42  }
 0x350   : > { %6357 = vmatpush1.bf16.msra.mxu0 %v6088_v18 }
 0x351   : > { %v6046_v14 = vpop.permute.xlu1 %6045 }
 0x352   : > { %v6086_v35 = vsel %vm6079_vm0, %v12132_v31, %v6046_v14  ;;  %v6087_v21 = vsel %vm6079_vm0, %v6046_v14, %v6048_v40 }
 0x353   : > { %6305 = vmatprep.subr.bf16.mxu1 %v6087_v21  ;;  %7304 = vperm.xlu1 %9328, %v7291_v49  }
 0x354   : > { %6306 = vmatpush1.bf16.msra.mxu1 %v6086_v35 }
 0x355   : > { %v6074_v44 = vpop.permute.xlu1 %6073 }
 0x356   : > { %v6099_v58 = vsel %vm6079_vm0, %v6072_v55, %v6074_v44  ;;  %v6100_v29 = vsel %vm6079_vm0, %v6074_v44, %v12233_v50 }
 0x357   : > { %v6144_v27 = vsel %vm697_vm1, %v6099_v58, 0  ;;  %8857 = vmatprep.subr.msk.bf16.mxu0 %vm697_vm1, %v6100_v29 }
 0x358   : > { %6359 = vmatpush1.bf16.msra.mxu0 %v6144_v27 }
 0x359   : > { %v6070_v5 = vpop.permute.xlu1 %6069 }
 0x35a   : > { %v6097_v31 = vsel %vm6079_vm0, %v12177_v62, %v6070_v5  ;;  %v6098_v56 = vsel %vm6079_vm0, %v6070_v5, %v6072_v55 }
 0x35b   : > { %v6138_v13 = vsel %vm697_vm1, %v6097_v31, 0  ;;  %8854 = vmatprep.subr.msk.bf16.mxu1 %vm697_vm1, %v6098_v56  ;;  %8858 = vmatmul.mubr.msk.bf16.vlgmr.msra.gmra.mrb[32].mxu0 %vm904_vm2, %v12098_v3 }
 0x35c   : > { %6308 = vmatpush1.bf16.msra.mxu1 %v6138_v13  ;;  %6398 = vmatprep.mubr.bf16.mxu0 %v12660_v41 }
 0x35d   : > { %v6835_v19 = vpop.permute.xlu0 %6834 }
 0x35f   : > { %8855 = vmatmul.mubr.msk.bf16.vlgmr.msra.gmra.mrb[12].mxu1 %vm904_vm2, %v12098_v3 }
 0x360   : > { %6347 = vmatprep.mubr.bf16.mxu1 %v12660_v41 }
 0x361   : > { %v4594_v2 = vpop.f32.mrb[88].mxu0  ;;  %v6833_v11 = vpop.permute.xlu0 %6832 }
 0x362   : > { %v12252_v62 = vadd.f32 %v4594_v2, %v12053_v57  ;;  %v4596_v12 = vpop.f32.mrb[89].mxu0  ;;  %v6881_v7 = vsel %vm6880_vm3, %v6833_v11, %v6835_v19 }
 0x363   : > { %v12255_v43 = vadd.f32 %v4596_v12, %v12060_v38  ;;  %8859 = vmatmul.mubr.msk.bf16.gmra.mrb[120].mxu0 %vm904_vm2, %v12130_v26  ;;  %v4598_v52 = vpop.f32.mrb[90].mxu0 }
 0x364   : > { %v3946_v33 = vpop.f32.mrb[52].mxu1  ;;  %v4599_v45 = vpop.f32.mrb[91].mxu0  ;;  %6985 = vmatprep.mubr.bf16.mxu0 %v12660_v41 }
 0x365   : > { %v12261_v54 = vadd.f32 %v3946_v33, %v12115_v63  ;;  %v3948_v24 = vpop.f32.mrb[53].mxu1  ;;  %v6857_v25 = vpop.permute.xlu0 %6856 }
 0x366   : > { %v12264_v57 = vadd.f32 %v3948_v24, %v12121_v53  ;;  %v3950_v60 = vpop.f32.mrb[54].mxu1 }
 0x367   : > { %8856 = vmatmul.mubr.msk.bf16.gmra.mrb[88].mxu1 %vm904_vm2, %v12130_v26  ;;  %v3951_v38 = vpop.f32.mrb[55].mxu1 }
 0x368   : > { %9029 = vmatprep.mubr.msk.bf16.mxu1 %vm904_vm2, %v12098_v3 }
 0x369   : > { %v6837_v51 = vpop.permute.xlu1 %6836  ;;  %v6861_v20 = vpop.permute.xlu0 %6860 }
 0x36a   : > { %v6882_v63 = vsel %vm6880_vm3, %v6835_v19, %v6837_v51 }
 0x36b   : > { %6953 = vmatprep.subr.bf16.mxu0 %v6882_v63 }
 0x36c   : > { %6954 = vmatpush1.bf16.msra.mxu0 %v6881_v7 }
 0x36d   : > { %v6054_v48 = vpop.permute.xlu1 %6053  ;;  %v6839_v9 = vpop.permute.xlu0 %6838 }
 0x36e   : > { %v6090_v53 = vsel %vm6079_vm0, %v6052_v46, %v6054_v48 }
 0x36f   : > { %9025 = vmatprep.subr.bf16.mxu1 %v6090_v53 }
 0x370   : > { %v9007_v34 = vpop.f32.mrb[56].mxu1  ;;  %9026 = vmatpush3.bf16.msra.mxu1 %v6090_v53 }
 0x371   : > { %v12274_v28 = vadd.f32 %v9007_v34, %v12160_v23  ;;  %v6859_v37 = vpop.permute.xlu1 %6858  ;;  %v4038_v17 = vpop.f32.mrb[57].mxu1  ;;  %v12286_v23 = vld [vmem:[%s12634_s2 + $0x60] sm:$0xff]  }
 0x372   : > { %v6892_v3 = vsel %vm6880_vm3, %v6857_v25, %v6859_v37  ;;  %v6893_v1 = vsel %vm6880_vm3, %v6859_v37, %v6861_v20  ;;  %v12279_v10 = vadd.f32 %v4038_v17, %v12163_v36  ;;  %v9008_v32 = vpop.f32.mrb[58].mxu1  ;;  %v6863_v35 = vpop.permute.xlu0 %6862 }
 0x373   : > { %v6921_v4 = vsel %vm697_vm1, %v6892_v3, 0  ;;  %v4041_v59 = vpop.f32.mrb[59].mxu1  ;;  %8900 = vmatprep.subr.msk.bf16.mxu0 %vm697_vm1, %v6893_v1  ;;  %v6894_v21 = vsel %vm6880_vm3, %v6861_v20, %v6863_v35 }
 0x374   : > { %v12289_v8 = vadd.f32 %v4041_v59, %v12172_v22  ;;  %v4696_v39 = vpop.f32.mrb[92].mxu0  ;;  %6956 = vmatpush1.bf16.msra.mxu0 %v6921_v4  ;;  %v6927_v58 = vsel %vm697_vm1, %v6894_v21, 0 }
 0x375   : > { %v12292_v36 = vadd.f32 %v4696_v39, %v12093_v6  ;;  %v6078_v40 = vpop.permute.xlu1 %6077  ;;  %v4698_v42 = vpop.f32.mrb[93].mxu0  ;;  %v6883_v6 = vsel %vm6880_vm3, %v6837_v51, %v6839_v9 }
 0x376   : > { %v6101_v46 = vsel %vm6079_vm0, %v12233_v50, %v6078_v40  ;;  %v12297_v47 = vadd.f32 %v4698_v42, %v12106_v0  ;;  %v4700_v18 = vpop.f32.mrb[94].mxu0  ;;  %v12311_v0 = vld [vmem:[%s12634_s2 + $0x68] ss:$0 sps:$4 sm:$0xff]   ;;  %v6843_v52 = vpop.permute.xlu0 %6842 }
 0x377   : > { %v6150_v55 = vsel %vm697_vm1, %v6101_v46, 0  ;;  %9295 = vmatprep.subr.msk.bf16.mxu1 %vm697_vm1, %v6101_v46  ;;  %8901 = vmatmul.mubr.msk.bf16.vlgmr.msra.gmra.mrb[0].mxu0 %vm904_vm2, %v12286_v23  ;;  %v4701_v22 = vpop.f32.mrb[95].mxu0 }
 0x378   : > { %9028 = vmatpush3.bf16.msra.mxu1 %v6150_v55  ;;  %6995 = vmatprep.mubr.bf16.mxu0 %v12660_v41 }
 0x379   : > { %v6841_v14 = vpop.permute.xlu1 %6840 }
 0x37a   : > { %v6884_v49 = vsel %vm6880_vm3, %v6839_v9, %v6841_v14  ;;  %v6885_v24 = vsel %vm6880_vm3, %v6841_v14, %v6843_v52 }
 0x37b   : > { %9030 = vmatmul.mubr.msk.bf16.vlgmr.msra.gmra.mrb[92].mxu1 %vm904_vm2, %v12130_v26  ;;  %7004 = vmatprep.subr.bf16.mxu1 %v6884_v49 }
 0x37c   : > { %7005 = vmatpush1.bf16.msra.mxu1 %v6883_v6  ;;  %7036 = vmatprep.mubr.bf16.mxu1 %v12660_v41 }
 0x37d   : > { %v6865_v50 = vpop.permute.xlu1 %6864 }
 0x37e   : > { %v6895_v44 = vsel %vm6880_vm3, %v6863_v35, %v6865_v50 }
 0x37f   : > { %8902 = vmatmul.mubr.msk.bf16.gmra.mrb[124].mxu0 %vm904_vm2, %v12311_v0  ;;  %8903 = vmatprep.subr.msk.bf16.mxu1 %vm697_vm1, %v6895_v44 }
 0x380   : > { %7007 = vmatpush1.bf16.msra.mxu1 %v6927_v58  ;;  %7087 = vmatprep.mubr.bf16.mxu0 %v12660_v41 }
 0x383   : > { %8904 = vmatmul.mubr.msk.bf16.vlgmr.msra.gmra.mrb[4].mxu1 %vm904_vm2, %v12286_v23 }
 0x384   : > { %7046 = vmatprep.mubr.bf16.mxu1 %v12660_v41 }
 0x388   : > { %v4798_v26 = vpop.f32.mrb[96].mxu0 }
 0x389   : > { %v12325_v29 = vadd.f32 %v4798_v26, %v12169_v61  ;;  %v4800_v27 = vpop.f32.mrb[97].mxu0 }
 0x38a   : > { %v12328_v5 = vadd.f32 %v4800_v27, %v12175_v15  ;;  %v4802_v31 = vpop.f32.mrb[98].mxu0  ;;  %v6867_v15 = vpop.permute.xlu0 %6866 }
 0x38b   : > { %8905 = vmatmul.mubr.msk.bf16.gmra.mrb[96].mxu1 %vm904_vm2, %v12311_v0  ;;  %v4803_v13 = vpop.f32.mrb[99].mxu0  ;;  %v6896_v60 = vsel %vm6880_vm3, %v6865_v50, %v6867_v15 }
 0x38c   : > { %v4645_v56 = vpop.f32.mrb[60].mxu1  ;;  %7138 = vmatprep.mubr.bf16.mxu1 %v12660_v41 }
 0x38d   : > { %v12334_v19 = vadd.f32 %v4645_v56, %v12204_v16  ;;  %v4647_v2 = vpop.f32.mrb[61].mxu1 }
 0x38e   : > { %v12337_v12 = vadd.f32 %v4647_v2, %v12207_v30  ;;  %v4649_v61 = vpop.f32.mrb[62].mxu1  ;;  %v6933_v30 = vsel %vm697_vm1, %v6896_v60, 0 }
 0x38f   : > { %v4650_v11 = vpop.f32.mrb[63].mxu1 }
 0x399   : > { %v6845_v33 = vpop.permute.xlu1 %6844  ;;  %v6847_v16 = vpop.permute.xlu0 %6846 }
 0x39a   : > { %v6886_v45 = vsel %vm6880_vm3, %v6843_v52, %v6845_v33  ;;  %v6887_v48 = vsel %vm6880_vm3, %v6845_v33, %v6847_v16 }
 0x39b   : > { %7055 = vmatprep.subr.bf16.mxu0 %v6886_v45 }
 0x39c   : > { %7056 = vmatpush1.bf16.msra.mxu0 %v6885_v24  ;;  %v12701_v24 = vld [vmem:[#allocation2_spill] sm:$0xff] }
 0x39d   : > { %v6869_v38 = vpop.permute.xlu1 %6868  ;;  %v6871_v7 = vpop.permute.xlu0 %6870 }
 0x39e   : > { %v6897_v25 = vsel %vm6880_vm3, %v6867_v15, %v6869_v38  ;;  %v6898_v20 = vsel %vm6880_vm3, %v6869_v38, %v6871_v7 }
 0x39f   : > { %8906 = vmatprep.subr.msk.bf16.mxu0 %vm697_vm1, %v6897_v25  ;;  %v6939_v37 = vsel %vm697_vm1, %v6898_v20, 0 }
 0x3a0   : > { %7058 = vmatpush1.bf16.msra.mxu0 %v6933_v30 }
 0x3a3   : > { %8907 = vmatmul.mubr.msk.bf16.vlgmr.msra.gmra.mrb[16].mxu0 %vm904_vm2, %v12286_v23 }
 0x3a4   : > { %7097 = vmatprep.mubr.bf16.mxu0 %v12660_v41 }
 0x3a5   : > { %v6849_v51 = vpop.permute.xlu1 %6848  ;;  %v6851_v17 = vpop.permute.xlu0 %6850 }
 0x3a6   : > { %v6888_v63 = vsel %vm6880_vm3, %v6847_v16, %v6849_v51  ;;  %v6889_v49 = vsel %vm6880_vm3, %v6849_v51, %v6851_v17 }
 0x3a7   : > { %7106 = vmatprep.subr.bf16.mxu1 %v6888_v63 }
 0x3a8   : > { %7107 = vmatpush1.bf16.msra.mxu1 %v6887_v48 }
 0x3a9   : > { %v6873_v53 = vpop.permute.xlu1 %6872 }
 0x3aa   : > { %v6899_v34 = vsel %vm6880_vm3, %v6871_v7, %v6873_v53 }
 0x3ab   : > { %8909 = vmatprep.subr.msk.bf16.mxu1 %vm697_vm1, %v6899_v34  ;;  %v5395_v3 = vpop.f32.mrb[100].mxu0  ;;  %8908 = vmatmul.mubr.msk.bf16.gmra.mrb[128].mxu0 %vm904_vm2, %v12311_v0 }
 0x3ac   : > { %7109 = vmatpush1.bf16.msra.mxu1 %v6939_v37  ;;  %v12357_v1 = vadd.f32 %v5395_v3, %v12252_v62  ;;  %v5397_v32 = vpop.f32.mrb[101].mxu0  ;;  %7189 = vmatprep.mubr.bf16.mxu0 %v12660_v41  ;;  %v6875_v62 = vpop.permute.xlu0 %6874 }
 0x3ad   : > { %v12361_v4 = vadd.f32 %v5397_v32, %v12255_v43  ;;  %v5399_v59 = vpop.f32.mrb[102].mxu0 }
 0x3ae   : > { %v5400_v39 = vpop.f32.mrb[103].mxu0 }
 0x3af   : > { %v4747_v9 = vpop.f32.mrb[64].mxu1  ;;  %8910 = vmatmul.mubr.msk.bf16.vlgmr.msra.gmra.mrb[12].mxu1 %vm904_vm2, %v12286_v23 }
 0x3b0   : > { %v12366_v40 = vadd.f32 %v4747_v9, %v12261_v54  ;;  %v4749_v42 = vpop.f32.mrb[65].mxu1  ;;  %7148 = vmatprep.mubr.bf16.mxu1 %v12660_v41  ;;  %v6900_v54 = vsel %vm6880_vm3, %v6873_v53, %v6875_v62 }
 0x3b1   : > { %v12370_v46 = vadd.f32 %v4749_v42, %v12264_v57  ;;  %v4751_v18 = vpop.f32.mrb[66].mxu1  ;;  %v6945_v21 = vsel %vm697_vm1, %v6900_v54, 0 }
 0x3b2   : > { %v4752_v55 = vpop.f32.mrb[67].mxu1 }
 0x3b5   : > { %v6853_v43 = vpop.permute.xlu1 %6852  ;;  %v6855_v22 = vpop.permute.xlu0 %6854 }
 0x3b6   : > { %v6890_v6 = vsel %vm6880_vm3, %v6851_v17, %v6853_v43  ;;  %v6891_v14 = vsel %vm6880_vm3, %v6853_v43, %v6855_v22 }
 0x3b7   : > { %8911 = vmatmul.mubr.msk.bf16.gmra.mrb[100].mxu1 %vm904_vm2, %v12311_v0  ;;  %7157 = vmatprep.subr.bf16.mxu0 %v6890_v6 }
 0x3b8   : > { %9033 = vmatprep.subr.bf16.mxu1 %v6891_v14  ;;  %7158 = vmatpush1.bf16.msra.mxu0 %v6889_v49 }
 0x3b9   : > { %9034 = vmatpush3.bf16.msra.mxu1 %v6891_v14  ;;  %v6877_v57 = vpop.permute.xlu1 %6876  ;;  %9037 = vmatprep.mubr.msk.bf16.mxu1 %vm904_vm2, %v12286_v23 }
 0x3ba   : > { %v6901_v35 = vsel %vm6880_vm3, %v6875_v62, %v6877_v57 }
 0x3bb   : > { %8912 = vmatprep.subr.msk.bf16.mxu0 %vm697_vm1, %v6901_v35 }
 0x3bc   : > { %7160 = vmatpush1.bf16.msra.mxu0 %v6945_v21 }
 0x3bd   : > { %v6879_v50 = vpop.permute.xlu1 %6878 }
 0x3be   : > { %v6902_v44 = vsel %vm6880_vm3, %v6877_v57, %v6879_v50 }
 0x3bf   : > { %v6951_v58 = vsel %vm697_vm1, %v6902_v44, 0  ;;  %v9015_v26 = vpop.f32.mrb[68].mxu1  ;;  %8913 = vmatmul.mubr.msk.bf16.vlgmr.msra.gmra.mrb[32].mxu0 %vm904_vm2, %v12286_v23  ;;  %9296 = vmatprep.subr.msk.bf16.mxu1 %vm697_vm1, %v6902_v44  ;;  %vm9418_vm1 = vmmov 0  }
 0x3c0   : > { %v4885_v27 = vadd.f32 %v9015_v26, %v12274_v28  ;;  %v4839_v31 = vpop.f32.mrb[69].mxu1  ;;  %9036 = vmatpush3.bf16.msra.mxu1 %v6951_v58  ;;  %7199 = vmatprep.mubr.bf16.mxu0 %v12660_v41  ;;  %v9416_v41 = vmov 1983009808  }
 0x3c1   : > { %v4863_v56 = vadd.f32 %v4839_v31, %v12279_v10  ;;  %v9016_v13 = vpop.f32.mrb[70].mxu1  ;;  %v7404_v10 = vunpack.c.l.s4 %v9416_v41 }
 0x3c2   : > { %v4842_v2 = vpop.f32.mrb[71].mxu1 }
 0x3c3   : > { %v4874_v61 = vadd.f32 %v4842_v2, %v12289_v8  ;;  %v5497_v11 = vpop.f32.mrb[104].mxu0  ;;  %9038 = vmatmul.mubr.msk.bf16.vlgmr.msra.gmra.mrb[104].mxu1 %vm904_vm2, %v12311_v0  ;;  %v7405_v45 = vunpack.c.0.s8 %v7404_v10  ;;  %v7396_v8 = vld [vmem:[%s12636_s4] sm:$0xff] }
 0x3c4   : > { %v5680_v23 = vadd.f32 %v5497_v11, %v12292_v36  ;;  %v5499_v52 = vpop.f32.mrb[105].mxu0  ;;  %v7402_v51 = vcombine.high %v7396_v8, %v7396_v8 }
 0x3c5   : > { %v5681_v15 = vadd.f32 %v5499_v52, %v12297_v47  ;;  %v5501_v28 = vpop.f32.mrb[106].mxu0  ;;  %v12399_v60 = vsub.s32 %v7405_v45, %v12701_v24 }
 0x3c6   : > { %v5502_v33 = vpop.f32.mrb[107].mxu0  ;;  %v12434_v45 = vpop.permute.xlu0 %7294 }
 0x3c7   : > { %8914 = vmatmul.mubr.msk.bf16.gmra.mrb[132].mxu0 %vm904_vm2, %v12311_v0  ;;  %v7409_v36 = vrot.slane %v7396_v8, %v12399_v60  ;;  %v12408_v63 = vrot.slane %v7402_v51, %v12399_v60  ;;  %vm8367_vm2 = vcmask 31744  }
 0x3c9   : > { %v7417_v25 = vcombine.high %v7409_v36, %v7409_v36  ;;  %v7418_v48 = vcombine.high %v12408_v63, %v12408_v63 }
 0x3cb   : > { %7463 = vmatprep.subr.bf16.mxu1 %v7417_v25  ;;  %v7397_v25 = vld [vmem:[%s12636_s4 + $0x8] sm:$0xff] }
 0x3cc   : > { %7464 = vmatpush1.bf16.xpose.msra.mxu1 %v7409_v36 }
 0x3cd   : > { %7503 = vmatprep.subr.bf16.mxu1 %v7418_v48 }
 0x3ce   : > { %v12436_v8 = vpop.permute.xlu1 %7299 }
 0x3cf   : > { %v5446_v38 = vpop.f32.mrb[72].mxu1 }
 0x3d0   : > { %v5678_v47 = vadd.f32 %v5446_v38, %v12334_v19  ;;  %v5448_v16 = vpop.f32.mrb[73].mxu1 }
 0x3d1   : > { %v5679_v30 = vadd.f32 %v5448_v16, %v12337_v12  ;;  %v5450_v0 = vpop.f32.mrb[74].mxu1 }
 0x3d2   : > { %v5451_v7 = vpop.f32.mrb[75].mxu1 }
 0x3eb   : > { %v5599_v20 = vpop.f32.mrb[108].mxu0 }
 0x3ec   : > { %v5684_v53 = vadd.f32 %v5599_v20, %v12325_v29  ;;  %v5601_v19 = vpop.f32.mrb[109].mxu0 }
 0x3ed   : > { %v5685_v34 = vadd.f32 %v5601_v19, %v12328_v5  ;;  %v5603_v37 = vpop.f32.mrb[110].mxu0 }
 0x3ee   : > { %v5604_v12 = vpop.f32.mrb[111].mxu0 }
 0x3f3   : > { %v5548_v17 = vpop.f32.mrb[76].mxu1 }
 0x3f4   : > { %v5682_v3 = vadd.f32 %v5548_v17, %v12366_v40  ;;  %v5550_v32 = vpop.f32.mrb[77].mxu1 }
 0x3f5   : > { %v5683_v59 = vadd.f32 %v5550_v32, %v12370_v46  ;;  %v5552_v9 = vpop.f32.mrb[78].mxu1 }
 0x3f6   : > { %v5553_v39 = vpop.f32.mrb[79].mxu1 }
 0x3ff   : > { %v9023_v42 = vpop.f32.mrb[80].mxu1  ;;  %v6196_v62 = vpop.f32.mrb[112].mxu0 }
 0x400   : > { %v5686_v18 = vadd.f32 %v9023_v42, %v4885_v27  ;;  %v6477_v55 = vadd.f32 %v6196_v62, %v12357_v1  ;;  %v5640_v43 = vpop.f32.mrb[81].mxu1  ;;  %v6198_v29 = vpop.f32.mrb[113].mxu0 }
 0x401   : > { %v5664_v22 = vadd.f32 %v5640_v43, %v4863_v56  ;;  %v6478_v5 = vadd.f32 %v6198_v29, %v12361_v4  ;;  %v9024_v6 = vpop.f32.mrb[82].mxu1  ;;  %v6200_v14 = vpop.f32.mrb[114].mxu0 }
 0x402   : > { %v5643_v49 = vpop.f32.mrb[83].mxu1  ;;  %v6201_v54 = vpop.f32.mrb[115].mxu0 }
 0x403   : > { %v5675_v40 = vadd.f32 %v5643_v49, %v4874_v61  ;;  %v12702_v49 = vld [vmem:[#allocation6_spill] sm:$0xff] }
 0x417   : > { %v6247_v57 = vpop.f32.mrb[84].mxu1  ;;  %v6298_v35 = vpop.f32.mrb[116].mxu0 }
 0x418   : > { %v12418_v46 = vadd.f32 %v6247_v57, %v5678_v47  ;;  %v12420_v21 = vadd.f32 %v6298_v35, %v5680_v23  ;;  %v6249_v50 = vpop.f32.mrb[85].mxu1  ;;  %v6300_v44 = vpop.f32.mrb[117].mxu0  ;;  %v12703_v57 = vld [vmem:[#allocation7_spill] sm:$0xff] }
 0x419   : > { %v12422_v58 = vadd.f32 %v6249_v50, %v5679_v30  ;;  %v12424_v1 = vadd.f32 %v6300_v44, %v5681_v15  ;;  %v6302_v26 = vpop.f32.mrb[118].mxu0  ;;  %v6251_v27 = vpop.f32.mrb[86].mxu1 }
 0x41a   : > { %v6303_v4 = vpop.f32.mrb[119].mxu0  ;;  %v6252_v31 = vpop.f32.mrb[87].mxu1  ;;  %v7419_v27 = vcombine.high %v7397_v25, %v7397_v25 }
 0x41b   : > { %v12705_v31 = vld [vmem:[#allocation4_spill] sm:$0xff] }
 0x436   : > { %v6400_v56 = vpop.f32.mrb[120].mxu0 }
 0x437   : > { %v12426_v13 = vadd.f32 %v6400_v56, %v5684_v53  ;;  %v6402_v2 = vpop.f32.mrb[121].mxu0 }
 0x438   : > { %v12428_v61 = vadd.f32 %v6402_v2, %v5685_v34  ;;  %v6404_v11 = vpop.f32.mrb[122].mxu0  ;;  %v7426_v34 = vrot.slane %v7397_v25, %v12399_v60 }
 0x439   : > { %v6405_v52 = vpop.f32.mrb[123].mxu0 }
 0x43a   : > { %v6349_v23 = vpop.f32.mrb[88].mxu1  ;;  %v7434_v43 = vcombine.high %v7426_v34, %v7426_v34 }
 0x43b   : > { %v12430_v28 = vadd.f32 %v6349_v23, %v5682_v3  ;;  %v6351_v33 = vpop.f32.mrb[89].mxu1  ;;  %v7433_v23 = vrot.slane %v7419_v27, %v12399_v60 }
 0x43c   : > { %v12432_v41 = vadd.f32 %v6351_v33, %v5683_v59  ;;  %v6353_v15 = vpop.f32.mrb[90].mxu1 }
 0x43d   : > { %v6354_v10 = vpop.f32.mrb[91].mxu1 }
 0x44a   : > { %v6987_v24 = vpop.f32.mrb[0].mxu0 }
 0x44b   : > { %v7307_v36 = vadd.f32 %v12434_v45, %v6987_v24  ;;  %v6989_v38 = vpop.f32.mrb[1].mxu0 }
 0x44c   : > { %v7308_v47 = vadd.f32 %v12434_v45, %v6989_v38  ;;  %v6991_v16 = vpop.f32.mrb[2].mxu0 }
 0x44d   : > { %v7318_v30 = vadd.f32 %v12436_v8, %v6991_v16  ;;  %v6993_v0 = vpop.f32.mrb[3].mxu0  ;;  %v7340_v48 = vmax.f32 %v7307_v36, 0.0 }
 0x44e   : > { %v7319_v7 = vadd.f32 %v12436_v8, %v6993_v0  ;;  %v9031_v51 = vpop.f32.mrb[92].mxu1  ;;  %v7341_v37 = vmax.f32 %v7308_v47, 0.0  ;;  %v7435_v0 = vcombine.high %v7433_v23, %v7433_v23 }
 0x44f   : > { %v7351_v20 = vmax.f32 %v7318_v30, 0.0  ;;  %v12445_v53 = vadd.f32 %v9031_v51, %v5686_v18  ;;  %v6441_v19 = vpop.f32.mrb[93].mxu1 }
 0x450   : > { %v7352_v12 = vmax.f32 %v7319_v7, 0.0  ;;  %v12448_v17 = vadd.f32 %v6441_v19, %v5664_v22  ;;  %v9032_v3 = vpop.f32.mrb[94].mxu1 }
 0x451   : > { %v12450_v32 = vpack.c.bf16 %v7351_v20, %v7340_v48  ;;  %v6444_v59 = vpop.f32.mrb[95].mxu1 }
 0x452   : > { %v12452_v9 = vpack.c.bf16 %v7352_v12, %v7341_v37  ;;  %v12454_v39 = vadd.f32 %v6444_v59, %v5675_v40  ;;  %v6997_v42 = vpop.f32.mrb[124].mxu0 }
 0x453   : > { %v12456_v62 = vadd.f32 %v6997_v42, %v6477_v55  ;;  %v6999_v18 = vpop.f32.mrb[125].mxu0 }
 0x454   : > { %v12458_v29 = vadd.f32 %v6999_v18, %v6478_v5  ;;  %7495 = vmatprep.mubr.bf16.mxu1 %v12452_v9  ;;  %v7001_v6 = vpop.f32.mrb[126].mxu0  ;;  %v12704_v5 = vld [vmem:[#allocation3_spill] sm:$0xff] }
 0x455   : > { %7496 = vmatmul.mubr.bf16.vlgmr.msra.gmra.mrb[108].mxu1 %v12450_v32  ;;  %v7002_v22 = vpop.f32.mrb[127].mxu0 }
 0x456   : > { %v7038_v14 = vpop.f32.mrb[4].mxu1  ;;  %7504 = vmatpush1.bf16.xpose.msra.mxu1 %v12408_v63 }
 0x457   : > { %v9059_v54 = vadd.f32 %v7038_v14, %v12702_v49  ;;  %v7040_v40 = vpop.f32.mrb[5].mxu1  ;;  %7543 = vmatprep.subr.bf16.mxu1 %v7434_v43 }
 0x458   : > { %v9060_v55 = vadd.f32 %v7040_v40, %v12703_v57  ;;  %v7042_v35 = vpop.f32.mrb[6].mxu1 }
 0x459   : > { %v7309_v50 = vadd.f32 %v9059_v54, %v12434_v45  ;;  %v9061_v44 = vadd.f32 %v7042_v35, %v12704_v5  ;;  %v7044_v26 = vpop.f32.mrb[7].mxu1 }
 0x45a   : > { %v7310_v4 = vadd.f32 %v9060_v55, %v12434_v45  ;;  %v9062_v56 = vadd.f32 %v7044_v26, %v12705_v31  ;;  %v12707_v26 = vld [vmem:[#allocation8_spill] sm:$0xff]  ;;  %v12708_v31 = vld [vmem:[#allocation9_spill] sm:$0xff] }
 0x45b   : > { %v7320_v2 = vadd.f32 %v9061_v44, %v12436_v8  ;;  %v7342_v11 = vmax.f32 %v7309_v50, 0.0  ;;  %v12706_v50 = vld [vmem:[#allocation5_spill] sm:$0xff] }
 0x45c   : > { %v7321_v63 = vadd.f32 %v9062_v56, %v12436_v8  ;;  %v7343_v33 = vmax.f32 %v7310_v4, 0.0 }
 0x45d   : > { %v7353_v52 = vmax.f32 %v7320_v2, 0.0 }
 0x45e   : > { %v7354_v15 = vmax.f32 %v7321_v63, 0.0  ;;  %v7048_v10 = vpop.f32.mrb[96].mxu1  ;;  %v12709_v63 = vld [vmem:[#allocation10_spill] sm:$0xff] }
 0x45f   : > { %v12472_v24 = vpack.c.bf16 %v7353_v52, %v7342_v11  ;;  %v12475_v36 = vadd.f32 %v7048_v10, %v12418_v46  ;;  %v7050_v38 = vpop.f32.mrb[97].mxu1 }
 0x460   : > { %v12478_v47 = vadd.f32 %v7050_v38, %v12422_v58  ;;  %v12480_v16 = vpack.c.bf16 %v7354_v15, %v7343_v33  ;;  %v7052_v25 = vpop.f32.mrb[98].mxu1  ;;  %v12489_v58 = vld [vmem:[%s12636_s4 + $0x10] sm:$0x3f] }
 0x461   : > { %v7053_v30 = vpop.f32.mrb[99].mxu1  ;;  %v7443_v59 = vrot.slane %v12489_v58, %v12399_v60 }
 0x462   : > { %7535 = vmatprep.mubr.bf16.mxu1 %v12480_v16 }
 0x463   : > { %7536 = vmatmul.mubr.bf16.vlgmr.msra.gmra.mrb[108].mxu1 %v12472_v24  ;;  %v7451_v54 = vcombine.high %v7443_v59, %v7443_v59 }
 0x464   : > { %7544 = vmatpush1.bf16.xpose.msra.mxu1 %v7426_v34 }
 0x465   : > { %7583 = vmatprep.subr.bf16.mxu1 %v7435_v0 }
 0x476   : > { %v7089_v7 = vpop.f32.mrb[16].mxu0 }
 0x477   : > { %v7311_v51 = vadd.f32 %v12434_v45, %v7089_v7  ;;  %v7091_v46 = vpop.f32.mrb[17].mxu0 }
 0x478   : > { %v7312_v48 = vadd.f32 %v12434_v45, %v7091_v46  ;;  %v7093_v20 = vpop.f32.mrb[18].mxu0 }
 0x479   : > { %v7322_v19 = vadd.f32 %v12436_v8, %v7093_v20  ;;  %v7095_v37 = vpop.f32.mrb[19].mxu0  ;;  %v7344_v3 = vmax.f32 %v7311_v51, 0.0 }
 0x47a   : > { %v7323_v12 = vadd.f32 %v12436_v8, %v7095_v37  ;;  %v7345_v42 = vmax.f32 %v7312_v48, 0.0 }
 0x47b   : > { %v7355_v34 = vmax.f32 %v7322_v19, 0.0  ;;  %v9417_v19 = vmov 0.0  }
 0x47c   : > { %v7356_v18 = vmax.f32 %v7323_v12, 0.0 }
 0x47d   : > { %v12495_v43 = vpack.c.bf16 %v7355_v34, %v7344_v3  ;;  %v8918_v34 = vld [vmem:[%s12636_s4 + $0x16] sm:$0xff] }
 0x47e   : > { %v12497_v6 = vpack.c.bf16 %v7356_v18, %v7345_v42  ;;  %v7099_v22 = vpop.f32.mrb[128].mxu0 }
 0x47f   : > { %v12500_v14 = vadd.f32 %v7099_v22, %v12420_v21  ;;  %v7101_v49 = vpop.f32.mrb[129].mxu0 }
 0x480   : > { %v12503_v40 = vadd.f32 %v7101_v49, %v12424_v1  ;;  %7575 = vmatprep.mubr.bf16.mxu1 %v12497_v6  ;;  %v7103_v57 = vpop.f32.mrb[130].mxu0 }
 0x481   : > { %7576 = vmatmul.mubr.bf16.vlgmr.msra.gmra.mrb[108].mxu1 %v12495_v43  ;;  %v7104_v35 = vpop.f32.mrb[131].mxu0 }
 0x482   : > { %v7140_v55 = vpop.f32.mrb[12].mxu1  ;;  %7584 = vmatpush1.bf16.xpose.msra.mxu1 %v7433_v23 }
 0x483   : > { %v9063_v5 = vadd.f32 %v7140_v55, %v12706_v50  ;;  %v7142_v44 = vpop.f32.mrb[13].mxu1  ;;  %7623 = vmatprep.subr.bf16.mxu1 %v7451_v54  ;;  %v7757_v50 = vrot.slane %v8918_v34, %v12399_v60 }
 0x484   : > { %v9064_v27 = vadd.f32 %v7142_v44, %v12707_v26  ;;  %v7144_v21 = vpop.f32.mrb[14].mxu1 }
 0x485   : > { %v7313_v4 = vadd.f32 %v9063_v5, %v12434_v45  ;;  %v9065_v1 = vadd.f32 %v7144_v21, %v12708_v31  ;;  %v7146_v56 = vpop.f32.mrb[15].mxu1 }
 0x486   : > { %v7314_v2 = vadd.f32 %v9064_v27, %v12434_v45  ;;  %v9066_v11 = vadd.f32 %v7146_v56, %v12709_v63 }
 0x487   : > { %v7324_v52 = vadd.f32 %v9065_v1, %v12436_v8  ;;  %v7346_v15 = vmax.f32 %v7313_v4, 0.0 }
 0x488   : > { %v7325_v33 = vadd.f32 %v9066_v11, %v12436_v8  ;;  %v7347_v23 = vmax.f32 %v7314_v2, 0.0  ;;  %v7765_v11 = vcombine.high %v7757_v50, %v7757_v50 }
 0x489   : > { %v7357_v10 = vmax.f32 %v7324_v52, 0.0 }
 0x48a   : > { %v7358_v38 = vmax.f32 %v7325_v33, 0.0  ;;  %v7150_v25 = vpop.f32.mrb[100].mxu1 }
 0x48b   : > { %v12515_v30 = vpack.c.bf16 %v7357_v10, %v7346_v15  ;;  %v12518_v0 = vadd.f32 %v7150_v25, %v12430_v28  ;;  %v7152_v7 = vpop.f32.mrb[101].mxu1 }
 0x48c   : > { %v12521_v51 = vadd.f32 %v7152_v7, %v12432_v41  ;;  %v12523_v46 = vpack.c.bf16 %v7358_v38, %v7347_v23  ;;  %v7154_v48 = vpop.f32.mrb[102].mxu1  ;;  %v8919_v38 = vld [vmem:[%s12636_s4 + $0x1e] sm:$0xff]  ;;  %v7725_v7 = vrot.slane %v12450_v32, 4  ;;  %v8920_v32 = vld [vmem:[%s12636_s4 + $0x26] sm:$0x3f] }
 0x48d   : > { %v7155_v20 = vpop.f32.mrb[103].mxu1  ;;  %v7774_v25 = vrot.slane %v8919_v38, %v12399_v60 }
 0x48e   : > { %7615 = vmatprep.mubr.bf16.mxu1 %v12523_v46  ;;  %v7728_v20 = vrot.slane %v12480_v16, 4  ;;  %v7791_v16 = vrot.slane %v8920_v32, %v12399_v60 }
 0x48f   : > { %7616 = vmatmul.mubr.bf16.vlgmr.msra.gmra.mrb[108].mxu1 %v12515_v30  ;;  %v7782_v48 = vcombine.high %v7774_v25, %v7774_v25 }
 0x490   : > { %7624 = vmatpush1.bf16.xpose.msra.mxu1 %v7443_v59  ;;  %v7436_v59 = vcombine.high %v12489_v58, %v12489_v58 }
 0x491   : > { %9041 = vmatprep.subr.bf16.mxu1 %v9417_v19 }
 0x492   : > { %v7191_v37 = vpop.f32.mrb[32].mxu0 }
 0x493   : > { %v7315_v28 = vadd.f32 %v12434_v45, %v7191_v37  ;;  %v7193_v12 = vpop.f32.mrb[33].mxu0 }
 0x494   : > { %v7316_v3 = vadd.f32 %v12434_v45, %v7193_v12  ;;  %v7195_v41 = vpop.f32.mrb[34].mxu0 }
 0x495   : > { %v7326_v42 = vadd.f32 %v12436_v8, %v7195_v41  ;;  %v7197_v18 = vpop.f32.mrb[35].mxu0  ;;  %v7348_v54 = vmax.f32 %v7315_v28, 0.0  ;;  %v7727_v28 = vrot.slane %v12472_v24, 4  ;;  %v7729_v41 = vrot.slane %v12495_v43, 4 }
 0x496   : > { %v7327_v22 = vadd.f32 %v12436_v8, %v7197_v18  ;;  %v9039_v49 = vpop.f32.mrb[104].mxu1  ;;  %v7349_v5 = vmax.f32 %v7316_v3, 0.0  ;;  %v7730_v3 = vrot.slane %v12497_v6, 4  ;;  %v7731_v24 = vrot.slane %v12515_v30, 4  ;;  %v8921_v18 = vld [vmem:[%s12636_s4 + $0x2c] sm:$0xff] }
 0x497   : > { %v7359_v57 = vmax.f32 %v7326_v42, 0.0  ;;  %v12538_v55 = vadd.f32 %v9039_v49, %v12445_v53  ;;  %v7242_v35 = vpop.f32.mrb[105].mxu1  ;;  %v7450_v53 = vrot.slane %v7436_v59, %v12399_v60  ;;  %v7732_v42 = vrot.slane %v12523_v46, 4 }
 0x498   : > { %v7360_v44 = vmax.f32 %v7327_v22, 0.0  ;;  %v7266_v26 = vadd.f32 %v7242_v35, %v12448_v17  ;;  %v9040_v27 = vpop.f32.mrb[106].mxu1  ;;  %v7784_v43 = vcombine.high %v8920_v32, %v8920_v32  ;;  %v8066_v22 = vrot.slane %v8921_v18, %v12399_v60 }
 0x499   : > { %v12542_v21 = vpack.c.bf16 %v7359_v57, %v7348_v54  ;;  %v7245_v4 = vpop.f32.mrb[107].mxu1  ;;  %v12582_v54 = vpop.permute.xlu1 %7304  ;;  %v8059_v30 = vcombine.high %v8921_v18, %v8921_v18 }
 0x49a   : > { %v7382_v31 = vpack.c.bf16 %v7360_v44, %v7349_v5  ;;  %v7317_v58 = vadd.f32 %v12434_v45, %v7266_v26  ;;  %v7277_v1 = vadd.f32 %v7245_v4, %v12454_v39  ;;  %v7201_v56 = vpop.f32.mrb[132].mxu0  ;;  %v7798_v46 = vrot.slane %v7784_v43, %v12399_v60 }
 0x49b   : > { %v12548_v2 = vadd.f32 %v7201_v56, %v12426_v13  ;;  %v7203_v63 = vpop.f32.mrb[133].mxu0  ;;  %v7750_v13 = vcombine.high %v8918_v34, %v8918_v34  ;;  %v7799_v34 = vcombine.high %v7791_v16, %v7791_v16  ;;  %v7733_v59 = vrot.slane %v12542_v21, 4 }
 0x49c   : > { %v7328_v52 = vadd.f32 %v12436_v8, %v7277_v1  ;;  %v12552_v17 = vadd.f32 %v7203_v63, %v12428_v61  ;;  %7655 = vmatprep.mubr.bf16.mxu1 %v7382_v31  ;;  %v7205_v33 = vpop.f32.mrb[134].mxu0  ;;  %v7350_v15 = vmax.f32 %v7317_v58, 0.0  ;;  %v7726_v61 = vrot.slane %v12452_v9, 4 }
 0x49d   : > { %7656 = vmatmul.mubr.bf16.vlgmr.msra.gmra.mrb[108].mxu1 %v12542_v21  ;;  %v7206_v45 = vpop.f32.mrb[135].mxu0  ;;  %v7764_v8 = vrot.slane %v7750_v13, %v12399_v60  ;;  %v7767_v9 = vcombine.high %v8919_v38, %v8919_v38  ;;  %v7734_v6 = vrot.slane %v7382_v31, 4  ;;  %v8074_v49 = vcombine.high %v8066_v22, %v8066_v22 }
 0x49e   : > { %v7361_v39 = vmax.f32 %v7328_v52, 0.0  ;;  %9042 = vmatpush3.bf16.xpose.msra.mxu1 %v7450_v53  ;;  %9043 = vmatprep.mubr.msk.bf16.mxu1 %vm9418_vm1, %v9417_v19  ;;  %v7330_v57 = vadd.f32 %v12582_v54, %v12458_v29  ;;  %v8073_v35 = vrot.slane %v8059_v30, %v12399_v60  ;;  %v7329_v27 = vadd.f32 %v12582_v54, %v12456_v62  ;;  %v8922_v29 = vld [vmem:[%s12636_s4 + $0x34] sm:$0xff] }
 0x49f   : > { %7811 = vmatprep.subr.bf16.mxu1 %v7765_v11  ;;  %v7766_v23 = vcombine.high %v7764_v8, %v7764_v8  ;;  %v7781_v37 = vrot.slane %v7767_v9, %v12399_v60  ;;  %v7332_v21 = vadd.f32 %v12582_v54, %v12478_v47  ;;  %v8083_v31 = vrot.slane %v8922_v29, %v12399_v60 }
 0x4a0   : > { %v7383_v10 = vpack.c.bf16 %v7361_v39, %v7350_v15  ;;  %v8075_v44 = vcombine.high %v8073_v35, %v8073_v35  ;;  %v7362_v4 = vmax.f32 %v7329_v27, 0.0  ;;  %v7331_v62 = vadd.f32 %v12582_v54, %v12475_v36 }
 0x4a1   : > { %v7783_v12 = vcombine.high %v7781_v37, %v7781_v37  ;;  %v7365_v58 = vmax.f32 %v7332_v21, 0.0  ;;  %v8091_v56 = vcombine.high %v8083_v31, %v8083_v31  ;;  %v8076_v63 = vcombine.high %v8922_v29, %v8922_v29 }
 0x4a2   : > { %v7735_v5 = vrot.slane %v7383_v10, 4  ;;  %v7384_v1 = vpack.c.bf16 %v7362_v4, %v7362_v4  ;;  %v7334_v47 = vadd.f32 %v12582_v54, %v12503_v40  ;;  %v7364_v11 = vmax.f32 %v7331_v62, 0.0  ;;  %v8923_v40 = vld [vmem:[%s12636_s4 + $0x3c] sm:$0x3f] }
 0x4a3   : > { %v7387_v53 = vpack.c.bf16 %v7365_v58, %v7365_v58  ;;  %v8090_v52 = vrot.slane %v8076_v63, %v12399_v60  ;;  %v7333_v13 = vadd.f32 %v12582_v54, %v12500_v14  ;;  %v7336_v36 = vadd.f32 %v12582_v54, %v12521_v51 }
 0x4a4   : > { %v7367_v33 = vmax.f32 %v7334_v47, 0.0  ;;  %v7386_v45 = vpack.c.bf16 %v7364_v11, %v7364_v11  ;;  %v7335_v14 = vadd.f32 %v12582_v54, %v12518_v0  ;;  %v7338_v51 = vadd.f32 %v12582_v54, %v12552_v17 }
 0x4a5   : > { %v8092_v15 = vcombine.high %v8090_v52, %v8090_v52  ;;  %v7339_v17 = vadd.f32 %v12582_v54, %v12538_v55 }
 0x4a6   : > { %v7389_v39 = vpack.c.bf16 %v7367_v33, %v7367_v33 }
 0x4a7   : > { %v7372_v32 = vmax.f32 %v7339_v17, 0.0 }
 0x4a9   : > { %9044 = vmatmul.mubr.bf16.vlgmr.msra.gmra.mrb[108].mxu1 %v7383_v10  ;;  %v7366_v10 = vmax.f32 %v7333_v13, 0.0 }
 0x4aa   : > { %7843 = vmatprep.mubr.bf16.mxu1 %v7726_v61  ;;  %7812 = vmatpush1.bf16.xpose.msra.mxu1 %v7757_v50  ;;  %v7363_v50 = vmax.f32 %v7330_v57, 0.0 }
 0x4ab   : > { %7851 = vmatprep.subr.bf16.mxu1 %v7766_v23  ;;  %v7369_v23 = vmax.f32 %v7336_v36, 0.0  ;;  %v7388_v61 = vpack.c.bf16 %v7366_v10, %v7366_v10 }
 0x4ac   : > { %v7385_v26 = vpack.c.bf16 %v7363_v50, %v7363_v50 }
 0x4b5   : > { %7844 = vmatmul.mubr.bf16.vlgmr.msra.gmra.mrb[108].mxu1 %v7725_v7  ;;  %v7368_v7 = vmax.f32 %v7335_v14, 0.0 }
 0x4b6   : > { %7883 = vmatprep.mubr.bf16.mxu1 %v7728_v20  ;;  %7852 = vmatpush1.bf16.xpose.msra.mxu1 %v7764_v8  ;;  %v8100_v8 = vrot.slane %v8923_v40, %v12399_v60 }
 0x4b7   : > { %7891 = vmatprep.subr.bf16.mxu1 %v7782_v48  ;;  %v7371_v48 = vmax.f32 %v7338_v51, 0.0  ;;  %v7390_v20 = vpack.c.bf16 %v7368_v7, %v7368_v7 }
 0x4b8   : > { %v8108_v38 = vcombine.high %v8100_v8, %v8100_v8 }
 0x4b9   : > { %v7393_v9 = vpack.c.bf16 %v7371_v48, %v7371_v48 }
 0x4c1   : > { %7884 = vmatmul.mubr.bf16.vlgmr.msra.gmra.mrb[108].mxu1 %v7727_v28  ;;  %v8093_v28 = vcombine.high %v8923_v40, %v8923_v40 }
 0x4c2   : > { %7923 = vmatprep.mubr.bf16.mxu1 %v7730_v3  ;;  %7892 = vmatpush1.bf16.xpose.msra.mxu1 %v7774_v25  ;;  %v7391_v25 = vpack.c.bf16 %v7369_v23, %v7369_v23 }
 0x4c3   : > { %7931 = vmatprep.subr.bf16.mxu1 %v7783_v12  ;;  %v8107_v0 = vrot.slane %v8093_v28, %v12399_v60 }
 0x4cd   : > { %7924 = vmatmul.mubr.bf16.vlgmr.msra.gmra.mrb[108].mxu1 %v7729_v41 }
 0x4ce   : > { %7963 = vmatprep.mubr.bf16.mxu1 %v7732_v42  ;;  %7932 = vmatpush1.bf16.xpose.msra.mxu1 %v7781_v37  ;;  %v7337_v37 = vadd.f32 %v12582_v54, %v12548_v2  ;;  %v8917_v2 = vld [vmem:[%s12637_s5] ss:$0 sm:$0xff] }
 0x4cf   : > { %7971 = vmatprep.subr.bf16.mxu1 %v7799_v34 }
 0x4d0   : > { %v7370_v12 = vmax.f32 %v7337_v37, 0.0 }
 0x4d2   : > { %v7392_v3 = vpack.c.bf16 %v7370_v12, %v7370_v12 }
 0x4d9   : > { %7964 = vmatmul.mubr.bf16.vlgmr.msra.gmra.mrb[108].mxu1 %v7731_v24 }
 0x4da   : > { %8003 = vmatprep.mubr.bf16.mxu1 %v7734_v6  ;;  %7972 = vmatpush1.bf16.xpose.msra.mxu1 %v7791_v16  ;;  %v7394_v16 = vpack.c.bf16 %v7372_v32, %v7372_v32 }
 0x4db   : > { %9047 = vmatprep.subr.bf16.mxu1 %v9417_v19 }
 0x4e5   : > { %8004 = vmatmul.mubr.bf16.vlgmr.msra.gmra.mrb[108].mxu1 %v7733_v59 }
 0x4e6   : > { %9048 = vmatpush3.bf16.xpose.msra.mxu1 %v7798_v46  ;;  %9049 = vmatprep.mubr.msk.bf16.mxu1 %vm9418_vm1, %v9417_v19 }
 0x4e7   : > { %8120 = vmatprep.subr.bf16.mxu1 %v8074_v49 }
 0x4f1   : > { %9050 = vmatmul.mubr.bf16.vlgmr.msra.gmra.mrb[108].mxu1 %v7735_v5 }
 0x4f2   : > { %8152 = vmatprep.mubr.bf16.mxu1 %v7385_v26  ;;  %8121 = vmatpush1.bf16.xpose.msra.mxu1 %v8066_v22 }
 0x4f3   : > { %8160 = vmatprep.subr.bf16.mxu1 %v8075_v44 }
 0x4fd   : > { %8153 = vmatmul.mubr.bf16.vlgmr.msra.gmra.mrb[108].mxu1 %v7384_v1 }
 0x4fe   : > { %8192 = vmatprep.mubr.bf16.mxu1 %v7387_v53  ;;  %8161 = vmatpush1.bf16.xpose.msra.mxu1 %v8073_v35 }
 0x4ff   : > { %8200 = vmatprep.subr.bf16.mxu1 %v8091_v56 }
 0x509   : > { %8193 = vmatmul.mubr.bf16.vlgmr.msra.gmra.mrb[108].mxu1 %v7386_v45 }
 0x50a   : > { %8232 = vmatprep.mubr.bf16.mxu1 %v7389_v39  ;;  %8201 = vmatpush1.bf16.xpose.msra.mxu1 %v8083_v31 }
 0x50b   : > { %8240 = vmatprep.subr.bf16.mxu1 %v8092_v15 }
 0x515   : > { %8233 = vmatmul.mubr.bf16.vlgmr.msra.gmra.mrb[108].mxu1 %v7388_v61 }
 0x516   : > { %8272 = vmatprep.mubr.bf16.mxu1 %v7391_v25  ;;  %8241 = vmatpush1.bf16.xpose.msra.mxu1 %v8090_v52 }
 0x517   : > { %8280 = vmatprep.subr.bf16.mxu1 %v8108_v38 }
 0x521   : > { %8273 = vmatmul.mubr.bf16.vlgmr.msra.gmra.mrb[108].mxu1 %v7390_v20 }
 0x522   : > { %8312 = vmatprep.mubr.bf16.mxu1 %v7393_v9  ;;  %8281 = vmatpush1.bf16.xpose.msra.mxu1 %v8100_v8 }
 0x523   : > { %9053 = vmatprep.subr.bf16.mxu1 %v9417_v19 }
 0x52d   : > { %8313 = vmatmul.mubr.bf16.vlgmr.msra.gmra.mrb[108].mxu1 %v7392_v3 }
 0x52e   : > { %9054 = vmatpush3.bf16.xpose.msra.mxu1 %v8107_v0  ;;  %9055 = vmatprep.mubr.msk.bf16.mxu1 %vm9418_vm1, %v9417_v19 }
 0x539   : > { %9056 = vmatmul.mubr.bf16.vlgmr.msra.gmra.mrb[108].mxu1 %v7394_v16 }
 0x60c   : > { %v8354_v41 = vpop.f32.mrb[108].mxu1 }
 0x60d   : > { %v9067_v34 = vadd.f32 %v8917_v2, %v8354_v41  ;;  %v9057_v60 = vpop.f32.mrb[109].mxu1 }
 0x60e   : > { %v8357_v42 = vpop.f32.mrb[110].mxu1 }
 0x60f   : > { %v8924_v24 = vmul.f32 -1.442695, %v9067_v34  ;;  %v9058_v6 = vpop.f32.mrb[111].mxu1 }
 0x611   : > { %9365 = vpow2.f32 %v8924_v24 }
 0x61b   : > { %v9366_v18 = vpop.eup %9365 }
 0x61c   : > { %v8364_v19 = vadd.f32 1.0, %v9366_v18 }
 0x61e   : > { %9367 = vrcp.f32 %v8364_v19 }
 0x628   : > { %v9368_v55 = vpop.eup %9367 }
 0x629   : > { %8368 = vst.msk [vmem:[%s249_s13] sm:$0xff] %vm8367_vm2, %v9368_v55 }
 0x62a PF: > { %s16_s21 = sadd.s32 1, %s9396_s21  }
 0x62b   : > { %p13_p4 = scmp.ge.s32.totalorder %s16_s21, 4  }
 0x62d   :  { %15 = sbr.rel (!%p13_p4) target bundleno = 1 (0x1), region = 92 }

</bundles_post_ra>
